<compile_context>
chip_gen: v7x
topology: tpu7x:2x2x1
jax: 0.10.0
libtpu: 0.0.40
codegen_flags: <defaults>
</compile_context>

<pallas_src>
import jax
import jax.numpy as jnp
from jax.experimental import pallas as pl
from jax.experimental.pallas import tpu as pltpu

_VMEM_LIMIT = 48 * 1024 * 1024


def _layer(w, h, a, b, relu=True):
    """(Cout,Cin)@(Cin,tn) bf16 matmul with f32 accumulation, folded-BN scale/bias."""
    y = jnp.dot(w, h, preferred_element_type=jnp.float32)
    y = y * a + b
    return jnp.maximum(y, 0.0) if relu else y


# ----------------------------------------------------------------------------- kernels

def stn_point_kernel(x_ref, w1, a1, b1, w2, a2, b2, w3, a3, b3, gf_ref):
    """STN per-point MLP (D->64->128->1024) + running max over point tiles.

    grid = (B, N//tile_n); gf_ref block is resident across the point-tile axis.
    """
    x = x_ref[0]                                                      # (D, tn) bf16
    h = _layer(w1[...], x, a1[...], b1[...]).astype(jnp.bfloat16)     # (64, tn)
    h = _layer(w2[...], h, a2[...], b2[...]).astype(jnp.bfloat16)     # (128, tn)
    h = _layer(w3[...], h, a3[...], b3[...])                          # (1024, tn) f32
    partial = jnp.max(h, axis=-1, keepdims=True)                      # (1024, 1)

    @pl.when(pl.program_id(1) == 0)
    def _():
        gf_ref[...] = partial[None]

    @pl.when(pl.program_id(1) != 0)
    def _():
        gf_ref[...] = jnp.maximum(gf_ref[...], partial[None])


def feat_kernel(x_ref, w1p_ref, a1, b1, w2, a2, b2, w3, a3, b3,
                w4, a4, b4, w5, a5, b5, pf_ref, gf_ref):
    """Main trunk with input transform folded into conv1 (per-batch W1').

    conv1..conv5 chain on one point tile, pointfeat written lane-dense,
    global feature accumulated via running max across point tiles.
    """
    x = x_ref[0]                                                      # (D, tn) bf16
    h = _layer(w1p_ref[0], x, a1[...], b1[...]).astype(jnp.bfloat16)  # (64, tn)
    h = _layer(w2[...], h, a2[...], b2[...]).astype(jnp.bfloat16)     # (64, tn)
    pf_ref[0] = h                                                     # pointfeat tile
    h = _layer(w3[...], h, a3[...], b3[...]).astype(jnp.bfloat16)     # (64, tn)
    h = _layer(w4[...], h, a4[...], b4[...]).astype(jnp.bfloat16)     # (128, tn)
    h = _layer(w5[...], h, a5[...], b5[...], relu=False)              # (1024, tn) f32
    partial = jnp.max(h, axis=-1, keepdims=True)                      # (1024, 1)

    @pl.when(pl.program_id(1) == 0)
    def _():
        gf_ref[...] = partial[None]

    @pl.when(pl.program_id(1) != 0)
    def _():
        gf_ref[...] = jnp.maximum(gf_ref[...], partial[None])


def concat_kernel(gf_ref, pf_ref, out_ref):
    """Fused broadcast + concat: out[:, :1024, :] = gfeat, out[:, 1024:, :] = pointfeat."""
    g = gf_ref[0]                                                     # (1024, 1) f32
    pf = pf_ref[0]                                                    # (64, tn) bf16
    tn = pf.shape[-1]
    out_ref[0, :1024, :] = jnp.broadcast_to(g, (1024, tn))
    out_ref[0, 1024:, :] = pf.astype(out_ref.dtype)


# ----------------------------------------------------------------------------- wrapper

def _const_spec(shape):
    nd = len(shape)
    return pl.BlockSpec(shape, lambda b, n, _nd=nd: (0,) * _nd)


def _pick_tile_n(N):
    for t in (1024, 512, 256, 128):
        if N % t == 0:
            return t
    return N   # small / ragged N: single tile


def pointnetfeat_forward(x_ncw, p):
    """x_ncw: (B, D, N) float32 (PyTorch NCW). Returns (out (B,1088,N), trans (B,D,D), None)."""
    B, D, N = x_ncw.shape
    x = x_ncw.astype(jnp.bfloat16)                        # already points-on-lanes
    tn = _pick_tile_n(N)
    NT = N // tn

    cp_red = pltpu.CompilerParams(dimension_semantics=("parallel", "arbitrary"),
                                  vmem_limit_bytes=_VMEM_LIMIT)
    cp_par = pltpu.CompilerParams(dimension_semantics=("parallel", "parallel"),
                                  vmem_limit_bytes=_VMEM_LIMIT)

    # --- STN: per-point MLP + max pool -> pooled (B, 1024, 1) ---
    stn_ins = [x,
               p['stn_w1'], p['stn_a1'], p['stn_b1'],
               p['stn_w2'], p['stn_a2'], p['stn_b2'],
               p['stn_w3'], p['stn_a3'], p['stn_b3']]
    pooled = pl.pallas_call(
        stn_point_kernel,
        out_shape=jax.ShapeDtypeStruct((B, 1024, 1), jnp.float32),
        grid=(B, NT),
        in_specs=[pl.BlockSpec((1, D, tn), lambda b, n: (b, 0, n))]
                 + [_const_spec(a.shape) for a in stn_ins[1:]],
        out_specs=pl.BlockSpec((1, 1024, 1), lambda b, n: (b, 0, 0)),
        compiler_params=cp_red,
    )(*stn_ins)

    # --- STN FC head (tiny, plain XLA) + identity -> trans; fold trans into conv1 ---
    g = pooled.reshape(B, 1024)
    h = jnp.maximum(g @ p['stn_w4'] * p['stn_a4'] + p['stn_b4'], 0.0)
    h = jnp.maximum(h @ p['stn_w5'] * p['stn_a5'] + p['stn_b5'], 0.0)
    eye = jnp.eye(D, dtype=jnp.float32).reshape(1, D * D)
    trans = (h @ p['stn_w6'] + p['stn_b6'] + eye).reshape(B, D, D)
    # W1'[b] = W1 @ trans[b]^T  (removes the separate bmm pass over the points)
    w1p = jnp.einsum('oe,bde->bod', p['w1'].astype(jnp.float32), trans).astype(jnp.bfloat16)

    # --- trunk: conv1..conv5 + max pool ---
    feat_ins = [x, w1p,
                p['a1'], p['b1'],
                p['w2'], p['a2'], p['b2'],
                p['w3'], p['a3'], p['b3'],
                p['w4'], p['a4'], p['b4'],
                p['w5'], p['a5'], p['b5']]
    pointfeat, gfeat = pl.pallas_call(
        feat_kernel,
        out_shape=(jax.ShapeDtypeStruct((B, 64, N), jnp.bfloat16),
                   jax.ShapeDtypeStruct((B, 1024, 1), jnp.float32)),
        grid=(B, NT),
        in_specs=[pl.BlockSpec((1, D, tn), lambda b, n: (b, 0, n)),
                  pl.BlockSpec((1, 64, D), lambda b, n: (b, 0, 0))]
                 + [_const_spec(a.shape) for a in feat_ins[2:]],
        out_specs=(pl.BlockSpec((1, 64, tn), lambda b, n: (b, 0, n)),
                   pl.BlockSpec((1, 1024, 1), lambda b, n: (b, 0, 0))),
        compiler_params=cp_red,
    )(*feat_ins)

    # --- fused broadcast + concat -> (B, 1088, N), written once, lane-dense ---
    out = pl.pallas_call(
        concat_kernel,
        out_shape=jax.ShapeDtypeStruct((B, 1024 + 64, N), jnp.float32),
        grid=(B, NT),
        in_specs=[pl.BlockSpec((1, 1024, 1), lambda b, n: (b, 0, 0)),
                  pl.BlockSpec((1, 64, tn), lambda b, n: (b, 0, n))],
        out_specs=pl.BlockSpec((1, 1088, tn), lambda b, n: (b, 0, n)),
        compiler_params=cp_par,
    )(gfeat, pointfeat)

    return out, trans, None                              # trans_feat is None


# ----------------------------------------------------------------------------- params

def _fold_bn_conv(key, cin, cout):
    """Conv1d(k=1) weight in (Cout, Cin) bf16 + eval-mode BN folded into (Cout,1) scale/bias."""
    ks = jax.random.split(key, 6)
    W = 0.1 * jax.random.normal(ks[0], (cout, cin), jnp.float32)
    b = 0.1 * jax.random.normal(ks[1], (cout,), jnp.float32)
    gamma = 1.0 + 0.1 * jax.random.normal(ks[2], (cout,), jnp.float32)
    beta = 0.1 * jax.random.normal(ks[3], (cout,), jnp.float32)
    mean = 0.1 * jax.random.normal(ks[4], (cout,), jnp.float32)
    var = 0.5 + jnp.abs(jax.random.normal(ks[5], (cout,), jnp.float32))
    s = gamma * jax.lax.rsqrt(var + 1e-5)
    bias = (b - mean) * s + beta
    return W.astype(jnp.bfloat16), s.reshape(cout, 1), bias.reshape(cout, 1)


def _fold_bn_fc(key, cin, cout, with_bn=True):
    """Linear weight in (Cin, Cout) f32 (XLA path) + folded BN scale/bias as (1, Cout)."""
    ks = jax.random.split(key, 6)
    W = 0.1 * jax.random.normal(ks[0], (cin, cout), jnp.float32)
    b = 0.1 * jax.random.normal(ks[1], (cout,), jnp.float32)
    if not with_bn:
        return W, jnp.ones((1, cout), jnp.float32), b.reshape(1, cout)
    gamma = 1.0 + 0.1 * jax.random.normal(ks[2], (cout,), jnp.float32)
    beta = 0.1 * jax.random.normal(ks[3], (cout,), jnp.float32)
    mean = 0.1 * jax.random.normal(ks[4], (cout,), jnp.float32)
    var = 0.5 + jnp.abs(jax.random.normal(ks[5], (cout,), jnp.float32))
    s = gamma * jax.lax.rsqrt(var + 1e-5)
    bias = (b - mean) * s + beta
    return W, s.reshape(1, cout), bias.reshape(1, cout)


def init_params(key, D):
    ks = jax.random.split(key, 11)
    p = {}
    p['stn_w1'], p['stn_a1'], p['stn_b1'] = _fold_bn_conv(ks[0], D, 64)
    p['stn_w2'], p['stn_a2'], p['stn_b2'] = _fold_bn_conv(ks[1], 64, 128)
    p['stn_w3'], p['stn_a3'], p['stn_b3'] = _fold_bn_conv(ks[2], 128, 1024)
    p['stn_w4'], p['stn_a4'], p['stn_b4'] = _fold_bn_fc(ks[3], 1024, 512)
    p['stn_w5'], p['stn_a5'], p['stn_b5'] = _fold_bn_fc(ks[4], 512, 256)
    p['stn_w6'], _,           p['stn_b6'] = _fold_bn_fc(ks[5], 256, D * D, with_bn=False)
    p['w1'], p['a1'], p['b1'] = _fold_bn_conv(ks[6], D, 64)
    p['w2'], p['a2'], p['b2'] = _fold_bn_conv(ks[7], 64, 64)
    p['w3'], p['a3'], p['b3'] = _fold_bn_conv(ks[8], 64, 64)
    p['w4'], p['a4'], p['b4'] = _fold_bn_conv(ks[9], 64, 128)
    p['w5'], p['a5'], p['b5'] = _fold_bn_conv(ks[10], 128, 1024)
    return p


# ----------------------------------------------------------------------------- reference
# Plain-jnp reference that mirrors the kernel's numerical recipe (bf16 activations,
# f32 matmul accumulation, f32 pooling / FC head) so the check is tight.

def reference_forward(x_ncw, p):
    B, D, N = x_ncw.shape
    x = x_ncw.astype(jnp.bfloat16)                        # (B, D, N)

    def conv(h_bf, w, a, b, relu=True):
        y = jnp.einsum('oc,bcn->bon', w, h_bf, preferred_element_type=jnp.float32)
        y = y * a[None] + b[None]
        return jnp.maximum(y, 0.0) if relu else y

    h = conv(x, p['stn_w1'], p['stn_a1'], p['stn_b1']).astype(jnp.bfloat16)
    h = conv(h, p['stn_w2'], p['stn_a2'], p['stn_b2']).astype(jnp.bfloat16)
    h = conv(h, p['stn_w3'], p['stn_a3'], p['stn_b3'])
    g = jnp.max(h, axis=2)                                # (B, 1024) f32
    h = jnp.maximum(g @ p['stn_w4'] * p['stn_a4'] + p['stn_b4'], 0.0)
    h = jnp.maximum(h @ p['stn_w5'] * p['stn_a5'] + p['stn_b5'], 0.0)
    eye = jnp.eye(D, dtype=jnp.float32).reshape(1, D * D)
    trans = (h @ p['stn_w6'] + p['stn_b6'] + eye).reshape(B, D, D)

    w1p = jnp.einsum('oe,bde->bod', p['w1'].astype(jnp.float32), trans).astype(jnp.bfloat16)
    h = jnp.einsum('bod,bdn->bon', w1p, x, preferred_element_type=jnp.float32)
    h = jnp.maximum(h * p['a1'][None] + p['b1'][None], 0.0).astype(jnp.bfloat16)
    h = conv(h, p['w2'], p['a2'], p['b2']).astype(jnp.bfloat16)
    pf = h
    h = conv(h, p['w3'], p['a3'], p['b3']).astype(jnp.bfloat16)
    h = conv(h, p['w4'], p['a4'], p['b4']).astype(jnp.bfloat16)
    h = conv(h, p['w5'], p['a5'], p['b5'], relu=False)
    g = jnp.max(h, axis=2)                                # (B, 1024) f32
    out = jnp.concatenate([jnp.broadcast_to(g[:, :, None], (B, 1024, N)),
                           pf.astype(jnp.float32)], axis=1)
    return out, trans


# ----------------------------------------------------------------------------- main

if __name__ == "__main__":
    B, D, N = 2, 4, 16                      # batch, input_dim (channels), n_pts
    key = jax.random.PRNGKey(0)
    kx, kp = jax.random.split(key)
    x = jax.random.normal(kx, (B, D, N), jnp.float32)     # PyTorch NCW input layout
    params = init_params(kp, D)

    out, trans, trans_feat = jax.jit(pointnetfeat_forward)(x, params)
    out = jax.block_until_ready(out)
    trans = jax.block_until_ready(trans)

    assert out.shape == (B, 1024 + 64, N)
    assert trans.shape == (B, D, D)
    assert trans_feat is None

    ref_out, ref_trans = reference_forward(x, params)
    assert jnp.allclose(out, ref_out, rtol=1e-2, atol=1e-2)
    assert jnp.allclose(trans, ref_trans, rtol=1e-2, atol=1e-2)

    print("KERNEL_OK")
</pallas_src>

<mosaic_0001>
module attributes {stable_mosaic.version = 11 : i64} {
  func.func @stn_point_kernel(%arg0: i32, %arg1: i32, %arg2: memref<1x4x16xbf16, #tpu.memory_space<vmem>>, %arg3: memref<64x4xbf16, #tpu.memory_space<vmem>>, %arg4: memref<64x1xf32, #tpu.memory_space<vmem>>, %arg5: memref<64x1xf32, #tpu.memory_space<vmem>>, %arg6: memref<128x64xbf16, #tpu.memory_space<vmem>>, %arg7: memref<128x1xf32, #tpu.memory_space<vmem>>, %arg8: memref<128x1xf32, #tpu.memory_space<vmem>>, %arg9: memref<1024x128xbf16, #tpu.memory_space<vmem>>, %arg10: memref<1024x1xf32, #tpu.memory_space<vmem>>, %arg11: memref<1024x1xf32, #tpu.memory_space<vmem>>, %arg12: memref<1x1024x1xf32, #tpu.memory_space<vmem>>) attributes {dimension_semantics = [#tpu.dimension_semantics<parallel>, #tpu.dimension_semantics<arbitrary>], iteration_bounds = array<i64: 2, 1>, scalar_prefetch = 0 : i64, scratch_operands = 0 : i64, tpu.core_type = #tpu.core_type<tc>, window_params = [{transform_indices = @transform_0, window_bounds = array<i64: 1, 4, 16>}, {pipeline_mode = #tpu.pipeline_mode<synchronous>, transform_indices = @transform_1, window_bounds = array<i64: 64, 4>}, {pipeline_mode = #tpu.pipeline_mode<synchronous>, transform_indices = @transform_2, window_bounds = array<i64: 64, 1>}, {pipeline_mode = #tpu.pipeline_mode<synchronous>, transform_indices = @transform_3, window_bounds = array<i64: 64, 1>}, {pipeline_mode = #tpu.pipeline_mode<synchronous>, transform_indices = @transform_4, window_bounds = array<i64: 128, 64>}, {pipeline_mode = #tpu.pipeline_mode<synchronous>, transform_indices = @transform_5, window_bounds = array<i64: 128, 1>}, {pipeline_mode = #tpu.pipeline_mode<synchronous>, transform_indices = @transform_6, window_bounds = array<i64: 128, 1>}, {pipeline_mode = #tpu.pipeline_mode<synchronous>, transform_indices = @transform_7, window_bounds = array<i64: 1024, 128>}, {pipeline_mode = #tpu.pipeline_mode<synchronous>, transform_indices = @transform_8, window_bounds = array<i64: 1024, 1>}, {pipeline_mode = #tpu.pipeline_mode<synchronous>, transform_indices = @transform_9, window_bounds = array<i64: 1024, 1>}, {transform_indices = @transform_10, window_bounds = array<i64: 1, 1024, 1>}]} {
    %c0 = arith.constant 0 : index
    %c0_0 = arith.constant 0 : index
    %c0_1 = arith.constant 0 : index
    %0 = vector.load %arg2[%c0, %c0_0, %c0_1] : memref<1x4x16xbf16, #tpu.memory_space<vmem>>, vector<1x4x16xbf16>
    %1 = vector.shape_cast %0 : vector<1x4x16xbf16> to vector<4x16xbf16>
    %c0_2 = arith.constant 0 : index
    %c0_3 = arith.constant 0 : index
    %2 = vector.load %arg3[%c0_2, %c0_3] : memref<64x4xbf16, #tpu.memory_space<vmem>>, vector<64x4xbf16>
    %c0_4 = arith.constant 0 : index
    %c0_5 = arith.constant 0 : index
    %3 = vector.load %arg4[%c0_4, %c0_5] : memref<64x1xf32, #tpu.memory_space<vmem>>, vector<64x1xf32>
    %c0_6 = arith.constant 0 : index
    %c0_7 = arith.constant 0 : index
    %4 = vector.load %arg5[%c0_6, %c0_7] : memref<64x1xf32, #tpu.memory_space<vmem>>, vector<64x1xf32>
    %cst = arith.constant dense<0.000000e+00> : vector<64x16xf32>
    %5 = tpu.matmul %2, %1, %cst {dimension_numbers = #tpu.dot_dimension_numbers<[1], [0], [0], [1], [0, 0, 1, 1], [], []>} : vector<64x4xbf16>, vector<4x16xbf16>, vector<64x16xf32> -> vector<64x16xf32>
    %6 = vector.broadcast %3 : vector<64x1xf32> to vector<64x16xf32>
    %7 = arith.mulf %5, %6 : vector<64x16xf32>
    %8 = vector.broadcast %4 : vector<64x1xf32> to vector<64x16xf32>
    %9 = arith.addf %7, %8 : vector<64x16xf32>
    %cst_8 = arith.constant 0.000000e+00 : f32
    %10 = vector.broadcast %cst_8 : f32 to vector<64x16xf32>
    %11 = arith.maximumf %9, %10 : vector<64x16xf32>
    %12 = arith.truncf %11 : vector<64x16xf32> to vector<64x16xbf16>
    %c0_9 = arith.constant 0 : index
    %c0_10 = arith.constant 0 : index
    %13 = vector.load %arg6[%c0_9, %c0_10] : memref<128x64xbf16, #tpu.memory_space<vmem>>, vector<128x64xbf16>
    %c0_11 = arith.constant 0 : index
    %c0_12 = arith.constant 0 : index
    %14 = vector.load %arg7[%c0_11, %c0_12] : memref<128x1xf32, #tpu.memory_space<vmem>>, vector<128x1xf32>
    %c0_13 = arith.constant 0 : index
    %c0_14 = arith.constant 0 : index
    %15 = vector.load %arg8[%c0_13, %c0_14] : memref<128x1xf32, #tpu.memory_space<vmem>>, vector<128x1xf32>
    %cst_15 = arith.constant dense<0.000000e+00> : vector<128x16xf32>
    %16 = tpu.matmul %13, %12, %cst_15 {dimension_numbers = #tpu.dot_dimension_numbers<[1], [0], [0], [1], [0, 0, 1, 1], [], []>} : vector<128x64xbf16>, vector<64x16xbf16>, vector<128x16xf32> -> vector<128x16xf32>
    %17 = vector.broadcast %14 : vector<128x1xf32> to vector<128x16xf32>
    %18 = arith.mulf %16, %17 : vector<128x16xf32>
    %19 = vector.broadcast %15 : vector<128x1xf32> to vector<128x16xf32>
    %20 = arith.addf %18, %19 : vector<128x16xf32>
    %cst_16 = arith.constant 0.000000e+00 : f32
    %21 = vector.broadcast %cst_16 : f32 to vector<128x16xf32>
    %22 = arith.maximumf %20, %21 : vector<128x16xf32>
    %23 = arith.truncf %22 : vector<128x16xf32> to vector<128x16xbf16>
    %c0_17 = arith.constant 0 : index
    %c0_18 = arith.constant 0 : index
    %24 = vector.load %arg9[%c0_17, %c0_18] : memref<1024x128xbf16, #tpu.memory_space<vmem>>, vector<1024x128xbf16>
    %c0_19 = arith.constant 0 : index
    %c0_20 = arith.constant 0 : index
    %25 = vector.load %arg10[%c0_19, %c0_20] : memref<1024x1xf32, #tpu.memory_space<vmem>>, vector<1024x1xf32>
    %c0_21 = arith.constant 0 : index
    %c0_22 = arith.constant 0 : index
    %26 = vector.load %arg11[%c0_21, %c0_22] : memref<1024x1xf32, #tpu.memory_space<vmem>>, vector<1024x1xf32>
    %cst_23 = arith.constant dense<0.000000e+00> : vector<1024x16xf32>
    %27 = tpu.matmul %24, %23, %cst_23 {dimension_numbers = #tpu.dot_dimension_numbers<[1], [0], [0], [1], [0, 0, 1, 1], [], []>} : vector<1024x128xbf16>, vector<128x16xbf16>, vector<1024x16xf32> -> vector<1024x16xf32>
    %28 = vector.broadcast %25 : vector<1024x1xf32> to vector<1024x16xf32>
    %29 = arith.mulf %27, %28 : vector<1024x16xf32>
    %30 = vector.broadcast %26 : vector<1024x1xf32> to vector<1024x16xf32>
    %31 = arith.addf %29, %30 : vector<1024x16xf32>
    %cst_24 = arith.constant 0.000000e+00 : f32
    %32 = vector.broadcast %cst_24 : f32 to vector<1024x16xf32>
    %33 = arith.maximumf %31, %32 : vector<1024x16xf32>
    %cst_25 = arith.constant dense<0xFF800000> : vector<1024xf32>
    %34 = vector.multi_reduction <maximumf>, %33, %cst_25 [1] : vector<1024x16xf32> to vector<1024xf32>
    %35 = vector.shape_cast %34 : vector<1024xf32> to vector<1024x1xf32>
    %c0_i32 = arith.constant 0 : i32
    %36 = arith.cmpi eq, %arg1, %c0_i32 : i32
    %37 = arith.extui %36 : i1 to i32
    %c0_i32_26 = arith.constant 0 : i32
    %38 = arith.cmpi ne, %37, %c0_i32_26 : i32
    scf.if %38 {
      %42 = vector.shape_cast %35 : vector<1024x1xf32> to vector<1x1024x1xf32>
      %c0_29 = arith.constant 0 : index
      %c0_30 = arith.constant 0 : index
      %c0_31 = arith.constant 0 : index
      %43 = vector.load %arg12[%c0_29, %c0_30, %c0_31] : memref<1x1024x1xf32, #tpu.memory_space<vmem>>, vector<1x1024x1xf32>
      tpu.vector_store %arg12[%c0_29, %c0_30, %c0_31], %42 {strides = array<i32>} : memref<1x1024x1xf32, #tpu.memory_space<vmem>>, vector<1x1024x1xf32>,
    } else {
    }
    %c0_i32_27 = arith.constant 0 : i32
    %39 = arith.cmpi ne, %arg1, %c0_i32_27 : i32
    %40 = arith.extui %39 : i1 to i32
    %c0_i32_28 = arith.constant 0 : i32
    %41 = arith.cmpi ne, %40, %c0_i32_28 : i32
    scf.if %41 {
      %c0_29 = arith.constant 0 : index
      %c0_30 = arith.constant 0 : index
      %c0_31 = arith.constant 0 : index
      %42 = vector.load %arg12[%c0_29, %c0_30, %c0_31] : memref<1x1024x1xf32, #tpu.memory_space<vmem>>, vector<1x1024x1xf32>
      %43 = vector.shape_cast %35 : vector<1024x1xf32> to vector<1x1024x1xf32>
      %44 = arith.maximumf %42, %43 : vector<1x1024x1xf32>
      %c0_32 = arith.constant 0 : index
      %c0_33 = arith.constant 0 : index
      %c0_34 = arith.constant 0 : index
      %45 = vector.load %arg12[%c0_32, %c0_33, %c0_34] : memref<1x1024x1xf32, #tpu.memory_space<vmem>>, vector<1x1024x1xf32>
      tpu.vector_store %arg12[%c0_32, %c0_33, %c0_34], %44 {strides = array<i32>} : memref<1x1024x1xf32, #tpu.memory_space<vmem>>, vector<1x1024x1xf32>,
    } else {
    }
    return
  }
  func.func @transform_0(%arg0: i32, %arg1: i32) -> (i32, i32, i32) {
    %c0_i32 = arith.constant 0 : i32
    %c0_i32_0 = arith.constant 0 : i32
    return %arg0, %c0_i32, %arg1 : i32, i32, i32
  }
  func.func @transform_1(%arg0: i32, %arg1: i32) -> (i32, i32) {
    %c0_i32 = arith.constant 0 : i32
    %c0_i32_0 = arith.constant 0 : i32
    %c0_i32_1 = arith.constant 0 : i32
    return %c0_i32, %c0_i32_0 : i32, i32
  }
  func.func @transform_2(%arg0: i32, %arg1: i32) -> (i32, i32) {
    %c0_i32 = arith.constant 0 : i32
    %c0_i32_0 = arith.constant 0 : i32
    %c0_i32_1 = arith.constant 0 : i32
    return %c0_i32, %c0_i32_0 : i32, i32
  }
  func.func @transform_3(%arg0: i32, %arg1: i32) -> (i32, i32) {
    %c0_i32 = arith.constant 0 : i32
    %c0_i32_0 = arith.constant 0 : i32
    %c0_i32_1 = arith.constant 0 : i32
    return %c0_i32, %c0_i32_0 : i32, i32
  }
  func.func @transform_4(%arg0: i32, %arg1: i32) -> (i32, i32) {
    %c0_i32 = arith.constant 0 : i32
    %c0_i32_0 = arith.constant 0 : i32
    %c0_i32_1 = arith.constant 0 : i32
    return %c0_i32, %c0_i32_0 : i32, i32
  }
  func.func @transform_5(%arg0: i32, %arg1: i32) -> (i32, i32) {
    %c0_i32 = arith.constant 0 : i32
    %c0_i32_0 = arith.constant 0 : i32
    %c0_i32_1 = arith.constant 0 : i32
    return %c0_i32, %c0_i32_0 : i32, i32
  }
  func.func @transform_6(%arg0: i32, %arg1: i32) -> (i32, i32) {
    %c0_i32 = arith.constant 0 : i32
    %c0_i32_0 = arith.constant 0 : i32
    %c0_i32_1 = arith.constant 0 : i32
    return %c0_i32, %c0_i32_0 : i32, i32
  }
  func.func @transform_7(%arg0: i32, %arg1: i32) -> (i32, i32) {
    %c0_i32 = arith.constant 0 : i32
    %c0_i32_0 = arith.constant 0 : i32
    %c0_i32_1 = arith.constant 0 : i32
    return %c0_i32, %c0_i32_0 : i32, i32
  }
  func.func @transform_8(%arg0: i32, %arg1: i32) -> (i32, i32) {
    %c0_i32 = arith.constant 0 : i32
    %c0_i32_0 = arith.constant 0 : i32
    %c0_i32_1 = arith.constant 0 : i32
    return %c0_i32, %c0_i32_0 : i32, i32
  }
  func.func @transform_9(%arg0: i32, %arg1: i32) -> (i32, i32) {
    %c0_i32 = arith.constant 0 : i32
    %c0_i32_0 = arith.constant 0 : i32
    %c0_i32_1 = arith.constant 0 : i32
    return %c0_i32, %c0_i32_0 : i32, i32
  }
  func.func @transform_10(%arg0: i32, %arg1: i32) -> (i32, i32, i32) {
    %c0_i32 = arith.constant 0 : i32
    %c0_i32_0 = arith.constant 0 : i32
    %c0_i32_1 = arith.constant 0 : i32
    return %arg0, %c0_i32, %c0_i32_0 : i32, i32, i32
  }
}

module attributes {stable_mosaic.version = 11 : i64} {
  func.func @concat_kernel(%arg0: i32, %arg1: i32, %arg2: memref<1x1024x1xf32, #tpu.memory_space<vmem>>, %arg3: memref<1x64x16xbf16, #tpu.memory_space<vmem>>, %arg4: memref<1x1088x16xf32, #tpu.memory_space<vmem>>) attributes {dimension_semantics = [#tpu.dimension_semantics<parallel>, #tpu.dimension_semantics<parallel>], iteration_bounds = array<i64: 2, 1>, scalar_prefetch = 0 : i64, scratch_operands = 0 : i64, tpu.core_type = #tpu.core_type<tc>, window_params = [{transform_indices = @transform_0, window_bounds = array<i64: 1, 1024, 1>}, {transform_indices = @transform_1, window_bounds = array<i64: 1, 64, 16>}, {transform_indices = @transform_2, window_bounds = array<i64: 1, 1088, 16>}]} {
    %c0 = arith.constant 0 : index
    %c0_0 = arith.constant 0 : index
    %c0_1 = arith.constant 0 : index
    %0 = vector.load %arg2[%c0, %c0_0, %c0_1] : memref<1x1024x1xf32, #tpu.memory_space<vmem>>, vector<1x1024x1xf32>
    %1 = vector.shape_cast %0 : vector<1x1024x1xf32> to vector<1024x1xf32>
    %c0_2 = arith.constant 0 : index
    %c0_3 = arith.constant 0 : index
    %c0_4 = arith.constant 0 : index
    %2 = vector.load %arg3[%c0_2, %c0_3, %c0_4] : memref<1x64x16xbf16, #tpu.memory_space<vmem>>, vector<1x64x16xbf16>
    %3 = vector.shape_cast %2 : vector<1x64x16xbf16> to vector<64x16xbf16>
    %4 = vector.shape_cast %1 : vector<1024x1xf32> to vector<1024x1xf32>
    %5 = vector.broadcast %4 : vector<1024x1xf32> to vector<1024x16xf32>
    %c0_5 = arith.constant 0 : index
    %c0_6 = arith.constant 0 : index
    %c0_7 = arith.constant 0 : index
    %6 = vector.load %arg4[%c0_5, %c0_6, %c0_7] : memref<1x1088x16xf32, #tpu.memory_space<vmem>>, vector<1x1024x16xf32>
    %7 = vector.shape_cast %6 : vector<1x1024x16xf32> to vector<1024x16xf32>
    %8 = vector.shape_cast %5 : vector<1024x16xf32> to vector<1x1024x16xf32>
    tpu.vector_store %arg4[%c0_5, %c0_6, %c0_7], %8 {strides = array<i32>} : memref<1x1088x16xf32, #tpu.memory_space<vmem>>, vector<1x1024x16xf32>,
    %9 = arith.extf %3 : vector<64x16xbf16> to vector<64x16xf32>
    %c0_8 = arith.constant 0 : index
    %c1024 = arith.constant 1024 : index
    %c0_9 = arith.constant 0 : index
    %10 = vector.load %arg4[%c0_8, %c1024, %c0_9] : memref<1x1088x16xf32, #tpu.memory_space<vmem>>, vector<1x64x16xf32>
    %11 = vector.shape_cast %10 : vector<1x64x16xf32> to vector<64x16xf32>
    %12 = vector.shape_cast %9 : vector<64x16xf32> to vector<1x64x16xf32>
    tpu.vector_store %arg4[%c0_8, %c1024, %c0_9], %12 {strides = array<i32>} : memref<1x1088x16xf32, #tpu.memory_space<vmem>>, vector<1x64x16xf32>,
    return
  }
  func.func @transform_0(%arg0: i32, %arg1: i32) -> (i32, i32, i32) {
    %c0_i32 = arith.constant 0 : i32
    %c0_i32_0 = arith.constant 0 : i32
    %c0_i32_1 = arith.constant 0 : i32
    return %arg0, %c0_i32, %c0_i32_0 : i32, i32, i32
  }
  func.func @transform_1(%arg0: i32, %arg1: i32) -> (i32, i32, i32) {
    %c0_i32 = arith.constant 0 : i32
    %c0_i32_0 = arith.constant 0 : i32
    return %arg0, %c0_i32, %arg1 : i32, i32, i32
  }
  func.func @transform_2(%arg0: i32, %arg1: i32) -> (i32, i32, i32) {
    %c0_i32 = arith.constant 0 : i32
    %c0_i32_0 = arith.constant 0 : i32
    return %arg0, %c0_i32, %arg1 : i32, i32, i32
  }
}

module attributes {stable_mosaic.version = 11 : i64} {
  func.func @feat_kernel(%arg0: i32, %arg1: i32, %arg2: memref<1x4x16xbf16, #tpu.memory_space<vmem>>, %arg3: memref<1x64x4xbf16, #tpu.memory_space<vmem>>, %arg4: memref<64x1xf32, #tpu.memory_space<vmem>>, %arg5: memref<64x1xf32, #tpu.memory_space<vmem>>, %arg6: memref<64x64xbf16, #tpu.memory_space<vmem>>, %arg7: memref<64x1xf32, #tpu.memory_space<vmem>>, %arg8: memref<64x1xf32, #tpu.memory_space<vmem>>, %arg9: memref<64x64xbf16, #tpu.memory_space<vmem>>, %arg10: memref<64x1xf32, #tpu.memory_space<vmem>>, %arg11: memref<64x1xf32, #tpu.memory_space<vmem>>, %arg12: memref<128x64xbf16, #tpu.memory_space<vmem>>, %arg13: memref<128x1xf32, #tpu.memory_space<vmem>>, %arg14: memref<128x1xf32, #tpu.memory_space<vmem>>, %arg15: memref<1024x128xbf16, #tpu.memory_space<vmem>>, %arg16: memref<1024x1xf32, #tpu.memory_space<vmem>>, %arg17: memref<1024x1xf32, #tpu.memory_space<vmem>>, %arg18: memref<1x64x16xbf16, #tpu.memory_space<vmem>>, %arg19: memref<1x1024x1xf32, #tpu.memory_space<vmem>>) attributes {dimension_semantics = [#tpu.dimension_semantics<parallel>, #tpu.dimension_semantics<arbitrary>], iteration_bounds = array<i64: 2, 1>, scalar_prefetch = 0 : i64, scratch_operands = 0 : i64, tpu.core_type = #tpu.core_type<tc>, window_params = [{transform_indices = @transform_0, window_bounds = array<i64: 1, 4, 16>}, {transform_indices = @transform_1, window_bounds = array<i64: 1, 64, 4>}, {pipeline_mode = #tpu.pipeline_mode<synchronous>, transform_indices = @transform_2, window_bounds = array<i64: 64, 1>}, {pipeline_mode = #tpu.pipeline_mode<synchronous>, transform_indices = @transform_3, window_bounds = array<i64: 64, 1>}, {pipeline_mode = #tpu.pipeline_mode<synchronous>, transform_indices = @transform_4, window_bounds = array<i64: 64, 64>}, {pipeline_mode = #tpu.pipeline_mode<synchronous>, transform_indices = @transform_5, window_bounds = array<i64: 64, 1>}, {pipeline_mode = #tpu.pipeline_mode<synchronous>, transform_indices = @transform_6, window_bounds = array<i64: 64, 1>}, {pipeline_mode = #tpu.pipeline_mode<synchronous>, transform_indices = @transform_7, window_bounds = array<i64: 64, 64>}, {pipeline_mode = #tpu.pipeline_mode<synchronous>, transform_indices = @transform_8, window_bounds = array<i64: 64, 1>}, {pipeline_mode = #tpu.pipeline_mode<synchronous>, transform_indices = @transform_9, window_bounds = array<i64: 64, 1>}, {pipeline_mode = #tpu.pipeline_mode<synchronous>, transform_indices = @transform_10, window_bounds = array<i64: 128, 64>}, {pipeline_mode = #tpu.pipeline_mode<synchronous>, transform_indices = @transform_11, window_bounds = array<i64: 128, 1>}, {pipeline_mode = #tpu.pipeline_mode<synchronous>, transform_indices = @transform_12, window_bounds = array<i64: 128, 1>}, {pipeline_mode = #tpu.pipeline_mode<synchronous>, transform_indices = @transform_13, window_bounds = array<i64: 1024, 128>}, {pipeline_mode = #tpu.pipeline_mode<synchronous>, transform_indices = @transform_14, window_bounds = array<i64: 1024, 1>}, {pipeline_mode = #tpu.pipeline_mode<synchronous>, transform_indices = @transform_15, window_bounds = array<i64: 1024, 1>}, {transform_indices = @transform_16, window_bounds = array<i64: 1, 64, 16>}, {transform_indices = @transform_17, window_bounds = array<i64: 1, 1024, 1>}]} {
    %c0 = arith.constant 0 : index
    %c0_0 = arith.constant 0 : index
    %c0_1 = arith.constant 0 : index
    %0 = vector.load %arg2[%c0, %c0_0, %c0_1] : memref<1x4x16xbf16, #tpu.memory_space<vmem>>, vector<1x4x16xbf16>
    %1 = vector.shape_cast %0 : vector<1x4x16xbf16> to vector<4x16xbf16>
    %c0_2 = arith.constant 0 : index
    %c0_3 = arith.constant 0 : index
    %c0_4 = arith.constant 0 : index
    %2 = vector.load %arg3[%c0_2, %c0_3, %c0_4] : memref<1x64x4xbf16, #tpu.memory_space<vmem>>, vector<1x64x4xbf16>
    %3 = vector.shape_cast %2 : vector<1x64x4xbf16> to vector<64x4xbf16>
    %c0_5 = arith.constant 0 : index
    %c0_6 = arith.constant 0 : index
    %4 = vector.load %arg4[%c0_5, %c0_6] : memref<64x1xf32, #tpu.memory_space<vmem>>, vector<64x1xf32>
    %c0_7 = arith.constant 0 : index
    %c0_8 = arith.constant 0 : index
    %5 = vector.load %arg5[%c0_7, %c0_8] : memref<64x1xf32, #tpu.memory_space<vmem>>, vector<64x1xf32>
    %cst = arith.constant dense<0.000000e+00> : vector<64x16xf32>
    %6 = tpu.matmul %3, %1, %cst {dimension_numbers = #tpu.dot_dimension_numbers<[1], [0], [0], [1], [0, 0, 1, 1], [], []>} : vector<64x4xbf16>, vector<4x16xbf16>, vector<64x16xf32> -> vector<64x16xf32>
    %7 = vector.broadcast %4 : vector<64x1xf32> to vector<64x16xf32>
    %8 = arith.mulf %6, %7 : vector<64x16xf32>
    %9 = vector.broadcast %5 : vector<64x1xf32> to vector<64x16xf32>
    %10 = arith.addf %8, %9 : vector<64x16xf32>
    %cst_9 = arith.constant 0.000000e+00 : f32
    %11 = vector.broadcast %cst_9 : f32 to vector<64x16xf32>
    %12 = arith.maximumf %10, %11 : vector<64x16xf32>
    %13 = arith.truncf %12 : vector<64x16xf32> to vector<64x16xbf16>
    %c0_10 = arith.constant 0 : index
    %c0_11 = arith.constant 0 : index
    %14 = vector.load %arg6[%c0_10, %c0_11] : memref<64x64xbf16, #tpu.memory_space<vmem>>, vector<64x64xbf16>
    %c0_12 = arith.constant 0 : index
    %c0_13 = arith.constant 0 : index
    %15 = vector.load %arg7[%c0_12, %c0_13] : memref<64x1xf32, #tpu.memory_space<vmem>>, vector<64x1xf32>
    %c0_14 = arith.constant 0 : index
    %c0_15 = arith.constant 0 : index
    %16 = vector.load %arg8[%c0_14, %c0_15] : memref<64x1xf32, #tpu.memory_space<vmem>>, vector<64x1xf32>
    %cst_16 = arith.constant dense<0.000000e+00> : vector<64x16xf32>
    %17 = tpu.matmul %14, %13, %cst_16 {dimension_numbers = #tpu.dot_dimension_numbers<[1], [0], [0], [1], [0, 0, 1, 1], [], []>} : vector<64x64xbf16>, vector<64x16xbf16>, vector<64x16xf32> -> vector<64x16xf32>
    %18 = vector.broadcast %15 : vector<64x1xf32> to vector<64x16xf32>
    %19 = arith.mulf %17, %18 : vector<64x16xf32>
    %20 = vector.broadcast %16 : vector<64x1xf32> to vector<64x16xf32>
    %21 = arith.addf %19, %20 : vector<64x16xf32>
    %cst_17 = arith.constant 0.000000e+00 : f32
    %22 = vector.broadcast %cst_17 : f32 to vector<64x16xf32>
    %23 = arith.maximumf %21, %22 : vector<64x16xf32>
    %24 = arith.truncf %23 : vector<64x16xf32> to vector<64x16xbf16>
    %c0_18 = arith.constant 0 : index
    %c0_19 = arith.constant 0 : index
    %c0_20 = arith.constant 0 : index
    %25 = vector.load %arg18[%c0_18, %c0_19, %c0_20] : memref<1x64x16xbf16, #tpu.memory_space<vmem>>, vector<1x64x16xbf16>
    %26 = vector.shape_cast %25 : vector<1x64x16xbf16> to vector<64x16xbf16>
    %27 = vector.shape_cast %24 : vector<64x16xbf16> to vector<1x64x16xbf16>
    tpu.vector_store %arg18[%c0_18, %c0_19, %c0_20], %27 {strides = array<i32>} : memref<1x64x16xbf16, #tpu.memory_space<vmem>>, vector<1x64x16xbf16>,
    %c0_21 = arith.constant 0 : index
    %c0_22 = arith.constant 0 : index
    %28 = vector.load %arg9[%c0_21, %c0_22] : memref<64x64xbf16, #tpu.memory_space<vmem>>, vector<64x64xbf16>
    %c0_23 = arith.constant 0 : index
    %c0_24 = arith.constant 0 : index
    %29 = vector.load %arg10[%c0_23, %c0_24] : memref<64x1xf32, #tpu.memory_space<vmem>>, vector<64x1xf32>
    %c0_25 = arith.constant 0 : index
    %c0_26 = arith.constant 0 : index
    %30 = vector.load %arg11[%c0_25, %c0_26] : memref<64x1xf32, #tpu.memory_space<vmem>>, vector<64x1xf32>
    %cst_27 = arith.constant dense<0.000000e+00> : vector<64x16xf32>
    %31 = tpu.matmul %28, %24, %cst_27 {dimension_numbers = #tpu.dot_dimension_numbers<[1], [0], [0], [1], [0, 0, 1, 1], [], []>} : vector<64x64xbf16>, vector<64x16xbf16>, vector<64x16xf32> -> vector<64x16xf32>
    %32 = vector.broadcast %29 : vector<64x1xf32> to vector<64x16xf32>
    %33 = arith.mulf %31, %32 : vector<64x16xf32>
    %34 = vector.broadcast %30 : vector<64x1xf32> to vector<64x16xf32>
    %35 = arith.addf %33, %34 : vector<64x16xf32>
    %cst_28 = arith.constant 0.000000e+00 : f32
    %36 = vector.broadcast %cst_28 : f32 to vector<64x16xf32>
    %37 = arith.maximumf %35, %36 : vector<64x16xf32>
    %38 = arith.truncf %37 : vector<64x16xf32> to vector<64x16xbf16>
    %c0_29 = arith.constant 0 : index
    %c0_30 = arith.constant 0 : index
    %39 = vector.load %arg12[%c0_29, %c0_30] : memref<128x64xbf16, #tpu.memory_space<vmem>>, vector<128x64xbf16>
    %c0_31 = arith.constant 0 : index
    %c0_32 = arith.constant 0 : index
    %40 = vector.load %arg13[%c0_31, %c0_32] : memref<128x1xf32, #tpu.memory_space<vmem>>, vector<128x1xf32>
    %c0_33 = arith.constant 0 : index
    %c0_34 = arith.constant 0 : index
    %41 = vector.load %arg14[%c0_33, %c0_34] : memref<128x1xf32, #tpu.memory_space<vmem>>, vector<128x1xf32>
    %cst_35 = arith.constant dense<0.000000e+00> : vector<128x16xf32>
    %42 = tpu.matmul %39, %38, %cst_35 {dimension_numbers = #tpu.dot_dimension_numbers<[1], [0], [0], [1], [0, 0, 1, 1], [], []>} : vector<128x64xbf16>, vector<64x16xbf16>, vector<128x16xf32> -> vector<128x16xf32>
    %43 = vector.broadcast %40 : vector<128x1xf32> to vector<128x16xf32>
    %44 = arith.mulf %42, %43 : vector<128x16xf32>
    %45 = vector.broadcast %41 : vector<128x1xf32> to vector<128x16xf32>
    %46 = arith.addf %44, %45 : vector<128x16xf32>
    %cst_36 = arith.constant 0.000000e+00 : f32
    %47 = vector.broadcast %cst_36 : f32 to vector<128x16xf32>
    %48 = arith.maximumf %46, %47 : vector<128x16xf32>
    %49 = arith.truncf %48 : vector<128x16xf32> to vector<128x16xbf16>
    %c0_37 = arith.constant 0 : index
    %c0_38 = arith.constant 0 : index
    %50 = vector.load %arg15[%c0_37, %c0_38] : memref<1024x128xbf16, #tpu.memory_space<vmem>>, vector<1024x128xbf16>
    %c0_39 = arith.constant 0 : index
    %c0_40 = arith.constant 0 : index
    %51 = vector.load %arg16[%c0_39, %c0_40] : memref<1024x1xf32, #tpu.memory_space<vmem>>, vector<1024x1xf32>
    %c0_41 = arith.constant 0 : index
    %c0_42 = arith.constant 0 : index
    %52 = vector.load %arg17[%c0_41, %c0_42] : memref<1024x1xf32, #tpu.memory_space<vmem>>, vector<1024x1xf32>
    %cst_43 = arith.constant dense<0.000000e+00> : vector<1024x16xf32>
    %53 = tpu.matmul %50, %49, %cst_43 {dimension_numbers = #tpu.dot_dimension_numbers<[1], [0], [0], [1], [0, 0, 1, 1], [], []>} : vector<1024x128xbf16>, vector<128x16xbf16>, vector<1024x16xf32> -> vector<1024x16xf32>
    %54 = vector.broadcast %51 : vector<1024x1xf32> to vector<1024x16xf32>
    %55 = arith.mulf %53, %54 : vector<1024x16xf32>
    %56 = vector.broadcast %52 : vector<1024x1xf32> to vector<1024x16xf32>
    %57 = arith.addf %55, %56 : vector<1024x16xf32>
    %cst_44 = arith.constant dense<0xFF800000> : vector<1024xf32>
    %58 = vector.multi_reduction <maximumf>, %57, %cst_44 [1] : vector<1024x16xf32> to vector<1024xf32>
    %59 = vector.shape_cast %58 : vector<1024xf32> to vector<1024x1xf32>
    %c0_i32 = arith.constant 0 : i32
    %60 = arith.cmpi eq, %arg1, %c0_i32 : i32
    %61 = arith.extui %60 : i1 to i32
    %c0_i32_45 = arith.constant 0 : i32
    %62 = arith.cmpi ne, %61, %c0_i32_45 : i32
    scf.if %62 {
      %66 = vector.shape_cast %59 : vector<1024x1xf32> to vector<1x1024x1xf32>
      %c0_48 = arith.constant 0 : index
      %c0_49 = arith.constant 0 : index
      %c0_50 = arith.constant 0 : index
      %67 = vector.load %arg19[%c0_48, %c0_49, %c0_50] : memref<1x1024x1xf32, #tpu.memory_space<vmem>>, vector<1x1024x1xf32>
      tpu.vector_store %arg19[%c0_48, %c0_49, %c0_50], %66 {strides = array<i32>} : memref<1x1024x1xf32, #tpu.memory_space<vmem>>, vector<1x1024x1xf32>,
    } else {
    }
    %c0_i32_46 = arith.constant 0 : i32
    %63 = arith.cmpi ne, %arg1, %c0_i32_46 : i32
    %64 = arith.extui %63 : i1 to i32
    %c0_i32_47 = arith.constant 0 : i32
    %65 = arith.cmpi ne, %64, %c0_i32_47 : i32
    scf.if %65 {
      %c0_48 = arith.constant 0 : index
      %c0_49 = arith.constant 0 : index
      %c0_50 = arith.constant 0 : index
      %66 = vector.load %arg19[%c0_48, %c0_49, %c0_50] : memref<1x1024x1xf32, #tpu.memory_space<vmem>>, vector<1x1024x1xf32>
      %67 = vector.shape_cast %59 : vector<1024x1xf32> to vector<1x1024x1xf32>
      %68 = arith.maximumf %66, %67 : vector<1x1024x1xf32>
      %c0_51 = arith.constant 0 : index
      %c0_52 = arith.constant 0 : index
      %c0_53 = arith.constant 0 : index
      %69 = vector.load %arg19[%c0_51, %c0_52, %c0_53] : memref<1x1024x1xf32, #tpu.memory_space<vmem>>, vector<1x1024x1xf32>
      tpu.vector_store %arg19[%c0_51, %c0_52, %c0_53], %68 {strides = array<i32>} : memref<1x1024x1xf32, #tpu.memory_space<vmem>>, vector<1x1024x1xf32>,
    } else {
    }
    return
  }
  func.func @transform_0(%arg0: i32, %arg1: i32) -> (i32, i32, i32) {
    %c0_i32 = arith.constant 0 : i32
    %c0_i32_0 = arith.constant 0 : i32
    return %arg0, %c0_i32, %arg1 : i32, i32, i32
  }
  func.func @transform_1(%arg0: i32, %arg1: i32) -> (i32, i32, i32) {
    %c0_i32 = arith.constant 0 : i32
    %c0_i32_0 = arith.constant 0 : i32
    %c0_i32_1 = arith.constant 0 : i32
    return %arg0, %c0_i32, %c0_i32_0 : i32, i32, i32
  }
  func.func @transform_2(%arg0: i32, %arg1: i32) -> (i32, i32) {
    %c0_i32 = arith.constant 0 : i32
    %c0_i32_0 = arith.constant 0 : i32
    %c0_i32_1 = arith.constant 0 : i32
    return %c0_i32, %c0_i32_0 : i32, i32
  }
  func.func @transform_3(%arg0: i32, %arg1: i32) -> (i32, i32) {
    %c0_i32 = arith.constant 0 : i32
    %c0_i32_0 = arith.constant 0 : i32
    %c0_i32_1 = arith.constant 0 : i32
    return %c0_i32, %c0_i32_0 : i32, i32
  }
  func.func @transform_4(%arg0: i32, %arg1: i32) -> (i32, i32) {
    %c0_i32 = arith.constant 0 : i32
    %c0_i32_0 = arith.constant 0 : i32
    %c0_i32_1 = arith.constant 0 : i32
    return %c0_i32, %c0_i32_0 : i32, i32
  }
  func.func @transform_5(%arg0: i32, %arg1: i32) -> (i32, i32) {
    %c0_i32 = arith.constant 0 : i32
    %c0_i32_0 = arith.constant 0 : i32
    %c0_i32_1 = arith.constant 0 : i32
    return %c0_i32, %c0_i32_0 : i32, i32
  }
  func.func @transform_6(%arg0: i32, %arg1: i32) -> (i32, i32) {
    %c0_i32 = arith.constant 0 : i32
    %c0_i32_0 = arith.constant 0 : i32
    %c0_i32_1 = arith.constant 0 : i32
    return %c0_i32, %c0_i32_0 : i32, i32
  }
  func.func @transform_7(%arg0: i32, %arg1: i32) -> (i32, i32) {
    %c0_i32 = arith.constant 0 : i32
    %c0_i32_0 = arith.constant 0 : i32
    %c0_i32_1 = arith.constant 0 : i32
    return %c0_i32, %c0_i32_0 : i32, i32
  }
  func.func @transform_8(%arg0: i32, %arg1: i32) -> (i32, i32) {
    %c0_i32 = arith.constant 0 : i32
    %c0_i32_0 = arith.constant 0 : i32
    %c0_i32_1 = arith.constant 0 : i32
    return %c0_i32, %c0_i32_0 : i32, i32
  }
  func.func @transform_9(%arg0: i32, %arg1: i32) -> (i32, i32) {
    %c0_i32 = arith.constant 0 : i32
    %c0_i32_0 = arith.constant 0 : i32
    %c0_i32_1 = arith.constant 0 : i32
    return %c0_i32, %c0_i32_0 : i32, i32
  }
  func.func @transform_10(%arg0: i32, %arg1: i32) -> (i32, i32) {
    %c0_i32 = arith.constant 0 : i32
    %c0_i32_0 = arith.constant 0 : i32
    %c0_i32_1 = arith.constant 0 : i32
    return %c0_i32, %c0_i32_0 : i32, i32
  }
  func.func @transform_11(%arg0: i32, %arg1: i32) -> (i32, i32) {
    %c0_i32 = arith.constant 0 : i32
    %c0_i32_0 = arith.constant 0 : i32
    %c0_i32_1 = arith.constant 0 : i32
    return %c0_i32, %c0_i32_0 : i32, i32
  }
  func.func @transform_12(%arg0: i32, %arg1: i32) -> (i32, i32) {
    %c0_i32 = arith.constant 0 : i32
    %c0_i32_0 = arith.constant 0 : i32
    %c0_i32_1 = arith.constant 0 : i32
    return %c0_i32, %c0_i32_0 : i32, i32
  }
  func.func @transform_13(%arg0: i32, %arg1: i32) -> (i32, i32) {
    %c0_i32 = arith.constant 0 : i32
    %c0_i32_0 = arith.constant 0 : i32
    %c0_i32_1 = arith.constant 0 : i32
    return %c0_i32, %c0_i32_0 : i32, i32
  }
  func.func @transform_14(%arg0: i32, %arg1: i32) -> (i32, i32) {
    %c0_i32 = arith.constant 0 : i32
    %c0_i32_0 = arith.constant 0 : i32
    %c0_i32_1 = arith.constant 0 : i32
    return %c0_i32, %c0_i32_0 : i32, i32
  }
  func.func @transform_15(%arg0: i32, %arg1: i32) -> (i32, i32) {
    %c0_i32 = arith.constant 0 : i32
    %c0_i32_0 = arith.constant 0 : i32
    %c0_i32_1 = arith.constant 0 : i32
    return %c0_i32, %c0_i32_0 : i32, i32
  }
  func.func @transform_16(%arg0: i32, %arg1: i32) -> (i32, i32, i32) {
    %c0_i32 = arith.constant 0 : i32
    %c0_i32_0 = arith.constant 0 : i32
    return %arg0, %c0_i32, %arg1 : i32, i32, i32
  }
  func.func @transform_17(%arg0: i32, %arg1: i32) -> (i32, i32, i32) {
    %c0_i32 = arith.constant 0 : i32
    %c0_i32_0 = arith.constant 0 : i32
    %c0_i32_1 = arith.constant 0 : i32
    return %arg0, %c0_i32, %c0_i32_0 : i32, i32, i32
  }
}

</mosaic_0001>

<bundles_post_ra>
// kernel: pointnetfeat_forward.5
= control target key start
LH: loop header
LB: loop body
LE: loop exit
PB: predicated region body
PF: predicated region fallthrough
CT: control target
= control target key end

     0   :  { %s1312_s9 = smov 0   ;;  %s1314_s10 = smov 0   ;;  %s1752_s0 = inlined_call_operand.vmem [shape: f32[2,1024,1], index: 0, kind: input, shape index: {}]   ;;  %s1753_s1 = inlined_call_operand.vmem [shape: bf16[2,64,16], index: 1, kind: input, shape index: {}]   ;;  %s1754_s2 = inlined_call_operand.vmem [shape: f32[2,1088,16], index: 2, kind: output, shape index: {}]  }
   0x1   :  { %s1316_s11 = smov 0  }
   0x2 LB: > { %s24_s12 = sadd.s32 1, %s1290_s10  ;;  %p1215_p0 = scmp.ge.s32.totalorder %s1294_s11, 1  ;;  %s1294_s11 = sphi %s1316_s11, %s12_s11   ;;  %s1290_s10 = sphi %s1314_s10, %s1756_s10   ;;  %s1286_s9 = sphi %s1312_s9, %s1755_s9  }
   0x3   : > { %p26_p1 = scmp.ge.s32.totalorder %s24_s12, 2  ;;  %p141_p2 = scmp.lt.s32.totalorder %s1294_s11, 3 }
   0x5   : > { %s1758_s12 = smov (%p26_p1, %s24_s12), 0  ;;  %p142_p3 = pnand %p1215_p0, %p141_p2 }
   0x6   : > { %p174_p4 = scmp.lt.s32.totalorder (!%p142_p3), %s1286_s9, 1  ;;  %v1296_v0 = vmov (!%p142_p3), 0   ;;  %vm971_vm0 = vcmask (!%p142_p3), 130048  }
   0x7   : > { %145 = sbr.rel (%p142_p3) target bundleno = 400 (0x190), region = 28  ;;  %1271 = vset.pattern.permute.xlu1 (!%p142_p3), %v1296_v0  ;;  %1270 = vset.pattern.permute.xlu0 (!%p142_p3), %v1296_v0 }
   0xe   : > { %s1760_s9 = smov (!%p174_p4, %s1286_s9), 1 }
   0xf   : > { %s1223_s13 = sshll.u32 %s1760_s9, 10  ;;  %s1224_s14 = sshll.u32 %s1760_s9, 5 }
  0x10   : > { %s1333_s17 = scalar_lea.vmem %s1752_s0, %s1223_s13  ;;  %s186_s20 = scalar_lea.vmem %s1753_s1, %s1224_s14 }
  0x11   : > { %s1244_s21 = smul.u32 1088, %s1760_s9  ;;  %v197_v1 = vld [vmem:[%s1333_s17 + $0x10] sm:$0xff]  ;;  %v1226_v2 = vld [vmem:[%s186_s20] sm:$0xff]   ;;  %v1241_v3 = vld [vmem:[%s186_s20 + $0x8] sm:$0xff]  }
  0x12   : > { %v1227_v4 = vunpack.c.l.bf16 %v1226_v2  ;;  %v1228_v5 = vunpack.c.h.bf16 %v1226_v2  ;;  %v1231_v6 = vunpack.c.l.bf16 %v1241_v3  ;;  %v1232_v7 = vunpack.c.h.bf16 %v1241_v3  ;;  %v1242_v8 = vld [vmem:[%s186_s20 + $0x10] sm:$0xff]   ;;  %v1243_v9 = vld [vmem:[%s186_s20 + $0x18] sm:$0xff]   ;;  %343 = vperm.xlu1 %1271, %v197_v1   ;;  %v195_v10 = vld [vmem:[%s1333_s17] sm:$0xff] }
  0x13   : > { %s1343_s24 = scalar_lea.vmem %s1754_s2, %s1244_s21  ;;  %v1235_v11 = vunpack.c.l.bf16 %v1242_v8  ;;  %v1236_v12 = vunpack.c.h.bf16 %v1242_v8  ;;  %v1239_v13 = vunpack.c.l.bf16 %v1243_v9  ;;  %v1240_v14 = vunpack.c.h.bf16 %v1243_v9  ;;  %333 = vperm.xlu0 %1270, %v195_v10   ;;  %v198_v15 = vld [vmem:[%s1333_s17 + $0x18] sm:$0xff]  ;;  %v196_v16 = vld [vmem:[%s1333_s17 + $0x8] sm:$0xff]  ;;  %v199_v18 = vld [vmem:[%s1333_s17 + $0x20] sm:$0xff] }
  0x14   : > { %1108 = vst.msk [vmem:[%s1343_s24 + $0x400] sm:$0xff] %vm971_vm0, %v1227_v4  ;;  %1109 = vst.msk [vmem:[%s1343_s24 + $0x408] sm:$0xff] %vm971_vm0, %v1228_v5  ;;  %v200_v17 = vld [vmem:[%s1333_s17 + $0x28] sm:$0xff]  ;;  %v202_v19 = vld [vmem:[%s1333_s17 + $0x38] sm:$0xff] }
  0x15   : > { %1110 = vst.msk [vmem:[%s1343_s24 + $0x410] sm:$0xff] %vm971_vm0, %v1231_v6  ;;  %1111 = vst.msk [vmem:[%s1343_s24 + $0x418] sm:$0xff] %vm971_vm0, %v1232_v7  ;;  %v201_v20 = vld [vmem:[%s1333_s17 + $0x30] sm:$0xff]  ;;  %v204_v21 = vld [vmem:[%s1333_s17 + $0x48] sm:$0xff] }
  0x16   : > { %1112 = vst.msk [vmem:[%s1343_s24 + $0x420] sm:$0xff] %vm971_vm0, %v1235_v11  ;;  %1113 = vst.msk [vmem:[%s1343_s24 + $0x428] sm:$0xff] %vm971_vm0, %v1236_v12  ;;  %348 = vperm.xlu1 %1271, %v198_v15   ;;  %v203_v22 = vld [vmem:[%s1333_s17 + $0x40] sm:$0xff]  ;;  %v206_v23 = vld [vmem:[%s1333_s17 + $0x58] sm:$0xff] }
  0x17   : > { %1114 = vst.msk [vmem:[%s1343_s24 + $0x430] sm:$0xff] %vm971_vm0, %v1239_v13  ;;  %1115 = vst.msk [vmem:[%s1343_s24 + $0x438] sm:$0xff] %vm971_vm0, %v1240_v14  ;;  %338 = vperm.xlu0 %1270, %v196_v16   ;;  %v205_v24 = vld [vmem:[%s1333_s17 + $0x50] sm:$0xff]  ;;  %v208_v25 = vld [vmem:[%s1333_s17 + $0x68] sm:$0xff] }
  0x18   : > { %v207_v26 = vld [vmem:[%s1333_s17 + $0x60] sm:$0xff]  ;;  %v210_v27 = vld [vmem:[%s1333_s17 + $0x78] sm:$0xff]  ;;  %v209_v28 = vld [vmem:[%s1333_s17 + $0x70] sm:$0xff] }
  0x19   : > { %v212_v29 = vld [vmem:[%s1333_s17 + $0x88] sm:$0xff]  ;;  %v211_v30 = vld [vmem:[%s1333_s17 + $0x80] sm:$0xff]  ;;  %v214_v31 = vld [vmem:[%s1333_s17 + $0x98] sm:$0xff] }
  0x1a   : > { %358 = vperm.xlu1 %1271, %v200_v17   ;;  %v213_v32 = vld [vmem:[%s1333_s17 + $0x90] sm:$0xff]  ;;  %v216_v33 = vld [vmem:[%s1333_s17 + $0xa8] sm:$0xff]  ;;  %v215_v34 = vld [vmem:[%s1333_s17 + $0xa0] sm:$0xff] }
  0x1b   : > { %353 = vperm.xlu0 %1270, %v199_v18   ;;  %v218_v35 = vld [vmem:[%s1333_s17 + $0xb8] sm:$0xff]  ;;  %v217_v36 = vld [vmem:[%s1333_s17 + $0xb0] sm:$0xff]  ;;  %v220_v37 = vld [vmem:[%s1333_s17 + $0xc8] sm:$0xff] }
  0x1c   : > { %v219_v38 = vld [vmem:[%s1333_s17 + $0xc0] sm:$0xff]  ;;  %v222_v39 = vld [vmem:[%s1333_s17 + $0xd8] sm:$0xff]  ;;  %v221_v40 = vld [vmem:[%s1333_s17 + $0xd0] sm:$0xff] }
  0x1d   : > { %v224_v41 = vld [vmem:[%s1333_s17 + $0xe8] sm:$0xff]  ;;  %v223_v42 = vld [vmem:[%s1333_s17 + $0xe0] sm:$0xff]  ;;  %v226_v43 = vld [vmem:[%s1333_s17 + $0xf8] sm:$0xff] }
  0x1e   : > { %368 = vperm.xlu1 %1271, %v202_v19   ;;  %v225_v44 = vld [vmem:[%s1333_s17 + $0xf0] sm:$0xff]  ;;  %v228_v45 = vld [vmem:[%s1333_s17 + $0x108] sm:$0xff]  ;;  %v227_v46 = vld [vmem:[%s1333_s17 + $0x100] sm:$0xff] }
  0x1f   : > { %363 = vperm.xlu0 %1270, %v201_v20   ;;  %v230_v47 = vld [vmem:[%s1333_s17 + $0x118] sm:$0xff]  ;;  %v229_v48 = vld [vmem:[%s1333_s17 + $0x110] sm:$0xff]  ;;  %v232_v49 = vld [vmem:[%s1333_s17 + $0x128] sm:$0xff] }
  0x20   : > { %v231_v50 = vld [vmem:[%s1333_s17 + $0x120] sm:$0xff]  ;;  %v234_v51 = vld [vmem:[%s1333_s17 + $0x138] sm:$0xff]  ;;  %v233_v52 = vld [vmem:[%s1333_s17 + $0x130] sm:$0xff] }
  0x21   : > { %v236_v53 = vld [vmem:[%s1333_s17 + $0x148] sm:$0xff]  ;;  %v235_v54 = vld [vmem:[%s1333_s17 + $0x140] sm:$0xff]  ;;  %v238_v55 = vld [vmem:[%s1333_s17 + $0x158] sm:$0xff] }
  0x22   : > { %378 = vperm.xlu1 %1271, %v204_v21   ;;  %v237_v56 = vld [vmem:[%s1333_s17 + $0x150] sm:$0xff]  ;;  %v240_v57 = vld [vmem:[%s1333_s17 + $0x168] sm:$0xff]  ;;  %v239_v58 = vld [vmem:[%s1333_s17 + $0x160] sm:$0xff] }
  0x23   : > { %373 = vperm.xlu0 %1270, %v203_v22   ;;  %v242_v59 = vld [vmem:[%s1333_s17 + $0x178] sm:$0xff]  ;;  %v241_v60 = vld [vmem:[%s1333_s17 + $0x170] sm:$0xff]  ;;  %v244_v61 = vld [vmem:[%s1333_s17 + $0x188] sm:$0xff] }
  0x24   : > { %v243_v62 = vld [vmem:[%s1333_s17 + $0x180] sm:$0xff]  ;;  %v246_v63 = vld [vmem:[%s1333_s17 + $0x198] sm:$0xff]  ;;  %v245_v0 = vld [vmem:[%s1333_s17 + $0x190] sm:$0xff] }
  0x25   : > { %v248_v1 = vld [vmem:[%s1333_s17 + $0x1a8] sm:$0xff]  ;;  %v247_v2 = vld [vmem:[%s1333_s17 + $0x1a0] sm:$0xff]  ;;  %v250_v3 = vld [vmem:[%s1333_s17 + $0x1b8] sm:$0xff] }
  0x26   : > { %388 = vperm.xlu1 %1271, %v206_v23   ;;  %v249_v4 = vld [vmem:[%s1333_s17 + $0x1b0] sm:$0xff]  ;;  %v252_v5 = vld [vmem:[%s1333_s17 + $0x1c8] sm:$0xff]  ;;  %v251_v6 = vld [vmem:[%s1333_s17 + $0x1c0] sm:$0xff] }
  0x27   : > { %383 = vperm.xlu0 %1270, %v205_v24   ;;  %v254_v7 = vld [vmem:[%s1333_s17 + $0x1d8] sm:$0xff]  ;;  %v253_v8 = vld [vmem:[%s1333_s17 + $0x1d0] sm:$0xff]  ;;  %v256_v9 = vld [vmem:[%s1333_s17 + $0x1e8] sm:$0xff] }
  0x28   : > { %v255_v10 = vld [vmem:[%s1333_s17 + $0x1e0] sm:$0xff]  ;;  %v258_v11 = vld [vmem:[%s1333_s17 + $0x1f8] sm:$0xff]  ;;  %v257_v12 = vld [vmem:[%s1333_s17 + $0x1f0] sm:$0xff] }
  0x29   : > { %v260_v13 = vld [vmem:[%s1333_s17 + $0x208] sm:$0xff]  ;;  %v259_v14 = vld [vmem:[%s1333_s17 + $0x200] sm:$0xff]  ;;  %v262_v17 = vld [vmem:[%s1333_s17 + $0x218] sm:$0xff] }
  0x2a   : > { %398 = vperm.xlu1 %1271, %v208_v25   ;;  %v261_v18 = vld [vmem:[%s1333_s17 + $0x210] sm:$0xff]  ;;  %v264_v21 = vld [vmem:[%s1333_s17 + $0x228] sm:$0xff]  ;;  %v263_v22 = vld [vmem:[%s1333_s17 + $0x220] sm:$0xff] }
  0x2b   : > { %393 = vperm.xlu0 %1270, %v207_v26   ;;  %v266_v25 = vld [vmem:[%s1333_s17 + $0x238] sm:$0xff]  ;;  %v265_v26 = vld [vmem:[%s1333_s17 + $0x230] sm:$0xff] }
  0x2e   : > { %408 = vperm.xlu1 %1271, %v210_v27  }
  0x2f   : > { %403 = vperm.xlu0 %1270, %v209_v28  }
  0x32   : > { %418 = vperm.xlu1 %1271, %v212_v29   ;;  %v268_v29 = vld [vmem:[%s1333_s17 + $0x248] sm:$0xff] }
  0x33   : > { %413 = vperm.xlu0 %1270, %v211_v30   ;;  %v267_v30 = vld [vmem:[%s1333_s17 + $0x240] sm:$0xff] }
  0x36   : > { %428 = vperm.xlu1 %1271, %v214_v31  }
  0x37   : > { %423 = vperm.xlu0 %1270, %v213_v32  }
  0x3a   : > { %438 = vperm.xlu1 %1271, %v216_v33   ;;  %v270_v33 = vld [vmem:[%s1333_s17 + $0x258] sm:$0xff] }
  0x3b   : > { %433 = vperm.xlu0 %1270, %v215_v34   ;;  %v269_v34 = vld [vmem:[%s1333_s17 + $0x250] sm:$0xff] }
  0x3e   : > { %448 = vperm.xlu1 %1271, %v218_v35  }
  0x3f   : > { %443 = vperm.xlu0 %1270, %v217_v36  }
  0x42   : > { %458 = vperm.xlu1 %1271, %v220_v37   ;;  %v272_v37 = vld [vmem:[%s1333_s17 + $0x268] sm:$0xff] }
  0x43   : > { %453 = vperm.xlu0 %1270, %v219_v38   ;;  %v271_v38 = vld [vmem:[%s1333_s17 + $0x260] sm:$0xff] }
  0x46   : > { %468 = vperm.xlu1 %1271, %v222_v39  }
  0x47   : > { %463 = vperm.xlu0 %1270, %v221_v40  }
  0x4a   : > { %478 = vperm.xlu1 %1271, %v224_v41   ;;  %v274_v41 = vld [vmem:[%s1333_s17 + $0x278] sm:$0xff] }
  0x4b   : > { %473 = vperm.xlu0 %1270, %v223_v42   ;;  %v273_v42 = vld [vmem:[%s1333_s17 + $0x270] sm:$0xff] }
  0x4e   : > { %488 = vperm.xlu1 %1271, %v226_v43  }
  0x4f   : > { %483 = vperm.xlu0 %1270, %v225_v44  }
  0x52   : > { %498 = vperm.xlu1 %1271, %v228_v45   ;;  %v276_v45 = vld [vmem:[%s1333_s17 + $0x288] sm:$0xff] }
  0x53   : > { %493 = vperm.xlu0 %1270, %v227_v46   ;;  %v275_v46 = vld [vmem:[%s1333_s17 + $0x280] sm:$0xff] }
  0x56   : > { %508 = vperm.xlu1 %1271, %v230_v47  }
  0x57   : > { %503 = vperm.xlu0 %1270, %v229_v48  }
  0x5a   : > { %518 = vperm.xlu1 %1271, %v232_v49   ;;  %v278_v49 = vld [vmem:[%s1333_s17 + $0x298] sm:$0xff] }
  0x5b   : > { %513 = vperm.xlu0 %1270, %v231_v50   ;;  %v277_v50 = vld [vmem:[%s1333_s17 + $0x290] sm:$0xff] }
  0x5e   : > { %528 = vperm.xlu1 %1271, %v234_v51  }
  0x5f   : > { %523 = vperm.xlu0 %1270, %v233_v52  }
  0x62   : > { %538 = vperm.xlu1 %1271, %v236_v53   ;;  %v280_v53 = vld [vmem:[%s1333_s17 + $0x2a8] sm:$0xff] }
  0x63   : > { %533 = vperm.xlu0 %1270, %v235_v54   ;;  %v279_v54 = vld [vmem:[%s1333_s17 + $0x2a0] sm:$0xff] }
  0x66   : > { %548 = vperm.xlu1 %1271, %v238_v55  }
  0x67   : > { %543 = vperm.xlu0 %1270, %v237_v56  }
  0x6a   : > { %558 = vperm.xlu1 %1271, %v240_v57   ;;  %v282_v57 = vld [vmem:[%s1333_s17 + $0x2b8] sm:$0xff] }
  0x6b   : > { %553 = vperm.xlu0 %1270, %v239_v58   ;;  %v281_v58 = vld [vmem:[%s1333_s17 + $0x2b0] sm:$0xff] }
  0x6e   : > { %568 = vperm.xlu1 %1271, %v242_v59  }
  0x6f   : > { %563 = vperm.xlu0 %1270, %v241_v60  }
  0x72   : > { %578 = vperm.xlu1 %1271, %v244_v61   ;;  %v284_v61 = vld [vmem:[%s1333_s17 + $0x2c8] sm:$0xff] }
  0x73   : > { %573 = vperm.xlu0 %1270, %v243_v62   ;;  %v283_v62 = vld [vmem:[%s1333_s17 + $0x2c0] sm:$0xff] }
  0x76   : > { %588 = vperm.xlu1 %1271, %v246_v63  }
  0x77   : > { %583 = vperm.xlu0 %1270, %v245_v0  }
  0x7a   : > { %598 = vperm.xlu1 %1271, %v248_v1   ;;  %v286_v1 = vld [vmem:[%s1333_s17 + $0x2d8] sm:$0xff] }
  0x7b   : > { %593 = vperm.xlu0 %1270, %v247_v2   ;;  %v285_v2 = vld [vmem:[%s1333_s17 + $0x2d0] sm:$0xff] }
  0x7e   : > { %608 = vperm.xlu1 %1271, %v250_v3  }
  0x7f   : > { %603 = vperm.xlu0 %1270, %v249_v4  }
  0x82   : > { %618 = vperm.xlu1 %1271, %v252_v5   ;;  %v288_v5 = vld [vmem:[%s1333_s17 + $0x2e8] sm:$0xff] }
  0x83   : > { %613 = vperm.xlu0 %1270, %v251_v6   ;;  %v287_v6 = vld [vmem:[%s1333_s17 + $0x2e0] sm:$0xff] }
  0x86   : > { %628 = vperm.xlu1 %1271, %v254_v7  }
  0x87   : > { %623 = vperm.xlu0 %1270, %v253_v8  }
  0x8a   : > { %638 = vperm.xlu1 %1271, %v256_v9   ;;  %v290_v9 = vld [vmem:[%s1333_s17 + $0x2f8] sm:$0xff] }
  0x8b   : > { %633 = vperm.xlu0 %1270, %v255_v10   ;;  %v289_v10 = vld [vmem:[%s1333_s17 + $0x2f0] sm:$0xff] }
  0x8e   : > { %648 = vperm.xlu1 %1271, %v258_v11  }
  0x8f   : > { %643 = vperm.xlu0 %1270, %v257_v12  }
  0x91   : > { %v344_v15 = vpop.permute.xlu1 %343 }
  0x92   : > { %974 = vst.msk [vmem:[%s1343_s24 + $0x10] sm:$0xff] %vm971_vm0, %v344_v15  ;;  %v334_v16 = vpop.permute.xlu0 %333  ;;  %658 = vperm.xlu1 %1271, %v260_v13   ;;  %v292_v13 = vld [vmem:[%s1333_s17 + $0x308] sm:$0xff] }
  0x93   : > { %972 = vst.msk [vmem:[%s1343_s24] sm:$0xff] %vm971_vm0, %v334_v16  ;;  %653 = vperm.xlu0 %1270, %v259_v14   ;;  %v291_v14 = vld [vmem:[%s1333_s17 + $0x300] sm:$0xff] }
  0x95   : > { %v349_v19 = vpop.permute.xlu1 %348 }
  0x96   : > { %975 = vst.msk [vmem:[%s1343_s24 + $0x18] sm:$0xff] %vm971_vm0, %v349_v19  ;;  %v339_v20 = vpop.permute.xlu0 %338  ;;  %668 = vperm.xlu1 %1271, %v262_v17   ;;  %v294_v17 = vld [vmem:[%s1333_s17 + $0x318] sm:$0xff] }
  0x97   : > { %973 = vst.msk [vmem:[%s1343_s24 + $0x8] sm:$0xff] %vm971_vm0, %v339_v20  ;;  %663 = vperm.xlu0 %1270, %v261_v18   ;;  %v293_v18 = vld [vmem:[%s1333_s17 + $0x310] sm:$0xff] }
  0x99   : > { %v359_v23 = vpop.permute.xlu1 %358 }
  0x9a   : > { %977 = vst.msk [vmem:[%s1343_s24 + $0x28] sm:$0xff] %vm971_vm0, %v359_v23  ;;  %v354_v24 = vpop.permute.xlu0 %353  ;;  %678 = vperm.xlu1 %1271, %v264_v21   ;;  %v296_v21 = vld [vmem:[%s1333_s17 + $0x328] sm:$0xff] }
  0x9b   : > { %976 = vst.msk [vmem:[%s1343_s24 + $0x20] sm:$0xff] %vm971_vm0, %v354_v24  ;;  %673 = vperm.xlu0 %1270, %v263_v22   ;;  %v295_v22 = vld [vmem:[%s1333_s17 + $0x320] sm:$0xff] }
  0x9d   : > { %v369_v27 = vpop.permute.xlu1 %368 }
  0x9e   : > { %979 = vst.msk [vmem:[%s1343_s24 + $0x38] sm:$0xff] %vm971_vm0, %v369_v27  ;;  %v364_v28 = vpop.permute.xlu0 %363  ;;  %688 = vperm.xlu1 %1271, %v266_v25   ;;  %v298_v25 = vld [vmem:[%s1333_s17 + $0x338] sm:$0xff] }
  0x9f   : > { %978 = vst.msk [vmem:[%s1343_s24 + $0x30] sm:$0xff] %vm971_vm0, %v364_v28  ;;  %683 = vperm.xlu0 %1270, %v265_v26   ;;  %v297_v26 = vld [vmem:[%s1333_s17 + $0x330] sm:$0xff] }
  0xa1   : > { %v379_v31 = vpop.permute.xlu1 %378 }
  0xa2   : > { %981 = vst.msk [vmem:[%s1343_s24 + $0x48] sm:$0xff] %vm971_vm0, %v379_v31  ;;  %v374_v32 = vpop.permute.xlu0 %373  ;;  %698 = vperm.xlu1 %1271, %v268_v29   ;;  %v300_v29 = vld [vmem:[%s1333_s17 + $0x348] sm:$0xff] }
  0xa3   : > { %980 = vst.msk [vmem:[%s1343_s24 + $0x40] sm:$0xff] %vm971_vm0, %v374_v32  ;;  %693 = vperm.xlu0 %1270, %v267_v30   ;;  %v299_v30 = vld [vmem:[%s1333_s17 + $0x340] sm:$0xff] }
  0xa5   : > { %v389_v35 = vpop.permute.xlu1 %388 }
  0xa6   : > { %983 = vst.msk [vmem:[%s1343_s24 + $0x58] sm:$0xff] %vm971_vm0, %v389_v35  ;;  %v384_v36 = vpop.permute.xlu0 %383  ;;  %708 = vperm.xlu1 %1271, %v270_v33   ;;  %v302_v33 = vld [vmem:[%s1333_s17 + $0x358] sm:$0xff] }
  0xa7   : > { %982 = vst.msk [vmem:[%s1343_s24 + $0x50] sm:$0xff] %vm971_vm0, %v384_v36  ;;  %703 = vperm.xlu0 %1270, %v269_v34   ;;  %v301_v34 = vld [vmem:[%s1333_s17 + $0x350] sm:$0xff] }
  0xa9   : > { %v399_v39 = vpop.permute.xlu1 %398 }
  0xaa   : > { %985 = vst.msk [vmem:[%s1343_s24 + $0x68] sm:$0xff] %vm971_vm0, %v399_v39  ;;  %v394_v40 = vpop.permute.xlu0 %393  ;;  %718 = vperm.xlu1 %1271, %v272_v37   ;;  %v304_v37 = vld [vmem:[%s1333_s17 + $0x368] sm:$0xff] }
  0xab   : > { %984 = vst.msk [vmem:[%s1343_s24 + $0x60] sm:$0xff] %vm971_vm0, %v394_v40  ;;  %713 = vperm.xlu0 %1270, %v271_v38   ;;  %v303_v38 = vld [vmem:[%s1333_s17 + $0x360] sm:$0xff] }
  0xad   : > { %v409_v43 = vpop.permute.xlu1 %408 }
  0xae   : > { %987 = vst.msk [vmem:[%s1343_s24 + $0x78] sm:$0xff] %vm971_vm0, %v409_v43  ;;  %v404_v44 = vpop.permute.xlu0 %403  ;;  %728 = vperm.xlu1 %1271, %v274_v41   ;;  %v306_v41 = vld [vmem:[%s1333_s17 + $0x378] sm:$0xff] }
  0xaf   : > { %986 = vst.msk [vmem:[%s1343_s24 + $0x70] sm:$0xff] %vm971_vm0, %v404_v44  ;;  %723 = vperm.xlu0 %1270, %v273_v42   ;;  %v305_v42 = vld [vmem:[%s1333_s17 + $0x370] sm:$0xff] }
  0xb1   : > { %v419_v47 = vpop.permute.xlu1 %418 }
  0xb2   : > { %989 = vst.msk [vmem:[%s1343_s24 + $0x88] sm:$0xff] %vm971_vm0, %v419_v47  ;;  %v414_v48 = vpop.permute.xlu0 %413  ;;  %738 = vperm.xlu1 %1271, %v276_v45   ;;  %v308_v45 = vld [vmem:[%s1333_s17 + $0x388] sm:$0xff] }
  0xb3   : > { %988 = vst.msk [vmem:[%s1343_s24 + $0x80] sm:$0xff] %vm971_vm0, %v414_v48  ;;  %733 = vperm.xlu0 %1270, %v275_v46   ;;  %v307_v46 = vld [vmem:[%s1333_s17 + $0x380] sm:$0xff] }
  0xb5   : > { %v429_v51 = vpop.permute.xlu1 %428 }
  0xb6   : > { %991 = vst.msk [vmem:[%s1343_s24 + $0x98] sm:$0xff] %vm971_vm0, %v429_v51  ;;  %v424_v52 = vpop.permute.xlu0 %423  ;;  %748 = vperm.xlu1 %1271, %v278_v49   ;;  %v310_v49 = vld [vmem:[%s1333_s17 + $0x398] sm:$0xff] }
  0xb7   : > { %990 = vst.msk [vmem:[%s1343_s24 + $0x90] sm:$0xff] %vm971_vm0, %v424_v52  ;;  %743 = vperm.xlu0 %1270, %v277_v50   ;;  %v309_v50 = vld [vmem:[%s1333_s17 + $0x390] sm:$0xff] }
  0xb9   : > { %v439_v55 = vpop.permute.xlu1 %438 }
  0xba   : > { %993 = vst.msk [vmem:[%s1343_s24 + $0xa8] sm:$0xff] %vm971_vm0, %v439_v55  ;;  %v434_v56 = vpop.permute.xlu0 %433  ;;  %758 = vperm.xlu1 %1271, %v280_v53   ;;  %v312_v53 = vld [vmem:[%s1333_s17 + $0x3a8] sm:$0xff] }
  0xbb   : > { %992 = vst.msk [vmem:[%s1343_s24 + $0xa0] sm:$0xff] %vm971_vm0, %v434_v56  ;;  %753 = vperm.xlu0 %1270, %v279_v54   ;;  %v311_v54 = vld [vmem:[%s1333_s17 + $0x3a0] sm:$0xff] }
  0xbd   : > { %v449_v59 = vpop.permute.xlu1 %448 }
  0xbe   : > { %995 = vst.msk [vmem:[%s1343_s24 + $0xb8] sm:$0xff] %vm971_vm0, %v449_v59  ;;  %v444_v60 = vpop.permute.xlu0 %443  ;;  %768 = vperm.xlu1 %1271, %v282_v57   ;;  %v314_v57 = vld [vmem:[%s1333_s17 + $0x3b8] sm:$0xff] }
  0xbf   : > { %994 = vst.msk [vmem:[%s1343_s24 + $0xb0] sm:$0xff] %vm971_vm0, %v444_v60  ;;  %763 = vperm.xlu0 %1270, %v281_v58   ;;  %v313_v58 = vld [vmem:[%s1333_s17 + $0x3b0] sm:$0xff] }
  0xc1   : > { %v459_v63 = vpop.permute.xlu1 %458 }
  0xc2   : > { %997 = vst.msk [vmem:[%s1343_s24 + $0xc8] sm:$0xff] %vm971_vm0, %v459_v63  ;;  %v454_v0 = vpop.permute.xlu0 %453  ;;  %778 = vperm.xlu1 %1271, %v284_v61   ;;  %v316_v61 = vld [vmem:[%s1333_s17 + $0x3c8] sm:$0xff] }
  0xc3   : > { %996 = vst.msk [vmem:[%s1343_s24 + $0xc0] sm:$0xff] %vm971_vm0, %v454_v0  ;;  %773 = vperm.xlu0 %1270, %v283_v62   ;;  %v315_v62 = vld [vmem:[%s1333_s17 + $0x3c0] sm:$0xff] }
  0xc5   : > { %v469_v3 = vpop.permute.xlu1 %468 }
  0xc6   : > { %999 = vst.msk [vmem:[%s1343_s24 + $0xd8] sm:$0xff] %vm971_vm0, %v469_v3  ;;  %v464_v4 = vpop.permute.xlu0 %463  ;;  %788 = vperm.xlu1 %1271, %v286_v1   ;;  %v318_v1 = vld [vmem:[%s1333_s17 + $0x3d8] sm:$0xff] }
  0xc7   : > { %998 = vst.msk [vmem:[%s1343_s24 + $0xd0] sm:$0xff] %vm971_vm0, %v464_v4  ;;  %783 = vperm.xlu0 %1270, %v285_v2   ;;  %v317_v2 = vld [vmem:[%s1333_s17 + $0x3d0] sm:$0xff] }
  0xc9   : > { %v479_v7 = vpop.permute.xlu1 %478 }
  0xca   : > { %1001 = vst.msk [vmem:[%s1343_s24 + $0xe8] sm:$0xff] %vm971_vm0, %v479_v7  ;;  %v474_v8 = vpop.permute.xlu0 %473  ;;  %798 = vperm.xlu1 %1271, %v288_v5   ;;  %v320_v5 = vld [vmem:[%s1333_s17 + $0x3e8] sm:$0xff] }
  0xcb   : > { %1000 = vst.msk [vmem:[%s1343_s24 + $0xe0] sm:$0xff] %vm971_vm0, %v474_v8  ;;  %793 = vperm.xlu0 %1270, %v287_v6   ;;  %v319_v6 = vld [vmem:[%s1333_s17 + $0x3e0] sm:$0xff] }
  0xcd   : > { %v489_v11 = vpop.permute.xlu1 %488 }
  0xce   : > { %1003 = vst.msk [vmem:[%s1343_s24 + $0xf8] sm:$0xff] %vm971_vm0, %v489_v11  ;;  %v484_v12 = vpop.permute.xlu0 %483  ;;  %808 = vperm.xlu1 %1271, %v290_v9   ;;  %v322_v9 = vld [vmem:[%s1333_s17 + $0x3f8] sm:$0xff] }
  0xcf   : > { %1002 = vst.msk [vmem:[%s1343_s24 + $0xf0] sm:$0xff] %vm971_vm0, %v484_v12  ;;  %803 = vperm.xlu0 %1270, %v289_v10   ;;  %v321_v10 = vld [vmem:[%s1333_s17 + $0x3f0] sm:$0xff] }
  0xd1   : > { %v499_v15 = vpop.permute.xlu1 %498 }
  0xd2   : > { %1005 = vst.msk [vmem:[%s1343_s24 + $0x108] sm:$0xff] %vm971_vm0, %v499_v15  ;;  %v494_v16 = vpop.permute.xlu0 %493  ;;  %818 = vperm.xlu1 %1271, %v292_v13  }
  0xd3   : > { %1004 = vst.msk [vmem:[%s1343_s24 + $0x100] sm:$0xff] %vm971_vm0, %v494_v16  ;;  %813 = vperm.xlu0 %1270, %v291_v14  }
  0xd5   : > { %v509_v19 = vpop.permute.xlu1 %508 }
  0xd6   : > { %1007 = vst.msk [vmem:[%s1343_s24 + $0x118] sm:$0xff] %vm971_vm0, %v509_v19  ;;  %v504_v20 = vpop.permute.xlu0 %503  ;;  %828 = vperm.xlu1 %1271, %v294_v17  }
  0xd7   : > { %1006 = vst.msk [vmem:[%s1343_s24 + $0x110] sm:$0xff] %vm971_vm0, %v504_v20  ;;  %823 = vperm.xlu0 %1270, %v293_v18  }
  0xd9   : > { %v519_v23 = vpop.permute.xlu1 %518 }
  0xda   : > { %1009 = vst.msk [vmem:[%s1343_s24 + $0x128] sm:$0xff] %vm971_vm0, %v519_v23  ;;  %v514_v24 = vpop.permute.xlu0 %513  ;;  %838 = vperm.xlu1 %1271, %v296_v21  }
  0xdb   : > { %1008 = vst.msk [vmem:[%s1343_s24 + $0x120] sm:$0xff] %vm971_vm0, %v514_v24  ;;  %833 = vperm.xlu0 %1270, %v295_v22  }
  0xdd   : > { %v529_v27 = vpop.permute.xlu1 %528 }
  0xde   : > { %1011 = vst.msk [vmem:[%s1343_s24 + $0x138] sm:$0xff] %vm971_vm0, %v529_v27  ;;  %v524_v28 = vpop.permute.xlu0 %523  ;;  %848 = vperm.xlu1 %1271, %v298_v25  }
  0xdf   : > { %1010 = vst.msk [vmem:[%s1343_s24 + $0x130] sm:$0xff] %vm971_vm0, %v524_v28  ;;  %843 = vperm.xlu0 %1270, %v297_v26  }
  0xe1   : > { %v539_v31 = vpop.permute.xlu1 %538 }
  0xe2   : > { %1013 = vst.msk [vmem:[%s1343_s24 + $0x148] sm:$0xff] %vm971_vm0, %v539_v31  ;;  %v534_v32 = vpop.permute.xlu0 %533  ;;  %858 = vperm.xlu1 %1271, %v300_v29  }
  0xe3   : > { %1012 = vst.msk [vmem:[%s1343_s24 + $0x140] sm:$0xff] %vm971_vm0, %v534_v32  ;;  %853 = vperm.xlu0 %1270, %v299_v30  }
  0xe5   : > { %v549_v35 = vpop.permute.xlu1 %548 }
  0xe6   : > { %1015 = vst.msk [vmem:[%s1343_s24 + $0x158] sm:$0xff] %vm971_vm0, %v549_v35  ;;  %v544_v36 = vpop.permute.xlu0 %543  ;;  %868 = vperm.xlu1 %1271, %v302_v33  }
  0xe7   : > { %1014 = vst.msk [vmem:[%s1343_s24 + $0x150] sm:$0xff] %vm971_vm0, %v544_v36  ;;  %863 = vperm.xlu0 %1270, %v301_v34  }
  0xe9   : > { %v559_v39 = vpop.permute.xlu1 %558 }
  0xea   : > { %1017 = vst.msk [vmem:[%s1343_s24 + $0x168] sm:$0xff] %vm971_vm0, %v559_v39  ;;  %v554_v40 = vpop.permute.xlu0 %553  ;;  %878 = vperm.xlu1 %1271, %v304_v37  }
  0xeb   : > { %1016 = vst.msk [vmem:[%s1343_s24 + $0x160] sm:$0xff] %vm971_vm0, %v554_v40  ;;  %873 = vperm.xlu0 %1270, %v303_v38  }
  0xed   : > { %v569_v43 = vpop.permute.xlu1 %568 }
  0xee   : > { %1019 = vst.msk [vmem:[%s1343_s24 + $0x178] sm:$0xff] %vm971_vm0, %v569_v43  ;;  %v564_v44 = vpop.permute.xlu0 %563  ;;  %888 = vperm.xlu1 %1271, %v306_v41  }
  0xef   : > { %1018 = vst.msk [vmem:[%s1343_s24 + $0x170] sm:$0xff] %vm971_vm0, %v564_v44  ;;  %883 = vperm.xlu0 %1270, %v305_v42  }
  0xf1   : > { %v579_v47 = vpop.permute.xlu1 %578 }
  0xf2   : > { %1021 = vst.msk [vmem:[%s1343_s24 + $0x188] sm:$0xff] %vm971_vm0, %v579_v47  ;;  %v574_v48 = vpop.permute.xlu0 %573  ;;  %898 = vperm.xlu1 %1271, %v308_v45  }
  0xf3   : > { %1020 = vst.msk [vmem:[%s1343_s24 + $0x180] sm:$0xff] %vm971_vm0, %v574_v48  ;;  %893 = vperm.xlu0 %1270, %v307_v46  }
  0xf5   : > { %v589_v51 = vpop.permute.xlu1 %588 }
  0xf6   : > { %1023 = vst.msk [vmem:[%s1343_s24 + $0x198] sm:$0xff] %vm971_vm0, %v589_v51  ;;  %v584_v52 = vpop.permute.xlu0 %583  ;;  %908 = vperm.xlu1 %1271, %v310_v49  }
  0xf7   : > { %1022 = vst.msk [vmem:[%s1343_s24 + $0x190] sm:$0xff] %vm971_vm0, %v584_v52  ;;  %903 = vperm.xlu0 %1270, %v309_v50  }
  0xf9   : > { %v599_v55 = vpop.permute.xlu1 %598 }
  0xfa   : > { %1025 = vst.msk [vmem:[%s1343_s24 + $0x1a8] sm:$0xff] %vm971_vm0, %v599_v55  ;;  %v594_v56 = vpop.permute.xlu0 %593  ;;  %918 = vperm.xlu1 %1271, %v312_v53  }
  0xfb   : > { %1024 = vst.msk [vmem:[%s1343_s24 + $0x1a0] sm:$0xff] %vm971_vm0, %v594_v56  ;;  %913 = vperm.xlu0 %1270, %v311_v54  }
  0xfd   : > { %v609_v59 = vpop.permute.xlu1 %608 }
  0xfe   : > { %1027 = vst.msk [vmem:[%s1343_s24 + $0x1b8] sm:$0xff] %vm971_vm0, %v609_v59  ;;  %v604_v60 = vpop.permute.xlu0 %603  ;;  %928 = vperm.xlu1 %1271, %v314_v57  }
  0xff   : > { %1026 = vst.msk [vmem:[%s1343_s24 + $0x1b0] sm:$0xff] %vm971_vm0, %v604_v60  ;;  %923 = vperm.xlu0 %1270, %v313_v58  }
 0x101   : > { %v619_v63 = vpop.permute.xlu1 %618 }
 0x102   : > { %1029 = vst.msk [vmem:[%s1343_s24 + $0x1c8] sm:$0xff] %vm971_vm0, %v619_v63  ;;  %v614_v0 = vpop.permute.xlu0 %613  ;;  %938 = vperm.xlu1 %1271, %v316_v61  }
 0x103   : > { %1028 = vst.msk [vmem:[%s1343_s24 + $0x1c0] sm:$0xff] %vm971_vm0, %v614_v0  ;;  %933 = vperm.xlu0 %1270, %v315_v62  }
 0x105   : > { %v629_v3 = vpop.permute.xlu1 %628 }
 0x106   : > { %1031 = vst.msk [vmem:[%s1343_s24 + $0x1d8] sm:$0xff] %vm971_vm0, %v629_v3  ;;  %v624_v4 = vpop.permute.xlu0 %623  ;;  %948 = vperm.xlu1 %1271, %v318_v1  }
 0x107   : > { %1030 = vst.msk [vmem:[%s1343_s24 + $0x1d0] sm:$0xff] %vm971_vm0, %v624_v4  ;;  %943 = vperm.xlu0 %1270, %v317_v2  }
 0x109   : > { %v639_v7 = vpop.permute.xlu1 %638 }
 0x10a   : > { %1033 = vst.msk [vmem:[%s1343_s24 + $0x1e8] sm:$0xff] %vm971_vm0, %v639_v7  ;;  %v634_v8 = vpop.permute.xlu0 %633  ;;  %958 = vperm.xlu1 %1271, %v320_v5  }
 0x10b   : > { %1032 = vst.msk [vmem:[%s1343_s24 + $0x1e0] sm:$0xff] %vm971_vm0, %v634_v8  ;;  %953 = vperm.xlu0 %1270, %v319_v6  }
 0x10d   : > { %v649_v11 = vpop.permute.xlu1 %648 }
 0x10e   : > { %1035 = vst.msk [vmem:[%s1343_s24 + $0x1f8] sm:$0xff] %vm971_vm0, %v649_v11  ;;  %v644_v12 = vpop.permute.xlu0 %643  ;;  %968 = vperm.xlu1 %1271, %v322_v9  }
 0x10f   : > { %1034 = vst.msk [vmem:[%s1343_s24 + $0x1f0] sm:$0xff] %vm971_vm0, %v644_v12  ;;  %963 = vperm.xlu0 %1270, %v321_v10  }
 0x111   : > { %v659_v13 = vpop.permute.xlu1 %658 }
 0x112   : > { %1037 = vst.msk [vmem:[%s1343_s24 + $0x208] sm:$0xff] %vm971_vm0, %v659_v13  ;;  %v654_v14 = vpop.permute.xlu0 %653 }
 0x113   : > { %1036 = vst.msk [vmem:[%s1343_s24 + $0x200] sm:$0xff] %vm971_vm0, %v654_v14 }
 0x115   : > { %v669_v15 = vpop.permute.xlu1 %668 }
 0x116   : > { %1039 = vst.msk [vmem:[%s1343_s24 + $0x218] sm:$0xff] %vm971_vm0, %v669_v15  ;;  %v664_v16 = vpop.permute.xlu0 %663 }
 0x117   : > { %1038 = vst.msk [vmem:[%s1343_s24 + $0x210] sm:$0xff] %vm971_vm0, %v664_v16 }
 0x119   : > { %v679_v17 = vpop.permute.xlu1 %678 }
 0x11a   : > { %1041 = vst.msk [vmem:[%s1343_s24 + $0x228] sm:$0xff] %vm971_vm0, %v679_v17  ;;  %v674_v18 = vpop.permute.xlu0 %673 }
 0x11b   : > { %1040 = vst.msk [vmem:[%s1343_s24 + $0x220] sm:$0xff] %vm971_vm0, %v674_v18 }
 0x11d   : > { %v689_v19 = vpop.permute.xlu1 %688 }
 0x11e   : > { %1043 = vst.msk [vmem:[%s1343_s24 + $0x238] sm:$0xff] %vm971_vm0, %v689_v19  ;;  %v684_v20 = vpop.permute.xlu0 %683 }
 0x11f   : > { %1042 = vst.msk [vmem:[%s1343_s24 + $0x230] sm:$0xff] %vm971_vm0, %v684_v20 }
 0x121   : > { %v699_v21 = vpop.permute.xlu1 %698 }
 0x122   : > { %1045 = vst.msk [vmem:[%s1343_s24 + $0x248] sm:$0xff] %vm971_vm0, %v699_v21  ;;  %v694_v22 = vpop.permute.xlu0 %693 }
 0x123   : > { %1044 = vst.msk [vmem:[%s1343_s24 + $0x240] sm:$0xff] %vm971_vm0, %v694_v22 }
 0x125   : > { %v709_v23 = vpop.permute.xlu1 %708 }
 0x126   : > { %1047 = vst.msk [vmem:[%s1343_s24 + $0x258] sm:$0xff] %vm971_vm0, %v709_v23  ;;  %v704_v24 = vpop.permute.xlu0 %703 }
 0x127   : > { %1046 = vst.msk [vmem:[%s1343_s24 + $0x250] sm:$0xff] %vm971_vm0, %v704_v24 }
 0x129   : > { %v719_v25 = vpop.permute.xlu1 %718 }
 0x12a   : > { %1049 = vst.msk [vmem:[%s1343_s24 + $0x268] sm:$0xff] %vm971_vm0, %v719_v25  ;;  %v714_v26 = vpop.permute.xlu0 %713 }
 0x12b   : > { %1048 = vst.msk [vmem:[%s1343_s24 + $0x260] sm:$0xff] %vm971_vm0, %v714_v26 }
 0x12d   : > { %v729_v27 = vpop.permute.xlu1 %728 }
 0x12e   : > { %1051 = vst.msk [vmem:[%s1343_s24 + $0x278] sm:$0xff] %vm971_vm0, %v729_v27  ;;  %v724_v28 = vpop.permute.xlu0 %723 }
 0x12f   : > { %1050 = vst.msk [vmem:[%s1343_s24 + $0x270] sm:$0xff] %vm971_vm0, %v724_v28 }
 0x131   : > { %v739_v29 = vpop.permute.xlu1 %738 }
 0x132   : > { %1053 = vst.msk [vmem:[%s1343_s24 + $0x288] sm:$0xff] %vm971_vm0, %v739_v29  ;;  %v734_v30 = vpop.permute.xlu0 %733 }
 0x133   : > { %1052 = vst.msk [vmem:[%s1343_s24 + $0x280] sm:$0xff] %vm971_vm0, %v734_v30 }
 0x135   : > { %v749_v31 = vpop.permute.xlu1 %748 }
 0x136   : > { %1055 = vst.msk [vmem:[%s1343_s24 + $0x298] sm:$0xff] %vm971_vm0, %v749_v31  ;;  %v744_v32 = vpop.permute.xlu0 %743 }
 0x137   : > { %1054 = vst.msk [vmem:[%s1343_s24 + $0x290] sm:$0xff] %vm971_vm0, %v744_v32 }
 0x139   : > { %v759_v33 = vpop.permute.xlu1 %758 }
 0x13a   : > { %1057 = vst.msk [vmem:[%s1343_s24 + $0x2a8] sm:$0xff] %vm971_vm0, %v759_v33  ;;  %v754_v34 = vpop.permute.xlu0 %753 }
 0x13b   : > { %1056 = vst.msk [vmem:[%s1343_s24 + $0x2a0] sm:$0xff] %vm971_vm0, %v754_v34 }
 0x13d   : > { %v769_v35 = vpop.permute.xlu1 %768 }
 0x13e   : > { %1059 = vst.msk [vmem:[%s1343_s24 + $0x2b8] sm:$0xff] %vm971_vm0, %v769_v35  ;;  %v764_v36 = vpop.permute.xlu0 %763 }
 0x13f   : > { %1058 = vst.msk [vmem:[%s1343_s24 + $0x2b0] sm:$0xff] %vm971_vm0, %v764_v36 }
 0x141   : > { %v779_v37 = vpop.permute.xlu1 %778 }
 0x142   : > { %1061 = vst.msk [vmem:[%s1343_s24 + $0x2c8] sm:$0xff] %vm971_vm0, %v779_v37  ;;  %v774_v38 = vpop.permute.xlu0 %773 }
 0x143   : > { %1060 = vst.msk [vmem:[%s1343_s24 + $0x2c0] sm:$0xff] %vm971_vm0, %v774_v38 }
 0x145   : > { %v789_v39 = vpop.permute.xlu1 %788 }
 0x146   : > { %1063 = vst.msk [vmem:[%s1343_s24 + $0x2d8] sm:$0xff] %vm971_vm0, %v789_v39  ;;  %v784_v40 = vpop.permute.xlu0 %783 }
 0x147   : > { %1062 = vst.msk [vmem:[%s1343_s24 + $0x2d0] sm:$0xff] %vm971_vm0, %v784_v40 }
 0x149   : > { %v799_v41 = vpop.permute.xlu1 %798 }
 0x14a   : > { %1065 = vst.msk [vmem:[%s1343_s24 + $0x2e8] sm:$0xff] %vm971_vm0, %v799_v41  ;;  %v794_v42 = vpop.permute.xlu0 %793 }
 0x14b   : > { %1064 = vst.msk [vmem:[%s1343_s24 + $0x2e0] sm:$0xff] %vm971_vm0, %v794_v42 }
 0x14d   : > { %v809_v43 = vpop.permute.xlu1 %808 }
 0x14e   : > { %1067 = vst.msk [vmem:[%s1343_s24 + $0x2f8] sm:$0xff] %vm971_vm0, %v809_v43  ;;  %v804_v44 = vpop.permute.xlu0 %803 }
 0x14f   : > { %1066 = vst.msk [vmem:[%s1343_s24 + $0x2f0] sm:$0xff] %vm971_vm0, %v804_v44 }
 0x151   : > { %v819_v45 = vpop.permute.xlu1 %818 }
 0x152   : > { %1069 = vst.msk [vmem:[%s1343_s24 + $0x308] sm:$0xff] %vm971_vm0, %v819_v45  ;;  %v814_v46 = vpop.permute.xlu0 %813 }
 0x153   : > { %1068 = vst.msk [vmem:[%s1343_s24 + $0x300] sm:$0xff] %vm971_vm0, %v814_v46 }
 0x155   : > { %v829_v47 = vpop.permute.xlu1 %828 }
 0x156   : > { %1071 = vst.msk [vmem:[%s1343_s24 + $0x318] sm:$0xff] %vm971_vm0, %v829_v47  ;;  %v824_v48 = vpop.permute.xlu0 %823 }
 0x157   : > { %1070 = vst.msk [vmem:[%s1343_s24 + $0x310] sm:$0xff] %vm971_vm0, %v824_v48 }
 0x159   : > { %v839_v49 = vpop.permute.xlu1 %838 }
 0x15a   : > { %1073 = vst.msk [vmem:[%s1343_s24 + $0x328] sm:$0xff] %vm971_vm0, %v839_v49  ;;  %v834_v50 = vpop.permute.xlu0 %833 }
 0x15b   : > { %1072 = vst.msk [vmem:[%s1343_s24 + $0x320] sm:$0xff] %vm971_vm0, %v834_v50 }
 0x15d   : > { %v849_v51 = vpop.permute.xlu1 %848 }
 0x15e   : > { %1075 = vst.msk [vmem:[%s1343_s24 + $0x338] sm:$0xff] %vm971_vm0, %v849_v51  ;;  %v844_v52 = vpop.permute.xlu0 %843 }
 0x15f   : > { %1074 = vst.msk [vmem:[%s1343_s24 + $0x330] sm:$0xff] %vm971_vm0, %v844_v52 }
 0x161   : > { %v859_v53 = vpop.permute.xlu1 %858 }
 0x162   : > { %1077 = vst.msk [vmem:[%s1343_s24 + $0x348] sm:$0xff] %vm971_vm0, %v859_v53  ;;  %v854_v54 = vpop.permute.xlu0 %853 }
 0x163   : > { %1076 = vst.msk [vmem:[%s1343_s24 + $0x340] sm:$0xff] %vm971_vm0, %v854_v54 }
 0x165   : > { %v869_v55 = vpop.permute.xlu1 %868 }
 0x166   : > { %1079 = vst.msk [vmem:[%s1343_s24 + $0x358] sm:$0xff] %vm971_vm0, %v869_v55  ;;  %v864_v56 = vpop.permute.xlu0 %863 }
 0x167   : > { %1078 = vst.msk [vmem:[%s1343_s24 + $0x350] sm:$0xff] %vm971_vm0, %v864_v56 }
 0x169   : > { %v879_v57 = vpop.permute.xlu1 %878 }
 0x16a   : > { %1081 = vst.msk [vmem:[%s1343_s24 + $0x368] sm:$0xff] %vm971_vm0, %v879_v57  ;;  %v874_v58 = vpop.permute.xlu0 %873 }
 0x16b   : > { %1080 = vst.msk [vmem:[%s1343_s24 + $0x360] sm:$0xff] %vm971_vm0, %v874_v58 }
 0x16d   : > { %v889_v59 = vpop.permute.xlu1 %888 }
 0x16e   : > { %1083 = vst.msk [vmem:[%s1343_s24 + $0x378] sm:$0xff] %vm971_vm0, %v889_v59  ;;  %v884_v60 = vpop.permute.xlu0 %883 }
 0x16f   : > { %1082 = vst.msk [vmem:[%s1343_s24 + $0x370] sm:$0xff] %vm971_vm0, %v884_v60 }
 0x171   : > { %v899_v61 = vpop.permute.xlu1 %898 }
 0x172   : > { %1085 = vst.msk [vmem:[%s1343_s24 + $0x388] sm:$0xff] %vm971_vm0, %v899_v61  ;;  %v894_v62 = vpop.permute.xlu0 %893 }
 0x173   : > { %1084 = vst.msk [vmem:[%s1343_s24 + $0x380] sm:$0xff] %vm971_vm0, %v894_v62 }
 0x175   : > { %v909_v63 = vpop.permute.xlu1 %908 }
 0x176   : > { %1087 = vst.msk [vmem:[%s1343_s24 + $0x398] sm:$0xff] %vm971_vm0, %v909_v63  ;;  %v904_v0 = vpop.permute.xlu0 %903 }
 0x177   : > { %1086 = vst.msk [vmem:[%s1343_s24 + $0x390] sm:$0xff] %vm971_vm0, %v904_v0 }
 0x179   : > { %v919_v1 = vpop.permute.xlu1 %918 }
 0x17a   : > { %1089 = vst.msk [vmem:[%s1343_s24 + $0x3a8] sm:$0xff] %vm971_vm0, %v919_v1  ;;  %v914_v2 = vpop.permute.xlu0 %913 }
 0x17b   : > { %1088 = vst.msk [vmem:[%s1343_s24 + $0x3a0] sm:$0xff] %vm971_vm0, %v914_v2 }
 0x17d   : > { %v929_v3 = vpop.permute.xlu1 %928 }
 0x17e   : > { %1091 = vst.msk [vmem:[%s1343_s24 + $0x3b8] sm:$0xff] %vm971_vm0, %v929_v3  ;;  %v924_v4 = vpop.permute.xlu0 %923 }
 0x17f   : > { %1090 = vst.msk [vmem:[%s1343_s24 + $0x3b0] sm:$0xff] %vm971_vm0, %v924_v4 }
 0x181   : > { %v939_v5 = vpop.permute.xlu1 %938 }
 0x182   : > { %1093 = vst.msk [vmem:[%s1343_s24 + $0x3c8] sm:$0xff] %vm971_vm0, %v939_v5  ;;  %v934_v6 = vpop.permute.xlu0 %933 }
 0x183   : > { %1092 = vst.msk [vmem:[%s1343_s24 + $0x3c0] sm:$0xff] %vm971_vm0, %v934_v6 }
 0x185   : > { %v949_v7 = vpop.permute.xlu1 %948 }
 0x186   : > { %1095 = vst.msk [vmem:[%s1343_s24 + $0x3d8] sm:$0xff] %vm971_vm0, %v949_v7  ;;  %v944_v8 = vpop.permute.xlu0 %943 }
 0x187   : > { %1094 = vst.msk [vmem:[%s1343_s24 + $0x3d0] sm:$0xff] %vm971_vm0, %v944_v8 }
 0x189   : > { %v959_v9 = vpop.permute.xlu1 %958 }
 0x18a   : > { %1097 = vst.msk [vmem:[%s1343_s24 + $0x3e8] sm:$0xff] %vm971_vm0, %v959_v9  ;;  %v954_v10 = vpop.permute.xlu0 %953 }
 0x18b   : > { %1096 = vst.msk [vmem:[%s1343_s24 + $0x3e0] sm:$0xff] %vm971_vm0, %v954_v10 }
 0x18d   : > { %v969_v11 = vpop.permute.xlu1 %968 }
 0x18e   : > { %1099 = vst.msk [vmem:[%s1343_s24 + $0x3f8] sm:$0xff] %vm971_vm0, %v969_v11  ;;  %v964_v12 = vpop.permute.xlu0 %963 }
 0x18f   : > { %1098 = vst.msk [vmem:[%s1343_s24 + $0x3f0] sm:$0xff] %vm971_vm0, %v964_v12 }
 0x190 PF: > { %s12_s11 = sadd.s32 1, %s1294_s11   ;;  %s1755_s9 = smov %s1290_s10 }
 0x191   : > { %p9_p5 = scmp.ge.s32.totalorder %s12_s11, 4   ;;  %s1756_s10 = smov %s1758_s12 }
 0x193   :  { %11 = sbr.rel (!%p9_p5) target bundleno = 2 (0x2), region = 61 }

// kernel: pointnetfeat_forward.3
= control target key start
LH: loop header
LB: loop body
LE: loop exit
PB: predicated region body
PF: predicated region fallthrough
CT: control target
= control target key end

     0   :  { %15 = vsyncpa [#allocation3], 0  ;;  %s5636_s13 = smov 0   ;;  %s5638_s14 = smov 0   ;;  %s8286_s0 = inlined_call_operand.vmem [shape: bf16[2,4,16], index: 0, kind: input, shape index: {}]   ;;  %s8287_s1 = inlined_call_operand.vmem [shape: bf16[64,4], index: 1, kind: input, shape index: {}]   ;;  %s8288_s2 = inlined_call_operand.vmem [shape: f32[64,1], index: 2, kind: input, shape index: {}]   ;;  %s8289_s3 = inlined_call_operand.vmem [shape: f32[64,1], index: 3, kind: input, shape index: {}]   ;;  %s8290_s4 = inlined_call_operand.vmem [shape: bf16[128,64], index: 4, kind: input, shape index: {}]   ;;  %s8291_s5 = inlined_call_operand.vmem [shape: f32[128,1], index: 5, kind: input, shape index: {}]   ;;  %s8292_s6 = inlined_call_operand.vmem [shape: f32[128,1], index: 6, kind: input, shape index: {}]   ;;  %s8293_s7 = inlined_call_operand.hbm [shape: bf16[1024,128], index: 7, kind: input, shape index: {}]   ;;  %s8294_s8 = inlined_call_operand.vmem [shape: f32[1024,1], index: 8, kind: input, shape index: {}]   ;;  %s8295_s9 = inlined_call_operand.vmem [shape: f32[1024,1], index: 9, kind: input, shape index: {}]   ;;  %s8296_s10 = inlined_call_operand.vmem [shape: f32[2,1024,1], index: 10, kind: output, shape index: {}]  }
   0x1   :  { %s5640_s15 = smov 0  }
   0x2 LB: > { %s5020_s16 = sadd.s32 4294967295, %s5575_s15   ;;  %s33_s17 = sadd.s32 1, %s5571_s14  ;;  %s5575_s15 = sphi %s5640_s15, %s21_s15   ;;  %s5571_s14 = sphi %s5638_s14, %s8726_s14   ;;  %s5567_s13 = sphi %s5636_s13, %s8725_s13  }
   0x3   : > { %p35_p0 = scmp.ge.s32.totalorder %s33_s17, 2  ;;  %p5022_p1 = scmp.ge.s32.totalorder %s5575_s15, 1 }
   0x4   : > { %p281_p2 = scmp.lt.s32.totalorder %s5575_s15, 3  ;;  %p5661_p4 = scmp.eq.s32.totalorder %s5020_s16, 0 }
   0x5   : > { %s8728_s17 = smov (%p35_p0, %s33_s17), 0  ;;  %s5577_s20 = smov [#allocation2]  }
   0x6   : > { %p5657_p3 = pnand %p5022_p1, %p281_p2  ;;  %s311_s21 = sshll.u32 %s5577_s20, 4  ;;  %s312_s21 = int_to_ptr.vmem [resolvable:$true] %s311_s21 }
   0x7   : > { %s8301_s19 = scalar_select %p5661_p4, 1, 0 }
   0x8   : > { %s8300_s18 = scalar_select %p5657_p3, 1, 0 }
   0x9   : > { %p5409_p5 = pneg %p5657_p3  ;;  %s5521_s25 = scalar_lea.hbm %s8293_s7, 8192 }
   0xa   : > { %p5522_p7 = scmp.ne.s32.totalorder %s8293_s7, %s5521_s25  ;;  %p5528_p11 = scmp.lt.u32.totalorder %s5521_s25, %s8293_s7 }
   0xb   : > { %p5669_p6 = pnand %p5661_p4, %p5409_p5 }
   0xd   : > { %p5523_p8 = pneg %p5669_p6 }
   0xf   : > { %p5524_p9 = pnand %p5523_p8, %p5522_p7 }
  0x11   : > { %p5525_p10 = pneg %p5524_p9 }
  0x13   : > { %p5530_p12 = pnand %p5528_p11, %p5525_p10 }
  0x15   : > { %5533 = shalt.err (!%p5530_p12)
}
  0x16   : > { %s5534_s30 = scalar_lea.vmem %s312_s21, 8192  ;;  %p5542_p2 = scmp.lt.s32.totalorder %s312_s21, %s312_s21 }
  0x17   : > { %p5535_p13 = scmp.ne.s32.totalorder %s312_s21, %s5534_s30  ;;  %p5543_p5 = scmp.lt.s32.totalorder %s5534_s30, %s5534_s30 }
  0x19   : > { %p5537_p0 = pnand %p5535_p13, %p5523_p8  ;;  %p5544_p4 = por %p5543_p5, %p5542_p2 }
  0x1b   : > { %p5538_p1 = pneg %p5537_p0 }
  0x1d   : > { %p5545_p3 = pnand %p5544_p4, %p5538_p1 }
  0x1f   : > { %5548 = shalt.err (!%p5545_p3)
}
  0x20   : > { %s5578_s11 = smov 64   ;;  %s5579_s12 = smov 4  }
  0x21   : > { %5412 = dma.hbm_to_vmem [thread:$0]  (!%p5669_p6), %s8293_s7, 8192, %s312_s21, [#allocation3], %s5578_s11, %s5578_s11, %s5579_s12  }
  0x22   : > { %p8303_p7 = scmp.ne.s32.totalorder %s8300_s18, 0 }
  0x24   : > { %343 = sbr.rel (%p8303_p7) target bundleno = 1168 (0x490), region = 60 }
  0x2b   : > { %p8304_p9 = scmp.ne.s32.totalorder %s8301_s19, 0 }
  0x2d   : > { %5562 = dma.done.wait (%p8304_p9), [#allocation3], 8192  }
  0x2e   : > { %5564 = vsyncadd (%p8304_p9), [#allocation3], 4294959104  ;;  %p383_p3 = scmp.lt.s32.totalorder %s5567_s13, 1  ;;  %v5580_v0 = vmov 0   ;;  %vm454_vm0 = vcmask 1041408   ;;  %v407_v1 = vld [vmem:[%s8288_s2 + $0x10] sm:$0xff] }
  0x2f   : > { %5444 = vset.pattern.permute.xlu1 %v5580_v0  ;;  %5443 = vset.pattern.permute.xlu0 %v5580_v0  ;;  %v405_v2 = vld [vmem:[%s8288_s2] sm:$0xff]  ;;  %vm441_vm1 = vcmask 31744   ;;  %v408_v6 = vld [vmem:[%s8288_s2 + $0x18] sm:$0xff]  ;;  %v406_v7 = vld [vmem:[%s8288_s2 + $0x8] sm:$0xff]  ;;  %vm719_vm2 = vcmask 523264   ;;  %vm4034_vm3 = vcmask 130048  }
  0x30   : > { %s8730_s13 = smov (!%p383_p3, %s5567_s13), 1  ;;  %535 = vperm.xlu1 %5444, %v407_v1   ;;  %525 = vperm.xlu0 %5443, %v405_v2   ;;  %v5445_v5 = vld [vmem:[%s8287_s1] sm:$0xff]   ;;  %v5446_v8 = vld [vmem:[%s8287_s1 + $0x8] sm:$0xff]   ;;  %v5447_v10 = vld [vmem:[%s8287_s1 + $0x10] sm:$0xff]   ;;  %vm4423_vm4 = vcmask 7168  }
  0x31   : > { %s5027_s22 = sshll.u32 %s8730_s13, 1  ;;  %5212 = vmatprep.mubr.msk.bf16.mxu0 %vm441_vm1, %v5445_v5  ;;  %v410_v9 = vld [vmem:[%s8288_s2 + $0x28] sm:$0xff]  ;;  %v409_v11 = vld [vmem:[%s8288_s2 + $0x20] sm:$0xff]  ;;  %v412_v12 = vld [vmem:[%s8288_s2 + $0x38] sm:$0xff]  ;;  %s5120_s11 = sshll.u32 %s8730_s13, 10 }
  0x32   : > { %s389_s18 = scalar_lea.vmem %s8286_s0, %s5027_s22  ;;  %v411_v13 = vld [vmem:[%s8288_s2 + $0x30] sm:$0xff]  ;;  %v5448_v14 = vld [vmem:[%s8287_s1 + $0x18] sm:$0xff]   ;;  %v414_v15 = vld [vmem:[%s8289_s3 + $0x8] sm:$0xff]  ;;  %s7807_s13 = scalar_lea.vmem %s8296_s10, %s5120_s11 }
  0x33   : > { %v396_v3 = vld [vmem:[%s389_s18] sm:$0x3]  ;;  %v416_v17 = vld [vmem:[%s8289_s3 + $0x18] sm:$0xff]  ;;  %v415_v18 = vld [vmem:[%s8289_s3 + $0x10] sm:$0xff] }
  0x34   : > { %v456_v4 = vsel %vm454_vm0, %v396_v3, 0  ;;  %5404 = vmatprep.subr.msk.bf16.mxu0 %vm454_vm0, %v396_v3  ;;  %540 = vperm.xlu1 %5444, %v408_v6   ;;  %v413_v16 = vld [vmem:[%s8289_s3] sm:$0xff]  ;;  %v418_v19 = vld [vmem:[%s8289_s3 + $0x28] sm:$0xff]  ;;  %v420_v21 = vld [vmem:[%s8289_s3 + $0x38] sm:$0xff] }
  0x35   : > { %5211 = vmatpush3.bf16.msra.mxu0 %v456_v4  ;;  %530 = vperm.xlu0 %5443, %v406_v7   ;;  %v417_v20 = vld [vmem:[%s8289_s3 + $0x20] sm:$0xff]  ;;  %v419_v22 = vld [vmem:[%s8289_s3 + $0x30] sm:$0xff]  ;;  %v648_v23 = vld [vmem:[%s8291_s5 + $0x8] sm:$0xff] }
  0x36   : > { %v647_v24 = vld [vmem:[%s8291_s5] sm:$0xff]  ;;  %v650_v25 = vld [vmem:[%s8291_s5 + $0x18] sm:$0xff]  ;;  %v649_v26 = vld [vmem:[%s8291_s5 + $0x10] sm:$0xff] }
  0x37   : > { %v652_v27 = vld [vmem:[%s8291_s5 + $0x28] sm:$0xff]  ;;  %v651_v28 = vld [vmem:[%s8291_s5 + $0x20] sm:$0xff]  ;;  %v654_v29 = vld [vmem:[%s8291_s5 + $0x38] sm:$0xff] }
  0x38   : > { %5213 = vmatmul.mubr.msk.bf16.vlgmr.msra.gmra.mrb[0].mxu0 %vm441_vm1, %v5446_v8  ;;  %550 = vperm.xlu1 %5444, %v410_v9   ;;  %v653_v30 = vld [vmem:[%s8291_s5 + $0x30] sm:$0xff]  ;;  %v656_v31 = vld [vmem:[%s8291_s5 + $0x48] sm:$0xff]  ;;  %v655_v32 = vld [vmem:[%s8291_s5 + $0x40] sm:$0xff] }
  0x39   : > { %5216 = vmatprep.mubr.msk.bf16.mxu0 %vm441_vm1, %v5447_v10  ;;  %545 = vperm.xlu0 %5443, %v409_v11   ;;  %v658_v33 = vld [vmem:[%s8291_s5 + $0x58] sm:$0xff]  ;;  %v657_v34 = vld [vmem:[%s8291_s5 + $0x50] sm:$0xff]  ;;  %v660_v35 = vld [vmem:[%s8291_s5 + $0x68] sm:$0xff] }
  0x3a   : > { %v659_v36 = vld [vmem:[%s8291_s5 + $0x60] sm:$0xff]  ;;  %v662_v37 = vld [vmem:[%s8291_s5 + $0x78] sm:$0xff]  ;;  %v661_v38 = vld [vmem:[%s8291_s5 + $0x70] sm:$0xff] }
  0x3b   : > { %v664_v39 = vld [vmem:[%s8292_s6 + $0x8] sm:$0xff]  ;;  %v663_v40 = vld [vmem:[%s8292_s6] sm:$0xff]  ;;  %v666_v41 = vld [vmem:[%s8292_s6 + $0x18] sm:$0xff] }
  0x3c   : > { %560 = vperm.xlu1 %5444, %v412_v12   ;;  %v665_v42 = vld [vmem:[%s8292_s6 + $0x10] sm:$0xff]  ;;  %v668_v43 = vld [vmem:[%s8292_s6 + $0x28] sm:$0xff]  ;;  %v667_v44 = vld [vmem:[%s8292_s6 + $0x20] sm:$0xff] }
  0x3d   : > { %555 = vperm.xlu0 %5443, %v411_v13   ;;  %v670_v45 = vld [vmem:[%s8292_s6 + $0x38] sm:$0xff]  ;;  %v669_v46 = vld [vmem:[%s8292_s6 + $0x30] sm:$0xff]  ;;  %v672_v47 = vld [vmem:[%s8292_s6 + $0x48] sm:$0xff] }
  0x3e   : > { %v671_v48 = vld [vmem:[%s8292_s6 + $0x40] sm:$0xff]  ;;  %v674_v49 = vld [vmem:[%s8292_s6 + $0x58] sm:$0xff]  ;;  %v673_v50 = vld [vmem:[%s8292_s6 + $0x50] sm:$0xff] }
  0x3f   : > { %v676_v51 = vld [vmem:[%s8292_s6 + $0x68] sm:$0xff]  ;;  %v675_v52 = vld [vmem:[%s8292_s6 + $0x60] sm:$0xff]  ;;  %v678_v53 = vld [vmem:[%s8292_s6 + $0x78] sm:$0xff] }
  0x40   : > { %5217 = vmatmul.mubr.msk.bf16.gmra.mrb[4].mxu0 %vm441_vm1, %v5448_v14  ;;  %578 = vperm.xlu1 %5444, %v414_v15   ;;  %v677_v54 = vld [vmem:[%s8292_s6 + $0x70] sm:$0xff]  ;;  %v1186_v55 = vld [vmem:[%s8294_s8 + $0x8] sm:$0xff]  ;;  %v1185_v56 = vld [vmem:[%s8294_s8] sm:$0xff] }
  0x41   : > { %573 = vperm.xlu0 %5443, %v413_v16   ;;  %v1188_v57 = vld [vmem:[%s8294_s8 + $0x18] sm:$0xff]  ;;  %v1187_v58 = vld [vmem:[%s8294_s8 + $0x10] sm:$0xff]  ;;  %v1190_v59 = vld [vmem:[%s8294_s8 + $0x28] sm:$0xff] }
  0x42   : > { %v1189_v60 = vld [vmem:[%s8294_s8 + $0x20] sm:$0xff]  ;;  %v1192_v61 = vld [vmem:[%s8294_s8 + $0x38] sm:$0xff]  ;;  %v1191_v62 = vld [vmem:[%s8294_s8 + $0x30] sm:$0xff] }
  0x43   : > { %v1194_v63 = vld [vmem:[%s8294_s8 + $0x48] sm:$0xff]  ;;  %v1193_v0 = vld [vmem:[%s8294_s8 + $0x40] sm:$0xff]  ;;  %v1196_v1 = vld [vmem:[%s8294_s8 + $0x58] sm:$0xff] }
  0x44   : > { %588 = vperm.xlu1 %5444, %v416_v17   ;;  %v1195_v2 = vld [vmem:[%s8294_s8 + $0x50] sm:$0xff]  ;;  %v5449_v3 = vld [vmem:[%s8290_s4] sm:$0xff]   ;;  %v1198_v4 = vld [vmem:[%s8294_s8 + $0x68] sm:$0xff] }
  0x45   : > { %583 = vperm.xlu0 %5443, %v415_v18   ;;  %5228 = vmatprep.mubr.msk.bf16.mxu1 %vm719_vm2, %v5449_v3  ;;  %v1197_v5 = vld [vmem:[%s8294_s8 + $0x60] sm:$0xff]  ;;  %v1200_v6 = vld [vmem:[%s8294_s8 + $0x78] sm:$0xff]  ;;  %v1199_v7 = vld [vmem:[%s8294_s8 + $0x70] sm:$0xff] }
  0x46   : > { %v1202_v8 = vld [vmem:[%s8294_s8 + $0x88] sm:$0xff]  ;;  %v1201_v9 = vld [vmem:[%s8294_s8 + $0x80] sm:$0xff]  ;;  %v1204_v12 = vld [vmem:[%s8294_s8 + $0x98] sm:$0xff] }
  0x47   : > { %v1203_v13 = vld [vmem:[%s8294_s8 + $0x90] sm:$0xff]  ;;  %v1206_v16 = vld [vmem:[%s8294_s8 + $0xa8] sm:$0xff]  ;;  %v1205_v17 = vld [vmem:[%s8294_s8 + $0xa0] sm:$0xff] }
  0x48   : > { %598 = vperm.xlu1 %5444, %v418_v19  }
  0x49   : > { %593 = vperm.xlu0 %5443, %v417_v20   ;;  %v1208_v20 = vld [vmem:[%s8294_s8 + $0xb8] sm:$0xff] }
  0x4c   : > { %608 = vperm.xlu1 %5444, %v420_v21   ;;  %v1207_v21 = vld [vmem:[%s8294_s8 + $0xb0] sm:$0xff] }
  0x4d   : > { %603 = vperm.xlu0 %5443, %v419_v22  }
  0x50   : > { %848 = vperm.xlu1 %5444, %v648_v23  }
  0x51   : > { %843 = vperm.xlu0 %5443, %v647_v24   ;;  %v1210_v24 = vld [vmem:[%s8294_s8 + $0xc8] sm:$0xff] }
  0x54   : > { %858 = vperm.xlu1 %5444, %v650_v25   ;;  %v1209_v25 = vld [vmem:[%s8294_s8 + $0xc0] sm:$0xff] }
  0x55   : > { %853 = vperm.xlu0 %5443, %v649_v26  }
  0x58   : > { %868 = vperm.xlu1 %5444, %v652_v27  }
  0x59   : > { %863 = vperm.xlu0 %5443, %v651_v28   ;;  %v1212_v28 = vld [vmem:[%s8294_s8 + $0xd8] sm:$0xff] }
  0x5c   : > { %878 = vperm.xlu1 %5444, %v654_v29   ;;  %v1211_v29 = vld [vmem:[%s8294_s8 + $0xd0] sm:$0xff] }
  0x5d   : > { %873 = vperm.xlu0 %5443, %v653_v30  }
  0x60   : > { %888 = vperm.xlu1 %5444, %v656_v31  }
  0x61   : > { %883 = vperm.xlu0 %5443, %v655_v32   ;;  %v1214_v32 = vld [vmem:[%s8294_s8 + $0xe8] sm:$0xff] }
  0x64   : > { %898 = vperm.xlu1 %5444, %v658_v33   ;;  %v1213_v33 = vld [vmem:[%s8294_s8 + $0xe0] sm:$0xff] }
  0x65   : > { %893 = vperm.xlu0 %5443, %v657_v34  }
  0x68   : > { %908 = vperm.xlu1 %5444, %v660_v35  }
  0x69   : > { %903 = vperm.xlu0 %5443, %v659_v36   ;;  %v1216_v36 = vld [vmem:[%s8294_s8 + $0xf8] sm:$0xff] }
  0x6c   : > { %918 = vperm.xlu1 %5444, %v662_v37   ;;  %v1215_v37 = vld [vmem:[%s8294_s8 + $0xf0] sm:$0xff] }
  0x6d   : > { %913 = vperm.xlu0 %5443, %v661_v38  }
  0x70   : > { %944 = vperm.xlu1 %5444, %v664_v39  }
  0x71   : > { %939 = vperm.xlu0 %5443, %v663_v40   ;;  %v1218_v40 = vld [vmem:[%s8294_s8 + $0x108] sm:$0xff] }
  0x74   : > { %954 = vperm.xlu1 %5444, %v666_v41   ;;  %v1217_v41 = vld [vmem:[%s8294_s8 + $0x100] sm:$0xff] }
  0x75   : > { %949 = vperm.xlu0 %5443, %v665_v42  }
  0x78   : > { %964 = vperm.xlu1 %5444, %v668_v43  }
  0x79   : > { %959 = vperm.xlu0 %5443, %v667_v44   ;;  %v1220_v44 = vld [vmem:[%s8294_s8 + $0x118] sm:$0xff] }
  0x7c   : > { %974 = vperm.xlu1 %5444, %v670_v45   ;;  %v1219_v45 = vld [vmem:[%s8294_s8 + $0x110] sm:$0xff] }
  0x7d   : > { %969 = vperm.xlu0 %5443, %v669_v46  }
  0x80   : > { %984 = vperm.xlu1 %5444, %v672_v47  }
  0x81   : > { %979 = vperm.xlu0 %5443, %v671_v48   ;;  %v1222_v48 = vld [vmem:[%s8294_s8 + $0x128] sm:$0xff] }
  0x84   : > { %994 = vperm.xlu1 %5444, %v674_v49   ;;  %v1221_v49 = vld [vmem:[%s8294_s8 + $0x120] sm:$0xff] }
  0x85   : > { %989 = vperm.xlu0 %5443, %v673_v50  }
  0x88   : > { %1004 = vperm.xlu1 %5444, %v676_v51  }
  0x89   : > { %999 = vperm.xlu0 %5443, %v675_v52   ;;  %v1224_v52 = vld [vmem:[%s8294_s8 + $0x138] sm:$0xff] }
  0x8c   : > { %1014 = vperm.xlu1 %5444, %v678_v53   ;;  %v1223_v53 = vld [vmem:[%s8294_s8 + $0x130] sm:$0xff] }
  0x8d   : > { %1009 = vperm.xlu0 %5443, %v677_v54  }
  0x90   : > { %2377 = vperm.xlu1 %5444, %v1186_v55  }
  0x91   : > { %2372 = vperm.xlu0 %5443, %v1185_v56   ;;  %v1226_v56 = vld [vmem:[%s8294_s8 + $0x148] sm:$0xff] }
  0x94   : > { %2387 = vperm.xlu1 %5444, %v1188_v57   ;;  %v1225_v57 = vld [vmem:[%s8294_s8 + $0x140] sm:$0xff] }
  0x95   : > { %2382 = vperm.xlu0 %5443, %v1187_v58  }
  0x98   : > { %2397 = vperm.xlu1 %5444, %v1190_v59  }
  0x99   : > { %2392 = vperm.xlu0 %5443, %v1189_v60   ;;  %v1228_v60 = vld [vmem:[%s8294_s8 + $0x158] sm:$0xff] }
  0x9c   : > { %2407 = vperm.xlu1 %5444, %v1192_v61   ;;  %v1227_v61 = vld [vmem:[%s8294_s8 + $0x150] sm:$0xff] }
  0x9d   : > { %2402 = vperm.xlu0 %5443, %v1191_v62  }
  0xa0   : > { %2417 = vperm.xlu1 %5444, %v1194_v63  }
  0xa1   : > { %2412 = vperm.xlu0 %5443, %v1193_v0   ;;  %v1230_v0 = vld [vmem:[%s8294_s8 + $0x168] sm:$0xff] }
  0xa4   : > { %2427 = vperm.xlu1 %5444, %v1196_v1   ;;  %v1229_v1 = vld [vmem:[%s8294_s8 + $0x160] sm:$0xff] }
  0xa5   : > { %2422 = vperm.xlu0 %5443, %v1195_v2  }
  0xa8   : > { %2437 = vperm.xlu1 %5444, %v1198_v4   ;;  %v1232_v4 = vld [vmem:[%s8294_s8 + $0x178] sm:$0xff] }
  0xa9   : > { %2432 = vperm.xlu0 %5443, %v1197_v5   ;;  %v1231_v5 = vld [vmem:[%s8294_s8 + $0x170] sm:$0xff] }
  0xac   : > { %2447 = vperm.xlu1 %5444, %v1200_v6  }
  0xad   : > { %2442 = vperm.xlu0 %5443, %v1199_v7  }
  0xaf   : > { %v5921_v10 = vpop.permute.xlu1 %535  ;;  %v5923_v11 = vpop.permute.xlu0 %525 }
  0xb0   : > { %2457 = vperm.xlu1 %5444, %v1202_v8   ;;  %v1234_v8 = vld [vmem:[%s8294_s8 + $0x188] sm:$0xff] }
  0xb1   : > { %2452 = vperm.xlu0 %5443, %v1201_v9   ;;  %v1233_v9 = vld [vmem:[%s8294_s8 + $0x180] sm:$0xff] }
  0xb3   : > { %v5931_v14 = vpop.permute.xlu1 %540 }
  0xb4   : > { %v5933_v15 = vpop.permute.xlu0 %530  ;;  %2467 = vperm.xlu1 %5444, %v1204_v12  }
  0xb5   : > { %2462 = vperm.xlu0 %5443, %v1203_v13  }
  0xb7   : > { %v5941_v18 = vpop.permute.xlu1 %550 }
  0xb8   : > { %v5943_v19 = vpop.permute.xlu0 %545  ;;  %2477 = vperm.xlu1 %5444, %v1206_v16   ;;  %v1236_v16 = vld [vmem:[%s8294_s8 + $0x198] sm:$0xff] }
  0xb9   : > { %2472 = vperm.xlu0 %5443, %v1205_v17   ;;  %v1235_v17 = vld [vmem:[%s8294_s8 + $0x190] sm:$0xff] }
  0xbb   : > { %v5951_v22 = vpop.permute.xlu1 %560 }
  0xbc   : > { %v5953_v23 = vpop.permute.xlu0 %555  ;;  %2487 = vperm.xlu1 %5444, %v1208_v20  }
  0xbd   : > { %2482 = vperm.xlu0 %5443, %v1207_v21  }
  0xbf   : > { %v5961_v26 = vpop.permute.xlu1 %578 }
  0xc0   : > { %v5963_v27 = vpop.permute.xlu0 %573  ;;  %2497 = vperm.xlu1 %5444, %v1210_v24   ;;  %v1238_v24 = vld [vmem:[%s8294_s8 + $0x1a8] sm:$0xff] }
  0xc1   : > { %2492 = vperm.xlu0 %5443, %v1209_v25   ;;  %v1237_v25 = vld [vmem:[%s8294_s8 + $0x1a0] sm:$0xff] }
  0xc3   : > { %v5971_v30 = vpop.permute.xlu1 %588 }
  0xc4   : > { %v5973_v31 = vpop.permute.xlu0 %583  ;;  %2507 = vperm.xlu1 %5444, %v1212_v28  }
  0xc5   : > { %2502 = vperm.xlu0 %5443, %v1211_v29  }
  0xc7   : > { %v5981_v34 = vpop.permute.xlu1 %598 }
  0xc8   : > { %v5983_v35 = vpop.permute.xlu0 %593  ;;  %2517 = vperm.xlu1 %5444, %v1214_v32   ;;  %v1240_v32 = vld [vmem:[%s8294_s8 + $0x1b8] sm:$0xff] }
  0xc9   : > { %2512 = vperm.xlu0 %5443, %v1213_v33   ;;  %v1239_v33 = vld [vmem:[%s8294_s8 + $0x1b0] sm:$0xff] }
  0xcb   : > { %v5991_v38 = vpop.permute.xlu1 %608 }
  0xcc   : > { %v5993_v39 = vpop.permute.xlu0 %603  ;;  %2527 = vperm.xlu1 %5444, %v1216_v36  }
  0xcd   : > { %2522 = vperm.xlu0 %5443, %v1215_v37  }
  0xcf   : > { %v6001_v42 = vpop.permute.xlu1 %848 }
  0xd0   : > { %v6003_v43 = vpop.permute.xlu0 %843  ;;  %2537 = vperm.xlu1 %5444, %v1218_v40   ;;  %v1242_v40 = vld [vmem:[%s8294_s8 + $0x1c8] sm:$0xff] }
  0xd1   : > { %2532 = vperm.xlu0 %5443, %v1217_v41   ;;  %v1241_v41 = vld [vmem:[%s8294_s8 + $0x1c0] sm:$0xff] }
  0xd3   : > { %v6011_v46 = vpop.permute.xlu1 %858 }
  0xd4   : > { %v6013_v47 = vpop.permute.xlu0 %853  ;;  %2547 = vperm.xlu1 %5444, %v1220_v44  }
  0xd5   : > { %2542 = vperm.xlu0 %5443, %v1219_v45  }
  0xd7   : > { %v6021_v50 = vpop.permute.xlu1 %868 }
  0xd8   : > { %v6023_v51 = vpop.permute.xlu0 %863  ;;  %2557 = vperm.xlu1 %5444, %v1222_v48   ;;  %v1244_v48 = vld [vmem:[%s8294_s8 + $0x1d8] sm:$0xff] }
  0xd9   : > { %2552 = vperm.xlu0 %5443, %v1221_v49   ;;  %v1243_v49 = vld [vmem:[%s8294_s8 + $0x1d0] sm:$0xff] }
  0xdb   : > { %v6031_v54 = vpop.permute.xlu1 %878 }
  0xdc   : > { %v6033_v55 = vpop.permute.xlu0 %873  ;;  %2567 = vperm.xlu1 %5444, %v1224_v52  }
  0xdd   : > { %2562 = vperm.xlu0 %5443, %v1223_v53  }
  0xdf   : > { %v6041_v58 = vpop.permute.xlu1 %888 }
  0xe0   : > { %v6043_v59 = vpop.permute.xlu0 %883  ;;  %2577 = vperm.xlu1 %5444, %v1226_v56   ;;  %v1246_v56 = vld [vmem:[%s8294_s8 + $0x1e8] sm:$0xff] }
  0xe1   : > { %2572 = vperm.xlu0 %5443, %v1225_v57   ;;  %v1245_v57 = vld [vmem:[%s8294_s8 + $0x1e0] sm:$0xff] }
  0xe3   : > { %v6051_v62 = vpop.permute.xlu1 %898 }
  0xe4   : > { %v6053_v63 = vpop.permute.xlu0 %893  ;;  %2587 = vperm.xlu1 %5444, %v1228_v60  }
  0xe5   : > { %2582 = vperm.xlu0 %5443, %v1227_v61  }
  0xe7   : > { %v6061_v2 = vpop.permute.xlu1 %908 }
  0xe8   : > { %v6063_v3 = vpop.permute.xlu0 %903  ;;  %2597 = vperm.xlu1 %5444, %v1230_v0  }
  0xe9   : > { %2592 = vperm.xlu0 %5443, %v1229_v1  }
  0xeb   : > { %v6071_v6 = vpop.permute.xlu1 %918 }
  0xec   : > { %v6073_v7 = vpop.permute.xlu0 %913  ;;  %2607 = vperm.xlu1 %5444, %v1232_v4  }
  0xed   : > { %2602 = vperm.xlu0 %5443, %v1231_v5   ;;  %v1248_v5 = vld [vmem:[%s8294_s8 + $0x1f8] sm:$0xff] }
  0xef   : > { %v6081_v12 = vpop.permute.xlu1 %944 }
  0xf0   : > { %v6083_v13 = vpop.permute.xlu0 %939  ;;  %2617 = vperm.xlu1 %5444, %v1234_v8   ;;  %v1247_v8 = vld [vmem:[%s8294_s8 + $0x1f0] sm:$0xff] }
  0xf1   : > { %2612 = vperm.xlu0 %5443, %v1233_v9  }
  0xf3   : > { %v6091_v20 = vpop.permute.xlu1 %954 }
  0xf4   : > { %v6093_v21 = vpop.permute.xlu0 %949  ;;  %2627 = vperm.xlu1 %5444, %v1236_v16  }
  0xf5   : > { %2622 = vperm.xlu0 %5443, %v1235_v17  }
  0xf7   : > { %v6101_v28 = vpop.permute.xlu1 %964 }
  0xf8   : > { %v6103_v29 = vpop.permute.xlu0 %959  ;;  %2637 = vperm.xlu1 %5444, %v1238_v24  }
  0xf9   : > { %2632 = vperm.xlu0 %5443, %v1237_v25  }
  0xfb   : > { %v6111_v36 = vpop.permute.xlu1 %974 }
  0xfc   : > { %v6113_v37 = vpop.permute.xlu0 %969  ;;  %2647 = vperm.xlu1 %5444, %v1240_v32  }
  0xfd   : > { %2642 = vperm.xlu0 %5443, %v1239_v33  }
  0xff   : > { %v6121_v44 = vpop.permute.xlu1 %984 }
 0x100   : > { %v6123_v45 = vpop.permute.xlu0 %979  ;;  %2657 = vperm.xlu1 %5444, %v1242_v40  }
 0x101   : > { %2652 = vperm.xlu0 %5443, %v1241_v41  }
 0x103   : > { %v6131_v52 = vpop.permute.xlu1 %994 }
 0x104   : > { %v6133_v53 = vpop.permute.xlu0 %989  ;;  %2667 = vperm.xlu1 %5444, %v1244_v48  }
 0x105   : > { %2662 = vperm.xlu0 %5443, %v1243_v49  }
 0x107   : > { %v6141_v60 = vpop.permute.xlu1 %1004 }
 0x108   : > { %v6143_v61 = vpop.permute.xlu0 %999  ;;  %2677 = vperm.xlu1 %5444, %v1246_v56  }
 0x109   : > { %2672 = vperm.xlu0 %5443, %v1245_v57  }
 0x10b   : > { %v5214_v0 = vpop.f32.mrb[0].mxu0  ;;  %v6155_v32 = vpop.permute.xlu1 %1014 }
 0x10c   : > { %v565_v1 = vmul.f32 %v5214_v0, %v5921_v10  ;;  %v492_v4 = vpop.f32.mrb[1].mxu0  ;;  %v6159_v40 = vpop.permute.xlu0 %1009  ;;  %2687 = vperm.xlu1 %5444, %v1248_v5  }
 0x10d   : > { %v563_v9 = vmul.f32 %v5923_v11, %v492_v4  ;;  %v5215_v16 = vpop.f32.mrb[2].mxu0  ;;  %2682 = vperm.xlu0 %5443, %v1247_v8   ;;  %v1250_v11 = vld [vmem:[%s8294_s8 + $0x208] sm:$0xff]  ;;  %v1252_v4 = vld [vmem:[%s8294_s8 + $0x218] sm:$0xff] }
 0x10e   : > { %v613_v17 = vadd.f32 %v5973_v31, %v565_v1  ;;  %v566_v24 = vmul.f32 %v5215_v16, %v5931_v14  ;;  %v495_v25 = vpop.f32.mrb[3].mxu0  ;;  %v1249_v14 = vld [vmem:[%s8294_s8 + $0x200] sm:$0xff]  ;;  %v1251_v16 = vld [vmem:[%s8294_s8 + $0x210] sm:$0xff] }
 0x10f   : > { %v611_v10 = vadd.f32 %v5963_v27, %v563_v9  ;;  %v564_v33 = vmul.f32 %v5933_v15, %v495_v25  ;;  %v6169_v49 = vpop.permute.xlu1 %2377 }
 0x110   : > { %v614_v41 = vadd.f32 %v5971_v30, %v566_v24  ;;  %v621_v48 = vmax.f32 %v613_v17, 0.0  ;;  %v6171_v57 = vpop.permute.xlu0 %2372  ;;  %2697 = vperm.xlu1 %5444, %v1250_v11  }
 0x111   : > { %v612_v31 = vadd.f32 %v5961_v26, %v564_v33  ;;  %v619_v15 = vmax.f32 %v611_v10, 0.0  ;;  %2692 = vperm.xlu0 %5443, %v1249_v14  }
 0x112   : > { %v622_v27 = vmax.f32 %v614_v41, 0.0 }
 0x113   : > { %v620_v56 = vmax.f32 %v612_v31, 0.0  ;;  %v5218_v0 = vpop.f32.mrb[4].mxu0 }
 0x114   : > { %v569_v30 = vmul.f32 %v5218_v0, %v5953_v23  ;;  %v508_v1 = vpop.f32.mrb[5].mxu0  ;;  %v628_v5 = vpack.c.bf16 %v622_v27, %v621_v48  ;;  %v6183_v23 = vpop.permute.xlu1 %2387  ;;  %2707 = vperm.xlu1 %5444, %v1252_v4   ;;  %v1257_v4 = vld [vmem:[%s8294_s8 + $0x240] sm:$0xff] }
 0x115   : > { %v567_v26 = vmul.f32 %v5943_v19, %v508_v1  ;;  %v5219_v8 = vpop.f32.mrb[6].mxu0  ;;  %v627_v9 = vpack.c.bf16 %v620_v56, %v619_v15  ;;  %v6187_v41 = vpop.permute.xlu0 %2382  ;;  %2702 = vperm.xlu0 %5443, %v1251_v16   ;;  %v1255_v56 = vld [vmem:[%s8294_s8 + $0x230] sm:$0xff]  ;;  %v1258_v1 = vld [vmem:[%s8294_s8 + $0x248] sm:$0xff] }
 0x116   : > { %v617_v17 = vadd.f32 %v5993_v39, %v569_v30  ;;  %v570_v24 = vmul.f32 %v5219_v8, %v5951_v22  ;;  %v511_v25 = vpop.f32.mrb[7].mxu0  ;;  %v1254_v39 = vld [vmem:[%s8294_s8 + $0x228] sm:$0xff]  ;;  %v5451_v16 = vld [vmem:[%s8290_s4 + $0x10] sm:$0xff]  }
 0x117   : > { %v615_v10 = vadd.f32 %v5983_v35, %v567_v26  ;;  %v568_v33 = vmul.f32 %v5941_v18, %v511_v25  ;;  %5220 = vmatprep.subr.bf16.mxu1 %v627_v9  ;;  %v1253_v35 = vld [vmem:[%s8294_s8 + $0x220] sm:$0xff]  ;;  %v5450_v8 = vld [vmem:[%s8290_s4 + $0x8] sm:$0xff]  }
 0x118   : > { %v618_v19 = vadd.f32 %v5991_v38, %v570_v24  ;;  %5221 = vmatpush3.bf16.msra.mxu1 %v627_v9  ;;  %v625_v18 = vmax.f32 %v617_v17, 0.0  ;;  %v6197_v14 = vpop.permute.xlu1 %2397  ;;  %2717 = vperm.xlu1 %5444, %v1254_v39   ;;  %v1260_v9 = vld [vmem:[%s8294_s8 + $0x258] sm:$0xff]  ;;  %v1259_v17 = vld [vmem:[%s8294_s8 + $0x250] sm:$0xff] }
 0x119   : > { %v616_v22 = vadd.f32 %v5981_v34, %v568_v33  ;;  %5222 = vmatprep.subr.bf16.mxu1 %v628_v5  ;;  %v623_v31 = vmax.f32 %v615_v10, 0.0  ;;  %v6199_v38 = vpop.permute.xlu0 %2392  ;;  %2712 = vperm.xlu0 %5443, %v1253_v35   ;;  %v1256_v34 = vld [vmem:[%s8294_s8 + $0x238] sm:$0xff]  ;;  %v1262_v10 = vld [vmem:[%s8294_s8 + $0x268] sm:$0xff]  ;;  %v1261_v33 = vld [vmem:[%s8294_s8 + $0x260] sm:$0xff] }
 0x11a   : > { %v626_v11 = vmax.f32 %v618_v19, 0.0  ;;  %v1264_v35 = vld [vmem:[%s8294_s8 + $0x278] sm:$0xff] }
 0x11b   : > { %v624_v48 = vmax.f32 %v616_v22, 0.0  ;;  %v5452_v22 = vld [vmem:[%s8290_s4 + $0x18] sm:$0xff]  }
 0x11c   : > { %5223 = vmatpush3.bf16.msra.mxu1 %v628_v5  ;;  %v630_v27 = vpack.c.bf16 %v626_v11, %v625_v18  ;;  %v6207_v0 = vpop.permute.xlu1 %2407  ;;  %2727 = vperm.xlu1 %5444, %v1256_v34   ;;  %v5453_v18 = vld [vmem:[%s8290_s4 + $0x20] sm:$0xff]   ;;  %v1263_v11 = vld [vmem:[%s8294_s8 + $0x270] sm:$0xff]  ;;  %v1266_v34 = vld [vmem:[%s8294_s8 + $0x288] sm:$0xff] }
 0x11d   : > { %v629_v15 = vpack.c.bf16 %v624_v48, %v623_v31  ;;  %v6209_v30 = vpop.permute.xlu0 %2402  ;;  %2722 = vperm.xlu0 %5443, %v1255_v56  }
 0x11f   : > { %5224 = vmatprep.subr.bf16.mxu1 %v629_v15 }
 0x120   : > { %5225 = vmatpush3.bf16.msra.mxu1 %v629_v15  ;;  %v6217_v5 = vpop.permute.xlu1 %2417  ;;  %2737 = vperm.xlu1 %5444, %v1258_v1   ;;  %v5454_v1 = vld [vmem:[%s8290_s4 + $0x28] sm:$0xff]  }
 0x121   : > { %5226 = vmatprep.subr.bf16.mxu1 %v630_v27  ;;  %8305 = vst [vmem:[#allocation5_spill] sm:$0xff] %v6217_v5  ;;  %v6219_v26 = vpop.permute.xlu0 %2412  ;;  %2732 = vperm.xlu0 %5443, %v1257_v4   ;;  %v1268_v4 = vld [vmem:[%s8294_s8 + $0x298] sm:$0xff] }
 0x124   : > { %5227 = vmatpush3.bf16.msra.mxu1 %v630_v27  ;;  %v6233_v24 = vpop.permute.xlu1 %2427  ;;  %2747 = vperm.xlu1 %5444, %v1260_v9   ;;  %v1265_v27 = vld [vmem:[%s8294_s8 + $0x280] sm:$0xff]  ;;  %v1267_v9 = vld [vmem:[%s8294_s8 + $0x290] sm:$0xff] }
 0x125   : > { %8306 = vst [vmem:[#allocation6_spill] sm:$0xff] %v6233_v24  ;;  %v6235_v25 = vpop.permute.xlu0 %2422  ;;  %2742 = vperm.xlu0 %5443, %v1259_v17  }
 0x127   : > { %5229 = vmatmul.mubr.msk.bf16.vlgmr.msra.gmra.mrb[0].mxu1 %vm719_vm2, %v5450_v8  ;;  %v5455_v8 = vld [vmem:[%s8290_s4 + $0x30] sm:$0xff]  }
 0x128   : > { %5232 = vmatprep.mubr.msk.bf16.mxu1 %vm719_vm2, %v5451_v16  ;;  %v6245_v19 = vpop.permute.xlu1 %2437  ;;  %2757 = vperm.xlu1 %5444, %v1262_v10   ;;  %v1270_v10 = vld [vmem:[%s8294_s8 + $0x2a8] sm:$0xff] }
 0x129   : > { %8307 = vst [vmem:[#allocation7_spill] sm:$0xff] %v6245_v19  ;;  %v6247_v39 = vpop.permute.xlu0 %2432  ;;  %2752 = vperm.xlu0 %5443, %v1261_v33   ;;  %v1269_v33 = vld [vmem:[%s8294_s8 + $0x2a0] sm:$0xff] }
 0x12a   : > { %8308 = vst [vmem:[#allocation8_spill] sm:$0xff] %v6247_v39  ;;  %v1332_v39 = vld [vmem:[%s8295_s9 + $0x98] sm:$0xff] }
 0x12c   : > { %v6261_v31 = vpop.permute.xlu1 %2447  ;;  %2767 = vperm.xlu1 %5444, %v1264_v35  }
 0x12d   : > { %8309 = vst [vmem:[#allocation9_spill] sm:$0xff] %v6261_v31  ;;  %v6263_v48 = vpop.permute.xlu0 %2442  ;;  %2762 = vperm.xlu0 %5443, %v1263_v11   ;;  %v1272_v11 = vld [vmem:[%s8294_s8 + $0x2b8] sm:$0xff] }
 0x12e   : > { %8310 = vst [vmem:[#allocation10_spill] sm:$0xff] %v6263_v48 }
 0x12f   : > { %5233 = vmatmul.mubr.msk.bf16.gmra.mrb[4].mxu1 %vm719_vm2, %v5452_v22 }
 0x130   : > { %5236 = vmatprep.mubr.msk.bf16.mxu1 %vm719_vm2, %v5453_v18  ;;  %v6273_v15 = vpop.permute.xlu1 %2457  ;;  %2777 = vperm.xlu1 %5444, %v1266_v34   ;;  %v5456_v18 = vld [vmem:[%s8290_s4 + $0x38] sm:$0xff]   ;;  %v1271_v34 = vld [vmem:[%s8294_s8 + $0x2b0] sm:$0xff] }
 0x131   : > { %8311 = vst [vmem:[#allocation11_spill] sm:$0xff] %v6273_v15  ;;  %v6275_v56 = vpop.permute.xlu0 %2452  ;;  %2772 = vperm.xlu0 %5443, %v1265_v27   ;;  %v1323_v15 = vld [vmem:[%s8295_s9 + $0x50] sm:$0xff] }
 0x132   : > { %8312 = vst [vmem:[#allocation12_spill] sm:$0xff] %v6275_v56 }
 0x134   : > { %v6289_v16 = vpop.permute.xlu1 %2467  ;;  %2787 = vperm.xlu1 %5444, %v1268_v4   ;;  %v1274_v4 = vld [vmem:[%s8294_s8 + $0x2c8] sm:$0xff] }
 0x135   : > { %8313 = vst [vmem:[#allocation13_spill] sm:$0xff] %v6289_v16  ;;  %v6291_v17 = vpop.permute.xlu0 %2462  ;;  %2782 = vperm.xlu0 %5443, %v1267_v9  }
 0x136   : > { %8314 = vst [vmem:[#allocation14_spill] sm:$0xff] %v6291_v17  ;;  %v1330_v17 = vld [vmem:[%s8295_s9 + $0x88] sm:$0xff] }
 0x137   : > { %5237 = vmatmul.mubr.msk.bf16.gmra.mrb[8].mxu1 %vm719_vm2, %v5454_v1 }
 0x138   : > { %5240 = vmatprep.mubr.msk.bf16.mxu1 %vm719_vm2, %v5455_v8  ;;  %v6301_v22 = vpop.permute.xlu1 %2477  ;;  %2797 = vperm.xlu1 %5444, %v1270_v10   ;;  %v1273_v8 = vld [vmem:[%s8294_s8 + $0x2c0] sm:$0xff] }
 0x139   : > { %8315 = vst [vmem:[#allocation15_spill] sm:$0xff] %v6301_v22  ;;  %v6303_v35 = vpop.permute.xlu0 %2472  ;;  %2792 = vperm.xlu0 %5443, %v1269_v33   ;;  %v1276_v33 = vld [vmem:[%s8294_s8 + $0x2d8] sm:$0xff] }
 0x13a   : > { %8316 = vst [vmem:[#allocation16_spill] sm:$0xff] %v6303_v35  ;;  %v1324_v35 = vld [vmem:[%s8295_s9 + $0x58] sm:$0xff] }
 0x13c   : > { %v6314_v27 = vpop.permute.xlu1 %2487  ;;  %2807 = vperm.xlu1 %5444, %v1272_v11  }
 0x13d   : > { %8317 = vst [vmem:[#allocation17_spill] sm:$0xff] %v6314_v27  ;;  %v6316_v1 = vpop.permute.xlu0 %2482  ;;  %2802 = vperm.xlu0 %5443, %v1271_v34  }
 0x13e   : > { %8318 = vst [vmem:[#allocation18_spill] sm:$0xff] %v6316_v1 }
 0x13f   : > { %5241 = vmatmul.mubr.msk.bf16.gmra.mrb[12].mxu1 %vm719_vm2, %v5456_v18  ;;  %v1275_v18 = vld [vmem:[%s8294_s8 + $0x2d0] sm:$0xff] }
 0x140   : > { %v6325_v9 = vpop.permute.xlu1 %2497  ;;  %2817 = vperm.xlu1 %5444, %v1274_v4   ;;  %v1277_v4 = vld [vmem:[%s8294_s8 + $0x2e0] sm:$0xff] }
 0x141   : > { %8319 = vst [vmem:[#allocation19_spill] sm:$0xff] %v6325_v9  ;;  %v6327_v10 = vpop.permute.xlu0 %2492  ;;  %2812 = vperm.xlu0 %5443, %v1273_v8   ;;  %v1278_v9 = vld [vmem:[%s8294_s8 + $0x2e8] sm:$0xff] }
 0x142   : > { %8320 = vst [vmem:[#allocation20_spill] sm:$0xff] %v6327_v10 }
 0x144   : > { %v6335_v11 = vpop.permute.xlu1 %2507  ;;  %2827 = vperm.xlu1 %5444, %v1276_v33   ;;  %v1279_v33 = vld [vmem:[%s8294_s8 + $0x2f0] sm:$0xff] }
 0x145   : > { %8321 = vst [vmem:[#allocation21_spill] sm:$0xff] %v6335_v11  ;;  %v6337_v34 = vpop.permute.xlu0 %2502  ;;  %2822 = vperm.xlu0 %5443, %v1275_v18   ;;  %v1280_v11 = vld [vmem:[%s8294_s8 + $0x2f8] sm:$0xff] }
 0x146   : > { %8322 = vst [vmem:[#allocation22_spill] sm:$0xff] %v6337_v34  ;;  %v1322_v34 = vld [vmem:[%s8295_s9 + $0x48] sm:$0xff] }
 0x148   : > { %v6345_v8 = vpop.permute.xlu1 %2517  ;;  %2837 = vperm.xlu1 %5444, %v1278_v9   ;;  %v1281_v9 = vld [vmem:[%s8294_s8 + $0x300] sm:$0xff] }
 0x149   : > { %8323 = vst [vmem:[#allocation23_spill] sm:$0xff] %v6345_v8  ;;  %v6347_v10 = vpop.permute.xlu0 %2512  ;;  %2832 = vperm.xlu0 %5443, %v1277_v4   ;;  %v1282_v8 = vld [vmem:[%s8294_s8 + $0x308] sm:$0xff] }
 0x14a   : > { %8324 = vst [vmem:[#allocation24_spill] sm:$0xff] %v6347_v10 }
 0x14c   : > { %v6355_v18 = vpop.permute.xlu1 %2527  ;;  %2847 = vperm.xlu1 %5444, %v1280_v11   ;;  %v1283_v11 = vld [vmem:[%s8294_s8 + $0x310] sm:$0xff] }
 0x14d   : > { %8325 = vst [vmem:[#allocation25_spill] sm:$0xff] %v6355_v18  ;;  %v6357_v22 = vpop.permute.xlu0 %2522  ;;  %2842 = vperm.xlu0 %5443, %v1279_v33   ;;  %v1284_v18 = vld [vmem:[%s8294_s8 + $0x318] sm:$0xff] }
 0x14e   : > { %8326 = vst [vmem:[#allocation26_spill] sm:$0xff] %v6357_v22 }
 0x150   : > { %v6365_v4 = vpop.permute.xlu1 %2537  ;;  %2857 = vperm.xlu1 %5444, %v1282_v8   ;;  %v1285_v8 = vld [vmem:[%s8294_s8 + $0x320] sm:$0xff] }
 0x151   : > { %8327 = vst [vmem:[#allocation27_spill] sm:$0xff] %v6365_v4  ;;  %v6367_v10 = vpop.permute.xlu0 %2532  ;;  %2852 = vperm.xlu0 %5443, %v1281_v9   ;;  %v1286_v4 = vld [vmem:[%s8294_s8 + $0x328] sm:$0xff] }
 0x152   : > { %8328 = vst [vmem:[#allocation28_spill] sm:$0xff] %v6367_v10 }
 0x154   : > { %v6375_v33 = vpop.permute.xlu1 %2547  ;;  %2867 = vperm.xlu1 %5444, %v1284_v18   ;;  %v1287_v18 = vld [vmem:[%s8294_s8 + $0x330] sm:$0xff] }
 0x155   : > { %8329 = vst [vmem:[#allocation29_spill] sm:$0xff] %v6375_v33  ;;  %v6377_v22 = vpop.permute.xlu0 %2542  ;;  %2862 = vperm.xlu0 %5443, %v1283_v11   ;;  %v1288_v33 = vld [vmem:[%s8294_s8 + $0x338] sm:$0xff] }
 0x156   : > { %8330 = vst [vmem:[#allocation30_spill] sm:$0xff] %v6377_v22 }
 0x158   : > { %v6385_v9 = vpop.permute.xlu1 %2557  ;;  %2877 = vperm.xlu1 %5444, %v1286_v4   ;;  %v1289_v4 = vld [vmem:[%s8294_s8 + $0x340] sm:$0xff] }
 0x159   : > { %8331 = vst [vmem:[#allocation31_spill] sm:$0xff] %v6385_v9  ;;  %v6387_v10 = vpop.permute.xlu0 %2552  ;;  %2872 = vperm.xlu0 %5443, %v1285_v8   ;;  %v1290_v9 = vld [vmem:[%s8294_s8 + $0x348] sm:$0xff] }
 0x15a   : > { %8332 = vst [vmem:[#allocation32_spill] sm:$0xff] %v6387_v10 }
 0x15c   : > { %v6395_v11 = vpop.permute.xlu1 %2567  ;;  %2887 = vperm.xlu1 %5444, %v1288_v33   ;;  %v1291_v33 = vld [vmem:[%s8294_s8 + $0x350] sm:$0xff] }
 0x15d   : > { %8333 = vst [vmem:[#allocation33_spill] sm:$0xff] %v6395_v11  ;;  %v6397_v22 = vpop.permute.xlu0 %2562  ;;  %2882 = vperm.xlu0 %5443, %v1287_v18   ;;  %v1292_v11 = vld [vmem:[%s8294_s8 + $0x358] sm:$0xff] }
 0x15e   : > { %8334 = vst [vmem:[#allocation34_spill] sm:$0xff] %v6397_v22 }
 0x160   : > { %v6405_v8 = vpop.permute.xlu1 %2577  ;;  %2897 = vperm.xlu1 %5444, %v1290_v9   ;;  %v1293_v9 = vld [vmem:[%s8294_s8 + $0x360] sm:$0xff] }
 0x161   : > { %8335 = vst [vmem:[#allocation35_spill] sm:$0xff] %v6405_v8  ;;  %v6407_v10 = vpop.permute.xlu0 %2572  ;;  %2892 = vperm.xlu0 %5443, %v1289_v4   ;;  %v1294_v8 = vld [vmem:[%s8294_s8 + $0x368] sm:$0xff] }
 0x162   : > { %8336 = vst [vmem:[#allocation36_spill] sm:$0xff] %v6407_v10 }
 0x164   : > { %v6415_v18 = vpop.permute.xlu1 %2587  ;;  %2907 = vperm.xlu1 %5444, %v1292_v11   ;;  %v1295_v11 = vld [vmem:[%s8294_s8 + $0x370] sm:$0xff] }
 0x165   : > { %8337 = vst [vmem:[#allocation37_spill] sm:$0xff] %v6415_v18  ;;  %v6417_v22 = vpop.permute.xlu0 %2582  ;;  %2902 = vperm.xlu0 %5443, %v1291_v33   ;;  %v1296_v18 = vld [vmem:[%s8294_s8 + $0x378] sm:$0xff] }
 0x166   : > { %8338 = vst [vmem:[#allocation38_spill] sm:$0xff] %v6417_v22 }
 0x168   : > { %v6425_v4 = vpop.permute.xlu1 %2597  ;;  %2917 = vperm.xlu1 %5444, %v1294_v8   ;;  %v1297_v8 = vld [vmem:[%s8294_s8 + $0x380] sm:$0xff] }
 0x169   : > { %8339 = vst [vmem:[#allocation39_spill] sm:$0xff] %v6425_v4  ;;  %v6427_v10 = vpop.permute.xlu0 %2592  ;;  %2912 = vperm.xlu0 %5443, %v1293_v9   ;;  %v1298_v4 = vld [vmem:[%s8294_s8 + $0x388] sm:$0xff] }
 0x16a   : > { %8340 = vst [vmem:[#allocation40_spill] sm:$0xff] %v6427_v10 }
 0x16c   : > { %v6435_v33 = vpop.permute.xlu1 %2607  ;;  %2927 = vperm.xlu1 %5444, %v1296_v18   ;;  %v1299_v18 = vld [vmem:[%s8294_s8 + $0x390] sm:$0xff] }
 0x16d   : > { %8341 = vst [vmem:[#allocation41_spill] sm:$0xff] %v6435_v33  ;;  %v6437_v22 = vpop.permute.xlu0 %2602  ;;  %2922 = vperm.xlu0 %5443, %v1295_v11   ;;  %v1300_v33 = vld [vmem:[%s8294_s8 + $0x398] sm:$0xff] }
 0x16e   : > { %8342 = vst [vmem:[#allocation42_spill] sm:$0xff] %v6437_v22 }
 0x170   : > { %v6445_v9 = vpop.permute.xlu1 %2617  ;;  %2937 = vperm.xlu1 %5444, %v1298_v4   ;;  %v1301_v4 = vld [vmem:[%s8294_s8 + $0x3a0] sm:$0xff] }
 0x171   : > { %8343 = vst [vmem:[#allocation43_spill] sm:$0xff] %v6445_v9  ;;  %v6447_v10 = vpop.permute.xlu0 %2612  ;;  %2932 = vperm.xlu0 %5443, %v1297_v8   ;;  %v1302_v9 = vld [vmem:[%s8294_s8 + $0x3a8] sm:$0xff] }
 0x172   : > { %8344 = vst [vmem:[#allocation44_spill] sm:$0xff] %v6447_v10 }
 0x174   : > { %v6455_v11 = vpop.permute.xlu1 %2627  ;;  %2947 = vperm.xlu1 %5444, %v1300_v33   ;;  %v1303_v33 = vld [vmem:[%s8294_s8 + $0x3b0] sm:$0xff] }
 0x175   : > { %8345 = vst [vmem:[#allocation45_spill] sm:$0xff] %v6455_v11  ;;  %v6457_v22 = vpop.permute.xlu0 %2622  ;;  %2942 = vperm.xlu0 %5443, %v1299_v18   ;;  %v1304_v11 = vld [vmem:[%s8294_s8 + $0x3b8] sm:$0xff] }
 0x176   : > { %8346 = vst [vmem:[#allocation46_spill] sm:$0xff] %v6457_v22 }
 0x178   : > { %v6465_v8 = vpop.permute.xlu1 %2637  ;;  %2957 = vperm.xlu1 %5444, %v1302_v9   ;;  %v1305_v9 = vld [vmem:[%s8294_s8 + $0x3c0] sm:$0xff] }
 0x179   : > { %8347 = vst [vmem:[#allocation47_spill] sm:$0xff] %v6465_v8  ;;  %v6467_v10 = vpop.permute.xlu0 %2632  ;;  %2952 = vperm.xlu0 %5443, %v1301_v4   ;;  %v1306_v8 = vld [vmem:[%s8294_s8 + $0x3c8] sm:$0xff] }
 0x17a   : > { %8348 = vst [vmem:[#allocation48_spill] sm:$0xff] %v6467_v10 }
 0x17c   : > { %v6475_v18 = vpop.permute.xlu1 %2647  ;;  %2967 = vperm.xlu1 %5444, %v1304_v11   ;;  %v1307_v11 = vld [vmem:[%s8294_s8 + $0x3d0] sm:$0xff] }
 0x17d   : > { %8349 = vst [vmem:[#allocation49_spill] sm:$0xff] %v6475_v18  ;;  %v6477_v22 = vpop.permute.xlu0 %2642  ;;  %2962 = vperm.xlu0 %5443, %v1303_v33   ;;  %v1308_v18 = vld [vmem:[%s8294_s8 + $0x3d8] sm:$0xff] }
 0x17e   : > { %8350 = vst [vmem:[#allocation50_spill] sm:$0xff] %v6477_v22 }
 0x180   : > { %v6485_v4 = vpop.permute.xlu1 %2657  ;;  %2977 = vperm.xlu1 %5444, %v1306_v8   ;;  %v1309_v8 = vld [vmem:[%s8294_s8 + $0x3e0] sm:$0xff] }
 0x181   : > { %8351 = vst [vmem:[#allocation51_spill] sm:$0xff] %v6485_v4  ;;  %v6487_v10 = vpop.permute.xlu0 %2652  ;;  %2972 = vperm.xlu0 %5443, %v1305_v9   ;;  %v1310_v4 = vld [vmem:[%s8294_s8 + $0x3e8] sm:$0xff] }
 0x182   : > { %8352 = vst [vmem:[#allocation52_spill] sm:$0xff] %v6487_v10 }
 0x184   : > { %v6495_v33 = vpop.permute.xlu1 %2667  ;;  %2987 = vperm.xlu1 %5444, %v1308_v18   ;;  %v1311_v18 = vld [vmem:[%s8294_s8 + $0x3f0] sm:$0xff] }
 0x185   : > { %8353 = vst [vmem:[#allocation53_spill] sm:$0xff] %v6495_v33  ;;  %v6497_v22 = vpop.permute.xlu0 %2662  ;;  %2982 = vperm.xlu0 %5443, %v1307_v11   ;;  %v1312_v33 = vld [vmem:[%s8294_s8 + $0x3f8] sm:$0xff] }
 0x186   : > { %8354 = vst [vmem:[#allocation54_spill] sm:$0xff] %v6497_v22 }
 0x188   : > { %v6505_v9 = vpop.permute.xlu1 %2677  ;;  %2997 = vperm.xlu1 %5444, %v1310_v4   ;;  %v1313_v4 = vld [vmem:[%s8295_s9] sm:$0xff] }
 0x189   : > { %8355 = vst [vmem:[#allocation55_spill] sm:$0xff] %v6505_v9  ;;  %v6507_v10 = vpop.permute.xlu0 %2672  ;;  %2992 = vperm.xlu0 %5443, %v1309_v8   ;;  %v1314_v9 = vld [vmem:[%s8295_s9 + $0x8] sm:$0xff] }
 0x18a   : > { %8356 = vst [vmem:[#allocation56_spill] sm:$0xff] %v6507_v10 }
 0x18c   : > { %v6515_v11 = vpop.permute.xlu1 %2687  ;;  %3007 = vperm.xlu1 %5444, %v1312_v33   ;;  %v1315_v33 = vld [vmem:[%s8295_s9 + $0x10] sm:$0xff] }
 0x18d   : > { %8357 = vst [vmem:[#allocation57_spill] sm:$0xff] %v6515_v11  ;;  %v6517_v22 = vpop.permute.xlu0 %2682  ;;  %3002 = vperm.xlu0 %5443, %v1311_v18   ;;  %v1316_v11 = vld [vmem:[%s8295_s9 + $0x18] sm:$0xff] }
 0x18e   : > { %8358 = vst [vmem:[#allocation58_spill] sm:$0xff] %v6517_v22 }
 0x190   : > { %v6525_v8 = vpop.permute.xlu1 %2697  ;;  %3145 = vperm.xlu1 %5444, %v1314_v9   ;;  %v1317_v9 = vld [vmem:[%s8295_s9 + $0x20] sm:$0xff] }
 0x191   : > { %8359 = vst [vmem:[#allocation59_spill] sm:$0xff] %v6525_v8  ;;  %v6527_v10 = vpop.permute.xlu0 %2692  ;;  %3140 = vperm.xlu0 %5443, %v1313_v4   ;;  %v1318_v8 = vld [vmem:[%s8295_s9 + $0x28] sm:$0xff] }
 0x192   : > { %8360 = vst [vmem:[#allocation60_spill] sm:$0xff] %v6527_v10 }
 0x194   : > { %v6535_v18 = vpop.permute.xlu1 %2707  ;;  %3155 = vperm.xlu1 %5444, %v1316_v11   ;;  %v1319_v11 = vld [vmem:[%s8295_s9 + $0x30] sm:$0xff] }
 0x195   : > { %8361 = vst [vmem:[#allocation61_spill] sm:$0xff] %v6535_v18  ;;  %v6537_v22 = vpop.permute.xlu0 %2702  ;;  %3150 = vperm.xlu0 %5443, %v1315_v33   ;;  %v1320_v18 = vld [vmem:[%s8295_s9 + $0x38] sm:$0xff] }
 0x196   : > { %8362 = vst [vmem:[#allocation62_spill] sm:$0xff] %v6537_v22 }
 0x198   : > { %v6545_v4 = vpop.permute.xlu1 %2717  ;;  %3165 = vperm.xlu1 %5444, %v1318_v8   ;;  %v1321_v8 = vld [vmem:[%s8295_s9 + $0x40] sm:$0xff] }
 0x199   : > { %v6547_v10 = vpop.permute.xlu0 %2712  ;;  %3160 = vperm.xlu0 %5443, %v1317_v9  }
 0x19c   : > { %v6555_v33 = vpop.permute.xlu1 %2727  ;;  %3175 = vperm.xlu1 %5444, %v1320_v18   ;;  %v5457_v18 = vld [vmem:[#allocation2] sm:$0xff]  }
 0x19d   : > { %v6557_v22 = vpop.permute.xlu0 %2722  ;;  %3170 = vperm.xlu0 %5443, %v1319_v11   ;;  %v5458_v11 = vld [vmem:[#allocation2 + $0x110] sm:$0xff]   ;;  %5260 = vmatprep.mubr.bf16.mxu0 %v5457_v18  ;;  %v1328_v18 = vld [vmem:[%s8295_s9 + $0x78] sm:$0xff] }
 0x19e   : > { %5328 = vmatprep.mubr.bf16.mxu1 %v5458_v11 }
 0x1a0   : > { %v6565_v9 = vpop.permute.xlu1 %2737  ;;  %3185 = vperm.xlu1 %5444, %v1322_v34   ;;  %v1326_v34 = vld [vmem:[%s8295_s9 + $0x68] sm:$0xff] }
 0x1a1   : > { %v6567_v27 = vpop.permute.xlu0 %2732  ;;  %3180 = vperm.xlu0 %5443, %v1321_v8   ;;  %v1325_v8 = vld [vmem:[%s8295_s9 + $0x60] sm:$0xff] }
 0x1a4   : > { %v6575_v1 = vpop.permute.xlu1 %2747  ;;  %3195 = vperm.xlu1 %5444, %v1324_v35  }
 0x1a5   : > { %v6577_v16 = vpop.permute.xlu0 %2742  ;;  %3190 = vperm.xlu0 %5443, %v1323_v15   ;;  %v1327_v15 = vld [vmem:[%s8295_s9 + $0x70] sm:$0xff] }
 0x1a8   : > { %v6585_v56 = vpop.permute.xlu1 %2757  ;;  %3205 = vperm.xlu1 %5444, %v1326_v34   ;;  %v1329_v34 = vld [vmem:[%s8295_s9 + $0x80] sm:$0xff] }
 0x1a9   : > { %8363 = vst [vmem:[#allocation63_spill] sm:$0xff] %v6585_v56  ;;  %v6587_v19 = vpop.permute.xlu0 %2752  ;;  %3200 = vperm.xlu0 %5443, %v1325_v8  }
 0x1aa   : > { %8364 = vst [vmem:[#allocation64_spill] sm:$0xff] %v6587_v19 }
 0x1ac   : > { %v6595_v35 = vpop.permute.xlu1 %2767  ;;  %3215 = vperm.xlu1 %5444, %v1328_v18   ;;  %v1331_v18 = vld [vmem:[%s8295_s9 + $0x90] sm:$0xff] }
 0x1ad   : > { %8365 = vst [vmem:[#allocation65_spill] sm:$0xff] %v6595_v35  ;;  %v6597_v11 = vpop.permute.xlu0 %2762  ;;  %3210 = vperm.xlu0 %5443, %v1327_v15  }
 0x1b0   : > { %v6605_v8 = vpop.permute.xlu1 %2777  ;;  %3225 = vperm.xlu1 %5444, %v1330_v17   ;;  %v1333_v17 = vld [vmem:[%s8295_s9 + $0xa0] sm:$0xff] }
 0x1b1   : > { %8366 = vst [vmem:[#allocation66_spill] sm:$0xff] %v6605_v8  ;;  %v6607_v31 = vpop.permute.xlu0 %2772  ;;  %3220 = vperm.xlu0 %5443, %v1329_v34   ;;  %v1334_v8 = vld [vmem:[%s8295_s9 + $0xa8] sm:$0xff] }
 0x1b2   : > { %8367 = vst [vmem:[#allocation67_spill] sm:$0xff] %v6607_v31 }
 0x1b4   : > { %v6615_v15 = vpop.permute.xlu1 %2787  ;;  %3235 = vperm.xlu1 %5444, %v1332_v39   ;;  %v1335_v39 = vld [vmem:[%s8295_s9 + $0xb0] sm:$0xff] }
 0x1b5   : > { %8368 = vst [vmem:[#allocation68_spill] sm:$0xff] %v6615_v15  ;;  %v6617_v56 = vpop.permute.xlu0 %2782  ;;  %3230 = vperm.xlu0 %5443, %v1331_v18   ;;  %v1336_v15 = vld [vmem:[%s8295_s9 + $0xb8] sm:$0xff] }
 0x1b6   : > { %8369 = vst [vmem:[#allocation69_spill] sm:$0xff] %v6617_v56 }
 0x1b8   : > { %v6625_v34 = vpop.permute.xlu1 %2797  ;;  %3245 = vperm.xlu1 %5444, %v1334_v8   ;;  %v1337_v8 = vld [vmem:[%s8295_s9 + $0xc0] sm:$0xff] }
 0x1b9   : > { %8370 = vst [vmem:[#allocation70_spill] sm:$0xff] %v6625_v34  ;;  %v6627_v31 = vpop.permute.xlu0 %2792  ;;  %3240 = vperm.xlu0 %5443, %v1333_v17   ;;  %v1338_v34 = vld [vmem:[%s8295_s9 + $0xc8] sm:$0xff] }
 0x1ba   : > { %8371 = vst [vmem:[#allocation71_spill] sm:$0xff] %v6627_v31 }
 0x1bc   : > { %v6635_v18 = vpop.permute.xlu1 %2807  ;;  %3255 = vperm.xlu1 %5444, %v1336_v15   ;;  %v1339_v15 = vld [vmem:[%s8295_s9 + $0xd0] sm:$0xff] }
 0x1bd   : > { %8372 = vst [vmem:[#allocation72_spill] sm:$0xff] %v6635_v18  ;;  %v6637_v56 = vpop.permute.xlu0 %2802  ;;  %3250 = vperm.xlu0 %5443, %v1335_v39   ;;  %v1340_v18 = vld [vmem:[%s8295_s9 + $0xd8] sm:$0xff] }
 0x1be   : > { %8373 = vst [vmem:[#allocation73_spill] sm:$0xff] %v6637_v56 }
 0x1c0   : > { %v6645_v17 = vpop.permute.xlu1 %2817  ;;  %3265 = vperm.xlu1 %5444, %v1338_v34   ;;  %v1341_v34 = vld [vmem:[%s8295_s9 + $0xe0] sm:$0xff] }
 0x1c1   : > { %8374 = vst [vmem:[#allocation74_spill] sm:$0xff] %v6645_v17  ;;  %v6647_v31 = vpop.permute.xlu0 %2812  ;;  %3260 = vperm.xlu0 %5443, %v1337_v8   ;;  %v1342_v17 = vld [vmem:[%s8295_s9 + $0xe8] sm:$0xff] }
 0x1c2   : > { %8375 = vst [vmem:[#allocation75_spill] sm:$0xff] %v6647_v31 }
 0x1c4   : > { %v6655_v39 = vpop.permute.xlu1 %2827  ;;  %3275 = vperm.xlu1 %5444, %v1340_v18   ;;  %v1343_v18 = vld [vmem:[%s8295_s9 + $0xf0] sm:$0xff] }
 0x1c5   : > { %8376 = vst [vmem:[#allocation76_spill] sm:$0xff] %v6655_v39  ;;  %v6657_v56 = vpop.permute.xlu0 %2822  ;;  %3270 = vperm.xlu0 %5443, %v1339_v15   ;;  %v1344_v39 = vld [vmem:[%s8295_s9 + $0xf8] sm:$0xff] }
 0x1c6   : > { %8377 = vst [vmem:[#allocation77_spill] sm:$0xff] %v6657_v56 }
 0x1c8   : > { %v6665_v8 = vpop.permute.xlu1 %2837  ;;  %3285 = vperm.xlu1 %5444, %v1342_v17   ;;  %v1345_v17 = vld [vmem:[%s8295_s9 + $0x100] sm:$0xff] }
 0x1c9   : > { %8378 = vst [vmem:[#allocation78_spill] sm:$0xff] %v6665_v8  ;;  %v6667_v31 = vpop.permute.xlu0 %2832  ;;  %3280 = vperm.xlu0 %5443, %v1341_v34   ;;  %v1346_v8 = vld [vmem:[%s8295_s9 + $0x108] sm:$0xff] }
 0x1ca   : > { %8379 = vst [vmem:[#allocation79_spill] sm:$0xff] %v6667_v31 }
 0x1cc   : > { %v6675_v15 = vpop.permute.xlu1 %2847  ;;  %3295 = vperm.xlu1 %5444, %v1344_v39   ;;  %v1347_v39 = vld [vmem:[%s8295_s9 + $0x110] sm:$0xff] }
 0x1cd   : > { %8380 = vst [vmem:[#allocation80_spill] sm:$0xff] %v6675_v15  ;;  %v6677_v56 = vpop.permute.xlu0 %2842  ;;  %3290 = vperm.xlu0 %5443, %v1343_v18   ;;  %v1348_v15 = vld [vmem:[%s8295_s9 + $0x118] sm:$0xff] }
 0x1ce   : > { %8381 = vst [vmem:[#allocation81_spill] sm:$0xff] %v6677_v56 }
 0x1d0   : > { %v6685_v34 = vpop.permute.xlu1 %2857  ;;  %3305 = vperm.xlu1 %5444, %v1346_v8   ;;  %v1349_v8 = vld [vmem:[%s8295_s9 + $0x120] sm:$0xff] }
 0x1d1   : > { %8382 = vst [vmem:[#allocation82_spill] sm:$0xff] %v6685_v34  ;;  %v6687_v31 = vpop.permute.xlu0 %2852  ;;  %3300 = vperm.xlu0 %5443, %v1345_v17   ;;  %v1350_v34 = vld [vmem:[%s8295_s9 + $0x128] sm:$0xff] }
 0x1d2   : > { %8383 = vst [vmem:[#allocation83_spill] sm:$0xff] %v6687_v31 }
 0x1d4   : > { %v6695_v18 = vpop.permute.xlu1 %2867  ;;  %3315 = vperm.xlu1 %5444, %v1348_v15   ;;  %v1351_v15 = vld [vmem:[%s8295_s9 + $0x130] sm:$0xff] }
 0x1d5   : > { %8384 = vst [vmem:[#allocation84_spill] sm:$0xff] %v6695_v18  ;;  %v6697_v56 = vpop.permute.xlu0 %2862  ;;  %3310 = vperm.xlu0 %5443, %v1347_v39   ;;  %v1352_v18 = vld [vmem:[%s8295_s9 + $0x138] sm:$0xff] }
 0x1d6   : > { %8385 = vst [vmem:[#allocation85_spill] sm:$0xff] %v6697_v56 }
 0x1d8   : > { %v6705_v17 = vpop.permute.xlu1 %2877  ;;  %3325 = vperm.xlu1 %5444, %v1350_v34   ;;  %v1353_v34 = vld [vmem:[%s8295_s9 + $0x140] sm:$0xff] }
 0x1d9   : > { %8386 = vst [vmem:[#allocation86_spill] sm:$0xff] %v6705_v17  ;;  %v6707_v31 = vpop.permute.xlu0 %2872  ;;  %3320 = vperm.xlu0 %5443, %v1349_v8   ;;  %v1354_v17 = vld [vmem:[%s8295_s9 + $0x148] sm:$0xff] }
 0x1da   : > { %8387 = vst [vmem:[#allocation87_spill] sm:$0xff] %v6707_v31 }
 0x1dc   : > { %v6715_v39 = vpop.permute.xlu1 %2887  ;;  %3335 = vperm.xlu1 %5444, %v1352_v18   ;;  %v1355_v18 = vld [vmem:[%s8295_s9 + $0x150] sm:$0xff] }
 0x1dd   : > { %8388 = vst [vmem:[#allocation88_spill] sm:$0xff] %v6715_v39  ;;  %v6717_v56 = vpop.permute.xlu0 %2882  ;;  %3330 = vperm.xlu0 %5443, %v1351_v15   ;;  %v1356_v39 = vld [vmem:[%s8295_s9 + $0x158] sm:$0xff] }
 0x1de   : > { %8389 = vst [vmem:[#allocation89_spill] sm:$0xff] %v6717_v56 }
 0x1e0   : > { %v6725_v8 = vpop.permute.xlu1 %2897  ;;  %3345 = vperm.xlu1 %5444, %v1354_v17   ;;  %v1357_v17 = vld [vmem:[%s8295_s9 + $0x160] sm:$0xff] }
 0x1e1   : > { %8390 = vst [vmem:[#allocation90_spill] sm:$0xff] %v6725_v8  ;;  %v6727_v31 = vpop.permute.xlu0 %2892  ;;  %3340 = vperm.xlu0 %5443, %v1353_v34   ;;  %v1358_v8 = vld [vmem:[%s8295_s9 + $0x168] sm:$0xff] }
 0x1e2   : > { %8391 = vst [vmem:[#allocation91_spill] sm:$0xff] %v6727_v31 }
 0x1e4   : > { %v6735_v15 = vpop.permute.xlu1 %2907  ;;  %3355 = vperm.xlu1 %5444, %v1356_v39   ;;  %v1359_v39 = vld [vmem:[%s8295_s9 + $0x170] sm:$0xff] }
 0x1e5   : > { %8392 = vst [vmem:[#allocation92_spill] sm:$0xff] %v6735_v15  ;;  %v6737_v56 = vpop.permute.xlu0 %2902  ;;  %3350 = vperm.xlu0 %5443, %v1355_v18   ;;  %v1360_v15 = vld [vmem:[%s8295_s9 + $0x178] sm:$0xff] }
 0x1e6   : > { %8393 = vst [vmem:[#allocation93_spill] sm:$0xff] %v6737_v56 }
 0x1e8   : > { %v6745_v34 = vpop.permute.xlu1 %2917  ;;  %3365 = vperm.xlu1 %5444, %v1358_v8   ;;  %v1361_v8 = vld [vmem:[%s8295_s9 + $0x180] sm:$0xff] }
 0x1e9   : > { %8394 = vst [vmem:[#allocation94_spill] sm:$0xff] %v6745_v34  ;;  %v6747_v31 = vpop.permute.xlu0 %2912  ;;  %3360 = vperm.xlu0 %5443, %v1357_v17  }
 0x1ea   : > { %8395 = vst [vmem:[#allocation95_spill] sm:$0xff] %v6747_v31  ;;  %v1362_v31 = vld [vmem:[%s8295_s9 + $0x188] sm:$0xff] }
 0x1ec   : > { %v6755_v18 = vpop.permute.xlu1 %2927  ;;  %3375 = vperm.xlu1 %5444, %v1360_v15   ;;  %v1363_v15 = vld [vmem:[%s8295_s9 + $0x190] sm:$0xff] }
 0x1ed   : > { %8396 = vst [vmem:[#allocation96_spill] sm:$0xff] %v6755_v18  ;;  %v6757_v56 = vpop.permute.xlu0 %2922  ;;  %3370 = vperm.xlu0 %5443, %v1359_v39   ;;  %v1364_v18 = vld [vmem:[%s8295_s9 + $0x198] sm:$0xff] }
 0x1ee   : > { %8397 = vst [vmem:[#allocation97_spill] sm:$0xff] %v6757_v56 }
 0x1f0   : > { %v6765_v17 = vpop.permute.xlu1 %2937  ;;  %3385 = vperm.xlu1 %5444, %v1362_v31   ;;  %v1365_v31 = vld [vmem:[%s8295_s9 + $0x1a0] sm:$0xff] }
 0x1f1   : > { %8398 = vst [vmem:[#allocation98_spill] sm:$0xff] %v6765_v17  ;;  %v6767_v34 = vpop.permute.xlu0 %2932  ;;  %3380 = vperm.xlu0 %5443, %v1361_v8   ;;  %v1366_v17 = vld [vmem:[%s8295_s9 + $0x1a8] sm:$0xff] }
 0x1f2   : > { %8399 = vst [vmem:[#allocation99_spill] sm:$0xff] %v6767_v34 }
 0x1f4   : > { %v6775_v39 = vpop.permute.xlu1 %2947  ;;  %3395 = vperm.xlu1 %5444, %v1364_v18  }
 0x1f5   : > { %8400 = vst [vmem:[#allocation100_spill] sm:$0xff] %v6775_v39  ;;  %v6777_v56 = vpop.permute.xlu0 %2942  ;;  %3390 = vperm.xlu0 %5443, %v1363_v15  }
 0x1f6   : > { %8401 = vst [vmem:[#allocation101_spill] sm:$0xff] %v6777_v56  ;;  %v1368_v56 = vld [vmem:[%s8295_s9 + $0x1b8] sm:$0xff] }
 0x1f8   : > { %v6785_v34 = vpop.permute.xlu1 %2957  ;;  %3405 = vperm.xlu1 %5444, %v1366_v17  }
 0x1f9   : > { %8402 = vst [vmem:[#allocation102_spill] sm:$0xff] %v6785_v34  ;;  %v6788_v48 = vpop.permute.xlu0 %2952  ;;  %3400 = vperm.xlu0 %5443, %v1365_v31  }
 0x1fa   : > { %v5230_v8 = vpop.f32.mrb[0].mxu1  ;;  %8403 = vst [vmem:[#allocation103_spill] sm:$0xff] %v6788_v48  ;;  %v5487_v48 = vld [vmem:[#allocation2 + $0x78] sm:$0xff]  }
 0x1fb   : > { %v923_v5 = vmul.f32 %v5230_v8, %v6013_v47  ;;  %v778_v39 = vpop.f32.mrb[1].mxu1  ;;  %v1367_v47 = vld [vmem:[%s8295_s9 + $0x1b0] sm:$0xff] }
 0x1fc   : > { %v921_v18 = vmul.f32 %v6003_v43, %v778_v39  ;;  %v5231_v15 = vpop.f32.mrb[2].mxu1  ;;  %v6801_v43 = vpop.permute.xlu1 %2967  ;;  %3415 = vperm.xlu1 %5444, %v1368_v56  }
 0x1fd   : > { %v1019_v35 = vadd.f32 %v6093_v21, %v923_v5  ;;  %v924_v19 = vmul.f32 %v5231_v15, %v6011_v46  ;;  %v781_v24 = vpop.f32.mrb[3].mxu1  ;;  %8404 = vst [vmem:[#allocation104_spill] sm:$0xff] %v6801_v43  ;;  %v6804_v31 = vpop.permute.xlu0 %2962  ;;  %3410 = vperm.xlu0 %5443, %v1367_v47   ;;  %v1370_v46 = vld [vmem:[%s8295_s9 + $0x1c8] sm:$0xff] }
 0x1fe   : > { %v1017_v8 = vadd.f32 %v6083_v13, %v921_v18  ;;  %v922_v17 = vmul.f32 %v6001_v42, %v781_v24  ;;  %8405 = vst [vmem:[#allocation105_spill] sm:$0xff] %v6804_v31  ;;  %v1369_v42 = vld [vmem:[%s8295_s9 + $0x1c0] sm:$0xff] }
 0x1ff   : > { %v1020_v39 = vadd.f32 %v6091_v20, %v924_v19  ;;  %v1035_v5 = vmax.f32 %v1019_v35, 0.0  ;;  %v5486_v31 = vld [vmem:[#allocation2 + $0x180] sm:$0xff]  }
 0x200   : > { %v1018_v21 = vadd.f32 %v6081_v12, %v922_v17  ;;  %v1033_v13 = vmax.f32 %v1017_v8, 0.0  ;;  %v6813_v20 = vpop.permute.xlu1 %2977  ;;  %3425 = vperm.xlu1 %5444, %v1370_v46  }
 0x201   : > { %v1036_v15 = vmax.f32 %v1020_v39, 0.0  ;;  %8406 = vst [vmem:[#allocation106_spill] sm:$0xff] %v6813_v20  ;;  %v6816_v12 = vpop.permute.xlu0 %2972  ;;  %3420 = vperm.xlu0 %5443, %v1369_v42   ;;  %v5481_v20 = vld [vmem:[#allocation2 + $0x60] sm:$0xff]  }
 0x202   : > { %v1034_v24 = vmax.f32 %v1018_v21, 0.0  ;;  %v5234_v18 = vpop.f32.mrb[4].mxu1  ;;  %8407 = vst [vmem:[#allocation107_spill] sm:$0xff] %v6816_v12  ;;  %v5485_v12 = vld [vmem:[#allocation2 + $0x70] sm:$0xff]  }
 0x203   : > { %v1050_v19 = vpack.c.bf16 %v1036_v15, %v1035_v5  ;;  %v927_v56 = vmul.f32 %v5234_v18, %v6033_v55  ;;  %v794_v47 = vpop.f32.mrb[5].mxu1  ;;  %v1372_v5 = vld [vmem:[%s8295_s9 + $0x1d8] sm:$0xff]  ;;  %v1371_v55 = vld [vmem:[%s8295_s9 + $0x1d0] sm:$0xff] }
 0x204   : > { %v1049_v17 = vpack.c.bf16 %v1034_v24, %v1033_v13  ;;  %v925_v35 = vmul.f32 %v6023_v51, %v794_v47  ;;  %v5235_v39 = vpop.f32.mrb[6].mxu1  ;;  %v6829_v51 = vpop.permute.xlu1 %2987  ;;  %3435 = vperm.xlu1 %5444, %v1372_v5  }
 0x205   : > { %v1023_v43 = vadd.f32 %v6113_v37, %v927_v56  ;;  %v928_v8 = vmul.f32 %v5235_v39, %v6031_v54  ;;  %v797_v21 = vpop.f32.mrb[7].mxu1  ;;  %8408 = vst [vmem:[#allocation108_spill] sm:$0xff] %v6829_v51  ;;  %v6832_v54 = vpop.permute.xlu0 %2982  ;;  %3430 = vperm.xlu0 %5443, %v1371_v55  }
 0x206   : > { %v1021_v46 = vadd.f32 %v6103_v29, %v925_v35  ;;  %v926_v15 = vmul.f32 %v6021_v50, %v797_v21  ;;  %5244 = vmatprep.subr.bf16.mxu0 %v1049_v17  ;;  %5388 = vmatprep.subr.bf16.mxu1 %v1049_v17  ;;  %8409 = vst [vmem:[#allocation109_spill] sm:$0xff] %v6832_v54  ;;  %v1374_v50 = vld [vmem:[%s8295_s9 + $0x1e8] sm:$0xff]  ;;  %v1373_v29 = vld [vmem:[%s8295_s9 + $0x1e0] sm:$0xff] }
 0x207   : > { %v1024_v37 = vadd.f32 %v6111_v36, %v928_v8  ;;  %5245 = vmatpush3.bf16.msra.mxu0 %v1049_v17  ;;  %5396 = vmatpush3.bf16.msra.mxu1 %v1049_v17  ;;  %v1039_v13 = vmax.f32 %v1023_v43, 0.0 }
 0x208   : > { %v1022_v42 = vadd.f32 %v6101_v28, %v926_v15  ;;  %5246 = vmatprep.subr.bf16.mxu0 %v1050_v19  ;;  %5389 = vmatprep.subr.bf16.mxu1 %v1050_v19  ;;  %v1037_v36 = vmax.f32 %v1021_v46, 0.0  ;;  %v6841_v47 = vpop.permute.xlu1 %2997  ;;  %v1375_v15 = vld [vmem:[%s8295_s9 + $0x1f0] sm:$0xff] }
 0x209   : > { %v1040_v24 = vmax.f32 %v1024_v37, 0.0  ;;  %8410 = vst [vmem:[#allocation110_spill] sm:$0xff] %v6841_v47  ;;  %v6844_v43 = vpop.permute.xlu0 %2992  ;;  %3445 = vperm.xlu1 %5444, %v1374_v50   ;;  %3440 = vperm.xlu0 %5443, %v1373_v29   ;;  %v5478_v47 = vld [vmem:[#allocation2 + $0x160] sm:$0xff]  }
 0x20a   : > { %v1038_v18 = vmax.f32 %v1022_v42, 0.0  ;;  %v5238_v56 = vpop.f32.mrb[8].mxu1  ;;  %8411 = vst [vmem:[#allocation111_spill] sm:$0xff] %v6844_v43  ;;  %v5482_v43 = vld [vmem:[#allocation2 + $0x170] sm:$0xff]  }
 0x20b   : > { %v1052_v28 = vpack.c.bf16 %v1040_v24, %v1039_v13  ;;  %v931_v17 = vmul.f32 %v5238_v56, %v6053_v63  ;;  %v810_v35 = vpop.f32.mrb[9].mxu1  ;;  %5247 = vmatpush3.bf16.msra.mxu0 %v1050_v19  ;;  %5397 = vmatpush3.bf16.msra.mxu1 %v1050_v19  ;;  %v1376_v63 = vld [vmem:[%s8295_s9 + $0x1f8] sm:$0xff] }
 0x20c   : > { %v1051_v39 = vpack.c.bf16 %v1038_v18, %v1037_v36  ;;  %v929_v8 = vmul.f32 %v6043_v59, %v810_v35  ;;  %v5239_v21 = vpop.f32.mrb[10].mxu1  ;;  %v6857_v37 = vpop.permute.xlu1 %3007 }
 0x20d   : > { %v1027_v5 = vadd.f32 %v6133_v53, %v931_v17  ;;  %v932_v55 = vmul.f32 %v5239_v21, %v6051_v62  ;;  %v813_v46 = vpop.f32.mrb[11].mxu1  ;;  %8412 = vst [vmem:[#allocation112_spill] sm:$0xff] %v6857_v37  ;;  %v6860_v62 = vpop.permute.xlu0 %3002  ;;  %3455 = vperm.xlu1 %5444, %v1376_v63   ;;  %3450 = vperm.xlu0 %5443, %v1375_v15   ;;  %v5477_v37 = vld [vmem:[#allocation2 + $0x50] sm:$0xff]  }
 0x20e   : > { %v1025_v19 = vadd.f32 %v6123_v45, %v929_v8  ;;  %v930_v59 = vmul.f32 %v6041_v58, %v813_v46  ;;  %5248 = vmatprep.subr.bf16.mxu0 %v1051_v39  ;;  %5390 = vmatprep.subr.bf16.mxu1 %v1051_v39  ;;  %8413 = vst [vmem:[#allocation113_spill] sm:$0xff] %v6860_v62  ;;  %v1378_v58 = vld [vmem:[%s8295_s9 + $0x208] sm:$0xff]  ;;  %v1377_v45 = vld [vmem:[%s8295_s9 + $0x200] sm:$0xff]  ;;  %v1379_v46 = vld [vmem:[%s8295_s9 + $0x210] sm:$0xff] }
 0x20f   : > { %v1028_v53 = vadd.f32 %v6131_v52, %v932_v55  ;;  %5249 = vmatpush3.bf16.msra.mxu0 %v1051_v39  ;;  %5398 = vmatpush3.bf16.msra.mxu1 %v1051_v39  ;;  %v1043_v13 = vmax.f32 %v1027_v5, 0.0 }
 0x210   : > { %v1026_v42 = vadd.f32 %v6121_v44, %v930_v59  ;;  %5250 = vmatprep.subr.bf16.mxu0 %v1052_v28  ;;  %5391 = vmatprep.subr.bf16.mxu1 %v1052_v28  ;;  %v1041_v52 = vmax.f32 %v1025_v19, 0.0  ;;  %v6869_v36 = vpop.permute.xlu1 %3145 }
 0x211   : > { %v1044_v24 = vmax.f32 %v1028_v53, 0.0  ;;  %v6872_v56 = vpop.permute.xlu0 %3140  ;;  %3465 = vperm.xlu1 %5444, %v1378_v58   ;;  %3460 = vperm.xlu0 %5443, %v1377_v45   ;;  %v1384_v58 = vld [vmem:[%s8295_s9 + $0x238] sm:$0xff]  ;;  %v1383_v45 = vld [vmem:[%s8295_s9 + $0x230] sm:$0xff] }
 0x212   : > { %v1042_v50 = vmax.f32 %v1026_v42, 0.0  ;;  %v5242_v29 = vpop.f32.mrb[12].mxu1 }
 0x213   : > { %v1054_v44 = vpack.c.bf16 %v1044_v24, %v1043_v13  ;;  %v935_v18 = vmul.f32 %v5242_v29, %v6073_v7  ;;  %v826_v17 = vpop.f32.mrb[13].mxu1  ;;  %5251 = vmatpush3.bf16.msra.mxu0 %v1052_v28  ;;  %5399 = vmatpush3.bf16.msra.mxu1 %v1052_v28  ;;  %v1380_v7 = vld [vmem:[%s8295_s9 + $0x218] sm:$0xff]  ;;  %v1386_v29 = vld [vmem:[%s8295_s9 + $0x248] sm:$0xff] }
 0x214   : > { %v1053_v35 = vpack.c.bf16 %v1042_v50, %v1041_v52  ;;  %v933_v39 = vmul.f32 %v6063_v3, %v826_v17  ;;  %v5243_v8 = vpop.f32.mrb[14].mxu1  ;;  %v6885_v63 = vpop.permute.xlu1 %3155  ;;  %v5459_v17 = vld [vmem:[#allocation2 + $0x8] sm:$0xff]  }
 0x215   : > { %v1031_v21 = vadd.f32 %v6159_v40, %v935_v18  ;;  %v936_v5 = vmul.f32 %v5243_v8, %v6071_v6  ;;  %v829_v55 = vpop.f32.mrb[15].mxu1  ;;  %v6888_v6 = vpop.permute.xlu0 %3150  ;;  %3475 = vperm.xlu1 %5444, %v1380_v7   ;;  %3470 = vperm.xlu0 %5443, %v1379_v46   ;;  %v5461_v8 = vld [vmem:[#allocation2 + $0x10] sm:$0xff]  }
 0x216   : > { %v1029_v28 = vadd.f32 %v6143_v61, %v933_v39  ;;  %v934_v3 = vmul.f32 %v6061_v2, %v829_v55  ;;  %5252 = vmatprep.subr.bf16.mxu0 %v1053_v35  ;;  %5392 = vmatprep.subr.bf16.mxu1 %v1053_v35  ;;  %v1382_v2 = vld [vmem:[%s8295_s9 + $0x228] sm:$0xff]  ;;  %v1381_v61 = vld [vmem:[%s8295_s9 + $0x220] sm:$0xff]  ;;  %v1387_v55 = vld [vmem:[%s8295_s9 + $0x250] sm:$0xff] }
 0x217   : > { %v1032_v40 = vadd.f32 %v6155_v32, %v936_v5  ;;  %5253 = vmatpush3.bf16.msra.mxu0 %v1053_v35  ;;  %5400 = vmatpush3.bf16.msra.mxu1 %v1053_v35  ;;  %v1047_v19 = vmax.f32 %v1031_v21, 0.0  ;;  %v5460_v35 = vld [vmem:[#allocation2 + $0x118] sm:$0xff]   ;;  %v5462_v21 = vld [vmem:[#allocation2 + $0x120] sm:$0xff]  }
 0x218   : > { %v1030_v15 = vadd.f32 %v6141_v60, %v934_v3  ;;  %5254 = vmatprep.subr.bf16.mxu0 %v1054_v44  ;;  %5393 = vmatprep.subr.bf16.mxu1 %v1054_v44  ;;  %v1045_v32 = vmax.f32 %v1029_v28, 0.0  ;;  %v6897_v42 = vpop.permute.xlu1 %3165  ;;  %v1388_v5 = vld [vmem:[%s8295_s9 + $0x258] sm:$0xff]  ;;  %v1390_v28 = vld [vmem:[%s8295_s9 + $0x268] sm:$0xff]  ;;  %v1389_v3 = vld [vmem:[%s8295_s9 + $0x260] sm:$0xff] }
 0x219   : > { %v1048_v59 = vmax.f32 %v1032_v40, 0.0  ;;  %v6899_v60 = vpop.permute.xlu0 %3160  ;;  %3485 = vperm.xlu1 %5444, %v1382_v2   ;;  %3480 = vperm.xlu0 %5443, %v1381_v61   ;;  %v5465_v2 = vld [vmem:[#allocation2 + $0x20] sm:$0xff]   ;;  %v5466_v61 = vld [vmem:[#allocation2 + $0x130] sm:$0xff]  }
 0x21a   : > { %v1046_v53 = vmax.f32 %v1030_v15, 0.0  ;;  %v5463_v15 = vld [vmem:[#allocation2 + $0x18] sm:$0xff]  }
 0x21b   : > { %v1056_v13 = vpack.c.bf16 %v1048_v59, %v1047_v19  ;;  %5255 = vmatpush3.bf16.msra.mxu0 %v1054_v44  ;;  %5401 = vmatpush3.bf16.msra.mxu1 %v1054_v44  ;;  %v1385_v44 = vld [vmem:[%s8295_s9 + $0x240] sm:$0xff]  ;;  %v5464_v19 = vld [vmem:[#allocation2 + $0x128] sm:$0xff]  }
 0x21c   : > { %v1055_v24 = vpack.c.bf16 %v1046_v53, %v1045_v32  ;;  %v6907_v52 = vpop.permute.xlu1 %3175  ;;  %v1392_v32 = vld [vmem:[%s8295_s9 + $0x278] sm:$0xff]  ;;  %v1391_v53 = vld [vmem:[%s8295_s9 + $0x270] sm:$0xff] }
 0x21d   : > { %v6909_v50 = vpop.permute.xlu0 %3170  ;;  %3495 = vperm.xlu1 %5444, %v1384_v58   ;;  %3490 = vperm.xlu0 %5443, %v1383_v45   ;;  %v1394_v58 = vld [vmem:[%s8295_s9 + $0x288] sm:$0xff]  ;;  %v1393_v45 = vld [vmem:[%s8295_s9 + $0x280] sm:$0xff] }
 0x21e   : > { %5256 = vmatprep.subr.bf16.mxu0 %v1055_v24  ;;  %5394 = vmatprep.subr.bf16.mxu1 %v1055_v24 }
 0x21f   : > { %5257 = vmatpush3.bf16.msra.mxu0 %v1055_v24  ;;  %5402 = vmatpush3.bf16.msra.mxu1 %v1055_v24 }
 0x220   : > { %5258 = vmatprep.subr.bf16.mxu0 %v1056_v13  ;;  %5395 = vmatprep.subr.bf16.mxu1 %v1056_v13  ;;  %v6917_v18 = vpop.permute.xlu1 %3185 }
 0x221   : > { %v6919_v39 = vpop.permute.xlu0 %3180  ;;  %3505 = vperm.xlu1 %5444, %v1386_v29   ;;  %3500 = vperm.xlu0 %5443, %v1385_v44   ;;  %v5467_v44 = vld [vmem:[#allocation2 + $0x28] sm:$0xff]  }
 0x223   : > { %5259 = vmatpush3.bf16.msra.mxu0 %v1056_v13  ;;  %5403 = vmatpush3.bf16.msra.mxu1 %v1056_v13 }
 0x224   : > { %v6927_v7 = vpop.permute.xlu1 %3195 }
 0x225   : > { %v6929_v46 = vpop.permute.xlu0 %3190  ;;  %3515 = vperm.xlu1 %5444, %v1388_v5   ;;  %3510 = vperm.xlu0 %5443, %v1387_v55   ;;  %v1396_v5 = vld [vmem:[%s8295_s9 + $0x298] sm:$0xff]  ;;  %v1395_v55 = vld [vmem:[%s8295_s9 + $0x290] sm:$0xff] }
 0x226   : > { %5261 = vmatmul.mubr.bf16.vlgmr.msra.gmra.mrb[8].mxu0 %v5459_v17  ;;  %5329 = vmatmul.mubr.bf16.vlgmr.msra.gmra.mrb[16].mxu1 %v5460_v35  ;;  %v5468_v17 = vld [vmem:[#allocation2 + $0x138] sm:$0xff]  }
 0x227   : > { %5264 = vmatprep.mubr.bf16.mxu0 %v5461_v8  ;;  %5332 = vmatprep.mubr.bf16.mxu1 %v5462_v21  ;;  %v5469_v8 = vld [vmem:[#allocation2 + $0x30] sm:$0xff]   ;;  %v5470_v21 = vld [vmem:[#allocation2 + $0x140] sm:$0xff]  }
 0x228   : > { %v6937_v40 = vpop.permute.xlu1 %3205 }
 0x229   : > { %8414 = vst [vmem:[#allocation114_spill] sm:$0xff] %v6937_v40  ;;  %v6939_v59 = vpop.permute.xlu0 %3200  ;;  %3525 = vperm.xlu1 %5444, %v1390_v28   ;;  %3520 = vperm.xlu0 %5443, %v1389_v3  }
 0x22c   : > { %v6947_v13 = vpop.permute.xlu1 %3215 }
 0x22d   : > { %v6949_v24 = vpop.permute.xlu0 %3210  ;;  %3535 = vperm.xlu1 %5444, %v1392_v32   ;;  %3530 = vperm.xlu0 %5443, %v1391_v53   ;;  %v5472_v32 = vld [vmem:[#allocation2 + $0x148] sm:$0xff]  }
 0x22e   : > { %5265 = vmatmul.mubr.bf16.gmra.mrb[12].mxu0 %v5463_v15  ;;  %5333 = vmatmul.mubr.bf16.gmra.mrb[20].mxu1 %v5464_v19  ;;  %v1398_v15 = vld [vmem:[%s8295_s9 + $0x2a8] sm:$0xff]  ;;  %v1397_v19 = vld [vmem:[%s8295_s9 + $0x2a0] sm:$0xff] }
 0x22f   : > { %5268 = vmatprep.mubr.bf16.mxu0 %v5465_v2  ;;  %5336 = vmatprep.mubr.bf16.mxu1 %v5466_v61  ;;  %v5471_v61 = vld [vmem:[#allocation2 + $0x38] sm:$0xff]  }
 0x230   : > { %v6957_v29 = vpop.permute.xlu1 %3225 }
 0x231   : > { %8415 = vst [vmem:[#allocation115_spill] sm:$0xff] %v6957_v29  ;;  %v6959_v35 = vpop.permute.xlu0 %3220  ;;  %3545 = vperm.xlu1 %5444, %v1394_v58   ;;  %3540 = vperm.xlu0 %5443, %v1393_v45   ;;  %v5473_v58 = vld [vmem:[#allocation2 + $0x40] sm:$0xff]   ;;  %v5474_v45 = vld [vmem:[#allocation2 + $0x150] sm:$0xff]  }
 0x232   : > { %8416 = vst [vmem:[#allocation116_spill] sm:$0xff] %v6959_v35 }
 0x234   : > { %v6967_v28 = vpop.permute.xlu1 %3235 }
 0x235   : > { %8417 = vst [vmem:[#allocation117_spill] sm:$0xff] %v6967_v28  ;;  %v6969_v3 = vpop.permute.xlu0 %3230  ;;  %3555 = vperm.xlu1 %5444, %v1396_v5   ;;  %3550 = vperm.xlu0 %5443, %v1395_v55   ;;  %v1402_v5 = vld [vmem:[%s8295_s9 + $0x2c8] sm:$0xff]  ;;  %v1401_v55 = vld [vmem:[%s8295_s9 + $0x2c0] sm:$0xff] }
 0x236   : > { %5269 = vmatmul.mubr.bf16.gmra.mrb[16].mxu0 %v5467_v44  ;;  %5337 = vmatmul.mubr.bf16.gmra.mrb[24].mxu1 %v5468_v17  ;;  %8418 = vst [vmem:[#allocation118_spill] sm:$0xff] %v6969_v3  ;;  %v1400_v44 = vld [vmem:[%s8295_s9 + $0x2b8] sm:$0xff]  ;;  %v1399_v17 = vld [vmem:[%s8295_s9 + $0x2b0] sm:$0xff] }
 0x237   : > { %5272 = vmatprep.mubr.bf16.mxu0 %v5469_v8  ;;  %5340 = vmatprep.mubr.bf16.mxu1 %v5470_v21 }
 0x238   : > { %v6977_v2 = vpop.permute.xlu1 %3245 }
 0x239   : > { %8419 = vst [vmem:[#allocation119_spill] sm:$0xff] %v6977_v2  ;;  %v6979_v53 = vpop.permute.xlu0 %3240  ;;  %3565 = vperm.xlu1 %5444, %v1398_v15   ;;  %3560 = vperm.xlu0 %5443, %v1397_v19   ;;  %v5475_v19 = vld [vmem:[#allocation2 + $0x48] sm:$0xff]  }
 0x23a   : > { %8420 = vst [vmem:[#allocation120_spill] sm:$0xff] %v6979_v53 }
 0x23c   : > { %v6987_v8 = vpop.permute.xlu1 %3255 }
 0x23d   : > { %8421 = vst [vmem:[#allocation121_spill] sm:$0xff] %v6987_v8  ;;  %v6989_v21 = vpop.permute.xlu0 %3250  ;;  %3575 = vperm.xlu1 %5444, %v1400_v44   ;;  %3570 = vperm.xlu0 %5443, %v1399_v17  }
 0x23e   : > { %5273 = vmatmul.mubr.bf16.gmra.mrb[20].mxu0 %v5471_v61  ;;  %5341 = vmatmul.mubr.bf16.gmra.mrb[28].mxu1 %v5472_v32  ;;  %8422 = vst [vmem:[#allocation122_spill] sm:$0xff] %v6989_v21  ;;  %v5476_v61 = vld [vmem:[#allocation2 + $0x158] sm:$0xff]  }
 0x23f   : > { %5276 = vmatprep.mubr.bf16.mxu0 %v5473_v58  ;;  %5344 = vmatprep.mubr.bf16.mxu1 %v5474_v45  ;;  %v1404_v58 = vld [vmem:[%s8295_s9 + $0x2d8] sm:$0xff]  ;;  %v1403_v45 = vld [vmem:[%s8295_s9 + $0x2d0] sm:$0xff] }
 0x240   : > { %v6997_v15 = vpop.permute.xlu1 %3265 }
 0x241   : > { %8423 = vst [vmem:[#allocation123_spill] sm:$0xff] %v6997_v15  ;;  %v6999_v32 = vpop.permute.xlu0 %3260  ;;  %3585 = vperm.xlu1 %5444, %v1402_v5   ;;  %3580 = vperm.xlu0 %5443, %v1401_v55   ;;  %v1406_v5 = vld [vmem:[%s8295_s9 + $0x2e8] sm:$0xff]  ;;  %v1405_v55 = vld [vmem:[%s8295_s9 + $0x2e0] sm:$0xff] }
 0x242   : > { %8424 = vst [vmem:[#allocation124_spill] sm:$0xff] %v6999_v32 }
 0x244   : > { %v7007_v44 = vpop.permute.xlu1 %3275 }
 0x245   : > { %8425 = vst [vmem:[#allocation125_spill] sm:$0xff] %v7007_v44  ;;  %v7009_v17 = vpop.permute.xlu0 %3270  ;;  %3595 = vperm.xlu1 %5444, %v1404_v58   ;;  %3590 = vperm.xlu0 %5443, %v1403_v45  }
 0x246   : > { %5277 = vmatmul.mubr.bf16.gmra.mrb[24].mxu0 %v5475_v19  ;;  %5345 = vmatmul.mubr.bf16.gmra.mrb[32].mxu1 %v5476_v61  ;;  %8426 = vst [vmem:[#allocation126_spill] sm:$0xff] %v7009_v17  ;;  %v5479_v19 = vld [vmem:[#allocation2 + $0x58] sm:$0xff]   ;;  %v5480_v61 = vld [vmem:[#allocation2 + $0x168] sm:$0xff]  }
 0x247   : > { %5280 = vmatprep.mubr.bf16.mxu0 %v5477_v37  ;;  %5348 = vmatprep.mubr.bf16.mxu1 %v5478_v47  ;;  %v1408_v47 = vld [vmem:[%s8295_s9 + $0x2f8] sm:$0xff]  ;;  %v1407_v37 = vld [vmem:[%s8295_s9 + $0x2f0] sm:$0xff] }
 0x248   : > { %v7017_v51 = vpop.permute.xlu1 %3285 }
 0x249   : > { %8427 = vst [vmem:[#allocation127_spill] sm:$0xff] %v7017_v51  ;;  %v7019_v62 = vpop.permute.xlu0 %3280  ;;  %3605 = vperm.xlu1 %5444, %v1406_v5   ;;  %3600 = vperm.xlu0 %5443, %v1405_v55   ;;  %v1410_v5 = vld [vmem:[%s8295_s9 + $0x308] sm:$0xff]  ;;  %v1409_v55 = vld [vmem:[%s8295_s9 + $0x300] sm:$0xff]  ;;  %v5501_v51 = vld [vmem:[#allocation2 + $0xb0] sm:$0xff]  }
 0x24a   : > { %8428 = vst [vmem:[#allocation128_spill] sm:$0xff] %v7019_v62 }
 0x24c   : > { %v7027_v58 = vpop.permute.xlu1 %3295 }
 0x24d   : > { %8429 = vst [vmem:[#allocation129_spill] sm:$0xff] %v7027_v58  ;;  %v7029_v45 = vpop.permute.xlu0 %3290  ;;  %3615 = vperm.xlu1 %5444, %v1408_v47   ;;  %3610 = vperm.xlu0 %5443, %v1407_v37  }
 0x24e   : > { %5281 = vmatmul.mubr.bf16.gmra.mrb[28].mxu0 %v5479_v19  ;;  %5349 = vmatmul.mubr.bf16.gmra.mrb[36].mxu1 %v5480_v61  ;;  %8430 = vst [vmem:[#allocation130_spill] sm:$0xff] %v7029_v45  ;;  %v5483_v19 = vld [vmem:[#allocation2 + $0x68] sm:$0xff]   ;;  %v5484_v61 = vld [vmem:[#allocation2 + $0x178] sm:$0xff]  }
 0x24f   : > { %5284 = vmatprep.mubr.bf16.mxu0 %v5481_v20  ;;  %5352 = vmatprep.mubr.bf16.mxu1 %v5482_v43  ;;  %v1412_v20 = vld [vmem:[%s8295_s9 + $0x318] sm:$0xff]  ;;  %v1411_v43 = vld [vmem:[%s8295_s9 + $0x310] sm:$0xff] }
 0x250   : > { %v7037_v54 = vpop.permute.xlu1 %3305 }
 0x251   : > { %8431 = vst [vmem:[#allocation131_spill] sm:$0xff] %v7037_v54  ;;  %v7039_v34 = vpop.permute.xlu0 %3300  ;;  %3625 = vperm.xlu1 %5444, %v1410_v5   ;;  %3620 = vperm.xlu0 %5443, %v1409_v55   ;;  %v1414_v5 = vld [vmem:[%s8295_s9 + $0x328] sm:$0xff]  ;;  %v1413_v55 = vld [vmem:[%s8295_s9 + $0x320] sm:$0xff] }
 0x252   : > { %8432 = vst [vmem:[#allocation132_spill] sm:$0xff] %v7039_v34  ;;  %v5488_v54 = vld [vmem:[#allocation2 + $0x188] sm:$0xff]  }
 0x254   : > { %v7047_v47 = vpop.permute.xlu1 %3315 }
 0x255   : > { %8433 = vst [vmem:[#allocation133_spill] sm:$0xff] %v7047_v47  ;;  %v7049_v37 = vpop.permute.xlu0 %3310  ;;  %3635 = vperm.xlu1 %5444, %v1412_v20   ;;  %3630 = vperm.xlu0 %5443, %v1411_v43   ;;  %v1418_v20 = vld [vmem:[%s8295_s9 + $0x348] sm:$0xff]  ;;  %v1417_v43 = vld [vmem:[%s8295_s9 + $0x340] sm:$0xff] }
 0x256   : > { %5285 = vmatmul.mubr.bf16.gmra.mrb[32].mxu0 %v5483_v19  ;;  %5353 = vmatmul.mubr.bf16.gmra.mrb[40].mxu1 %v5484_v61  ;;  %8434 = vst [vmem:[#allocation134_spill] sm:$0xff] %v7049_v37  ;;  %v5489_v19 = vld [vmem:[#allocation2 + $0x80] sm:$0xff]   ;;  %v5490_v61 = vld [vmem:[#allocation2 + $0x190] sm:$0xff]  }
 0x257   : > { %5288 = vmatprep.mubr.bf16.mxu0 %v5485_v12  ;;  %5356 = vmatprep.mubr.bf16.mxu1 %v5486_v31  ;;  %v1416_v31 = vld [vmem:[%s8295_s9 + $0x338] sm:$0xff]  ;;  %v1415_v12 = vld [vmem:[%s8295_s9 + $0x330] sm:$0xff] }
 0x258   : > { %v7057_v34 = vpop.permute.xlu1 %3325 }
 0x259   : > { %8435 = vst [vmem:[#allocation135_spill] sm:$0xff] %v7057_v34  ;;  %v7059_v47 = vpop.permute.xlu0 %3320  ;;  %3645 = vperm.xlu1 %5444, %v1414_v5   ;;  %3640 = vperm.xlu0 %5443, %v1413_v55   ;;  %v5491_v34 = vld [vmem:[#allocation2 + $0x88] sm:$0xff]  }
 0x25a   : > { %8436 = vst [vmem:[#allocation136_spill] sm:$0xff] %v7059_v47  ;;  %v5492_v47 = vld [vmem:[#allocation2 + $0x198] sm:$0xff]  }
 0x25c   : > { %v7073_v5 = vpop.permute.xlu1 %3335 }
 0x25d   : > { %3655 = vperm.xlu1 %5444, %v1416_v31   ;;  %3650 = vperm.xlu0 %5443, %v1415_v12   ;;  %8437 = vst [vmem:[#allocation137_spill] sm:$0xff] %v7073_v5  ;;  %v7075_v55 = vpop.permute.xlu0 %3330  ;;  %v5495_v5 = vld [vmem:[#allocation2 + $0x98] sm:$0xff]  }
 0x25e   : > { %5289 = vmatmul.mubr.bf16.gmra.mrb[36].mxu0 %v5487_v48  ;;  %5357 = vmatmul.mubr.bf16.gmra.mrb[44].mxu1 %v5488_v54  ;;  %8438 = vst [vmem:[#allocation138_spill] sm:$0xff] %v7075_v55  ;;  %v5493_v48 = vld [vmem:[#allocation2 + $0x90] sm:$0xff]   ;;  %v5494_v54 = vld [vmem:[#allocation2 + $0x1a0] sm:$0xff]   ;;  %v5496_v55 = vld [vmem:[#allocation2 + $0x1a8] sm:$0xff]  }
 0x25f   : > { %5292 = vmatprep.mubr.bf16.mxu0 %v5489_v19  ;;  %5360 = vmatprep.mubr.bf16.mxu1 %v5490_v61  ;;  %v1420_v19 = vld [vmem:[%s8295_s9 + $0x358] sm:$0xff]  ;;  %v1419_v61 = vld [vmem:[%s8295_s9 + $0x350] sm:$0xff] }
 0x260   : > { %v7083_v31 = vpop.permute.xlu1 %3345 }
 0x261   : > { %3665 = vperm.xlu1 %5444, %v1418_v20   ;;  %3660 = vperm.xlu0 %5443, %v1417_v43   ;;  %8439 = vst [vmem:[#allocation139_spill] sm:$0xff] %v7083_v31  ;;  %v7085_v12 = vpop.permute.xlu0 %3340  ;;  %v1422_v20 = vld [vmem:[%s8295_s9 + $0x368] sm:$0xff]  ;;  %v1421_v43 = vld [vmem:[%s8295_s9 + $0x360] sm:$0xff] }
 0x262   : > { %8440 = vst [vmem:[#allocation140_spill] sm:$0xff] %v7085_v12  ;;  %v5499_v31 = vld [vmem:[#allocation2 + $0xa8] sm:$0xff]   ;;  %v5500_v12 = vld [vmem:[#allocation2 + $0x1b8] sm:$0xff]  }
 0x265   : > { %3675 = vperm.xlu1 %5444, %v1420_v19   ;;  %3670 = vperm.xlu0 %5443, %v1419_v61   ;;  %v7099_v19 = vpop.permute.xlu1 %3355  ;;  %v7101_v61 = vpop.permute.xlu0 %3350 }
 0x266   : > { %5293 = vmatmul.mubr.bf16.gmra.mrb[40].mxu0 %v5491_v34  ;;  %5361 = vmatmul.mubr.bf16.gmra.mrb[48].mxu1 %v5492_v47  ;;  %v5497_v34 = vld [vmem:[#allocation2 + $0xa0] sm:$0xff]   ;;  %v5498_v47 = vld [vmem:[#allocation2 + $0x1b0] sm:$0xff]   ;;  %8441 = vst [vmem:[#allocation141_spill] sm:$0xff] %v7099_v19  ;;  %8442 = vst [vmem:[#allocation142_spill] sm:$0xff] %v7101_v61 }
 0x267   : > { %5296 = vmatprep.mubr.bf16.mxu0 %v5493_v48  ;;  %5364 = vmatprep.mubr.bf16.mxu1 %v5494_v54  ;;  %v1424_v48 = vld [vmem:[%s8295_s9 + $0x378] sm:$0xff]  ;;  %v1423_v54 = vld [vmem:[%s8295_s9 + $0x370] sm:$0xff]  ;;  %v5502_v19 = vld [vmem:[#allocation2 + $0x1c0] sm:$0xff]  }
 0x269   : > { %3685 = vperm.xlu1 %5444, %v1422_v20   ;;  %3680 = vperm.xlu0 %5443, %v1421_v43   ;;  %v1426_v20 = vld [vmem:[%s8295_s9 + $0x388] sm:$0xff]  ;;  %v1425_v43 = vld [vmem:[%s8295_s9 + $0x380] sm:$0xff]  ;;  %v7109_v37 = vpop.permute.xlu1 %3365 }
 0x26a   : > { %8443 = vst [vmem:[#allocation143_spill] sm:$0xff] %v7109_v37  ;;  %v5504_v37 = vld [vmem:[#allocation2 + $0x1c8] sm:$0xff]  }
 0x26d   : > { %3695 = vperm.xlu1 %5444, %v1424_v48   ;;  %3690 = vperm.xlu0 %5443, %v1423_v54   ;;  %v1429_v48 = vld [vmem:[%s8295_s9 + $0x3a0] sm:$0xff]  ;;  %v7125_v54 = vpop.permute.xlu1 %3375 }
 0x26e   : > { %5297 = vmatmul.mubr.bf16.gmra.mrb[44].mxu0 %v5495_v5  ;;  %5365 = vmatmul.mubr.bf16.gmra.mrb[52].mxu1 %v5496_v55  ;;  %v7111_v5 = vpop.permute.xlu0 %3360  ;;  %v1428_v55 = vld [vmem:[%s8295_s9 + $0x398] sm:$0xff]  ;;  %8445 = vst [vmem:[#allocation145_spill] sm:$0xff] %v7125_v54  ;;  %v5507_v54 = vld [vmem:[#allocation2 + $0xc8] sm:$0xff]  }
 0x26f   : > { %5300 = vmatprep.mubr.bf16.mxu0 %v5497_v34  ;;  %5368 = vmatprep.mubr.bf16.mxu1 %v5498_v47  ;;  %8444 = vst [vmem:[#allocation144_spill] sm:$0xff] %v7111_v5  ;;  %v1427_v34 = vld [vmem:[%s8295_s9 + $0x390] sm:$0xff]  ;;  %v1430_v47 = vld [vmem:[%s8295_s9 + $0x3a8] sm:$0xff]  ;;  %v5508_v5 = vld [vmem:[#allocation2 + $0x1d8] sm:$0xff]  }
 0x271   : > { %3705 = vperm.xlu1 %5444, %v1426_v20   ;;  %3700 = vperm.xlu0 %5443, %v1425_v43   ;;  %v5503_v43 = vld [vmem:[#allocation2 + $0xb8] sm:$0xff]  }
 0x272   : > { %v7127_v20 = vpop.permute.xlu0 %3370 }
 0x273   : > { %8446 = vst [vmem:[#allocation146_spill] sm:$0xff] %v7127_v20  ;;  %v5513_v20 = vld [vmem:[#allocation2 + $0xe0] sm:$0xff]  }
 0x275   : > { %3715 = vperm.xlu1 %5444, %v1428_v55   ;;  %3710 = vperm.xlu0 %5443, %v1427_v34   ;;  %v7135_v55 = vpop.permute.xlu1 %3385 }
 0x276   : > { %5301 = vmatmul.mubr.bf16.gmra.mrb[48].mxu0 %v5499_v31  ;;  %5369 = vmatmul.mubr.bf16.gmra.mrb[56].mxu1 %v5500_v12  ;;  %v5505_v31 = vld [vmem:[#allocation2 + $0xc0] sm:$0xff]   ;;  %v5506_v12 = vld [vmem:[#allocation2 + $0x1d0] sm:$0xff]   ;;  %8447 = vst [vmem:[#allocation147_spill] sm:$0xff] %v7135_v55  ;;  %v7137_v34 = vpop.permute.xlu0 %3380  ;;  %v5511_v55 = vld [vmem:[#allocation2 + $0xd8] sm:$0xff]  }
 0x277   : > { %5304 = vmatprep.mubr.bf16.mxu0 %v5501_v51  ;;  %5372 = vmatprep.mubr.bf16.mxu1 %v5502_v19  ;;  %v1432_v51 = vld [vmem:[%s8295_s9 + $0x3b8] sm:$0xff]  ;;  %v1431_v19 = vld [vmem:[%s8295_s9 + $0x3b0] sm:$0xff]  ;;  %8448 = vst [vmem:[#allocation148_spill] sm:$0xff] %v7137_v34  ;;  %v5512_v34 = vld [vmem:[#allocation2 + $0x1e8] sm:$0xff]  }
 0x279   : > { %3725 = vperm.xlu1 %5444, %v1430_v47   ;;  %3720 = vperm.xlu0 %5443, %v1429_v48   ;;  %v1434_v47 = vld [vmem:[%s8295_s9 + $0x3c8] sm:$0xff]  ;;  %v1433_v48 = vld [vmem:[%s8295_s9 + $0x3c0] sm:$0xff] }
 0x27d   : > { %3735 = vperm.xlu1 %5444, %v1432_v51   ;;  %3730 = vperm.xlu0 %5443, %v1431_v19   ;;  %v7151_v51 = vpop.permute.xlu1 %3395  ;;  %v7153_v19 = vpop.permute.xlu0 %3390 }
 0x27e   : > { %5305 = vmatmul.mubr.bf16.gmra.mrb[52].mxu0 %v5503_v43  ;;  %5373 = vmatmul.mubr.bf16.gmra.mrb[60].mxu1 %v5504_v37  ;;  %v5509_v43 = vld [vmem:[#allocation2 + $0xd0] sm:$0xff]   ;;  %v5510_v37 = vld [vmem:[#allocation2 + $0x1e0] sm:$0xff]   ;;  %8449 = vst [vmem:[#allocation149_spill] sm:$0xff] %v7151_v51  ;;  %8450 = vst [vmem:[#allocation150_spill] sm:$0xff] %v7153_v19 }
 0x27f   : > { %5308 = vmatprep.mubr.bf16.mxu0 %v5505_v31  ;;  %5376 = vmatprep.mubr.bf16.mxu1 %v5506_v12  ;;  %v1436_v31 = vld [vmem:[%s8295_s9 + $0x3d8] sm:$0xff]  ;;  %v1435_v12 = vld [vmem:[%s8295_s9 + $0x3d0] sm:$0xff] }
 0x280   : > { %v5514_v51 = vld [vmem:[#allocation2 + $0x1f0] sm:$0xff]  }
 0x281   : > { %3745 = vperm.xlu1 %5444, %v1434_v47   ;;  %3740 = vperm.xlu0 %5443, %v1433_v48   ;;  %v1438_v47 = vld [vmem:[%s8295_s9 + $0x3e8] sm:$0xff]  ;;  %v1437_v48 = vld [vmem:[%s8295_s9 + $0x3e0] sm:$0xff]  ;;  %v7161_v61 = vpop.permute.xlu1 %3405 }
 0x282   : > { %8451 = vst [vmem:[#allocation151_spill] sm:$0xff] %v7161_v61 }
 0x285   : > { %3755 = vperm.xlu1 %5444, %v1436_v31   ;;  %3750 = vperm.xlu0 %5443, %v1435_v12   ;;  %v5515_v12 = vld [vmem:[#allocation2 + $0xe8] sm:$0xff]  }
 0x286   : > { %5309 = vmatmul.mubr.bf16.gmra.mrb[56].mxu0 %v5507_v54  ;;  %5377 = vmatmul.mubr.bf16.gmra.mrb[64].mxu1 %v5508_v5  ;;  %v7163_v54 = vpop.permute.xlu0 %3400  ;;  %v1440_v5 = vld [vmem:[%s8295_s9 + $0x3f8] sm:$0xff] }
 0x287   : > { %5312 = vmatprep.mubr.bf16.mxu0 %v5509_v43  ;;  %5380 = vmatprep.mubr.bf16.mxu1 %v5510_v37  ;;  %8452 = vst [vmem:[#allocation152_spill] sm:$0xff] %v7163_v54  ;;  %v1439_v43 = vld [vmem:[%s8295_s9 + $0x3f0] sm:$0xff]  ;;  %v7171_v37 = vpop.permute.xlu1 %3415 }
 0x288   : > { %8453 = vst [vmem:[#allocation153_spill] sm:$0xff] %v7171_v37 }
 0x289   : > { %3765 = vperm.xlu1 %5444, %v1438_v47   ;;  %3760 = vperm.xlu0 %5443, %v1437_v48   ;;  %v5516_v47 = vld [vmem:[#allocation2 + $0x1f8] sm:$0xff]   ;;  %v5517_v48 = vld [vmem:[#allocation2 + $0xf0] sm:$0xff]  }
 0x28a   : > { %v7173_v31 = vpop.permute.xlu0 %3410 }
 0x28b   : > { %8454 = vst [vmem:[#allocation154_spill] sm:$0xff] %v7173_v31  ;;  %v7175_v61 = vpop.permute.xlu1 %3425 }
 0x28c   : > { %8455 = vst [vmem:[#allocation155_spill] sm:$0xff] %v7175_v61 }
 0x28d   : > { %3775 = vperm.xlu1 %5444, %v1440_v5   ;;  %3770 = vperm.xlu0 %5443, %v1439_v43   ;;  %v5520_v5 = vld [vmem:[#allocation2 + $0x108] sm:$0xff]  }
 0x28e   : > { %5313 = vmatmul.mubr.bf16.gmra.mrb[60].mxu0 %v5511_v55  ;;  %5381 = vmatmul.mubr.bf16.gmra.mrb[68].mxu1 %v5512_v34  ;;  %v7177_v54 = vpop.permute.xlu0 %3420  ;;  %v5518_v55 = vld [vmem:[#allocation2 + $0xf8] sm:$0xff]   ;;  %v5519_v34 = vld [vmem:[#allocation2 + $0x100] sm:$0xff]  }
 0x28f   : > { %5316 = vmatprep.mubr.bf16.mxu0 %v5513_v20  ;;  %5384 = vmatprep.mubr.bf16.mxu1 %v5514_v51  ;;  %8456 = vst [vmem:[#allocation156_spill] sm:$0xff] %v7177_v54  ;;  %v7179_v20 = vpop.permute.xlu1 %3435 }
 0x290   : > { %8457 = vst [vmem:[#allocation157_spill] sm:$0xff] %v7179_v20 }
 0x292   : > { %v7181_v51 = vpop.permute.xlu0 %3430 }
 0x293   : > { %8458 = vst [vmem:[#allocation158_spill] sm:$0xff] %v7181_v51  ;;  %v7183_v43 = vpop.permute.xlu1 %3445 }
 0x294   : > { %8459 = vst [vmem:[#allocation159_spill] sm:$0xff] %v7183_v43 }
 0x296   : > { %5317 = vmatmul.mubr.bf16.gmra.mrb[64].mxu0 %v5515_v12  ;;  %5385 = vmatmul.mubr.bf16.gmra.mrb[72].mxu1 %v5516_v47  ;;  %v7185_v37 = vpop.permute.xlu0 %3440 }
 0x297   : > { %5320 = vmatprep.mubr.bf16.mxu0 %v5517_v48  ;;  %8460 = vst [vmem:[#allocation160_spill] sm:$0xff] %v7185_v37  ;;  %v7187_v12 = vpop.permute.xlu1 %3455 }
 0x298   : > { %8461 = vst [vmem:[#allocation161_spill] sm:$0xff] %v7187_v12 }
 0x29a   : > { %v7189_v47 = vpop.permute.xlu0 %3450 }
 0x29b   : > { %8462 = vst [vmem:[#allocation162_spill] sm:$0xff] %v7189_v47  ;;  %v7191_v48 = vpop.permute.xlu1 %3465 }
 0x29c   : > { %8463 = vst [vmem:[#allocation163_spill] sm:$0xff] %v7191_v48 }
 0x29e   : > { %5321 = vmatmul.mubr.bf16.gmra.mrb[68].mxu0 %v5518_v55  ;;  %v7193_v61 = vpop.permute.xlu0 %3460 }
 0x29f   : > { %5324 = vmatprep.mubr.bf16.mxu0 %v5519_v34  ;;  %8464 = vst [vmem:[#allocation164_spill] sm:$0xff] %v7193_v61  ;;  %v7195_v54 = vpop.permute.xlu1 %3475 }
 0x2a0   : > { %8465 = vst [vmem:[#allocation165_spill] sm:$0xff] %v7195_v54 }
 0x2a2   : > { %v7197_v20 = vpop.permute.xlu0 %3470 }
 0x2a3   : > { %8466 = vst [vmem:[#allocation166_spill] sm:$0xff] %v7197_v20  ;;  %v7199_v55 = vpop.permute.xlu1 %3485 }
 0x2a6   : > { %5325 = vmatmul.mubr.bf16.gmra.mrb[72].mxu0 %v5520_v5  ;;  %v3481_v34 = vpop.permute.xlu0 %3480 }
 0x2a7   : > { %v7201_v51 = vpop.permute.xlu1 %3495 }
 0x2aa   : > { %v3491_v43 = vpop.permute.xlu0 %3490 }
 0x2ab   : > { %v7203_v37 = vpop.permute.xlu1 %3505 }
 0x2ae   : > { %v7205_v5 = vpop.permute.xlu0 %3500 }
 0x2af   : > { %v7207_v12 = vpop.permute.xlu1 %3515 }
 0x2b2   : > { %v7209_v47 = vpop.permute.xlu0 %3510 }
 0x2b3   : > { %v7211_v48 = vpop.permute.xlu1 %3525 }
 0x2b6   : > { %v7213_v61 = vpop.permute.xlu0 %3520 }
 0x2b7   : > { %v7215_v54 = vpop.permute.xlu1 %3535 }
 0x2ba   : > { %v7217_v20 = vpop.permute.xlu0 %3530 }
 0x2bb   : > { %v7219_v31 = vpop.permute.xlu1 %3545 }
 0x2bc   : > { %8467 = vst [vmem:[#allocation167_spill] sm:$0xff] %v7219_v31 }
 0x2be   : > { %v7221_v19 = vpop.permute.xlu0 %3540 }
 0x2bf   : > { %v7223_v58 = vpop.permute.xlu1 %3555 }
 0x2c0   : > { %8468 = vst [vmem:[#allocation168_spill] sm:$0xff] %v7223_v58 }
 0x2c2   : > { %v7225_v62 = vpop.permute.xlu0 %3550 }
 0x2c3   : > { %v7227_v15 = vpop.permute.xlu1 %3565 }
 0x2c4   : > { %8469 = vst [vmem:[#allocation169_spill] sm:$0xff] %v7227_v15 }
 0x2c6   : > { %v7229_v45 = vpop.permute.xlu0 %3560 }
 0x2c7   : > { %8470 = vst [vmem:[#allocation170_spill] sm:$0xff] %v7229_v45  ;;  %v7231_v44 = vpop.permute.xlu1 %3575 }
 0x2c8   : > { %8471 = vst [vmem:[#allocation171_spill] sm:$0xff] %v7231_v44 }
 0x2ca   : > { %v7233_v32 = vpop.permute.xlu0 %3570 }
 0x2cb   : > { %8472 = vst [vmem:[#allocation172_spill] sm:$0xff] %v7233_v32  ;;  %v7235_v2 = vpop.permute.xlu1 %3585 }
 0x2cc   : > { %8473 = vst [vmem:[#allocation173_spill] sm:$0xff] %v7235_v2 }
 0x2ce   : > { %v7237_v17 = vpop.permute.xlu0 %3580 }
 0x2cf   : > { %8474 = vst [vmem:[#allocation174_spill] sm:$0xff] %v7237_v17 }
 0x2f9   : > { %v5262_v8 = vpop.f32.mrb[8].mxu0  ;;  %v5330_v53 = vpop.f32.mrb[16].mxu1 }
 0x2fa   : > { %v3012_v29 = vmul.f32 %v5262_v8, %v6187_v41  ;;  %v3080_v21 = vmul.f32 %v5330_v53, %v6557_v22  ;;  %v1859_v28 = vpop.f32.mrb[9].mxu0  ;;  %v2131_v35 = vpop.f32.mrb[17].mxu1 }
 0x2fb   : > { %v3010_v15 = vmul.f32 %v6171_v57, %v1859_v28  ;;  %v3078_v45 = vmul.f32 %v6547_v10, %v2131_v35  ;;  %v5263_v32 = vpop.f32.mrb[10].mxu0  ;;  %v5331_v40 = vpop.f32.mrb[18].mxu1 }
 0x2fc   : > { %v3780_v44 = vadd.f32 %v6888_v6, %v3012_v29  ;;  %v3848_v31 = vadd.f32 %v3491_v43, %v3080_v21  ;;  %v3013_v3 = vmul.f32 %v5263_v32, %v6183_v23  ;;  %v1862_v58 = vpop.f32.mrb[11].mxu0  ;;  %v2134_v41 = vpop.f32.mrb[19].mxu1  ;;  %v3081_v21 = vmul.f32 %v5331_v40, %v6555_v33 }
 0x2fd   : > { %v3778_v2 = vadd.f32 %v6872_v56, %v3010_v15  ;;  %v3846_v17 = vadd.f32 %v3481_v34, %v3078_v45  ;;  %v3011_v8 = vmul.f32 %v6169_v49, %v1862_v58  ;;  %v7247_v57 = vpop.permute.xlu1 %3595  ;;  %v7249_v10 = vpop.permute.xlu0 %3590  ;;  %v3079_v40 = vmul.f32 %v6545_v4, %v2134_v41 }
 0x2fe   : > { %v3908_v22 = vmax.f32 %v3780_v44, 0.0  ;;  %v3976_v53 = vmax.f32 %v3848_v31, 0.0  ;;  %v3781_v23 = vadd.f32 %v6885_v63, %v3013_v3  ;;  %v3849_v33 = vadd.f32 %v7201_v51, %v3081_v21 }
 0x2ff   : > { %v3974_v6 = vmax.f32 %v3846_v17, 0.0  ;;  %v3779_v29 = vadd.f32 %v6869_v36, %v3011_v8  ;;  %v3906_v28 = vmax.f32 %v3778_v2, 0.0  ;;  %v3847_v4 = vadd.f32 %v7199_v55, %v3079_v40 }
 0x300   : > { %v4245_v35 = vsel %vm4034_vm3, %v3976_v53, -inf  ;;  %v4041_v56 = vsel %vm4034_vm3, %v3908_v22, -inf  ;;  %v3909_v63 = vmax.f32 %v3781_v23, 0.0  ;;  %v3977_v51 = vmax.f32 %v3849_v33, 0.0 }
 0x301   : > { %4246 = vmax.xlane.f32.xlu1 %v4245_v35  ;;  %v5334_v15 = vpop.f32.mrb[20].mxu1  ;;  %4042 = vmax.xlane.f32.xlu0 %v4041_v56  ;;  %v5266_v49 = vpop.f32.mrb[12].mxu0  ;;  %v3907_v17 = vmax.f32 %v3779_v29, 0.0  ;;  %v4239_v2 = vsel %vm4034_vm3, %v3974_v6, -inf }
 0x302   : > { %v3016_v32 = vmul.f32 %v5266_v49, %v6209_v30  ;;  %v1875_v44 = vpop.f32.mrb[13].mxu0  ;;  %v2147_v58 = vpop.f32.mrb[21].mxu1  ;;  %v3084_v36 = vmul.f32 %v5334_v15, %v6577_v16  ;;  %v4035_v30 = vsel %vm4034_vm3, %v3906_v28, -inf  ;;  %v4044_v35 = vsel %vm4034_vm3, %v3909_v63, -inf }
 0x303   : > { %v5267_v31 = vpop.f32.mrb[14].mxu0  ;;  %v5335_v43 = vpop.f32.mrb[22].mxu1  ;;  %v3014_v8 = vmul.f32 %v6199_v38, %v1875_v44  ;;  %v4038_v6 = vsel %vm4034_vm3, %v3907_v17, -inf  ;;  %v3082_v38 = vmul.f32 %v6567_v27, %v2147_v58 }
 0x304   : > { %v3784_v45 = vadd.f32 %v6909_v50, %v3016_v32  ;;  %v1878_v3 = vpop.f32.mrb[15].mxu0  ;;  %v2150_v34 = vpop.f32.mrb[23].mxu1  ;;  %v3852_v50 = vadd.f32 %v7209_v47, %v3084_v36  ;;  %v3017_v41 = vmul.f32 %v5267_v31, %v6207_v0  ;;  %v3975_v0 = vmax.f32 %v3847_v4, 0.0 }
 0x305   : > { %4240 = vmax.xlane.f32.xlu1 %v4239_v2  ;;  %4036 = vmax.xlane.f32.xlu0 %v4035_v30  ;;  %v7263_v22 = vpop.permute.xlu1 %3605  ;;  %v7265_v16 = vpop.permute.xlu0 %3600  ;;  %v3782_v21 = vadd.f32 %v6899_v60, %v3014_v8  ;;  %v3085_v44 = vmul.f32 %v5335_v43, %v6575_v1  ;;  %v3850_v31 = vadd.f32 %v7205_v5, %v3082_v38 }
 0x306   : > { %v3912_v53 = vmax.f32 %v3784_v45, 0.0  ;;  %v3980_v47 = vmax.f32 %v3852_v50, 0.0  ;;  %v3785_v32 = vadd.f32 %v6907_v52, %v3017_v41  ;;  %v4248_v45 = vsel %vm4034_vm3, %v3977_v51, -inf }
 0x307   : > { %v3910_v58 = vmax.f32 %v3782_v21, 0.0  ;;  %v3853_v43 = vadd.f32 %v7207_v12, %v3085_v44  ;;  %v3015_v63 = vmul.f32 %v6197_v14, %v1878_v3  ;;  %v4242_v40 = vsel %vm4034_vm3, %v3975_v0, -inf  ;;  %v8475_v0 = vld [vmem:[#allocation6_spill] sm:$0xff] }
 0x308   : > { %v4053_v55 = vsel %vm4034_vm3, %v3912_v53, -inf  ;;  %v4257_v52 = vsel %vm4034_vm3, %v3980_v47, -inf  ;;  %v3913_v1 = vmax.f32 %v3785_v32, 0.0  ;;  %v3978_v8 = vmax.f32 %v3850_v31, 0.0 }
 0x309   : > { %v5338_v29 = vpop.f32.mrb[24].mxu1  ;;  %4039 = vmax.xlane.f32.xlu1 %v4038_v6  ;;  %v5270_v56 = vpop.f32.mrb[16].mxu0  ;;  %4045 = vmax.xlane.f32.xlu0 %v4044_v35  ;;  %v4047_v51 = vsel %vm4034_vm3, %v3910_v58, -inf  ;;  %v3981_v4 = vmax.f32 %v3853_v43, 0.0  ;;  %v3783_v41 = vadd.f32 %v6897_v42, %v3015_v63  ;;  %v3083_v35 = vmul.f32 %v6565_v9, %v2150_v34 }
 0x30a   : > { %v1891_v28 = vpop.f32.mrb[17].mxu0  ;;  %v7273_v23 = vpop.f32.mrb[25].mxu1  ;;  %v3020_v2 = vmul.f32 %v5270_v56, %v6235_v25  ;;  %v3088_v12 = vmul.f32 %v5338_v29, %v6597_v11  ;;  %v4056_v56 = vsel %vm4034_vm3, %v3913_v1, -inf  ;;  %v4251_v38 = vsel %vm4034_vm3, %v3978_v8, -inf }
 0x30b   : > { %v5271_v15 = vpop.f32.mrb[18].mxu0  ;;  %v7277_v49 = vpop.f32.mrb[26].mxu1  ;;  %v3018_v21 = vmul.f32 %v6219_v26, %v1891_v28  ;;  %v3851_v42 = vadd.f32 %v7203_v37, %v3083_v35  ;;  %v4260_v32 = vsel %vm4034_vm3, %v3981_v4, -inf  ;;  %v8478_v4 = vld [vmem:[#allocation10_spill] sm:$0xff] }
 0x30c   : > { %v7282_v17 = vpop.f32.mrb[19].mxu0  ;;  %v7284_v36 = vpop.f32.mrb[27].mxu1  ;;  %v3788_v14 = vadd.f32 %v6929_v46, %v3020_v2  ;;  %v3856_v46 = vadd.f32 %v7217_v20, %v3088_v12  ;;  %v3021_v9 = vmul.f32 %v5271_v15, %v8475_v0  ;;  %v8476_v15 = vld [vmem:[#allocation64_spill] sm:$0xff]  ;;  %v8480_v0 = vld [vmem:[#allocation69_spill] sm:$0xff] }
 0x30d   : > { %4054 = vmax.xlane.f32.xlu1 %v4053_v55  ;;  %4249 = vmax.xlane.f32.xlu0 %v4248_v45  ;;  %v7287_v60 = vpop.permute.xlu1 %3615  ;;  %v7289_v27 = vpop.permute.xlu0 %3610  ;;  %v3911_v55 = vmax.f32 %v3783_v41, 0.0  ;;  %v3786_v37 = vadd.f32 %v6919_v39, %v3018_v21  ;;  %v3086_v31 = vmul.f32 %v8476_v15, %v7273_v23  ;;  %v3979_v43 = vmax.f32 %v3851_v42, 0.0 }
 0x30e   : > { %v3916_v29 = vmax.f32 %v3788_v14, 0.0  ;;  %v3984_v58 = vmax.f32 %v3856_v46, 0.0  ;;  %v3789_v63 = vadd.f32 %v6927_v7, %v3021_v9 }
 0x30f   : > { %v4050_v12 = vsel %vm4034_vm3, %v3911_v55, -inf  ;;  %v3914_v23 = vmax.f32 %v3786_v37, 0.0  ;;  %v4254_v21 = vsel %vm4034_vm3, %v3979_v43, -inf }
 0x310   : > { %v4065_v1 = vsel %vm4034_vm3, %v3916_v29, -inf  ;;  %v4269_v35 = vsel %vm4034_vm3, %v3984_v58, -inf }
 0x311   : > { %v7296_v33 = vpop.f32.mrb[28].mxu1  ;;  %4258 = vmax.xlane.f32.xlu1 %v4257_v52  ;;  %v5274_v30 = vpop.f32.mrb[20].mxu0  ;;  %4243 = vmax.xlane.f32.xlu0 %v4242_v40  ;;  %v8477_v40 = vld [vmem:[#allocation65_spill] sm:$0xff]  ;;  %v4059_v37 = vsel %vm4034_vm3, %v3914_v23, -inf }
 0x312   : > { %v7299_v50 = vpop.f32.mrb[21].mxu0  ;;  %v7301_v53 = vpop.f32.mrb[29].mxu1  ;;  %v3089_v8 = vmul.f32 %v7277_v49, %v8477_v40  ;;  %v3024_v41 = vmul.f32 %v5274_v30, %v8478_v4  ;;  %v8479_v49 = vld [vmem:[#allocation5_spill] sm:$0xff] }
 0x313   : > { %v7303_v5 = vpop.f32.mrb[22].mxu0  ;;  %v7305_v25 = vpop.f32.mrb[30].mxu1  ;;  %v3019_v46 = vmul.f32 %v8479_v49, %v7282_v17  ;;  %v3092_v17 = vmul.f32 %v7296_v33, %v8480_v0 }
 0x314   : > { %v7309_v3 = vpop.f32.mrb[23].mxu0  ;;  %v7311_v6 = vpop.f32.mrb[31].mxu1  ;;  %v3857_v7 = vadd.f32 %v7215_v54, %v3089_v8  ;;  %v3792_v9 = vadd.f32 %v6949_v24, %v3024_v41 }
 0x315   : > { %4048 = vmax.xlane.f32.xlu1 %v4047_v51  ;;  %4057 = vmax.xlane.f32.xlu0 %v4056_v56  ;;  %v7317_v47 = vpop.permute.xlu1 %3625  ;;  %v7319_v11 = vpop.permute.xlu0 %3620  ;;  %v3854_v51 = vadd.f32 %v7213_v61, %v3086_v31  ;;  %v3917_v56 = vmax.f32 %v3789_v63, 0.0  ;;  %v3787_v31 = vadd.f32 %v6917_v18, %v3019_v46  ;;  %v3860_v24 = vadd.f32 %v7225_v62, %v3092_v17 }
 0x316   : > { %v3985_v15 = vmax.f32 %v3857_v7, 0.0  ;;  %v3920_v8 = vmax.f32 %v3792_v9, 0.0 }
 0x317   : > { %v3982_v54 = vmax.f32 %v3854_v51, 0.0  ;;  %v4068_v63 = vsel %vm4034_vm3, %v3917_v56, -inf  ;;  %v3915_v18 = vmax.f32 %v3787_v31, 0.0  ;;  %v8487_v31 = vld [vmem:[#allocation68_spill] sm:$0xff] }
 0x318   : > { %v4272_v56 = vsel %vm4034_vm3, %v3985_v15, -inf  ;;  %v4077_v9 = vsel %vm4034_vm3, %v3920_v8, -inf }
 0x319   : > { %v7326_v34 = vpop.f32.mrb[32].mxu1  ;;  %4252 = vmax.xlane.f32.xlu1 %v4251_v38  ;;  %v7329_v44 = vpop.f32.mrb[24].mxu0  ;;  %4261 = vmax.xlane.f32.xlu0 %v4260_v32  ;;  %v4263_v51 = vsel %vm4034_vm3, %v3982_v54, -inf }
 0x31a   : > { %v7331_v45 = vpop.f32.mrb[25].mxu0  ;;  %v7333_v20 = vpop.f32.mrb[33].mxu1 }
 0x31b   : > { %v7335_v26 = vpop.f32.mrb[26].mxu0  ;;  %v7337_v28 = vpop.f32.mrb[34].mxu1 }
 0x31c   : > { %v7342_v2 = vpop.f32.mrb[27].mxu0  ;;  %v7344_v52 = vpop.f32.mrb[35].mxu1 }
 0x31d   : > { %4066 = vmax.xlane.f32.xlu1 %v4065_v1  ;;  %4051 = vmax.xlane.f32.xlu0 %v4050_v12  ;;  %v7351_v39 = vpop.permute.xlu1 %3635  ;;  %v7353_v14 = vpop.permute.xlu0 %3630  ;;  %v8481_v1 = vld [vmem:[#allocation63_spill] sm:$0xff]  ;;  %v8484_v12 = vld [vmem:[#allocation8_spill] sm:$0xff] }
 0x31e   : > { %v3087_v43 = vmul.f32 %v8481_v1, %v7284_v36  ;;  %v3022_v23 = vmul.f32 %v8484_v12, %v7299_v50  ;;  %v8485_v36 = vld [vmem:[#allocation9_spill] sm:$0xff]  ;;  %v3093_v1 = vmul.f32 %v7305_v25, %v8487_v31  ;;  %v8489_v12 = vld [vmem:[#allocation14_spill] sm:$0xff]  ;;  %v8491_v25 = vld [vmem:[#allocation7_spill] sm:$0xff] }
 0x31f   : > { %v3025_v41 = vmul.f32 %v7303_v5, %v8485_v36  ;;  %v8486_v5 = vld [vmem:[#allocation67_spill] sm:$0xff]  ;;  %v3028_v8 = vmul.f32 %v7329_v44, %v8489_v12  ;;  %v8494_v12 = vld [vmem:[#allocation114_spill] sm:$0xff] }
 0x320   : > { %v3855_v4 = vadd.f32 %v7211_v48, %v3087_v43  ;;  %v3988_v48 = vmax.f32 %v3860_v24, 0.0  ;;  %v3090_v54 = vmul.f32 %v8486_v5, %v7301_v53  ;;  %v4062_v43 = vsel %vm4034_vm3, %v3915_v18, -inf }
 0x321   : > { %v7361_v29 = vpop.f32.mrb[36].mxu1  ;;  %4270 = vmax.xlane.f32.xlu1 %v4269_v35  ;;  %v7364_v38 = vpop.f32.mrb[28].mxu0  ;;  %4255 = vmax.xlane.f32.xlu0 %v4254_v21  ;;  %v3790_v21 = vadd.f32 %v6939_v59, %v3022_v23  ;;  %v3793_v15 = vadd.f32 %v6947_v13, %v3025_v41  ;;  %v3023_v18 = vmul.f32 %v8491_v25, %v7309_v3 }
 0x322   : > { %v7366_v55 = vpop.f32.mrb[29].mxu0  ;;  %v7368_v61 = vpop.f32.mrb[37].mxu1  ;;  %v3858_v24 = vadd.f32 %v7221_v19, %v3090_v54  ;;  %v4281_v23 = vsel %vm4034_vm3, %v3988_v48, -inf  ;;  %v8492_v54 = vld [vmem:[#allocation73_spill] sm:$0xff] }
 0x323   : > { %v7370_v30 = vpop.f32.mrb[30].mxu0  ;;  %v7372_v42 = vpop.f32.mrb[38].mxu1  ;;  %v3918_v53 = vmax.f32 %v3790_v21, 0.0  ;;  %v3921_v13 = vmax.f32 %v3793_v15, 0.0  ;;  %v3096_v3 = vmul.f32 %v7326_v34, %v8492_v54 }
 0x324   : > { %v7377_v32 = vpop.f32.mrb[31].mxu0  ;;  %v7379_v58 = vpop.f32.mrb[39].mxu1  ;;  %v3986_v5 = vmax.f32 %v3858_v24, 0.0 }
 0x325   : > { %4060 = vmax.xlane.f32.xlu1 %v4059_v37  ;;  %4069 = vmax.xlane.f32.xlu0 %v4068_v63  ;;  %v7386_v40 = vpop.permute.xlu1 %3645  ;;  %v7388_v33 = vpop.permute.xlu0 %3640  ;;  %v3983_v37 = vmax.f32 %v3855_v4, 0.0  ;;  %v4080_v24 = vsel %vm4034_vm3, %v3921_v13, -inf }
 0x326   : > { %8482 = vst [vmem:[#allocation6_spill] sm:$0xff] %v7386_v40  ;;  %8483 = vst [vmem:[#allocation64_spill] sm:$0xff] %v7388_v33  ;;  %v8499_v40 = vld [vmem:[#allocation12_spill] sm:$0xff] }
 0x327   : > { %v4266_v41 = vsel %vm4034_vm3, %v3983_v37, -inf }
 0x329   : > { %v7397_v35 = vpop.f32.mrb[40].mxu1  ;;  %4264 = vmax.xlane.f32.xlu1 %v4263_v51  ;;  %v7400_v7 = vpop.f32.mrb[32].mxu0  ;;  %4273 = vmax.xlane.f32.xlu0 %v4272_v56  ;;  %v8490_v51 = vld [vmem:[#allocation168_spill] sm:$0xff] }
 0x32a   : > { %v7402_v62 = vpop.f32.mrb[33].mxu0  ;;  %v7404_v49 = vpop.f32.mrb[41].mxu1  ;;  %v3861_v4 = vadd.f32 %v8490_v51, %v3093_v1  ;;  %v4071_v1 = vsel %vm4034_vm3, %v3918_v53, -inf  ;;  %v8495_v51 = vld [vmem:[#allocation66_spill] sm:$0xff]  ;;  %v3026_v53 = vmul.f32 %v8499_v40, %v7331_v45 }
 0x32b   : > { %v7406_v50 = vpop.f32.mrb[34].mxu0  ;;  %v7408_v46 = vpop.f32.mrb[42].mxu1  ;;  %v3091_v25 = vmul.f32 %v8495_v51, %v7311_v6  ;;  %v8501_v6 = vld [vmem:[#allocation13_spill] sm:$0xff] }
 0x32c   : > { %v7413_v0 = vpop.f32.mrb[35].mxu0  ;;  %v7415_v17 = vpop.f32.mrb[43].mxu1 }
 0x32d   : > { %4078 = vmax.xlane.f32.xlu1 %v4077_v9  ;;  %4063 = vmax.xlane.f32.xlu0 %v4062_v43  ;;  %v7422_v59 = vpop.permute.xlu1 %3655  ;;  %v7424_v63 = vpop.permute.xlu0 %3650  ;;  %v8493_v9 = vld [vmem:[#allocation118_spill] sm:$0xff]  ;;  %v3989_v43 = vmax.f32 %v3861_v4, 0.0  ;;  %v4275_v4 = vsel %vm4034_vm3, %v3986_v5, -inf }
 0x32e   : > { %8488 = vst [vmem:[#allocation65_spill] sm:$0xff] %v7422_v59  ;;  %v3796_v15 = vadd.f32 %v8493_v9, %v3028_v8  ;;  %v8498_v8 = vld [vmem:[#allocation172_spill] sm:$0xff] }
 0x32f   : > { %v3864_v54 = vadd.f32 %v8498_v8, %v3096_v3  ;;  %v4284_v51 = vsel %vm4034_vm3, %v3989_v43, -inf }
 0x330   : > { %v3924_v9 = vmax.f32 %v3796_v15, 0.0 }
 0x331   : > { %v7433_v36 = vpop.f32.mrb[44].mxu1  ;;  %4282 = vmax.xlane.f32.xlu1 %v4281_v23  ;;  %v7436_v56 = vpop.f32.mrb[36].mxu0  ;;  %4267 = vmax.xlane.f32.xlu0 %v4266_v41  ;;  %v3791_v23 = vadd.f32 %v8494_v12, %v3023_v18  ;;  %v8500_v12 = vld [vmem:[#allocation167_spill] sm:$0xff]  ;;  %v3992_v5 = vmax.f32 %v3864_v54, 0.0 }
 0x332   : > { %v7438_v19 = vpop.f32.mrb[37].mxu0  ;;  %v7440_v21 = vpop.f32.mrb[45].mxu1  ;;  %v3859_v59 = vadd.f32 %v8500_v12, %v3091_v25  ;;  %v4089_v12 = vsel %vm4034_vm3, %v3924_v9, -inf }
 0x333   : > { %v7442_v44 = vpop.f32.mrb[38].mxu0  ;;  %v7444_v48 = vpop.f32.mrb[46].mxu1  ;;  %v3919_v18 = vmax.f32 %v3791_v23, 0.0  ;;  %v8503_v23 = vld [vmem:[#allocation116_spill] sm:$0xff] }
 0x334   : > { %v7449_v31 = vpop.f32.mrb[39].mxu0  ;;  %v7451_v37 = vpop.f32.mrb[47].mxu1  ;;  %v3794_v25 = vadd.f32 %v8503_v23, %v3026_v53  ;;  %v8510_v23 = vld [vmem:[#allocation170_spill] sm:$0xff] }
 0x335   : > { %4072 = vmax.xlane.f32.xlu1 %v4071_v1  ;;  %4081 = vmax.xlane.f32.xlu0 %v4080_v24  ;;  %v7458_v41 = vpop.permute.xlu1 %3665  ;;  %v7460_v34 = vpop.permute.xlu0 %3660  ;;  %v3029_v1 = vmul.f32 %v7335_v26, %v8501_v6  ;;  %v8504_v26 = vld [vmem:[#allocation71_spill] sm:$0xff]  ;;  %v3987_v6 = vmax.f32 %v3859_v59, 0.0  ;;  %v4293_v59 = vsel %vm4034_vm3, %v3992_v5, -inf }
 0x336   : > { %8496 = vst [vmem:[#allocation10_spill] sm:$0xff] %v7458_v41  ;;  %8497 = vst [vmem:[#allocation5_spill] sm:$0xff] %v7460_v34  ;;  %v3094_v8 = vmul.f32 %v8504_v26, %v7333_v20  ;;  %v8508_v34 = vld [vmem:[#allocation72_spill] sm:$0xff]  ;;  %v3922_v20 = vmax.f32 %v3794_v25, 0.0 }
 0x337   : > { %v3097_v33 = vmul.f32 %v7337_v28, %v8508_v34  ;;  %v8513_v28 = vld [vmem:[#allocation11_spill] sm:$0xff] }
 0x338   : > { %v3862_v26 = vadd.f32 %v8510_v23, %v3094_v8  ;;  %v3027_v34 = vmul.f32 %v8513_v28, %v7342_v2 }
 0x339   : > { %v7469_v13 = vpop.f32.mrb[48].mxu1  ;;  %4276 = vmax.xlane.f32.xlu1 %v4275_v4  ;;  %v7472_v24 = vpop.f32.mrb[40].mxu0  ;;  %4285 = vmax.xlane.f32.xlu0 %v4284_v51  ;;  %v8507_v51 = vld [vmem:[#allocation117_spill] sm:$0xff] }
 0x33a   : > { %v7474_v3 = vpop.f32.mrb[41].mxu0  ;;  %v7476_v15 = vpop.f32.mrb[49].mxu1  ;;  %v3797_v41 = vadd.f32 %v8507_v51, %v3029_v1  ;;  %v8512_v51 = vld [vmem:[#allocation171_spill] sm:$0xff]  ;;  %v3990_v2 = vmax.f32 %v3862_v26, 0.0 }
 0x33b   : > { %v7478_v45 = vpop.f32.mrb[42].mxu0  ;;  %v7480_v40 = vpop.f32.mrb[50].mxu1 }
 0x33c   : > { %8502 = vst [vmem:[#allocation69_spill] sm:$0xff] %v7480_v40  ;;  %v7485_v4 = vpop.f32.mrb[43].mxu0  ;;  %v7487_v43 = vpop.f32.mrb[51].mxu1  ;;  %v4074_v40 = vsel %vm4034_vm3, %v3919_v18, -inf  ;;  %v3925_v1 = vmax.f32 %v3797_v41, 0.0 }
 0x33d   : > { %8505 = vst [vmem:[#allocation63_spill] sm:$0xff] %v7485_v4  ;;  %8506 = vst [vmem:[#allocation8_spill] sm:$0xff] %v7487_v43  ;;  %4090 = vmax.xlane.f32.xlu1 %v4089_v12  ;;  %4075 = vmax.xlane.f32.xlu0 %v4074_v40  ;;  %v7494_v54 = vpop.permute.xlu1 %3675  ;;  %v7496_v53 = vpop.permute.xlu0 %3670  ;;  %v8511_v43 = vld [vmem:[#allocation18_spill] sm:$0xff]  ;;  %v3865_v4 = vadd.f32 %v8512_v51, %v3097_v33  ;;  %v4278_v40 = vsel %vm4034_vm3, %v3987_v6, -inf }
 0x33e   : > { %8509 = vst [vmem:[#allocation9_spill] sm:$0xff] %v7494_v54  ;;  %v3032_v9 = vmul.f32 %v7364_v38, %v8511_v43  ;;  %v8516_v38 = vld [vmem:[#allocation70_spill] sm:$0xff]  ;;  %v8519_v43 = vld [vmem:[#allocation77_spill] sm:$0xff] }
 0x33f   : > { %v3095_v41 = vmul.f32 %v8516_v38, %v7344_v52  ;;  %v3100_v23 = vmul.f32 %v7361_v29, %v8519_v43  ;;  %v8520_v6 = vld [vmem:[#allocation122_spill] sm:$0xff]  ;;  %v3993_v54 = vmax.f32 %v3865_v4, 0.0  ;;  %v4092_v52 = vsel %vm4034_vm3, %v3925_v1, -inf  ;;  %v8523_v38 = vld [vmem:[#allocation169_spill] sm:$0xff]  ;;  %v8525_v43 = vld [vmem:[#allocation16_spill] sm:$0xff] }
 0x341   : > { %v7505_v18 = vpop.f32.mrb[52].mxu1  ;;  %4294 = vmax.xlane.f32.xlu1 %v4293_v59  ;;  %v7508_v12 = vpop.f32.mrb[44].mxu0  ;;  %4279 = vmax.xlane.f32.xlu0 %v4278_v40  ;;  %v3800_v59 = vadd.f32 %v8520_v6, %v3032_v9  ;;  %v4083_v40 = vsel %vm4034_vm3, %v3922_v20, -inf  ;;  %v3863_v26 = vadd.f32 %v8523_v38, %v3095_v41  ;;  %v3868_v29 = vadd.f32 %v7249_v10, %v3100_v23 }
 0x342   : > { %v7510_v25 = vpop.f32.mrb[45].mxu0  ;;  %v7512_v8 = vpop.f32.mrb[53].mxu1  ;;  %v3030_v6 = vmul.f32 %v8525_v43, %v7366_v55  ;;  %v4287_v20 = vsel %vm4034_vm3, %v3990_v2, -inf  ;;  %v4296_v1 = vsel %vm4034_vm3, %v3993_v54, -inf }
 0x343   : > { %8514 = vst [vmem:[#allocation67_spill] sm:$0xff] %v7510_v25  ;;  %8515 = vst [vmem:[#allocation68_spill] sm:$0xff] %v7512_v8  ;;  %v7516_v5 = vpop.f32.mrb[46].mxu0  ;;  %v7518_v33 = vpop.f32.mrb[54].mxu1  ;;  %v8522_v8 = vld [vmem:[#allocation115_spill] sm:$0xff]  ;;  %v3928_v9 = vmax.f32 %v3800_v59, 0.0 }
 0x344   : > { %8517 = vst [vmem:[#allocation14_spill] sm:$0xff] %v7516_v5  ;;  %8518 = vst [vmem:[#allocation168_spill] sm:$0xff] %v7518_v33  ;;  %v7523_v51 = vpop.f32.mrb[47].mxu0  ;;  %v7525_v28 = vpop.f32.mrb[55].mxu1  ;;  %v3795_v25 = vadd.f32 %v8522_v8, %v3027_v34  ;;  %v3991_v23 = vmax.f32 %v3863_v26, 0.0  ;;  %v8530_v59 = vld [vmem:[#allocation120_spill] sm:$0xff] }
 0x345   : > { %8521 = vst [vmem:[#allocation7_spill] sm:$0xff] %v7525_v28  ;;  %4084 = vmax.xlane.f32.xlu1 %v4083_v40  ;;  %4093 = vmax.xlane.f32.xlu0 %v4092_v52  ;;  %v3686_v33 = vpop.permute.xlu1 %3685  ;;  %v7531_v5 = vpop.permute.xlu0 %3680  ;;  %v8526_v28 = vld [vmem:[#allocation17_spill] sm:$0xff]  ;;  %v4101_v43 = vsel %vm4034_vm3, %v3928_v9, -inf }
 0x346   : > { %8524 = vst [vmem:[#allocation73_spill] sm:$0xff] %v7531_v5  ;;  %v3923_v4 = vmax.f32 %v3795_v25, 0.0  ;;  %v3033_v34 = vmul.f32 %v7370_v30, %v8526_v28  ;;  %v3996_v25 = vmax.f32 %v3868_v29, 0.0  ;;  %v3798_v30 = vadd.f32 %v8530_v59, %v3030_v6  ;;  %v8531_v28 = vld [vmem:[#allocation75_spill] sm:$0xff]  ;;  %v8535_v5 = vld [vmem:[#allocation94_spill] sm:$0xff] }
 0x347   : > { %v3098_v52 = vmul.f32 %v8531_v28, %v7368_v61  ;;  %v8537_v28 = vld [vmem:[#allocation174_spill] sm:$0xff] }
 0x348   : > { %v3926_v59 = vmax.f32 %v3798_v30, 0.0 }
 0x349   : > { %v7539_v8 = vpop.f32.mrb[56].mxu1  ;;  %4288 = vmax.xlane.f32.xlu1 %v4287_v20  ;;  %v7542_v41 = vpop.f32.mrb[48].mxu0  ;;  %4297 = vmax.xlane.f32.xlu0 %v4296_v1  ;;  %v8533_v20 = vld [vmem:[#allocation121_spill] sm:$0xff]  ;;  %v3866_v9 = vadd.f32 %v8537_v28, %v3098_v52 }
 0x34a   : > { %8527 = vst [vmem:[#allocation118_spill] sm:$0xff] %v7539_v8  ;;  %v7544_v40 = vpop.f32.mrb[49].mxu0  ;;  %v7546_v10 = vpop.f32.mrb[57].mxu1  ;;  %v3801_v1 = vadd.f32 %v8533_v20, %v3033_v34  ;;  %v8534_v8 = vld [vmem:[#allocation76_spill] sm:$0xff] }
 0x34b   : > { %v7548_v55 = vpop.f32.mrb[50].mxu0  ;;  %v7550_v2 = vpop.f32.mrb[58].mxu1  ;;  %v3101_v26 = vmul.f32 %v7372_v42, %v8534_v8  ;;  %v4305_v42 = vsel %vm4034_vm3, %v3996_v25, -inf }
 0x34c   : > { %8528 = vst [vmem:[#allocation114_spill] sm:$0xff] %v7548_v55  ;;  %8529 = vst [vmem:[#allocation66_spill] sm:$0xff] %v7550_v2  ;;  %v7555_v38 = vpop.f32.mrb[51].mxu0  ;;  %v2294_v54 = vpop.f32.mrb[59].mxu1  ;;  %v4086_v2 = vsel %vm4034_vm3, %v3923_v4, -inf  ;;  %v3929_v8 = vmax.f32 %v3801_v1, 0.0 }
 0x34d   : > { %8532 = vst [vmem:[#allocation172_spill] sm:$0xff] %v7555_v38  ;;  %v3119_v55 = vmul.f32 %v8535_v5, %v2294_v54  ;;  %4102 = vmax.xlane.f32.xlu1 %v4101_v43  ;;  %4087 = vmax.xlane.f32.xlu0 %v4086_v2  ;;  %v7565_v6 = vpop.permute.xlu1 %3695  ;;  %v7567_v61 = vpop.permute.xlu0 %3690  ;;  %v8538_v38 = vld [vmem:[#allocation22_spill] sm:$0xff]  ;;  %v3869_v5 = vadd.f32 %v7247_v57, %v3101_v26  ;;  %v8539_v4 = vld [vmem:[#allocation15_spill] sm:$0xff]  ;;  %v3994_v57 = vmax.f32 %v3866_v9, 0.0  ;;  %v4095_v26 = vsel %vm4034_vm3, %v3926_v59, -inf }
 0x34e   : > { %8536 = vst [vmem:[#allocation12_spill] sm:$0xff] %v7565_v6  ;;  %v3036_v34 = vmul.f32 %v7400_v7, %v8538_v38  ;;  %v3031_v2 = vmul.f32 %v8539_v4, %v7377_v32  ;;  %v8541_v38 = vld [vmem:[#allocation81_spill] sm:$0xff]  ;;  %v8542_v43 = vld [vmem:[#allocation126_spill] sm:$0xff]  ;;  %v4104_v9 = vsel %vm4034_vm3, %v3929_v8, -inf }
 0x34f   : > { %v7563_v29 = vadd.f32 %v3686_v33, %v3119_v55  ;;  %v4290_v55 = vsel %vm4034_vm3, %v3991_v23, -inf  ;;  %v3104_v32 = vmul.f32 %v7397_v35, %v8541_v38  ;;  %v3997_v28 = vmax.f32 %v3869_v5, 0.0 }
 0x350   : > { %v3804_v20 = vadd.f32 %v8542_v43, %v3036_v34  ;;  %v8547_v43 = vld [vmem:[#allocation20_spill] sm:$0xff]  ;;  %v4299_v5 = vsel %vm4034_vm3, %v3994_v57, -inf }
 0x351   : > { %v7576_v33 = vpop.f32.mrb[60].mxu1  ;;  %4306 = vmax.xlane.f32.xlu1 %v4305_v42  ;;  %v7579_v54 = vpop.f32.mrb[52].mxu0  ;;  %4291 = vmax.xlane.f32.xlu0 %v4290_v55  ;;  %v8544_v42 = vld [vmem:[#allocation119_spill] sm:$0xff]  ;;  %v8545_v55 = vld [vmem:[#allocation74_spill] sm:$0xff]  ;;  %v3872_v34 = vadd.f32 %v7289_v27, %v3104_v32  ;;  %v3034_v59 = vmul.f32 %v8547_v43, %v7402_v62 }
 0x352   : > { %v7581_v30 = vpop.f32.mrb[53].mxu0  ;;  %v7583_v52 = vpop.f32.mrb[61].mxu1  ;;  %v3799_v4 = vadd.f32 %v8544_v42, %v3031_v2  ;;  %v3099_v6 = vmul.f32 %v8545_v55, %v7379_v58  ;;  %v3932_v38 = vmax.f32 %v3804_v20, 0.0  ;;  %v8548_v42 = vld [vmem:[#allocation173_spill] sm:$0xff]  ;;  %v4308_v55 = vsel %vm4034_vm3, %v3997_v28, -inf  ;;  %v8553_v20 = vld [vmem:[#allocation124_spill] sm:$0xff] }
 0x353   : > { %v7585_v7 = vpop.f32.mrb[54].mxu0  ;;  %v7587_v25 = vpop.f32.mrb[62].mxu1  ;;  %v8549_v58 = vld [vmem:[#allocation21_spill] sm:$0xff] }
 0x354   : > { %8540 = vst [vmem:[#allocation167_spill] sm:$0xff] %v7587_v25  ;;  %v7592_v1 = vpop.f32.mrb[55].mxu0  ;;  %v7594_v23 = vpop.f32.mrb[63].mxu1  ;;  %v3927_v2 = vmax.f32 %v3799_v4, 0.0  ;;  %v3802_v4 = vadd.f32 %v8553_v20, %v3034_v59 }
 0x355   : > { %8543 = vst [vmem:[#allocation13_spill] sm:$0xff] %v7594_v23  ;;  %4096 = vmax.xlane.f32.xlu1 %v4095_v26  ;;  %4105 = vmax.xlane.f32.xlu0 %v4104_v9  ;;  %v7601_v25 = vpop.permute.xlu1 %3705  ;;  %v7603_v35 = vpop.permute.xlu0 %3700  ;;  %v3867_v23 = vadd.f32 %v8548_v42, %v3099_v6  ;;  %v3037_v26 = vmul.f32 %v7406_v50, %v8549_v58  ;;  %v4000_v6 = vmax.f32 %v3872_v34, 0.0  ;;  %v8554_v50 = vld [vmem:[#allocation79_spill] sm:$0xff]  ;;  %v4113_v42 = vsel %vm4034_vm3, %v3932_v38, -inf }
 0x356   : > { %8546 = vst [vmem:[#allocation116_spill] sm:$0xff] %v7601_v25  ;;  %v3102_v43 = vmul.f32 %v8554_v50, %v7404_v49  ;;  %v3930_v49 = vmax.f32 %v3802_v4, 0.0  ;;  %v8559_v50 = vld [vmem:[#allocation26_spill] sm:$0xff] }
 0x357   : > { %v3995_v58 = vmax.f32 %v3867_v23, 0.0  ;;  %v3040_v38 = vmul.f32 %v7436_v56, %v8559_v50  ;;  %v4317_v23 = vsel %vm4034_vm3, %v4000_v6, -inf  ;;  %v8564_v6 = vld [vmem:[#allocation130_spill] sm:$0xff] }
 0x358   : > { %v3870_v20 = vadd.f32 %v7265_v16, %v3102_v43 }
 0x359   : > { %v7612_v8 = vpop.f32.mrb[64].mxu1  ;;  %4300 = vmax.xlane.f32.xlu1 %v4299_v5  ;;  %v7615_v9 = vpop.f32.mrb[56].mxu0  ;;  %4309 = vmax.xlane.f32.xlu0 %v4308_v55  ;;  %v8556_v55 = vld [vmem:[#allocation125_spill] sm:$0xff]  ;;  %v3808_v43 = vadd.f32 %v8564_v6, %v3040_v38  ;;  %v8568_v6 = vld [vmem:[#allocation24_spill] sm:$0xff] }
 0x35a   : > { %8550 = vst [vmem:[#allocation71_spill] sm:$0xff] %v7612_v8  ;;  %v7617_v27 = vpop.f32.mrb[57].mxu0  ;;  %v7619_v32 = vpop.f32.mrb[65].mxu1  ;;  %v3805_v25 = vadd.f32 %v8556_v55, %v3037_v26  ;;  %v8557_v8 = vld [vmem:[#allocation80_spill] sm:$0xff] }
 0x35b   : > { %8551 = vst [vmem:[#allocation117_spill] sm:$0xff] %v7619_v32  ;;  %v7621_v62 = vpop.f32.mrb[58].mxu0  ;;  %v7623_v57 = vpop.f32.mrb[66].mxu1  ;;  %v3105_v32 = vmul.f32 %v7408_v46, %v8557_v8  ;;  %v8560_v46 = vld [vmem:[#allocation19_spill] sm:$0xff] }
 0x35c   : > { %8552 = vst [vmem:[#allocation72_spill] sm:$0xff] %v7623_v57  ;;  %v7628_v5 = vpop.f32.mrb[59].mxu0  ;;  %v7630_v28 = vpop.f32.mrb[67].mxu1  ;;  %v4098_v57 = vsel %vm4034_vm3, %v3927_v2, -inf  ;;  %v3933_v26 = vmax.f32 %v3805_v25, 0.0  ;;  %v3035_v2 = vmul.f32 %v8560_v46, %v7413_v0 }
 0x35d   : > { %8555 = vst [vmem:[#allocation170_spill] sm:$0xff] %v7630_v28  ;;  %4114 = vmax.xlane.f32.xlu1 %v4113_v42  ;;  %4099 = vmax.xlane.f32.xlu0 %v4098_v57  ;;  %v7637_v34 = vpop.permute.xlu1 %3715  ;;  %v7639_v59 = vpop.permute.xlu0 %3710  ;;  %v3873_v55 = vadd.f32 %v7287_v60, %v3105_v32  ;;  %v4302_v57 = vsel %vm4034_vm3, %v3995_v58, -inf  ;;  %v3998_v60 = vmax.f32 %v3870_v20, 0.0  ;;  %v8563_v32 = vld [vmem:[#allocation85_spill] sm:$0xff]  ;;  %v8567_v28 = vld [vmem:[#allocation78_spill] sm:$0xff] }
 0x35e   : > { %8558 = vst [vmem:[#allocation18_spill] sm:$0xff] %v7637_v34  ;;  %v3108_v0 = vmul.f32 %v7433_v36, %v8563_v32  ;;  %v3103_v34 = vmul.f32 %v8567_v28, %v7415_v17  ;;  %v4116_v20 = vsel %vm4034_vm3, %v3933_v26, -inf  ;;  %v3936_v32 = vmax.f32 %v3808_v43, 0.0  ;;  %v8569_v17 = vld [vmem:[#allocation25_spill] sm:$0xff] }
 0x35f   : > { %v4001_v46 = vmax.f32 %v3873_v55, 0.0  ;;  %v4311_v55 = vsel %vm4034_vm3, %v3998_v60, -inf  ;;  %v3041_v28 = vmul.f32 %v7442_v44, %v8569_v17  ;;  %v8574_v44 = vld [vmem:[#allocation83_spill] sm:$0xff] }
 0x360   : > { %v3876_v38 = vadd.f32 %v7353_v14, %v3108_v0  ;;  %v3106_v43 = vmul.f32 %v8574_v44, %v7440_v21  ;;  %v8578_v21 = vld [vmem:[#allocation30_spill] sm:$0xff] }
 0x361   : > { %v7648_v8 = vpop.f32.mrb[68].mxu1  ;;  %4318 = vmax.xlane.f32.xlu1 %v4317_v23  ;;  %v7651_v42 = vpop.f32.mrb[60].mxu0  ;;  %4303 = vmax.xlane.f32.xlu0 %v4302_v57  ;;  %v4107_v23 = vsel %vm4034_vm3, %v3930_v49, -inf  ;;  %v8566_v57 = vld [vmem:[#allocation123_spill] sm:$0xff]  ;;  %v3038_v49 = vmul.f32 %v8568_v6, %v7438_v19 }
 0x362   : > { %8561 = vst [vmem:[#allocation171_spill] sm:$0xff] %v7648_v8  ;;  %v7653_v16 = vpop.f32.mrb[61].mxu0  ;;  %v7655_v4 = vpop.f32.mrb[69].mxu1  ;;  %v3803_v8 = vadd.f32 %v8566_v57, %v3035_v2  ;;  %v3871_v57 = vadd.f32 %v7263_v22, %v3103_v34  ;;  %v4004_v22 = vmax.f32 %v3876_v38, 0.0  ;;  %v8573_v34 = vld [vmem:[#allocation128_spill] sm:$0xff] }
 0x363   : > { %v7657_v56 = vpop.f32.mrb[62].mxu0  ;;  %v7659_v25 = vpop.f32.mrb[70].mxu1  ;;  %v3806_v60 = vadd.f32 %v8573_v34, %v3038_v49  ;;  %v3874_v49 = vadd.f32 %v7319_v11, %v3106_v43  ;;  %v3044_v34 = vmul.f32 %v7472_v24, %v8578_v21  ;;  %v8584_v21 = vld [vmem:[#allocation82_spill] sm:$0xff] }
 0x364   : > { %8562 = vst [vmem:[#allocation11_spill] sm:$0xff] %v7659_v25  ;;  %v7664_v50 = vpop.f32.mrb[63].mxu0  ;;  %v7666_v58 = vpop.f32.mrb[71].mxu1  ;;  %v3931_v2 = vmax.f32 %v3803_v8, 0.0  ;;  %v3999_v17 = vmax.f32 %v3871_v57, 0.0  ;;  %v4329_v44 = vsel %vm4034_vm3, %v4004_v22, -inf }
 0x365   : > { %8565 = vst [vmem:[#allocation70_spill] sm:$0xff] %v7666_v58  ;;  %4108 = vmax.xlane.f32.xlu1 %v4107_v23  ;;  %4117 = vmax.xlane.f32.xlu0 %v4116_v20  ;;  %v7673_v25 = vpop.permute.xlu1 %3725  ;;  %v7675_v36 = vpop.permute.xlu0 %3720  ;;  %v4320_v23 = vsel %vm4034_vm3, %v4001_v46, -inf  ;;  %v8577_v58 = vld [vmem:[#allocation84_spill] sm:$0xff]  ;;  %v3934_v38 = vmax.f32 %v3806_v60, 0.0  ;;  %v4002_v22 = vmax.f32 %v3874_v49, 0.0  ;;  %v8581_v60 = vld [vmem:[#allocation89_spill] sm:$0xff] }
 0x369   : > { %v7684_v26 = vpop.f32.mrb[72].mxu1  ;;  %4312 = vmax.xlane.f32.xlu1 %v4311_v55  ;;  %v7687_v20 = vpop.f32.mrb[64].mxu0  ;;  %4321 = vmax.xlane.f32.xlu0 %v4320_v23  ;;  %v4125_v55 = vsel %vm4034_vm3, %v3936_v32, -inf  ;;  %v8576_v23 = vld [vmem:[#allocation129_spill] sm:$0xff] }
 0x36a   : > { %8570 = vst [vmem:[#allocation77_spill] sm:$0xff] %v7684_v26  ;;  %v7689_v14 = vpop.f32.mrb[65].mxu0  ;;  %v7691_v0 = vpop.f32.mrb[73].mxu1  ;;  %v3809_v26 = vadd.f32 %v8576_v23, %v3041_v28  ;;  %v8580_v28 = vld [vmem:[#allocation23_spill] sm:$0xff] }
 0x36b   : > { %8571 = vst [vmem:[#allocation122_spill] sm:$0xff] %v7691_v0  ;;  %v7693_v19 = vpop.f32.mrb[66].mxu0  ;;  %v7695_v8 = vpop.f32.mrb[74].mxu1  ;;  %v3109_v0 = vmul.f32 %v7444_v48, %v8577_v58  ;;  %v3039_v48 = vmul.f32 %v8580_v28, %v7449_v31  ;;  %v4314_v58 = vsel %vm4034_vm3, %v3999_v17, -inf  ;;  %v4119_v31 = vsel %vm4034_vm3, %v3934_v38, -inf  ;;  %v8583_v17 = vld [vmem:[#allocation127_spill] sm:$0xff] }
 0x36c   : > { %8572 = vst [vmem:[#allocation115_spill] sm:$0xff] %v7695_v8  ;;  %v7700_v6 = vpop.f32.mrb[67].mxu0  ;;  %v7702_v46 = vpop.f32.mrb[75].mxu1  ;;  %v4110_v8 = vsel %vm4034_vm3, %v3931_v2, -inf  ;;  %v3937_v32 = vmax.f32 %v3809_v26, 0.0  ;;  %v3112_v26 = vmul.f32 %v7469_v13, %v8581_v60  ;;  %v8586_v60 = vld [vmem:[#allocation28_spill] sm:$0xff] }
 0x36d   : > { %8575 = vst [vmem:[#allocation169_spill] sm:$0xff] %v7702_v46  ;;  %4126 = vmax.xlane.f32.xlu1 %v4125_v55  ;;  %4111 = vmax.xlane.f32.xlu0 %v4110_v8  ;;  %v7713_v46 = vpop.permute.xlu1 %3735  ;;  %v3877_v57 = vadd.f32 %v7351_v39, %v3109_v0  ;;  %v7721_v8 = vpop.permute.xlu0 %3730  ;;  %v8582_v39 = vld [vmem:[#allocation134_spill] sm:$0xff]  ;;  %v3807_v23 = vadd.f32 %v8583_v17, %v3039_v48 }
 0x36e   : > { %8579 = vst [vmem:[#allocation16_spill] sm:$0xff] %v7713_v46  ;;  %v3812_v0 = vadd.f32 %v8582_v39, %v3044_v34  ;;  %v4128_v28 = vsel %vm4034_vm3, %v3937_v32, -inf  ;;  %v3880_v13 = vadd.f32 %v7424_v63, %v3112_v26  ;;  %v3042_v38 = vmul.f32 %v8586_v60, %v7474_v3  ;;  %v8588_v3 = vld [vmem:[#allocation132_spill] sm:$0xff] }
 0x36f   : > { %v4005_v55 = vmax.f32 %v3877_v57, 0.0  ;;  %v4323_v57 = vsel %vm4034_vm3, %v4002_v22, -inf  ;;  %v3935_v48 = vmax.f32 %v3807_v23, 0.0  ;;  %v8589_v22 = vld [vmem:[#allocation87_spill] sm:$0xff]  ;;  %v8591_v60 = vld [vmem:[#allocation88_spill] sm:$0xff] }
 0x370   : > { %v3940_v34 = vmax.f32 %v3812_v0, 0.0  ;;  %v4008_v26 = vmax.f32 %v3880_v13, 0.0  ;;  %v3810_v0 = vadd.f32 %v8588_v3, %v3042_v38  ;;  %v3110_v23 = vmul.f32 %v8589_v22, %v7476_v15  ;;  %v8594_v15 = vld [vmem:[#allocation64_spill] sm:$0xff]  ;;  %v8595_v22 = vld [vmem:[#allocation34_spill] sm:$0xff] }
 0x371   : > { %4330 = vmax.xlane.f32.xlu1 %v4329_v44  ;;  %v7719_v2 = vpop.f32.mrb[68].mxu0  ;;  %4315 = vmax.xlane.f32.xlu0 %v4314_v58  ;;  %v3107_v44 = vmul.f32 %v8584_v21, %v7451_v37  ;;  %v7737_v49 = vpop.permute.xlu1 %3745  ;;  %v8587_v37 = vld [vmem:[#allocation29_spill] sm:$0xff]  ;;  %v4332_v32 = vsel %vm4034_vm3, %v4005_v55, -inf }
 0x372   : > { %v7723_v11 = vpop.f32.mrb[69].mxu0  ;;  %8585 = vst [vmem:[#allocation17_spill] sm:$0xff] %v7737_v49  ;;  %v7739_v58 = vpop.permute.xlu0 %3740  ;;  %v3938_v38 = vmax.f32 %v3810_v0, 0.0  ;;  %v3878_v3 = vadd.f32 %v8594_v15, %v3110_v23 }
 0x373   : > { %v7725_v24 = vpop.f32.mrb[70].mxu0  ;;  %v3875_v39 = vadd.f32 %v7317_v47, %v3107_v44 }
 0x374   : > { %v7730_v43 = vpop.f32.mrb[71].mxu0  ;;  %v4006_v23 = vmax.f32 %v3878_v3, 0.0 }
 0x375   : > { %4120 = vmax.xlane.f32.xlu1 %v4119_v31  ;;  %4129 = vmax.xlane.f32.xlu0 %v4128_v28  ;;  %v3045_v31 = vmul.f32 %v7478_v45, %v8587_v37  ;;  %v4137_v45 = vsel %vm4034_vm3, %v3940_v34, -inf  ;;  %v4003_v44 = vmax.f32 %v3875_v39, 0.0  ;;  %v8590_v28 = vld [vmem:[#allocation133_spill] sm:$0xff]  ;;  %v7765_v49 = vpop.permute.xlu1 %3755  ;;  %v3048_v34 = vmul.f32 %v7508_v12, %v8595_v22  ;;  %v8603_v22 = vld [vmem:[#allocation131_spill] sm:$0xff] }
 0x376   : > { %8593 = vst [vmem:[#allocation120_spill] sm:$0xff] %v7765_v49  ;;  %v7767_v13 = vpop.permute.xlu0 %3750  ;;  %v4341_v39 = vsel %vm4034_vm3, %v4008_v26, -inf  ;;  %v8602_v26 = vld [vmem:[#allocation138_spill] sm:$0xff] }
 0x377   : > { %v3813_v55 = vadd.f32 %v8590_v28, %v3045_v31  ;;  %v8596_v28 = vld [vmem:[#allocation65_spill] sm:$0xff] }
 0x379   : > { %4324 = vmax.xlane.f32.xlu1 %v4323_v57  ;;  %v7749_v17 = vpop.f32.mrb[72].mxu0  ;;  %4333 = vmax.xlane.f32.xlu0 %v4332_v32  ;;  %v8592_v57 = vld [vmem:[#allocation69_spill] sm:$0xff]  ;;  %v4122_v32 = vsel %vm4034_vm3, %v3935_v48, -inf  ;;  %v3941_v31 = vmax.f32 %v3813_v55, 0.0  ;;  %v7777_v49 = vpop.permute.xlu1 %3765  ;;  %v3816_v55 = vadd.f32 %v8602_v26, %v3048_v34  ;;  %v4335_v34 = vsel %vm4034_vm3, %v4006_v23, -inf  ;;  %v8610_v26 = vld [vmem:[#allocation14_spill] sm:$0xff] }
 0x37a   : > { %v7751_v21 = vpop.f32.mrb[73].mxu0  ;;  %v3113_v37 = vmul.f32 %v8592_v57, %v8591_v60  ;;  %v8597_v60 = vld [vmem:[#allocation63_spill] sm:$0xff]  ;;  %8599 = vst [vmem:[#allocation75_spill] sm:$0xff] %v7777_v49  ;;  %v7779_v0 = vpop.permute.xlu0 %3760  ;;  %v8613_v23 = vld [vmem:[#allocation136_spill] sm:$0xff] }
 0x37b   : > { %v7753_v63 = vpop.f32.mrb[74].mxu0  ;;  %v8598_v57 = vld [vmem:[#allocation27_spill] sm:$0xff]  ;;  %8600 = vst [vmem:[#allocation121_spill] sm:$0xff] %v7779_v0  ;;  %v3944_v3 = vmax.f32 %v3816_v55, 0.0  ;;  %v8607_v0 = vld [vmem:[#allocation32_spill] sm:$0xff] }
 0x37c   : > { %v7758_v47 = vpop.f32.mrb[75].mxu0  ;;  %v3881_v46 = vadd.f32 %v8596_v28, %v3113_v37  ;;  %v3043_v48 = vmul.f32 %v8598_v57, %v8597_v60  ;;  %v4131_v37 = vsel %vm4034_vm3, %v3938_v38, -inf  ;;  %v8604_v60 = vld [vmem:[#allocation8_spill] sm:$0xff]  ;;  %v4140_v57 = vsel %vm4034_vm3, %v3941_v31, -inf  ;;  %v8606_v49 = vld [vmem:[#allocation67_spill] sm:$0xff] }
 0x37d   : > { %4138 = vmax.xlane.f32.xlu1 %v4137_v45  ;;  %4123 = vmax.xlane.f32.xlu0 %v4122_v32  ;;  %v4326_v45 = vsel %vm4034_vm3, %v4003_v44, -inf  ;;  %v8601_v32 = vld [vmem:[#allocation93_spill] sm:$0xff]  ;;  %v8605_v44 = vld [vmem:[#allocation86_spill] sm:$0xff]  ;;  %v7798_v31 = vpop.permute.xlu1 %3775 }
 0x37e   : > { %v3116_v12 = vmul.f32 %v7505_v18, %v8601_v32  ;;  %v4009_v15 = vmax.f32 %v3881_v46, 0.0  ;;  %v3811_v28 = vadd.f32 %v8603_v22, %v3043_v48  ;;  %v3046_v18 = vmul.f32 %v8607_v0, %v8606_v49  ;;  %v8608_v46 = vld [vmem:[#allocation6_spill] sm:$0xff]  ;;  %v8609_v48 = vld [vmem:[#allocation33_spill] sm:$0xff] }
 0x37f   : > { %v3049_v22 = vmul.f32 %v8610_v26, %v8609_v48 }
 0x380   : > { %v3939_v38 = vmax.f32 %v3811_v28, 0.0  ;;  %v3814_v55 = vadd.f32 %v8613_v23, %v3046_v18 }
 0x381   : > { %4342 = vmax.xlane.f32.xlu1 %v4341_v39  ;;  %4327 = vmax.xlane.f32.xlu0 %v4326_v45  ;;  %v3111_v39 = vmul.f32 %v8605_v44, %v8604_v60  ;;  %v3884_v45 = vadd.f32 %v7496_v53, %v3116_v12  ;;  %v7800_v60 = vpop.permute.xlu0 %3770  ;;  %v8611_v53 = vld [vmem:[#allocation68_spill] sm:$0xff]  ;;  %v8612_v12 = vld [vmem:[#allocation91_spill] sm:$0xff]  ;;  %v8614_v44 = vld [vmem:[#allocation137_spill] sm:$0xff] }
 0x382   : > { %v3114_v49 = vmul.f32 %v8612_v12, %v8611_v53  ;;  %v4134_v48 = vsel %vm4034_vm3, %v3939_v38, -inf  ;;  %v8619_v38 = vld [vmem:[#allocation9_spill] sm:$0xff] }
 0x383   : > { %v3879_v32 = vadd.f32 %v8608_v46, %v3111_v39  ;;  %v4012_v0 = vmax.f32 %v3884_v45, 0.0  ;;  %v3817_v39 = vadd.f32 %v8614_v44, %v3049_v22  ;;  %v3942_v45 = vmax.f32 %v3814_v55, 0.0 }
 0x385   : > { %4132 = vmax.xlane.f32.xlu1 %v4131_v37  ;;  %4141 = vmax.xlane.f32.xlu0 %v4140_v57  ;;  %v4344_v37 = vsel %vm4034_vm3, %v4009_v15, -inf  ;;  %v4149_v15 = vsel %vm4034_vm3, %v3944_v3, -inf  ;;  %v4007_v28 = vmax.f32 %v3879_v32, 0.0  ;;  %v8615_v57 = vld [vmem:[#allocation92_spill] sm:$0xff]  ;;  %v8617_v3 = vld [vmem:[#allocation5_spill] sm:$0xff]  ;;  %v8618_v32 = vld [vmem:[#allocation38_spill] sm:$0xff] }
 0x386   : > { %v3882_v18 = vadd.f32 %v8617_v3, %v3114_v49  ;;  %v3052_v22 = vmul.f32 %v7542_v41, %v8618_v32  ;;  %v4353_v53 = vsel %vm4034_vm3, %v4012_v0, -inf  ;;  %v3945_v12 = vmax.f32 %v3817_v39, 0.0  ;;  %v8622_v0 = vld [vmem:[#allocation36_spill] sm:$0xff]  ;;  %v8625_v3 = vld [vmem:[#allocation90_spill] sm:$0xff] }
 0x387   : > { %v3050_v39 = vmul.f32 %v8622_v0, %v7544_v40 }
 0x388   : > { %v4010_v55 = vmax.f32 %v3882_v18, 0.0 }
 0x389   : > { %4336 = vmax.xlane.f32.xlu1 %v4335_v34  ;;  %4345 = vmax.xlane.f32.xlu0 %v4344_v37  ;;  %v8616_v34 = vld [vmem:[#allocation168_spill] sm:$0xff] }
 0x38a   : > { %v3117_v46 = vmul.f32 %v8616_v34, %v8615_v57  ;;  %v4338_v57 = vsel %vm4034_vm3, %v4007_v28, -inf  ;;  %v8623_v28 = vld [vmem:[#allocation135_spill] sm:$0xff] }
 0x38c   : > { %v3885_v23 = vadd.f32 %v8619_v38, %v3117_v46  ;;  %v8626_v38 = vld [vmem:[#allocation140_spill] sm:$0xff] }
 0x38d   : > { %4150 = vmax.xlane.f32.xlu1 %v4149_v15  ;;  %4135 = vmax.xlane.f32.xlu0 %v4134_v48  ;;  %v8620_v15 = vld [vmem:[#allocation31_spill] sm:$0xff]  ;;  %v8621_v48 = vld [vmem:[#allocation142_spill] sm:$0xff] }
 0x38e   : > { %v4247_v26 = vpop.xlane.xlu1 %4246  ;;  %v4043_v37 = vpop.xlane.xlu0 %4042  ;;  %v3047_v44 = vmul.f32 %v8620_v15, %v7523_v51  ;;  %v3820_v41 = vadd.f32 %v8621_v48, %v3052_v22  ;;  %v4143_v51 = vsel %vm4034_vm3, %v3942_v45, -inf  ;;  %v4013_v46 = vmax.f32 %v3885_v23, 0.0  ;;  %v8627_v45 = vld [vmem:[#allocation95_spill] sm:$0xff]  ;;  %v8630_v48 = vld [vmem:[#allocation114_spill] sm:$0xff] }
 0x38f   : > { %4494 = vst.msk [vmem:[%s7807_s13 + $0x230] sm:$0xff] %vm4423_vm4, %v4247_v26  ;;  %4426 = vst.msk [vmem:[%s7807_s13 + $0x10] sm:$0xff] %vm4423_vm4, %v4043_v37  ;;  %v8624_v37 = vld [vmem:[#allocation7_spill] sm:$0xff]  ;;  %v3818_v15 = vadd.f32 %v8626_v38, %v3050_v39  ;;  %v3118_v23 = vmul.f32 %v8627_v45, %v7546_v10 }
 0x390   : > { %v3815_v26 = vadd.f32 %v8623_v28, %v3047_v44  ;;  %v3115_v32 = vmul.f32 %v8625_v3, %v8624_v37  ;;  %v3948_v40 = vmax.f32 %v3820_v41, 0.0  ;;  %v4347_v44 = vsel %vm4034_vm3, %v4010_v55, -inf  ;;  %v8631_v28 = vld [vmem:[#allocation73_spill] sm:$0xff]  ;;  %v8632_v3 = vld [vmem:[#allocation42_spill] sm:$0xff] }
 0x391   : > { %4354 = vmax.xlane.f32.xlu1 %v4353_v53  ;;  %4339 = vmax.xlane.f32.xlu0 %v4338_v57  ;;  %v4152_v53 = vsel %vm4034_vm3, %v3945_v12, -inf  ;;  %v3946_v10 = vmax.f32 %v3818_v15, 0.0  ;;  %v3886_v37 = vadd.f32 %v8631_v28, %v3118_v23  ;;  %v3056_v55 = vmul.f32 %v7579_v54, %v8632_v3  ;;  %v8640_v3 = vld [vmem:[#allocation46_spill] sm:$0xff] }
 0x392   : > { %v4241_v34 = vpop.xlane.xlu1 %4240  ;;  %v4037_v49 = vpop.xlane.xlu0 %4036  ;;  %v3943_v57 = vmax.f32 %v3815_v26, 0.0  ;;  %v4161_v26 = vsel %vm4034_vm3, %v3948_v40, -inf  ;;  %v8637_v40 = vld [vmem:[#allocation40_spill] sm:$0xff] }
 0x393   : > { %4492 = vst.msk [vmem:[%s7807_s13 + $0x220] sm:$0xff] %vm4423_vm4, %v4241_v34  ;;  %4424 = vst.msk [vmem:[%s7807_s13] sm:$0xff] %vm4423_vm4, %v4037_v49  ;;  %v8628_v34 = vld [vmem:[#allocation10_spill] sm:$0xff]  ;;  %v8629_v49 = vld [vmem:[#allocation37_spill] sm:$0xff]  ;;  %v4014_v54 = vmax.f32 %v3886_v37, 0.0 }
 0x394   : > { %v3883_v12 = vadd.f32 %v8628_v34, %v3115_v32  ;;  %v3053_v0 = vmul.f32 %v8630_v48, %v8629_v49  ;;  %v4146_v45 = vsel %vm4034_vm3, %v3943_v57, -inf  ;;  %v4155_v49 = vsel %vm4034_vm3, %v3946_v10, -inf  ;;  %v8638_v57 = vld [vmem:[#allocation139_spill] sm:$0xff]  ;;  %v8639_v37 = vld [vmem:[#allocation144_spill] sm:$0xff] }
 0x395   : > { %4144 = vmax.xlane.f32.xlu1 %v4143_v51  ;;  %4153 = vmax.xlane.f32.xlu0 %v4152_v53  ;;  %v4356_v51 = vsel %vm4034_vm3, %v4013_v46, -inf  ;;  %v8633_v53 = vld [vmem:[#allocation141_spill] sm:$0xff]  ;;  %v4359_v10 = vsel %vm4034_vm3, %v4014_v54, -inf  ;;  %v4015_v54 = vmax.f32 %v7563_v29, 0.0 }
 0x396   : > { %v4040_v18 = vpop.xlane.xlu1 %4039  ;;  %v4046_v22 = vpop.xlane.xlu0 %4045  ;;  %v4011_v32 = vmax.f32 %v3883_v12, 0.0  ;;  %v3821_v46 = vadd.f32 %v8633_v53, %v3053_v0  ;;  %v3054_v12 = vmul.f32 %v8637_v40, %v7581_v30  ;;  %v8645_v40 = vld [vmem:[#allocation39_spill] sm:$0xff] }
 0x397   : > { %4425 = vst.msk [vmem:[%s7807_s13 + $0x8] sm:$0xff] %vm4423_vm4, %v4040_v18  ;;  %4427 = vst.msk [vmem:[%s7807_s13 + $0x18] sm:$0xff] %vm4423_vm4, %v4046_v22  ;;  %v8634_v18 = vld [vmem:[#allocation172_spill] sm:$0xff]  ;;  %v8635_v22 = vld [vmem:[#allocation35_spill] sm:$0xff] }
 0x398   : > { %v3051_v38 = vmul.f32 %v8635_v22, %v8634_v18  ;;  %v3949_v48 = vmax.f32 %v3821_v46, 0.0  ;;  %v3822_v30 = vadd.f32 %v8639_v37, %v3054_v12  ;;  %v3055_v12 = vmul.f32 %v8645_v40, %v7592_v1  ;;  %v8655_v40 = vld [vmem:[#allocation54_spill] sm:$0xff] }
 0x399   : > { %4348 = vmax.xlane.f32.xlu1 %v4347_v44  ;;  %4357 = vmax.xlane.f32.xlu0 %v4356_v51  ;;  %v8636_v44 = vld [vmem:[#allocation146_spill] sm:$0xff]  ;;  %v4350_v51 = vsel %vm4034_vm3, %v4011_v32, -inf  ;;  %v8641_v32 = vld [vmem:[#allocation41_spill] sm:$0xff] }
 0x39a   : > { %v4055_v41 = vpop.xlane.xlu1 %4054  ;;  %v4250_v39 = vpop.xlane.xlu0 %4249  ;;  %v3824_v34 = vadd.f32 %v8636_v44, %v3056_v55  ;;  %v3819_v0 = vadd.f32 %v8638_v57, %v3051_v38  ;;  %v3060_v55 = vmul.f32 %v7615_v9, %v8640_v3  ;;  %v3057_v53 = vmul.f32 %v7585_v7, %v8641_v32  ;;  %v8644_v44 = vld [vmem:[#allocation145_spill] sm:$0xff]  ;;  %v8650_v32 = vld [vmem:[#allocation154_spill] sm:$0xff] }
 0x39b   : > { %4430 = vst.msk [vmem:[%s7807_s13 + $0x30] sm:$0xff] %vm4423_vm4, %v4055_v41  ;;  %4495 = vst.msk [vmem:[%s7807_s13 + $0x238] sm:$0xff] %vm4423_vm4, %v4250_v39  ;;  %v4164_v46 = vsel %vm4034_vm3, %v3949_v48, -inf  ;;  %v3950_v38 = vmax.f32 %v3822_v30, 0.0  ;;  %v8649_v30 = vld [vmem:[#allocation45_spill] sm:$0xff] }
 0x39c   : > { %v3952_v28 = vmax.f32 %v3824_v34, 0.0  ;;  %v3825_v34 = vadd.f32 %v8644_v44, %v3057_v53  ;;  %v3061_v3 = vmul.f32 %v7621_v62, %v8649_v30  ;;  %v8654_v44 = vld [vmem:[#allocation152_spill] sm:$0xff] }
 0x39d   : > { %4162 = vmax.xlane.f32.xlu1 %v4161_v26  ;;  %4147 = vmax.xlane.f32.xlu0 %v4146_v45  ;;  %v3947_v26 = vmax.f32 %v3819_v0, 0.0  ;;  %v8642_v45 = vld [vmem:[#allocation150_spill] sm:$0xff]  ;;  %v8646_v0 = vld [vmem:[#allocation148_spill] sm:$0xff]  ;;  %v4167_v1 = vsel %vm4034_vm3, %v3950_v38, -inf  ;;  %v8652_v38 = vld [vmem:[#allocation149_spill] sm:$0xff] }
 0x39e   : > { %v4259_v15 = vpop.xlane.xlu1 %4258  ;;  %v4244_v23 = vpop.xlane.xlu0 %4243  ;;  %v3828_v9 = vadd.f32 %v8642_v45, %v3060_v55  ;;  %v4173_v7 = vsel %vm4034_vm3, %v3952_v28, -inf  ;;  %v8648_v28 = vld [vmem:[#allocation143_spill] sm:$0xff]  ;;  %v4362_v55 = vsel %vm4034_vm3, %v4015_v54, -inf  ;;  %v3829_v45 = vadd.f32 %v8652_v38, %v3061_v3  ;;  %v8660_v3 = vld [vmem:[#allocation153_spill] sm:$0xff] }
 0x39f   : > { %4498 = vst.msk [vmem:[%s7807_s13 + $0x250] sm:$0xff] %vm4423_vm4, %v4259_v15  ;;  %4493 = vst.msk [vmem:[%s7807_s13 + $0x228] sm:$0xff] %vm4423_vm4, %v4244_v23  ;;  %v8643_v15 = vld [vmem:[#allocation44_spill] sm:$0xff]  ;;  %v3823_v37 = vadd.f32 %v8648_v28, %v3055_v12  ;;  %v3068_v12 = vmul.f32 %v7687_v20, %v8655_v40 }
 0x3a0   : > { %v3058_v23 = vmul.f32 %v8643_v15, %v7617_v27  ;;  %v3956_v27 = vmax.f32 %v3828_v9, 0.0  ;;  %v8653_v9 = vld [vmem:[#allocation43_spill] sm:$0xff]  ;;  %v8659_v28 = vld [vmem:[#allocation52_spill] sm:$0xff] }
 0x3a1   : > { %4156 = vmax.xlane.f32.xlu1 %v4155_v49  ;;  %4351 = vmax.xlane.f32.xlu0 %v4350_v51  ;;  %v4158_v49 = vsel %vm4034_vm3, %v3947_v26, -inf  ;;  %v3059_v15 = vmul.f32 %v8653_v9, %v7628_v5  ;;  %v8667_v40 = vld [vmem:[#allocation56_spill] sm:$0xff] }
 0x3a2   : > { %v4049_v41 = vpop.xlane.xlu1 %4048  ;;  %v4058_v39 = vpop.xlane.xlu0 %4057  ;;  %v3826_v51 = vadd.f32 %v8646_v0, %v3058_v23  ;;  %v4185_v62 = vsel %vm4034_vm3, %v3956_v27, -inf  ;;  %v8657_v27 = vld [vmem:[#allocation49_spill] sm:$0xff] }
 0x3a3   : > { %4428 = vst.msk [vmem:[%s7807_s13 + $0x20] sm:$0xff] %vm4423_vm4, %v4049_v41  ;;  %4431 = vst.msk [vmem:[%s7807_s13 + $0x38] sm:$0xff] %vm4423_vm4, %v4058_v39  ;;  %v8647_v41 = vld [vmem:[#allocation50_spill] sm:$0xff]  ;;  %v3953_v39 = vmax.f32 %v3825_v34, 0.0  ;;  %v3065_v0 = vmul.f32 %v7657_v56, %v8657_v27 }
 0x3a4   : > { %v3064_v29 = vmul.f32 %v7651_v42, %v8647_v41  ;;  %v3954_v42 = vmax.f32 %v3826_v51, 0.0 }
 0x3a5   : > { %4360 = vmax.xlane.f32.xlu1 %v4359_v10  ;;  %4165 = vmax.xlane.f32.xlu0 %v4164_v46  ;;  %v8651_v46 = vld [vmem:[#allocation48_spill] sm:$0xff]  ;;  %v4176_v23 = vsel %vm4034_vm3, %v3953_v39, -inf }
 0x3a6   : > { %v4253_v18 = vpop.xlane.xlu1 %4252  ;;  %v4262_v22 = vpop.xlane.xlu0 %4261  ;;  %v3832_v53 = vadd.f32 %v8650_v32, %v3064_v29  ;;  %v4179_v5 = vsel %vm4034_vm3, %v3954_v42, -inf }
 0x3a7   : > { %4496 = vst.msk [vmem:[%s7807_s13 + $0x240] sm:$0xff] %vm4423_vm4, %v4253_v18  ;;  %4499 = vst.msk [vmem:[%s7807_s13 + $0x258] sm:$0xff] %vm4423_vm4, %v4262_v22  ;;  %v3062_v18 = vmul.f32 %v8651_v46, %v7653_v16  ;;  %v3951_v22 = vmax.f32 %v3823_v37, 0.0  ;;  %v3066_v37 = vmul.f32 %v8659_v28, %v7689_v14  ;;  %v8662_v46 = vld [vmem:[#allocation156_spill] sm:$0xff] }
 0x3a8   : > { %v3960_v16 = vmax.f32 %v3832_v53, 0.0 }
 0x3a9   : > { %4174 = vmax.xlane.f32.xlu1 %v4173_v7  ;;  %4159 = vmax.xlane.f32.xlu0 %v4158_v49  ;;  %v3830_v34 = vadd.f32 %v8654_v44, %v3062_v18  ;;  %v3957_v49 = vmax.f32 %v3829_v45, 0.0  ;;  %v4170_v51 = vsel %vm4034_vm3, %v3951_v22, -inf  ;;  %v3834_v18 = vadd.f32 %v8662_v46, %v3066_v37  ;;  %v8664_v45 = vld [vmem:[#allocation151_spill] sm:$0xff]  ;;  %v8666_v44 = vld [vmem:[#allocation162_spill] sm:$0xff] }
 0x3aa   : > { %v4067_v48 = vpop.xlane.xlu1 %4066  ;;  %v4052_v57 = vpop.xlane.xlu0 %4051  ;;  %v4197_v56 = vsel %vm4034_vm3, %v3960_v16, -inf  ;;  %v8672_v37 = vld [vmem:[#allocation155_spill] sm:$0xff] }
 0x3ab   : > { %4434 = vst.msk [vmem:[%s7807_s13 + $0x50] sm:$0xff] %vm4423_vm4, %v4067_v48  ;;  %4429 = vst.msk [vmem:[%s7807_s13 + $0x28] sm:$0xff] %vm4423_vm4, %v4052_v57  ;;  %v8656_v48 = vld [vmem:[#allocation147_spill] sm:$0xff]  ;;  %v3958_v20 = vmax.f32 %v3830_v34, 0.0  ;;  %v4188_v42 = vsel %vm4034_vm3, %v3957_v49, -inf  ;;  %v8668_v49 = vld [vmem:[#allocation157_spill] sm:$0xff] }
 0x3ac   : > { %v3827_v57 = vadd.f32 %v8656_v48, %v3059_v15  ;;  %v8665_v15 = vld [vmem:[#allocation53_spill] sm:$0xff] }
 0x3ad   : > { %4168 = vmax.xlane.f32.xlu1 %v4167_v1  ;;  %4363 = vmax.xlane.f32.xlu0 %v4362_v55  ;;  %v8658_v1 = vld [vmem:[#allocation158_spill] sm:$0xff]  ;;  %v3833_v55 = vadd.f32 %v8660_v3, %v3065_v0 }
 0x3ae   : > { %v4271_v10 = vpop.xlane.xlu1 %4270  ;;  %v4256_v26 = vpop.xlane.xlu0 %4255  ;;  %v3836_v39 = vadd.f32 %v8658_v1, %v3068_v12  ;;  %v3955_v30 = vmax.f32 %v3827_v57, 0.0  ;;  %v3070_v12 = vmul.f32 %v8667_v40, %v7723_v11  ;;  %v8669_v57 = vld [vmem:[#allocation51_spill] sm:$0xff]  ;;  %v8671_v1 = vld [vmem:[#allocation62_spill] sm:$0xff]  ;;  %v8682_v40 = vld [vmem:[#allocation61_spill] sm:$0xff] }
 0x3af   : > { %4502 = vst.msk [vmem:[%s7807_s13 + $0x270] sm:$0xff] %vm4423_vm4, %v4271_v10  ;;  %4497 = vst.msk [vmem:[%s7807_s13 + $0x248] sm:$0xff] %vm4423_vm4, %v4256_v26  ;;  %v8661_v10 = vld [vmem:[#allocation47_spill] sm:$0xff]  ;;  %v3961_v38 = vmax.f32 %v3833_v55, 0.0  ;;  %v3067_v27 = vmul.f32 %v8669_v57, %v7700_v6 }
 0x3b0   : > { %v3063_v26 = vmul.f32 %v8661_v10, %v7664_v50  ;;  %v3964_v14 = vmax.f32 %v3836_v39, 0.0  ;;  %v4191_v50 = vsel %vm4034_vm3, %v3958_v20, -inf  ;;  %v3076_v39 = vmul.f32 %v7749_v17, %v8671_v1  ;;  %v8683_v57 = vld [vmem:[#allocation99_spill] sm:$0xff] }
 0x3b1   : > { %4186 = vmax.xlane.f32.xlu1 %v4185_v62  ;;  %4177 = vmax.xlane.f32.xlu0 %v4176_v23  ;;  %v8663_v62 = vld [vmem:[#allocation58_spill] sm:$0xff]  ;;  %v3069_v23 = vmul.f32 %v7693_v19, %v8665_v15  ;;  %v4200_v0 = vsel %vm4034_vm3, %v3961_v38, -inf }
 0x3b2   : > { %v4061_v7 = vpop.xlane.xlu1 %4060  ;;  %v4070_v54 = vpop.xlane.xlu0 %4069  ;;  %v3072_v22 = vmul.f32 %v7719_v2, %v8663_v62  ;;  %v3831_v9 = vadd.f32 %v8664_v45, %v3063_v26  ;;  %v3962_v2 = vmax.f32 %v3834_v18, 0.0  ;;  %v4209_v19 = vsel %vm4034_vm3, %v3964_v14, -inf  ;;  %v8676_v18 = vld [vmem:[#allocation161_spill] sm:$0xff]  ;;  %v8679_v15 = vld [vmem:[#allocation118_spill] sm:$0xff] }
 0x3b3   : > { %4432 = vst.msk [vmem:[%s7807_s13 + $0x40] sm:$0xff] %vm4423_vm4, %v4061_v7  ;;  %4435 = vst.msk [vmem:[%s7807_s13 + $0x58] sm:$0xff] %vm4423_vm4, %v4070_v54  ;;  %v4182_v7 = vsel %vm4034_vm3, %v3955_v30, -inf  ;;  %v3837_v48 = vadd.f32 %v8668_v49, %v3069_v23  ;;  %v8673_v30 = vld [vmem:[#allocation57_spill] sm:$0xff] }
 0x3b4   : > { %v3840_v34 = vadd.f32 %v8666_v44, %v3072_v22  ;;  %v4203_v6 = vsel %vm4034_vm3, %v3962_v2, -inf  ;;  %v3073_v3 = vmul.f32 %v7725_v24, %v8673_v30  ;;  %v8677_v22 = vld [vmem:[#allocation55_spill] sm:$0xff]  ;;  %v8688_v30 = vld [vmem:[#allocation66_spill] sm:$0xff] }
 0x3b5   : > { %4180 = vmax.xlane.f32.xlu1 %v4179_v5  ;;  %4171 = vmax.xlane.f32.xlu0 %v4170_v51  ;;  %v3959_v5 = vmax.f32 %v3831_v9, 0.0  ;;  %v3965_v28 = vmax.f32 %v3837_v48, 0.0  ;;  %v8681_v44 = vld [vmem:[#allocation159_spill] sm:$0xff] }
 0x3b6   : > { %v4265_v41 = vpop.xlane.xlu1 %4264  ;;  %v4274_v29 = vpop.xlane.xlu0 %4273  ;;  %v3968_v11 = vmax.f32 %v3840_v34, 0.0  ;;  %v3841_v62 = vadd.f32 %v8676_v18, %v3073_v3  ;;  %v8692_v18 = vld [vmem:[#allocation12_spill] sm:$0xff] }
 0x3b7   : > { %4500 = vst.msk [vmem:[%s7807_s13 + $0x260] sm:$0xff] %vm4423_vm4, %v4265_v41  ;;  %4503 = vst.msk [vmem:[%s7807_s13 + $0x278] sm:$0xff] %vm4423_vm4, %v4274_v29  ;;  %v8670_v29 = vld [vmem:[#allocation160_spill] sm:$0xff]  ;;  %v4194_v55 = vsel %vm4034_vm3, %v3959_v5, -inf  ;;  %v4212_v38 = vsel %vm4034_vm3, %v3965_v28, -inf }
 0x3b8   : > { %v3838_v20 = vadd.f32 %v8670_v29, %v3070_v12  ;;  %v4221_v24 = vsel %vm4034_vm3, %v3968_v11, -inf  ;;  %v3969_v2 = vmax.f32 %v3841_v62, 0.0  ;;  %v3077_v12 = vmul.f32 %v7753_v63, %v8682_v40  ;;  %v8685_v29 = vld [vmem:[#allocation59_spill] sm:$0xff] }
 0x3b9   : > { %4198 = vmax.xlane.f32.xlu1 %v4197_v56  ;;  %4189 = vmax.xlane.f32.xlu0 %v4188_v42  ;;  %v3835_v56 = vadd.f32 %v8672_v37, %v3067_v27  ;;  %v8674_v42 = vld [vmem:[#allocation166_spill] sm:$0xff]  ;;  %v3122_v27 = vmul.f32 %v8683_v57, %v7583_v52 }
 0x3ba   : > { %v4079_v32 = vpop.xlane.xlu1 %4078  ;;  %v4064_v53 = vpop.xlane.xlu0 %4063  ;;  %v3966_v17 = vmax.f32 %v3838_v20, 0.0  ;;  %v3075_v20 = vmul.f32 %v8685_v29, %v7758_v47  ;;  %v4224_v1 = vsel %vm4034_vm3, %v3969_v2, -inf  ;;  %v8702_v29 = vld [vmem:[#allocation170_spill] sm:$0xff] }
 0x3bb   : > { %4438 = vst.msk [vmem:[%s7807_s13 + $0x70] sm:$0xff] %vm4423_vm4, %v4079_v32  ;;  %4433 = vst.msk [vmem:[%s7807_s13 + $0x48] sm:$0xff] %vm4423_vm4, %v4064_v53  ;;  %v3844_v32 = vadd.f32 %v8674_v42, %v3076_v39  ;;  %v8675_v53 = vld [vmem:[#allocation60_spill] sm:$0xff]  ;;  %v3963_v46 = vmax.f32 %v3835_v56, 0.0  ;;  %v3890_v37 = vadd.f32 %v7603_v35, %v3122_v27  ;;  %v8700_v27 = vld [vmem:[#allocation107_spill] sm:$0xff] }
 0x3bc   : > { %v3074_v14 = vmul.f32 %v8675_v53, %v7751_v21  ;;  %v8678_v21 = vld [vmem:[#allocation97_spill] sm:$0xff]  ;;  %v8687_v56 = vld [vmem:[#allocation96_spill] sm:$0xff] }
 0x3bd   : > { %4192 = vmax.xlane.f32.xlu1 %v4191_v50  ;;  %4183 = vmax.xlane.f32.xlu0 %v4182_v7  ;;  %v3071_v50 = vmul.f32 %v8677_v22, %v7730_v43  ;;  %v3120_v23 = vmul.f32 %v8679_v15, %v8678_v21  ;;  %v3972_v7 = vmax.f32 %v3844_v32, 0.0  ;;  %v4215_v43 = vsel %vm4034_vm3, %v3966_v17, -inf  ;;  %v8690_v53 = vld [vmem:[#allocation117_spill] sm:$0xff] }
 0x3be   : > { %v4283_v54 = vpop.xlane.xlu1 %4282  ;;  %v4268_v16 = vpop.xlane.xlu0 %4267  ;;  %v3121_v3 = vmul.f32 %v8688_v30, %v8687_v56  ;;  %v4018_v32 = vmax.f32 %v3890_v37, 0.0  ;;  %v8693_v22 = vld [vmem:[#allocation13_spill] sm:$0xff]  ;;  %v8706_v30 = vld [vmem:[#allocation104_spill] sm:$0xff] }
 0x3bf   : > { %4506 = vst.msk [vmem:[%s7807_s13 + $0x290] sm:$0xff] %vm4423_vm4, %v4283_v54  ;;  %4501 = vst.msk [vmem:[%s7807_s13 + $0x268] sm:$0xff] %vm4423_vm4, %v4268_v16  ;;  %v8680_v54 = vld [vmem:[#allocation164_spill] sm:$0xff]  ;;  %v3839_v34 = vadd.f32 %v8681_v44, %v3071_v50  ;;  %v3888_v48 = vadd.f32 %v7567_v61, %v3120_v23  ;;  %v4233_v63 = vsel %vm4034_vm3, %v3972_v7, -inf  ;;  %v8694_v50 = vld [vmem:[#allocation98_spill] sm:$0xff] }
 0x3c0   : > { %v3842_v16 = vadd.f32 %v8680_v54, %v3074_v14  ;;  %v8691_v14 = vld [vmem:[#allocation103_spill] sm:$0xff]  ;;  %v3889_v62 = vadd.f32 %v8692_v18, %v3121_v3  ;;  %v8695_v23 = vld [vmem:[#allocation105_spill] sm:$0xff]  ;;  %v8697_v44 = vld [vmem:[#allocation100_spill] sm:$0xff] }
 0x3c1   : > { %4210 = vmax.xlane.f32.xlu1 %v4209_v19  ;;  %4201 = vmax.xlane.f32.xlu0 %v4200_v0  ;;  %v4206_v19 = vsel %vm4034_vm3, %v3963_v46, -inf  ;;  %v4016_v39 = vmax.f32 %v3888_v48, 0.0  ;;  %v8696_v7 = vld [vmem:[#allocation71_spill] sm:$0xff]  ;;  %v8707_v3 = vld [vmem:[#allocation72_spill] sm:$0xff]  ;;  %v8711_v18 = vld [vmem:[#allocation70_spill] sm:$0xff] }
 0x3c2   : > { %v4073_v51 = vpop.xlane.xlu1 %4072  ;;  %v4082_v41 = vpop.xlane.xlu0 %4081  ;;  %v3970_v0 = vmax.f32 %v3842_v16, 0.0  ;;  %v3128_v54 = vmul.f32 %v8696_v7, %v8695_v23  ;;  %v4017_v2 = vmax.f32 %v3889_v62, 0.0  ;;  %v8712_v62 = vld [vmem:[#allocation106_spill] sm:$0xff] }
 0x3c3   : > { %4436 = vst.msk [vmem:[%s7807_s13 + $0x60] sm:$0xff] %vm4423_vm4, %v4073_v51  ;;  %4439 = vst.msk [vmem:[%s7807_s13 + $0x78] sm:$0xff] %vm4423_vm4, %v4082_v41  ;;  %v3967_v51 = vmax.f32 %v3839_v34, 0.0  ;;  %v8684_v41 = vld [vmem:[#allocation165_spill] sm:$0xff]  ;;  %v4365_v46 = vsel %vm4034_vm3, %v4016_v39, -inf  ;;  %v8698_v34 = vld [vmem:[#allocation167_spill] sm:$0xff] }
 0x3c4   : > { %v3845_v11 = vadd.f32 %v8684_v41, %v3077_v12  ;;  %v4227_v47 = vsel %vm4034_vm3, %v3970_v0, -inf  ;;  %v3125_v40 = vmul.f32 %v8698_v34, %v8697_v44  ;;  %v8699_v12 = vld [vmem:[#allocation116_spill] sm:$0xff]  ;;  %v3130_v0 = vmul.f32 %v8700_v27, %v7655_v4  ;;  %v8704_v39 = vld [vmem:[#allocation109_spill] sm:$0xff] }
 0x3c5   : > { %4204 = vmax.xlane.f32.xlu1 %v4203_v6  ;;  %4195 = vmax.xlane.f32.xlu0 %v4194_v55  ;;  %v8686_v6 = vld [vmem:[#allocation101_spill] sm:$0xff]  ;;  %v4218_v17 = vsel %vm4034_vm3, %v3967_v51, -inf  ;;  %v8701_v51 = vld [vmem:[#allocation18_spill] sm:$0xff] }
 0x3c6   : > { %v4277_v10 = vpop.xlane.xlu1 %4276  ;;  %v4286_v26 = vpop.xlane.xlu0 %4285  ;;  %v3124_v28 = vmul.f32 %v7576_v33, %v8686_v6  ;;  %v3973_v55 = vmax.f32 %v3845_v11, 0.0  ;;  %v3893_v41 = vadd.f32 %v8701_v51, %v3125_v40  ;;  %v8705_v6 = vld [vmem:[#allocation171_spill] sm:$0xff]  ;;  %v3898_v37 = vadd.f32 %v7739_v58, %v3130_v0  ;;  %v8718_v44 = vld [vmem:[#allocation17_spill] sm:$0xff] }
 0x3c7   : > { %4504 = vst.msk [vmem:[%s7807_s13 + $0x280] sm:$0xff] %vm4423_vm4, %v4277_v10  ;;  %4507 = vst.msk [vmem:[%s7807_s13 + $0x298] sm:$0xff] %vm4423_vm4, %v4286_v26  ;;  %v8689_v10 = vld [vmem:[#allocation163_spill] sm:$0xff]  ;;  %v8720_v0 = vld [vmem:[#allocation169_spill] sm:$0xff] }
 0x3c8   : > { %v3843_v26 = vadd.f32 %v8689_v10, %v3075_v20  ;;  %v3892_v35 = vadd.f32 %v7639_v59, %v3124_v28  ;;  %v8703_v20 = vld [vmem:[#allocation102_spill] sm:$0xff]  ;;  %v3132_v28 = vmul.f32 %v8705_v6, %v8704_v39  ;;  %v4021_v56 = vmax.f32 %v3893_v41, 0.0 }
 0x3c9   : > { %4222 = vmax.xlane.f32.xlu1 %v4221_v24  ;;  %4213 = vmax.xlane.f32.xlu0 %v4212_v38  ;;  %v3126_v24 = vmul.f32 %v8691_v14, %v8690_v53  ;;  %v3123_v38 = vmul.f32 %v8694_v50, %v8693_v22  ;;  %v8710_v14 = vld [vmem:[#allocation16_spill] sm:$0xff]  ;;  %v3131_v22 = vmul.f32 %v8712_v62, %v8711_v18 }
 0x3ca   : > { %v4091_v45 = vpop.xlane.xlu1 %4090  ;;  %v4076_v9 = vpop.xlane.xlu0 %4075  ;;  %v4020_v15 = vmax.f32 %v3892_v35, 0.0  ;;  %v3900_v58 = vadd.f32 %v7767_v13, %v3132_v28  ;;  %v8708_v35 = vld [vmem:[#allocation122_spill] sm:$0xff]  ;;  %v4380_v50 = vsel %vm4034_vm3, %v4021_v56, -inf }
 0x3cb   : > { %4442 = vst.msk [vmem:[%s7807_s13 + $0x90] sm:$0xff] %vm4423_vm4, %v4091_v45  ;;  %4437 = vst.msk [vmem:[%s7807_s13 + $0x68] sm:$0xff] %vm4423_vm4, %v4076_v9  ;;  %v3971_v45 = vmax.f32 %v3843_v26, 0.0  ;;  %v4236_v9 = vsel %vm4034_vm3, %v3973_v55, -inf  ;;  %v3894_v16 = vadd.f32 %v7675_v36, %v3126_v24  ;;  %v3896_v36 = vadd.f32 %v7721_v8, %v3128_v54 }
 0x3cc   : > { %v3129_v55 = vmul.f32 %v8707_v3, %v8706_v30  ;;  %v3899_v34 = vadd.f32 %v8718_v44, %v3131_v22 }
 0x3cd   : > { %4216 = vmax.xlane.f32.xlu1 %v4215_v43  ;;  %4207 = vmax.xlane.f32.xlu0 %v4206_v19  ;;  %v4371_v43 = vsel %vm4034_vm3, %v4018_v32, -inf  ;;  %v3891_v19 = vadd.f32 %v8699_v12, %v3123_v38  ;;  %v4022_v57 = vmax.f32 %v3894_v16, 0.0  ;;  %v4024_v4 = vmax.f32 %v3896_v36, 0.0  ;;  %v8709_v32 = vld [vmem:[#allocation111_spill] sm:$0xff]  ;;  %v8716_v16 = vld [vmem:[#allocation108_spill] sm:$0xff] }
 0x3ce   : > { %v4295_v5 = vpop.xlane.xlu1 %4294  ;;  %v4280_v49 = vpop.xlane.xlu0 %4279  ;;  %v3134_v53 = vmul.f32 %v8709_v32, %v8708_v35  ;;  %v3897_v24 = vadd.f32 %v8710_v14, %v3129_v55  ;;  %v8719_v36 = vld [vmem:[#allocation120_spill] sm:$0xff]  ;;  %v4027_v27 = vmax.f32 %v3899_v34, 0.0 }
 0x3cf   : > { %4510 = vst.msk [vmem:[%s7807_s13 + $0x2b0] sm:$0xff] %vm4423_vm4, %v4295_v5  ;;  %4505 = vst.msk [vmem:[%s7807_s13 + $0x288] sm:$0xff] %vm4423_vm4, %v4280_v49  ;;  %v4230_v5 = vsel %vm4034_vm3, %v3971_v45, -inf  ;;  %v4019_v11 = vmax.f32 %v3891_v19, 0.0  ;;  %v4028_v45 = vmax.f32 %v3900_v58, 0.0 }
 0x3d0   : > { %v4025_v54 = vmax.f32 %v3897_v24, 0.0  ;;  %v4398_v6 = vsel %vm4034_vm3, %v4027_v27, -inf }
 0x3d1   : > { %4234 = vmax.xlane.f32.xlu1 %v4233_v63  ;;  %4225 = vmax.xlane.f32.xlu0 %v4224_v1  ;;  %v4377_v63 = vsel %vm4034_vm3, %v4020_v15, -inf  ;;  %v3127_v1 = vmul.f32 %v8703_v20, %v8702_v29  ;;  %v4374_v26 = vsel %vm4034_vm3, %v4019_v11, -inf  ;;  %v8715_v15 = vld [vmem:[#allocation121_spill] sm:$0xff] }
 0x3d2   : > { %v4085_v61 = vpop.xlane.xlu1 %4084  ;;  %v4094_v52 = vpop.xlane.xlu0 %4093  ;;  %v3902_v23 = vadd.f32 %v8715_v15, %v3134_v53  ;;  %v4392_v41 = vsel %vm4034_vm3, %v4025_v54, -inf }
 0x3d3   : > { %4440 = vst.msk [vmem:[%s7807_s13 + $0x80] sm:$0xff] %vm4423_vm4, %v4085_v61  ;;  %4443 = vst.msk [vmem:[%s7807_s13 + $0x98] sm:$0xff] %vm4423_vm4, %v4094_v52  ;;  %v4368_v61 = vsel %vm4034_vm3, %v4017_v2, -inf  ;;  %v3895_v10 = vadd.f32 %v7673_v25, %v3127_v1  ;;  %v4389_v25 = vsel %vm4034_vm3, %v4024_v4, -inf  ;;  %v8724_v4 = vld [vmem:[#allocation75_spill] sm:$0xff] }
 0x3d5   : > { %4228 = vmax.xlane.f32.xlu1 %v4227_v47  ;;  %4219 = vmax.xlane.f32.xlu0 %v4218_v17  ;;  %v4383_v47 = vsel %vm4034_vm3, %v4022_v57, -inf }
 0x3d6   : > { %v4289_v42 = vpop.xlane.xlu1 %4288  ;;  %v4298_v33 = vpop.xlane.xlu0 %4297 }
 0x3d7   : > { %4508 = vst.msk [vmem:[%s7807_s13 + $0x2a0] sm:$0xff] %vm4423_vm4, %v4289_v42  ;;  %4511 = vst.msk [vmem:[%s7807_s13 + $0x2b8] sm:$0xff] %vm4423_vm4, %v4298_v33  ;;  %v4026_v33 = vmax.f32 %v3898_v37, 0.0 }
 0x3d9   : > { %4366 = vmax.xlane.f32.xlu1 %v4365_v46  ;;  %4237 = vmax.xlane.f32.xlu0 %v4236_v9  ;;  %v4023_v46 = vmax.f32 %v3895_v10, 0.0  ;;  %v8713_v9 = vld [vmem:[#allocation113_spill] sm:$0xff]  ;;  %v4395_v7 = vsel %vm4034_vm3, %v4026_v33, -inf }
 0x3da   : > { %v4103_v59 = vpop.xlane.xlu1 %4102  ;;  %v4088_v21 = vpop.xlane.xlu0 %4087 }
 0x3db   : > { %4446 = vst.msk [vmem:[%s7807_s13 + $0xb0] sm:$0xff] %vm4423_vm4, %v4103_v59  ;;  %4441 = vst.msk [vmem:[%s7807_s13 + $0x88] sm:$0xff] %vm4423_vm4, %v4088_v21  ;;  %v8714_v59 = vld [vmem:[#allocation77_spill] sm:$0xff]  ;;  %v4386_v40 = vsel %vm4034_vm3, %v4023_v46, -inf }
 0x3dc   : > { %v3136_v21 = vmul.f32 %v8714_v59, %v8713_v9 }
 0x3dd   : > { %4372 = vmax.xlane.f32.xlu1 %v4371_v43  ;;  %4231 = vmax.xlane.f32.xlu0 %v4230_v5  ;;  %v8717_v43 = vld [vmem:[#allocation11_spill] sm:$0xff] }
 0x3de   : > { %v4307_v49 = vpop.xlane.xlu1 %4306  ;;  %v4292_v48 = vpop.xlane.xlu0 %4291  ;;  %v3133_v2 = vmul.f32 %v8717_v43, %v8716_v16  ;;  %v3904_v5 = vadd.f32 %v7800_v60, %v3136_v21 }
 0x3df   : > { %4514 = vst.msk [vmem:[%s7807_s13 + $0x2d0] sm:$0xff] %vm4423_vm4, %v4307_v49  ;;  %4509 = vst.msk [vmem:[%s7807_s13 + $0x2a8] sm:$0xff] %vm4423_vm4, %v4292_v48  ;;  %v4030_v49 = vmax.f32 %v3902_v23, 0.0  ;;  %v4401_v48 = vsel %vm4034_vm3, %v4028_v45, -inf }
 0x3e0   : > { %v3901_v57 = vadd.f32 %v8719_v36, %v3133_v2  ;;  %v4032_v29 = vmax.f32 %v3904_v5, 0.0 }
 0x3e1   : > { %4378 = vmax.xlane.f32.xlu1 %v4377_v63  ;;  %4369 = vmax.xlane.f32.xlu0 %v4368_v61  ;;  %v8721_v63 = vld [vmem:[#allocation110_spill] sm:$0xff]  ;;  %v4407_v20 = vsel %vm4034_vm3, %v4030_v49, -inf  ;;  %v8722_v61 = vld [vmem:[#allocation112_spill] sm:$0xff] }
 0x3e2   : > { %v4097_v8 = vpop.xlane.xlu1 %4096  ;;  %v4106_v52 = vpop.xlane.xlu0 %4105  ;;  %v3135_v51 = vmul.f32 %v8721_v63, %v8720_v0  ;;  %v4029_v1 = vmax.f32 %v3901_v57, 0.0 }
 0x3e3   : > { %4444 = vst.msk [vmem:[%s7807_s13 + $0xa0] sm:$0xff] %vm4423_vm4, %v4097_v8  ;;  %4447 = vst.msk [vmem:[%s7807_s13 + $0xb8] sm:$0xff] %vm4423_vm4, %v4106_v52  ;;  %v8723_v8 = vld [vmem:[#allocation115_spill] sm:$0xff] }
 0x3e4   : > { %v3137_v52 = vmul.f32 %v8723_v8, %v8722_v61  ;;  %v3903_v39 = vadd.f32 %v8724_v4, %v3135_v51  ;;  %v4404_v3 = vsel %vm4034_vm3, %v4029_v1, -inf }
 0x3e5   : > { %4384 = vmax.xlane.f32.xlu1 %v4383_v47  ;;  %4375 = vmax.xlane.f32.xlu0 %v4374_v26  ;;  %v4413_v47 = vsel %vm4034_vm3, %v4032_v29, -inf }
 0x3e6   : > { %v4301_v17 = vpop.xlane.xlu1 %4300  ;;  %v4310_v42 = vpop.xlane.xlu0 %4309  ;;  %v3905_v56 = vadd.f32 %v7798_v31, %v3137_v52  ;;  %v4031_v30 = vmax.f32 %v3903_v39, 0.0 }
 0x3e7   : > { %4512 = vst.msk [vmem:[%s7807_s13 + $0x2c0] sm:$0xff] %vm4423_vm4, %v4301_v17  ;;  %4515 = vst.msk [vmem:[%s7807_s13 + $0x2d8] sm:$0xff] %vm4423_vm4, %v4310_v42 }
 0x3e8   : > { %v4033_v26 = vmax.f32 %v3905_v56, 0.0  ;;  %v4410_v17 = vsel %vm4034_vm3, %v4031_v30, -inf }
 0x3e9   : > { %4390 = vmax.xlane.f32.xlu1 %v4389_v25  ;;  %4381 = vmax.xlane.f32.xlu0 %v4380_v50 }
 0x3ea   : > { %v4115_v13 = vpop.xlane.xlu1 %4114  ;;  %v4100_v38 = vpop.xlane.xlu0 %4099  ;;  %v4416_v58 = vsel %vm4034_vm3, %v4033_v26, -inf }
 0x3eb   : > { %4450 = vst.msk [vmem:[%s7807_s13 + $0xd0] sm:$0xff] %vm4423_vm4, %v4115_v13  ;;  %4445 = vst.msk [vmem:[%s7807_s13 + $0xa8] sm:$0xff] %vm4423_vm4, %v4100_v38 }
 0x3ed   : > { %4396 = vmax.xlane.f32.xlu1 %v4395_v7  ;;  %4387 = vmax.xlane.f32.xlu0 %v4386_v40 }
 0x3ee   : > { %v4319_v12 = vpop.xlane.xlu1 %4318  ;;  %v4304_v19 = vpop.xlane.xlu0 %4303 }
 0x3ef   : > { %4518 = vst.msk [vmem:[%s7807_s13 + $0x2f0] sm:$0xff] %vm4423_vm4, %v4319_v12  ;;  %4513 = vst.msk [vmem:[%s7807_s13 + $0x2c8] sm:$0xff] %vm4423_vm4, %v4304_v19 }
 0x3f1   : > { %4402 = vmax.xlane.f32.xlu1 %v4401_v48  ;;  %4393 = vmax.xlane.f32.xlu0 %v4392_v41 }
 0x3f2   : > { %v4109_v11 = vpop.xlane.xlu1 %4108  ;;  %v4118_v60 = vpop.xlane.xlu0 %4117 }
 0x3f3   : > { %4448 = vst.msk [vmem:[%s7807_s13 + $0xc0] sm:$0xff] %vm4423_vm4, %v4109_v11  ;;  %4451 = vst.msk [vmem:[%s7807_s13 + $0xd8] sm:$0xff] %vm4423_vm4, %v4118_v60 }
 0x3f5   : > { %4408 = vmax.xlane.f32.xlu1 %v4407_v20  ;;  %4399 = vmax.xlane.f32.xlu0 %v4398_v6 }
 0x3f6   : > { %v4313_v28 = vpop.xlane.xlu1 %4312  ;;  %v4322_v37 = vpop.xlane.xlu0 %4321 }
 0x3f7   : > { %4516 = vst.msk [vmem:[%s7807_s13 + $0x2e0] sm:$0xff] %vm4423_vm4, %v4313_v28  ;;  %4519 = vst.msk [vmem:[%s7807_s13 + $0x2f8] sm:$0xff] %vm4423_vm4, %v4322_v37 }
 0x3f9   : > { %4414 = vmax.xlane.f32.xlu1 %v4413_v47  ;;  %4405 = vmax.xlane.f32.xlu0 %v4404_v3 }
 0x3fa   : > { %v4127_v55 = vpop.xlane.xlu1 %4126  ;;  %v4112_v10 = vpop.xlane.xlu0 %4111 }
 0x3fb   : > { %4454 = vst.msk [vmem:[%s7807_s13 + $0xf0] sm:$0xff] %vm4423_vm4, %v4127_v55  ;;  %4449 = vst.msk [vmem:[%s7807_s13 + $0xc8] sm:$0xff] %vm4423_vm4, %v4112_v10 }
 0x3fd   : > { %4411 = vmax.xlane.f32.xlu0 %v4410_v17 }
 0x3fe   : > { %v4331_v31 = vpop.xlane.xlu1 %4330  ;;  %v4316_v42 = vpop.xlane.xlu0 %4315 }
 0x3ff   : > { %4522 = vst.msk [vmem:[%s7807_s13 + $0x310] sm:$0xff] %vm4423_vm4, %v4331_v31  ;;  %4517 = vst.msk [vmem:[%s7807_s13 + $0x2e8] sm:$0xff] %vm4423_vm4, %v4316_v42 }
 0x401   : > { %4417 = vmax.xlane.f32.xlu0 %v4416_v58 }
 0x402   : > { %v4121_v33 = vpop.xlane.xlu1 %4120  ;;  %v4130_v35 = vpop.xlane.xlu0 %4129 }
 0x403   : > { %4452 = vst.msk [vmem:[%s7807_s13 + $0xe0] sm:$0xff] %vm4423_vm4, %v4121_v33  ;;  %4455 = vst.msk [vmem:[%s7807_s13 + $0xf8] sm:$0xff] %vm4423_vm4, %v4130_v35 }
 0x406   : > { %v4325_v32 = vpop.xlane.xlu1 %4324  ;;  %v4334_v53 = vpop.xlane.xlu0 %4333 }
 0x407   : > { %4520 = vst.msk [vmem:[%s7807_s13 + $0x300] sm:$0xff] %vm4423_vm4, %v4325_v32  ;;  %4523 = vst.msk [vmem:[%s7807_s13 + $0x318] sm:$0xff] %vm4423_vm4, %v4334_v53 }
 0x40a   : > { %v4139_v25 = vpop.xlane.xlu1 %4138  ;;  %v4124_v14 = vpop.xlane.xlu0 %4123 }
 0x40b   : > { %4458 = vst.msk [vmem:[%s7807_s13 + $0x110] sm:$0xff] %vm4423_vm4, %v4139_v25  ;;  %4453 = vst.msk [vmem:[%s7807_s13 + $0xe8] sm:$0xff] %vm4423_vm4, %v4124_v14 }
 0x40e   : > { %v4343_v24 = vpop.xlane.xlu1 %4342  ;;  %v4328_v46 = vpop.xlane.xlu0 %4327 }
 0x40f   : > { %4526 = vst.msk [vmem:[%s7807_s13 + $0x330] sm:$0xff] %vm4423_vm4, %v4343_v24  ;;  %4521 = vst.msk [vmem:[%s7807_s13 + $0x308] sm:$0xff] %vm4423_vm4, %v4328_v46 }
 0x412   : > { %v4133_v18 = vpop.xlane.xlu1 %4132  ;;  %v4142_v62 = vpop.xlane.xlu0 %4141 }
 0x413   : > { %4456 = vst.msk [vmem:[%s7807_s13 + $0x100] sm:$0xff] %vm4423_vm4, %v4133_v18  ;;  %4459 = vst.msk [vmem:[%s7807_s13 + $0x118] sm:$0xff] %vm4423_vm4, %v4142_v62 }
 0x416   : > { %v4337_v22 = vpop.xlane.xlu1 %4336  ;;  %v4346_v50 = vpop.xlane.xlu0 %4345 }
 0x417   : > { %4524 = vst.msk [vmem:[%s7807_s13 + $0x320] sm:$0xff] %vm4423_vm4, %v4337_v22  ;;  %4527 = vst.msk [vmem:[%s7807_s13 + $0x338] sm:$0xff] %vm4423_vm4, %v4346_v50 }
 0x41a   : > { %v4151_v13 = vpop.xlane.xlu1 %4150  ;;  %v4136_v38 = vpop.xlane.xlu0 %4135 }
 0x41b   : > { %4462 = vst.msk [vmem:[%s7807_s13 + $0x130] sm:$0xff] %vm4423_vm4, %v4151_v13  ;;  %4457 = vst.msk [vmem:[%s7807_s13 + $0x108] sm:$0xff] %vm4423_vm4, %v4136_v38 }
 0x41e   : > { %v4355_v45 = vpop.xlane.xlu1 %4354  ;;  %v4340_v9 = vpop.xlane.xlu0 %4339 }
 0x41f   : > { %4530 = vst.msk [vmem:[%s7807_s13 + $0x350] sm:$0xff] %vm4423_vm4, %v4355_v45  ;;  %4525 = vst.msk [vmem:[%s7807_s13 + $0x328] sm:$0xff] %vm4423_vm4, %v4340_v9 }
 0x422   : > { %v4145_v59 = vpop.xlane.xlu1 %4144  ;;  %v4154_v21 = vpop.xlane.xlu0 %4153 }
 0x423   : > { %4460 = vst.msk [vmem:[%s7807_s13 + $0x120] sm:$0xff] %vm4423_vm4, %v4145_v59  ;;  %4463 = vst.msk [vmem:[%s7807_s13 + $0x138] sm:$0xff] %vm4423_vm4, %v4154_v21 }
 0x426   : > { %v4349_v15 = vpop.xlane.xlu1 %4348  ;;  %v4358_v23 = vpop.xlane.xlu0 %4357 }
 0x427   : > { %4528 = vst.msk [vmem:[%s7807_s13 + $0x340] sm:$0xff] %vm4423_vm4, %v4349_v15  ;;  %4531 = vst.msk [vmem:[%s7807_s13 + $0x358] sm:$0xff] %vm4423_vm4, %v4358_v23 }
 0x42a   : > { %v4163_v7 = vpop.xlane.xlu1 %4162  ;;  %v4148_v54 = vpop.xlane.xlu0 %4147 }
 0x42b   : > { %4466 = vst.msk [vmem:[%s7807_s13 + $0x150] sm:$0xff] %vm4423_vm4, %v4163_v7  ;;  %4461 = vst.msk [vmem:[%s7807_s13 + $0x128] sm:$0xff] %vm4423_vm4, %v4148_v54 }
 0x42e   : > { %v4157_v16 = vpop.xlane.xlu1 %4156  ;;  %v4352_v43 = vpop.xlane.xlu0 %4351 }
 0x42f   : > { %4464 = vst.msk [vmem:[%s7807_s13 + $0x140] sm:$0xff] %vm4423_vm4, %v4157_v16  ;;  %4529 = vst.msk [vmem:[%s7807_s13 + $0x348] sm:$0xff] %vm4423_vm4, %v4352_v43 }
 0x432   : > { %v4361_v2 = vpop.xlane.xlu1 %4360  ;;  %v4166_v44 = vpop.xlane.xlu0 %4165 }
 0x433   : > { %4532 = vst.msk [vmem:[%s7807_s13 + $0x360] sm:$0xff] %vm4423_vm4, %v4361_v2  ;;  %4467 = vst.msk [vmem:[%s7807_s13 + $0x158] sm:$0xff] %vm4423_vm4, %v4166_v44 }
 0x436   : > { %v4175_v34 = vpop.xlane.xlu1 %4174  ;;  %v4160_v40 = vpop.xlane.xlu0 %4159 }
 0x437   : > { %4470 = vst.msk [vmem:[%s7807_s13 + $0x170] sm:$0xff] %vm4423_vm4, %v4175_v34  ;;  %4465 = vst.msk [vmem:[%s7807_s13 + $0x148] sm:$0xff] %vm4423_vm4, %v4160_v40 }
 0x43a   : > { %v4169_v12 = vpop.xlane.xlu1 %4168  ;;  %v4364_v19 = vpop.xlane.xlu0 %4363 }
 0x43b   : > { %4468 = vst.msk [vmem:[%s7807_s13 + $0x160] sm:$0xff] %vm4423_vm4, %v4169_v12  ;;  %4533 = vst.msk [vmem:[%s7807_s13 + $0x368] sm:$0xff] %vm4423_vm4, %v4364_v19 }
 0x43e   : > { %v4187_v5 = vpop.xlane.xlu1 %4186  ;;  %v4178_v49 = vpop.xlane.xlu0 %4177 }
 0x43f   : > { %4474 = vst.msk [vmem:[%s7807_s13 + $0x190] sm:$0xff] %vm4423_vm4, %v4187_v5  ;;  %4471 = vst.msk [vmem:[%s7807_s13 + $0x178] sm:$0xff] %vm4423_vm4, %v4178_v49 }
 0x442   : > { %v4181_v48 = vpop.xlane.xlu1 %4180  ;;  %v4172_v36 = vpop.xlane.xlu0 %4171 }
 0x443   : > { %4472 = vst.msk [vmem:[%s7807_s13 + $0x180] sm:$0xff] %vm4423_vm4, %v4181_v48  ;;  %4469 = vst.msk [vmem:[%s7807_s13 + $0x168] sm:$0xff] %vm4423_vm4, %v4172_v36 }
 0x446   : > { %v4199_v57 = vpop.xlane.xlu1 %4198  ;;  %v4190_v27 = vpop.xlane.xlu0 %4189 }
 0x447   : > { %4478 = vst.msk [vmem:[%s7807_s13 + $0x1b0] sm:$0xff] %vm4423_vm4, %v4199_v57  ;;  %4475 = vst.msk [vmem:[%s7807_s13 + $0x198] sm:$0xff] %vm4423_vm4, %v4190_v27 }
 0x44a   : > { %v4193_v0 = vpop.xlane.xlu1 %4192  ;;  %v4184_v63 = vpop.xlane.xlu0 %4183 }
 0x44b   : > { %4476 = vst.msk [vmem:[%s7807_s13 + $0x1a0] sm:$0xff] %vm4423_vm4, %v4193_v0  ;;  %4473 = vst.msk [vmem:[%s7807_s13 + $0x188] sm:$0xff] %vm4423_vm4, %v4184_v63 }
 0x44e   : > { %v4211_v51 = vpop.xlane.xlu1 %4210  ;;  %v4202_v41 = vpop.xlane.xlu0 %4201 }
 0x44f   : > { %4482 = vst.msk [vmem:[%s7807_s13 + $0x1d0] sm:$0xff] %vm4423_vm4, %v4211_v51  ;;  %4479 = vst.msk [vmem:[%s7807_s13 + $0x1b8] sm:$0xff] %vm4423_vm4, %v4202_v41 }
 0x452   : > { %v4205_v11 = vpop.xlane.xlu1 %4204  ;;  %v4196_v60 = vpop.xlane.xlu0 %4195 }
 0x453   : > { %4480 = vst.msk [vmem:[%s7807_s13 + $0x1c0] sm:$0xff] %vm4423_vm4, %v4205_v11  ;;  %4477 = vst.msk [vmem:[%s7807_s13 + $0x1a8] sm:$0xff] %vm4423_vm4, %v4196_v60 }
 0x456   : > { %v4223_v29 = vpop.xlane.xlu1 %4222  ;;  %v4214_v20 = vpop.xlane.xlu0 %4213 }
 0x457   : > { %4486 = vst.msk [vmem:[%s7807_s13 + $0x1f0] sm:$0xff] %vm4423_vm4, %v4223_v29  ;;  %4483 = vst.msk [vmem:[%s7807_s13 + $0x1d8] sm:$0xff] %vm4423_vm4, %v4214_v20 }
 0x45a   : > { %v4217_v1 = vpop.xlane.xlu1 %4216  ;;  %v4208_v61 = vpop.xlane.xlu0 %4207 }
 0x45b   : > { %4484 = vst.msk [vmem:[%s7807_s13 + $0x1e0] sm:$0xff] %vm4423_vm4, %v4217_v1  ;;  %4481 = vst.msk [vmem:[%s7807_s13 + $0x1c8] sm:$0xff] %vm4423_vm4, %v4208_v61 }
 0x45e   : > { %v4235_v8 = vpop.xlane.xlu1 %4234  ;;  %v4226_v52 = vpop.xlane.xlu0 %4225 }
 0x45f   : > { %4490 = vst.msk [vmem:[%s7807_s13 + $0x210] sm:$0xff] %vm4423_vm4, %v4235_v8  ;;  %4487 = vst.msk [vmem:[%s7807_s13 + $0x1f8] sm:$0xff] %vm4423_vm4, %v4226_v52 }
 0x462   : > { %v4229_v4 = vpop.xlane.xlu1 %4228  ;;  %v4220_v39 = vpop.xlane.xlu0 %4219 }
 0x463   : > { %4488 = vst.msk [vmem:[%s7807_s13 + $0x200] sm:$0xff] %vm4423_vm4, %v4229_v4  ;;  %4485 = vst.msk [vmem:[%s7807_s13 + $0x1e8] sm:$0xff] %vm4423_vm4, %v4220_v39 }
 0x466   : > { %v4367_v6 = vpop.xlane.xlu1 %4366  ;;  %v4238_v28 = vpop.xlane.xlu0 %4237 }
 0x467   : > { %4534 = vst.msk [vmem:[%s7807_s13 + $0x370] sm:$0xff] %vm4423_vm4, %v4367_v6  ;;  %4491 = vst.msk [vmem:[%s7807_s13 + $0x218] sm:$0xff] %vm4423_vm4, %v4238_v28 }
 0x46a   : > { %v4373_v37 = vpop.xlane.xlu1 %4372  ;;  %v4232_v47 = vpop.xlane.xlu0 %4231 }
 0x46b   : > { %4536 = vst.msk [vmem:[%s7807_s13 + $0x380] sm:$0xff] %vm4423_vm4, %v4373_v37  ;;  %4489 = vst.msk [vmem:[%s7807_s13 + $0x208] sm:$0xff] %vm4423_vm4, %v4232_v47 }
 0x46e   : > { %v4379_v56 = vpop.xlane.xlu1 %4378  ;;  %v4370_v30 = vpop.xlane.xlu0 %4369 }
 0x46f   : > { %4538 = vst.msk [vmem:[%s7807_s13 + $0x390] sm:$0xff] %vm4423_vm4, %v4379_v56  ;;  %4535 = vst.msk [vmem:[%s7807_s13 + $0x378] sm:$0xff] %vm4423_vm4, %v4370_v30 }
 0x472   : > { %v4385_v3 = vpop.xlane.xlu1 %4384  ;;  %v4376_v55 = vpop.xlane.xlu0 %4375 }
 0x473   : > { %4540 = vst.msk [vmem:[%s7807_s13 + $0x3a0] sm:$0xff] %vm4423_vm4, %v4385_v3  ;;  %4537 = vst.msk [vmem:[%s7807_s13 + $0x388] sm:$0xff] %vm4423_vm4, %v4376_v55 }
 0x476   : > { %v4391_v10 = vpop.xlane.xlu1 %4390  ;;  %v4382_v26 = vpop.xlane.xlu0 %4381 }
 0x477   : > { %4542 = vst.msk [vmem:[%s7807_s13 + $0x3b0] sm:$0xff] %vm4423_vm4, %v4391_v10  ;;  %4539 = vst.msk [vmem:[%s7807_s13 + $0x398] sm:$0xff] %vm4423_vm4, %v4382_v26 }
 0x47a   : > { %v4397_v17 = vpop.xlane.xlu1 %4396  ;;  %v4388_v31 = vpop.xlane.xlu0 %4387 }
 0x47b   : > { %4544 = vst.msk [vmem:[%s7807_s13 + $0x3c0] sm:$0xff] %vm4423_vm4, %v4397_v17  ;;  %4541 = vst.msk [vmem:[%s7807_s13 + $0x3a8] sm:$0xff] %vm4423_vm4, %v4388_v31 }
 0x47e   : > { %v4403_v42 = vpop.xlane.xlu1 %4402  ;;  %v4394_v58 = vpop.xlane.xlu0 %4393 }
 0x47f   : > { %4546 = vst.msk [vmem:[%s7807_s13 + $0x3d0] sm:$0xff] %vm4423_vm4, %v4403_v42  ;;  %4543 = vst.msk [vmem:[%s7807_s13 + $0x3b8] sm:$0xff] %vm4423_vm4, %v4394_v58 }
 0x482   : > { %v4409_v33 = vpop.xlane.xlu1 %4408  ;;  %v4400_v35 = vpop.xlane.xlu0 %4399 }
 0x483   : > { %4548 = vst.msk [vmem:[%s7807_s13 + $0x3e0] sm:$0xff] %vm4423_vm4, %v4409_v33  ;;  %4545 = vst.msk [vmem:[%s7807_s13 + $0x3c8] sm:$0xff] %vm4423_vm4, %v4400_v35 }
 0x486   : > { %v4415_v32 = vpop.xlane.xlu1 %4414  ;;  %v4406_v53 = vpop.xlane.xlu0 %4405 }
 0x487   : > { %4550 = vst.msk [vmem:[%s7807_s13 + $0x3f0] sm:$0xff] %vm4423_vm4, %v4415_v32  ;;  %4547 = vst.msk [vmem:[%s7807_s13 + $0x3d8] sm:$0xff] %vm4423_vm4, %v4406_v53 }
 0x48a   : > { %v4412_v25 = vpop.xlane.xlu0 %4411 }
 0x48b   : > { %4549 = vst.msk [vmem:[%s7807_s13 + $0x3e8] sm:$0xff] %vm4423_vm4, %v4412_v25 }
 0x48e   : > { %v4418_v14 = vpop.xlane.xlu0 %4417 }
 0x48f   : > { %4551 = vst.msk [vmem:[%s7807_s13 + $0x3f8] sm:$0xff] %vm4423_vm4, %v4418_v14 }
 0x490 PF: > { %s21_s15 = sadd.s32 1, %s5575_s15   ;;  %s8725_s13 = smov %s5571_s14 }
 0x491   : > { %p18_p4 = scmp.ge.s32.totalorder %s21_s15, 4   ;;  %s8726_s14 = smov %s8728_s17 }
 0x493   :  { %20 = sbr.rel (!%p18_p4) target bundleno = 2 (0x2), region = 103 }
 0x49a   :  { %4962 = vsyncpa [#allocation3], 1 }
 0x49b   :  { %4964 = vsyncpa [#allocation3 + $0x1], 1 }

// kernel: pointnetfeat_forward.4
= control target key start
LH: loop header
LB: loop body
LE: loop exit
PB: predicated region body
PF: predicated region fallthrough
CT: control target
= control target key end

     0   :  { %s6343_s24 = smov 0   ;;  %s6345_s25 = smov 0   ;;  %s9374_s0 = inlined_call_operand.vmem [shape: bf16[2,4,16], index: 0, kind: input, shape index: {}]   ;;  %s9375_s1 = inlined_call_operand.vmem [shape: bf16[2,64,4], index: 1, kind: input, shape index: {}]   ;;  %s9376_s2 = inlined_call_operand.vmem [shape: f32[64,1], index: 2, kind: input, shape index: {}]   ;;  %s9377_s3 = inlined_call_operand.vmem [shape: f32[64,1], index: 3, kind: input, shape index: {}]   ;;  %s9378_s4 = inlined_call_operand.vmem [shape: bf16[64,64], index: 4, kind: input, shape index: {}]   ;;  %s9379_s5 = inlined_call_operand.vmem [shape: f32[64,1], index: 5, kind: input, shape index: {}]   ;;  %s9380_s6 = inlined_call_operand.vmem [shape: f32[64,1], index: 6, kind: input, shape index: {}]   ;;  %s9381_s7 = inlined_call_operand.vmem [shape: bf16[64,64], index: 7, kind: input, shape index: {}]   ;;  %s9382_s8 = inlined_call_operand.vmem [shape: f32[64,1], index: 8, kind: input, shape index: {}]   ;;  %s9383_s9 = inlined_call_operand.vmem [shape: f32[64,1], index: 9, kind: input, shape index: {}]   ;;  %s9384_s10 = inlined_call_operand.vmem [shape: bf16[128,64], index: 10, kind: input, shape index: {}]   ;;  %s9385_s11 = inlined_call_operand.vmem [shape: f32[128,1], index: 11, kind: input, shape index: {}]   ;;  %s9386_s12 = inlined_call_operand.vmem [shape: f32[128,1], index: 12, kind: input, shape index: {}]   ;;  %s9387_s13 = inlined_call_operand.vmem [shape: bf16[1024,128], index: 13, kind: input, shape index: {}]   ;;  %s9388_s14 = inlined_call_operand.vmem [shape: f32[1024,1], index: 14, kind: input, shape index: {}]   ;;  %s9389_s15 = inlined_call_operand.vmem [shape: f32[1024,1], index: 15, kind: input, shape index: {}]   ;;  %s9390_s16 = inlined_call_operand.vmem [shape: bf16[2,64,16], index: 16, kind: output, shape index: {0}]   ;;  %s9391_s17 = inlined_call_operand.vmem [shape: f32[2,1024,1], index: 17, kind: output, shape index: {1}]  }
   0x1   :  { %9395 = sst [smem:[#allocation184_spill]] %s9374_s0  ;;  %s6347_s26 = smov 0  }
   0x2   :  { %9396 = sst [smem:[#allocation185_spill]] %s9375_s1 }
   0x3   :  { %9397 = sst [smem:[#allocation186_spill]] %s9387_s13 }
   0x4   :  { %9398 = sst [smem:[#allocation187_spill]] %s9391_s17 }
   0x5 LB: > { %9399 = sst [smem:[#allocation2_spill]] %s6246_s25  ;;  %s40_s27 = sadd.s32 1, %s6246_s25  ;;  %s6250_s26 = sphi %s6347_s26, %s28_s26   ;;  %s6246_s25 = sphi %s6345_s25, %s9878_s25   ;;  %s6242_s24 = sphi %s6343_s24, %s9877_s24  }
   0x6   : > { %9400 = sst [smem:[#allocation3_spill]] %s6250_s26  ;;  %p5652_p0 = scmp.ge.s32.totalorder %s6250_s26, 1 }
   0x7   : > { %p42_p1 = scmp.ge.s32.totalorder %s40_s27, 2  ;;  %p518_p2 = scmp.lt.s32.totalorder %s6250_s26, 3 }
   0x9   : > { %s9880_s27 = smov (%p42_p1, %s40_s27), 0  ;;  %p519_p3 = pnand %p5652_p0, %p518_p2 }
   0xa   : > { %9401 = sst [smem:[#allocation4_spill]] %s9880_s27 }
   0xb   : > { %522 = sbr.rel (%p519_p3) target bundleno = 1619 (0x653), region = 84 }
  0x12   : > { %v622_v0 = vld [vmem:[%s9376_s2 + $0x10] sm:$0xff]  ;;  %v620_v1 = vld [vmem:[%s9376_s2] sm:$0xff]  ;;  %p585_p4 = scmp.lt.s32.totalorder %s6242_s24, 1  ;;  %v6252_v2 = vmov 0   ;;  %v623_v3 = vld [vmem:[%s9376_s2 + $0x18] sm:$0xff]  ;;  %vm669_vm0 = vcmask 1041408  }
  0x13   : > { %6143 = vset.pattern.permute.xlu1 %v6252_v2  ;;  %6142 = vset.pattern.permute.xlu0 %v6252_v2  ;;  %v621_v4 = vld [vmem:[%s9376_s2 + $0x8] sm:$0xff]  ;;  %s9402_s29 = sld [smem:[#allocation184_spill]]  ;;  %s9403_s25 = sld [smem:[#allocation185_spill]]  ;;  %v624_v6 = vld [vmem:[%s9376_s2 + $0x20] sm:$0xff]  ;;  %vm656_vm1 = vcmask 31744   ;;  %v627_v12 = vld [vmem:[%s9376_s2 + $0x38] sm:$0xff] }
  0x14   : > { %750 = vperm.xlu1 %6143, %v622_v0   ;;  %740 = vperm.xlu0 %6142, %v620_v1   ;;  %s9882_s24 = smov (!%p585_p4, %s6242_s24), 1  ;;  %v625_v5 = vld [vmem:[%s9376_s2 + $0x28] sm:$0xff]  ;;  %v626_v13 = vld [vmem:[%s9376_s2 + $0x30] sm:$0xff]  ;;  %v628_v15 = vld [vmem:[%s9377_s3] sm:$0xff]  ;;  %vm890_vm2 = vcmask 523264   ;;  %vm1104_vm3 = vcmask 125952  }
  0x15   : > { %s5653_s21 = sshll.u32 %s9882_s24, 1  ;;  %s5774_s22 = sshll.u32 %s9882_s24, 5  ;;  %v629_v14 = vld [vmem:[%s9377_s3 + $0x8] sm:$0xff]  ;;  %v631_v17 = vld [vmem:[%s9377_s3 + $0x18] sm:$0xff]  ;;  %v630_v18 = vld [vmem:[%s9377_s3 + $0x10] sm:$0xff]  ;;  %vm4616_vm4 = vcmask 130048  }
  0x16   : > { %v633_v19 = vld [vmem:[%s9377_s3 + $0x28] sm:$0xff]  ;;  %v632_v20 = vld [vmem:[%s9377_s3 + $0x20] sm:$0xff]  ;;  %v635_v21 = vld [vmem:[%s9377_s3 + $0x38] sm:$0xff]  ;;  %s9561_s23 = sld [smem:[#allocation186_spill]]  ;;  %vm5005_vm5 = vcmask 7168   ;;  %s9760_s13 = sld [smem:[#allocation187_spill]] }
  0x17   : > { %v634_v22 = vld [vmem:[%s9377_s3 + $0x30] sm:$0xff]  ;;  %v855_v23 = vld [vmem:[%s9379_s5 + $0x8] sm:$0xff]  ;;  %v854_v24 = vld [vmem:[%s9379_s5] sm:$0xff] }
  0x18   : > { %755 = vperm.xlu1 %6143, %v623_v3   ;;  %745 = vperm.xlu0 %6142, %v621_v4   ;;  %v857_v25 = vld [vmem:[%s9379_s5 + $0x18] sm:$0xff]  ;;  %v856_v26 = vld [vmem:[%s9379_s5 + $0x10] sm:$0xff]  ;;  %v859_v27 = vld [vmem:[%s9379_s5 + $0x28] sm:$0xff] }
  0x19   : > { %s591_s0 = scalar_lea.vmem %s9402_s29, %s5653_s21  ;;  %s596_s18 = scalar_lea.vmem %s9403_s25, %s5774_s22  ;;  %v858_v28 = vld [vmem:[%s9379_s5 + $0x20] sm:$0xff]  ;;  %v861_v29 = vld [vmem:[%s9379_s5 + $0x38] sm:$0xff]  ;;  %v860_v30 = vld [vmem:[%s9379_s5 + $0x30] sm:$0xff] }
  0x1a   : > { %v611_v7 = vld [vmem:[%s591_s0] sm:$0x3]  ;;  %v6145_v10 = vld [vmem:[%s596_s18 + $0x8] sm:$0xff]   ;;  %v6146_v11 = vld [vmem:[%s596_s18 + $0x10] sm:$0xff]   ;;  %s7473_s21 = scalar_lea.vmem %s9390_s16, %s5774_s22  ;;  %s5776_s25 = sshll.u32 %s9882_s24, 10 }
  0x1b   : > { %v6144_v8 = vld [vmem:[%s596_s18] sm:$0xff]   ;;  %6116 = vmatprep.subr.msk.bf16.mxu0 %vm669_vm0, %v611_v7  ;;  %v671_v9 = vsel %vm669_vm0, %v611_v7, 0  ;;  %v6147_v16 = vld [vmem:[%s596_s18 + $0x18] sm:$0xff]   ;;  %v863_v31 = vld [vmem:[%s9380_s6 + $0x8] sm:$0xff] }
  0x1c   : > { %5891 = vmatpush3.bf16.msra.mxu0 %v671_v9  ;;  %5892 = vmatprep.mubr.msk.bf16.mxu0 %vm656_vm1, %v6144_v8  ;;  %v862_v32 = vld [vmem:[%s9380_s6] sm:$0xff]  ;;  %v865_v33 = vld [vmem:[%s9380_s6 + $0x18] sm:$0xff]  ;;  %v864_v34 = vld [vmem:[%s9380_s6 + $0x10] sm:$0xff]  ;;  %s8891_s17 = scalar_lea.vmem %s9760_s13, %s5776_s25 }
  0x1d   : > { %765 = vperm.xlu1 %6143, %v625_v5   ;;  %760 = vperm.xlu0 %6142, %v624_v6   ;;  %v867_v35 = vld [vmem:[%s9380_s6 + $0x28] sm:$0xff]  ;;  %v866_v36 = vld [vmem:[%s9380_s6 + $0x20] sm:$0xff]  ;;  %v869_v37 = vld [vmem:[%s9380_s6 + $0x38] sm:$0xff] }
  0x1e   : > { %v868_v38 = vld [vmem:[%s9380_s6 + $0x30] sm:$0xff]  ;;  %v1122_v39 = vld [vmem:[%s9382_s8 + $0x8] sm:$0xff]  ;;  %v1121_v40 = vld [vmem:[%s9382_s8] sm:$0xff] }
  0x1f   : > { %5893 = vmatmul.mubr.msk.bf16.vlgmr.msra.gmra.mrb[0].mxu0 %vm656_vm1, %v6145_v10  ;;  %v1124_v41 = vld [vmem:[%s9382_s8 + $0x18] sm:$0xff]  ;;  %v1123_v42 = vld [vmem:[%s9382_s8 + $0x10] sm:$0xff]  ;;  %v1126_v43 = vld [vmem:[%s9382_s8 + $0x28] sm:$0xff] }
  0x20   : > { %5896 = vmatprep.mubr.msk.bf16.mxu0 %vm656_vm1, %v6146_v11  ;;  %v1125_v44 = vld [vmem:[%s9382_s8 + $0x20] sm:$0xff]  ;;  %v1128_v45 = vld [vmem:[%s9382_s8 + $0x38] sm:$0xff]  ;;  %v1127_v46 = vld [vmem:[%s9382_s8 + $0x30] sm:$0xff] }
  0x21   : > { %775 = vperm.xlu1 %6143, %v627_v12   ;;  %770 = vperm.xlu0 %6142, %v626_v13   ;;  %v1130_v47 = vld [vmem:[%s9383_s9 + $0x8] sm:$0xff]  ;;  %v1129_v48 = vld [vmem:[%s9383_s9] sm:$0xff]  ;;  %v1132_v49 = vld [vmem:[%s9383_s9 + $0x18] sm:$0xff] }
  0x22   : > { %v1131_v50 = vld [vmem:[%s9383_s9 + $0x10] sm:$0xff]  ;;  %v1134_v51 = vld [vmem:[%s9383_s9 + $0x28] sm:$0xff]  ;;  %v1133_v52 = vld [vmem:[%s9383_s9 + $0x20] sm:$0xff] }
  0x23   : > { %v1136_v53 = vld [vmem:[%s9383_s9 + $0x38] sm:$0xff]  ;;  %v1135_v54 = vld [vmem:[%s9383_s9 + $0x30] sm:$0xff]  ;;  %v1359_v55 = vld [vmem:[%s9385_s11 + $0x8] sm:$0xff] }
  0x24   : > { %v1358_v56 = vld [vmem:[%s9385_s11] sm:$0xff]  ;;  %v1361_v57 = vld [vmem:[%s9385_s11 + $0x18] sm:$0xff]  ;;  %v1360_v58 = vld [vmem:[%s9385_s11 + $0x10] sm:$0xff] }
  0x25   : > { %793 = vperm.xlu1 %6143, %v629_v14   ;;  %788 = vperm.xlu0 %6142, %v628_v15   ;;  %v1363_v59 = vld [vmem:[%s9385_s11 + $0x28] sm:$0xff]  ;;  %v1362_v60 = vld [vmem:[%s9385_s11 + $0x20] sm:$0xff]  ;;  %v1365_v61 = vld [vmem:[%s9385_s11 + $0x38] sm:$0xff] }
  0x26   : > { %v1364_v62 = vld [vmem:[%s9385_s11 + $0x30] sm:$0xff]  ;;  %v1367_v63 = vld [vmem:[%s9385_s11 + $0x48] sm:$0xff]  ;;  %v1366_v0 = vld [vmem:[%s9385_s11 + $0x40] sm:$0xff] }
  0x27   : > { %5897 = vmatmul.mubr.msk.bf16.gmra.mrb[4].mxu0 %vm656_vm1, %v6147_v16  ;;  %v1369_v1 = vld [vmem:[%s9385_s11 + $0x58] sm:$0xff]  ;;  %v1368_v2 = vld [vmem:[%s9385_s11 + $0x50] sm:$0xff]  ;;  %v1371_v3 = vld [vmem:[%s9385_s11 + $0x68] sm:$0xff] }
  0x28   : > { %v1370_v4 = vld [vmem:[%s9385_s11 + $0x60] sm:$0xff]  ;;  %v1373_v6 = vld [vmem:[%s9385_s11 + $0x78] sm:$0xff]  ;;  %v1372_v7 = vld [vmem:[%s9385_s11 + $0x70] sm:$0xff] }
  0x29   : > { %803 = vperm.xlu1 %6143, %v631_v17   ;;  %798 = vperm.xlu0 %6142, %v630_v18   ;;  %v6148_v5 = vld [vmem:[%s9378_s4] sm:$0xff]   ;;  %v1375_v8 = vld [vmem:[%s9386_s12 + $0x8] sm:$0xff]  ;;  %v1377_v12 = vld [vmem:[%s9386_s12 + $0x18] sm:$0xff] }
  0x2a   : > { %5908 = vmatprep.mubr.msk.bf16.mxu1 %vm890_vm2, %v6148_v5  ;;  %v1374_v9 = vld [vmem:[%s9386_s12] sm:$0xff]  ;;  %v1376_v13 = vld [vmem:[%s9386_s12 + $0x10] sm:$0xff]  ;;  %v1379_v16 = vld [vmem:[%s9386_s12 + $0x28] sm:$0xff] }
  0x2b   : > { %v1378_v17 = vld [vmem:[%s9386_s12 + $0x20] sm:$0xff]  ;;  %v1909_v5 = vld [vmem:[%s9388_s14 + $0x70] sm:$0xff] }
  0x2d   : > { %813 = vperm.xlu1 %6143, %v633_v19   ;;  %808 = vperm.xlu0 %6142, %v632_v20   ;;  %v1381_v20 = vld [vmem:[%s9386_s12 + $0x38] sm:$0xff] }
  0x31   : > { %823 = vperm.xlu1 %6143, %v635_v21   ;;  %818 = vperm.xlu0 %6142, %v634_v22   ;;  %v1380_v21 = vld [vmem:[%s9386_s12 + $0x30] sm:$0xff] }
  0x35   : > { %975 = vperm.xlu1 %6143, %v855_v23   ;;  %970 = vperm.xlu0 %6142, %v854_v24   ;;  %v1383_v24 = vld [vmem:[%s9386_s12 + $0x48] sm:$0xff] }
  0x39   : > { %985 = vperm.xlu1 %6143, %v857_v25   ;;  %980 = vperm.xlu0 %6142, %v856_v26   ;;  %v1382_v25 = vld [vmem:[%s9386_s12 + $0x40] sm:$0xff] }
  0x3d   : > { %995 = vperm.xlu1 %6143, %v859_v27   ;;  %990 = vperm.xlu0 %6142, %v858_v28   ;;  %v1385_v28 = vld [vmem:[%s9386_s12 + $0x58] sm:$0xff] }
  0x41   : > { %1005 = vperm.xlu1 %6143, %v861_v29   ;;  %1000 = vperm.xlu0 %6142, %v860_v30   ;;  %v1384_v29 = vld [vmem:[%s9386_s12 + $0x50] sm:$0xff] }
  0x45   : > { %1023 = vperm.xlu1 %6143, %v863_v31   ;;  %1018 = vperm.xlu0 %6142, %v862_v32   ;;  %v1387_v32 = vld [vmem:[%s9386_s12 + $0x68] sm:$0xff] }
  0x49   : > { %1033 = vperm.xlu1 %6143, %v865_v33   ;;  %1028 = vperm.xlu0 %6142, %v864_v34   ;;  %v1386_v33 = vld [vmem:[%s9386_s12 + $0x60] sm:$0xff] }
  0x4d   : > { %1043 = vperm.xlu1 %6143, %v867_v35   ;;  %1038 = vperm.xlu0 %6142, %v866_v36   ;;  %v1389_v36 = vld [vmem:[%s9386_s12 + $0x78] sm:$0xff] }
  0x51   : > { %1053 = vperm.xlu1 %6143, %v869_v37   ;;  %1048 = vperm.xlu0 %6142, %v868_v38   ;;  %v1388_v37 = vld [vmem:[%s9386_s12 + $0x70] sm:$0xff] }
  0x55   : > { %1241 = vperm.xlu1 %6143, %v1122_v39   ;;  %1236 = vperm.xlu0 %6142, %v1121_v40   ;;  %v1896_v40 = vld [vmem:[%s9388_s14 + $0x8] sm:$0xff] }
  0x59   : > { %1251 = vperm.xlu1 %6143, %v1124_v41   ;;  %1246 = vperm.xlu0 %6142, %v1123_v42   ;;  %v1895_v41 = vld [vmem:[%s9388_s14] sm:$0xff] }
  0x5d   : > { %1261 = vperm.xlu1 %6143, %v1126_v43   ;;  %1256 = vperm.xlu0 %6142, %v1125_v44   ;;  %v1898_v44 = vld [vmem:[%s9388_s14 + $0x18] sm:$0xff] }
  0x61   : > { %1271 = vperm.xlu1 %6143, %v1128_v45   ;;  %1266 = vperm.xlu0 %6142, %v1127_v46   ;;  %v1897_v45 = vld [vmem:[%s9388_s14 + $0x10] sm:$0xff] }
  0x65   : > { %1289 = vperm.xlu1 %6143, %v1130_v47   ;;  %1284 = vperm.xlu0 %6142, %v1129_v48   ;;  %v1900_v48 = vld [vmem:[%s9388_s14 + $0x28] sm:$0xff] }
  0x69   : > { %1299 = vperm.xlu1 %6143, %v1132_v49   ;;  %1294 = vperm.xlu0 %6142, %v1131_v50   ;;  %v1899_v49 = vld [vmem:[%s9388_s14 + $0x20] sm:$0xff] }
  0x6d   : > { %1309 = vperm.xlu1 %6143, %v1134_v51   ;;  %1304 = vperm.xlu0 %6142, %v1133_v52   ;;  %v1902_v52 = vld [vmem:[%s9388_s14 + $0x38] sm:$0xff] }
  0x71   : > { %1319 = vperm.xlu1 %6143, %v1136_v53   ;;  %1314 = vperm.xlu0 %6142, %v1135_v54   ;;  %v1901_v53 = vld [vmem:[%s9388_s14 + $0x30] sm:$0xff] }
  0x75   : > { %1558 = vperm.xlu1 %6143, %v1359_v55   ;;  %1553 = vperm.xlu0 %6142, %v1358_v56   ;;  %v1904_v56 = vld [vmem:[%s9388_s14 + $0x48] sm:$0xff] }
  0x79   : > { %1568 = vperm.xlu1 %6143, %v1361_v57   ;;  %1563 = vperm.xlu0 %6142, %v1360_v58   ;;  %v1903_v57 = vld [vmem:[%s9388_s14 + $0x40] sm:$0xff] }
  0x7d   : > { %1578 = vperm.xlu1 %6143, %v1363_v59   ;;  %1573 = vperm.xlu0 %6142, %v1362_v60   ;;  %v1906_v60 = vld [vmem:[%s9388_s14 + $0x58] sm:$0xff] }
  0x81   : > { %1588 = vperm.xlu1 %6143, %v1365_v61   ;;  %1583 = vperm.xlu0 %6142, %v1364_v62   ;;  %v1905_v61 = vld [vmem:[%s9388_s14 + $0x50] sm:$0xff] }
  0x85   : > { %1598 = vperm.xlu1 %6143, %v1367_v63   ;;  %1593 = vperm.xlu0 %6142, %v1366_v0   ;;  %v1908_v0 = vld [vmem:[%s9388_s14 + $0x68] sm:$0xff] }
  0x89   : > { %1608 = vperm.xlu1 %6143, %v1369_v1   ;;  %1603 = vperm.xlu0 %6142, %v1368_v2   ;;  %v1907_v1 = vld [vmem:[%s9388_s14 + $0x60] sm:$0xff] }
  0x8d   : > { %1618 = vperm.xlu1 %6143, %v1371_v3   ;;  %1613 = vperm.xlu0 %6142, %v1370_v4   ;;  %v1910_v4 = vld [vmem:[%s9388_s14 + $0x78] sm:$0xff] }
  0x91   : > { %1628 = vperm.xlu1 %6143, %v1373_v6   ;;  %1623 = vperm.xlu0 %6142, %v1372_v7  }
  0x93   : > { %v6579_v10 = vpop.permute.xlu1 %750  ;;  %v6581_v11 = vpop.permute.xlu0 %740 }
  0x95   : > { %1654 = vperm.xlu1 %6143, %v1375_v8   ;;  %1649 = vperm.xlu0 %6142, %v1374_v9   ;;  %v1912_v8 = vld [vmem:[%s9388_s14 + $0x88] sm:$0xff]  ;;  %v1911_v9 = vld [vmem:[%s9388_s14 + $0x80] sm:$0xff] }
  0x97   : > { %v6589_v14 = vpop.permute.xlu1 %755  ;;  %v6591_v15 = vpop.permute.xlu0 %745 }
  0x99   : > { %1664 = vperm.xlu1 %6143, %v1377_v12   ;;  %1659 = vperm.xlu0 %6142, %v1376_v13  }
  0x9c   : > { %v6599_v18 = vpop.permute.xlu1 %765  ;;  %v6601_v19 = vpop.permute.xlu0 %760 }
  0x9d   : > { %1674 = vperm.xlu1 %6143, %v1379_v16   ;;  %1669 = vperm.xlu0 %6142, %v1378_v17   ;;  %v1914_v16 = vld [vmem:[%s9388_s14 + $0x98] sm:$0xff]  ;;  %v1913_v17 = vld [vmem:[%s9388_s14 + $0x90] sm:$0xff] }
  0xa0   : > { %v6609_v22 = vpop.permute.xlu1 %775  ;;  %v6611_v23 = vpop.permute.xlu0 %770 }
  0xa1   : > { %1684 = vperm.xlu1 %6143, %v1381_v20   ;;  %1679 = vperm.xlu0 %6142, %v1380_v21  }
  0xa4   : > { %v6619_v26 = vpop.permute.xlu1 %793  ;;  %v6621_v27 = vpop.permute.xlu0 %788 }
  0xa5   : > { %1694 = vperm.xlu1 %6143, %v1383_v24   ;;  %1689 = vperm.xlu0 %6142, %v1382_v25   ;;  %v1916_v24 = vld [vmem:[%s9388_s14 + $0xa8] sm:$0xff]  ;;  %v1915_v25 = vld [vmem:[%s9388_s14 + $0xa0] sm:$0xff] }
  0xa8   : > { %v6629_v30 = vpop.permute.xlu1 %803  ;;  %v6631_v31 = vpop.permute.xlu0 %798 }
  0xa9   : > { %1704 = vperm.xlu1 %6143, %v1385_v28   ;;  %1699 = vperm.xlu0 %6142, %v1384_v29  }
  0xac   : > { %v6639_v34 = vpop.permute.xlu1 %813  ;;  %v6641_v35 = vpop.permute.xlu0 %808 }
  0xad   : > { %1714 = vperm.xlu1 %6143, %v1387_v32   ;;  %1709 = vperm.xlu0 %6142, %v1386_v33   ;;  %v1918_v32 = vld [vmem:[%s9388_s14 + $0xb8] sm:$0xff]  ;;  %v1917_v33 = vld [vmem:[%s9388_s14 + $0xb0] sm:$0xff] }
  0xb0   : > { %v6649_v38 = vpop.permute.xlu1 %823  ;;  %v6651_v39 = vpop.permute.xlu0 %818 }
  0xb1   : > { %1724 = vperm.xlu1 %6143, %v1389_v36   ;;  %1719 = vperm.xlu0 %6142, %v1388_v37  }
  0xb4   : > { %v6659_v42 = vpop.permute.xlu1 %975  ;;  %v6661_v43 = vpop.permute.xlu0 %970 }
  0xb5   : > { %3087 = vperm.xlu1 %6143, %v1896_v40   ;;  %3082 = vperm.xlu0 %6142, %v1895_v41   ;;  %v1920_v40 = vld [vmem:[%s9388_s14 + $0xc8] sm:$0xff]  ;;  %v1919_v41 = vld [vmem:[%s9388_s14 + $0xc0] sm:$0xff] }
  0xb8   : > { %v6669_v46 = vpop.permute.xlu1 %985  ;;  %v6671_v47 = vpop.permute.xlu0 %980 }
  0xb9   : > { %3097 = vperm.xlu1 %6143, %v1898_v44   ;;  %3092 = vperm.xlu0 %6142, %v1897_v45  }
  0xbc   : > { %v6679_v50 = vpop.permute.xlu1 %995  ;;  %v6681_v51 = vpop.permute.xlu0 %990 }
  0xbd   : > { %3107 = vperm.xlu1 %6143, %v1900_v48   ;;  %3102 = vperm.xlu0 %6142, %v1899_v49   ;;  %v1922_v48 = vld [vmem:[%s9388_s14 + $0xd8] sm:$0xff]  ;;  %v1921_v49 = vld [vmem:[%s9388_s14 + $0xd0] sm:$0xff] }
  0xc0   : > { %v6689_v54 = vpop.permute.xlu1 %1005  ;;  %v6691_v55 = vpop.permute.xlu0 %1000 }
  0xc1   : > { %3117 = vperm.xlu1 %6143, %v1902_v52   ;;  %3112 = vperm.xlu0 %6142, %v1901_v53  }
  0xc4   : > { %v6699_v58 = vpop.permute.xlu1 %1023  ;;  %v6701_v59 = vpop.permute.xlu0 %1018 }
  0xc5   : > { %3127 = vperm.xlu1 %6143, %v1904_v56   ;;  %3122 = vperm.xlu0 %6142, %v1903_v57   ;;  %v1924_v56 = vld [vmem:[%s9388_s14 + $0xe8] sm:$0xff]  ;;  %v1923_v57 = vld [vmem:[%s9388_s14 + $0xe0] sm:$0xff] }
  0xc8   : > { %v6709_v62 = vpop.permute.xlu1 %1033  ;;  %v6711_v63 = vpop.permute.xlu0 %1028 }
  0xc9   : > { %3137 = vperm.xlu1 %6143, %v1906_v60   ;;  %3132 = vperm.xlu0 %6142, %v1905_v61  }
  0xcc   : > { %v6719_v2 = vpop.permute.xlu1 %1043  ;;  %v6721_v3 = vpop.permute.xlu0 %1038 }
  0xcd   : > { %3147 = vperm.xlu1 %6143, %v1908_v0   ;;  %3142 = vperm.xlu0 %6142, %v1907_v1   ;;  %v1926_v0 = vld [vmem:[%s9388_s14 + $0xf8] sm:$0xff]  ;;  %v1925_v1 = vld [vmem:[%s9388_s14 + $0xf0] sm:$0xff] }
  0xd0   : > { %v6729_v6 = vpop.permute.xlu1 %1053  ;;  %v6731_v7 = vpop.permute.xlu0 %1048 }
  0xd1   : > { %3157 = vperm.xlu1 %6143, %v1910_v4   ;;  %3152 = vperm.xlu0 %6142, %v1909_v5  }
  0xd4   : > { %v6739_v12 = vpop.permute.xlu1 %1241  ;;  %v6741_v13 = vpop.permute.xlu0 %1236 }
  0xd5   : > { %3167 = vperm.xlu1 %6143, %v1912_v8   ;;  %3162 = vperm.xlu0 %6142, %v1911_v9  }
  0xd8   : > { %v6749_v20 = vpop.permute.xlu1 %1251  ;;  %v6751_v21 = vpop.permute.xlu0 %1246 }
  0xd9   : > { %3177 = vperm.xlu1 %6143, %v1914_v16   ;;  %3172 = vperm.xlu0 %6142, %v1913_v17   ;;  %v1928_v17 = vld [vmem:[%s9388_s14 + $0x108] sm:$0xff] }
  0xdc   : > { %v6759_v28 = vpop.permute.xlu1 %1261  ;;  %v6761_v29 = vpop.permute.xlu0 %1256 }
  0xdd   : > { %3187 = vperm.xlu1 %6143, %v1916_v24   ;;  %3182 = vperm.xlu0 %6142, %v1915_v25   ;;  %v1927_v24 = vld [vmem:[%s9388_s14 + $0x100] sm:$0xff] }
  0xe0   : > { %v6769_v36 = vpop.permute.xlu1 %1271  ;;  %v6771_v37 = vpop.permute.xlu0 %1266 }
  0xe1   : > { %3197 = vperm.xlu1 %6143, %v1918_v32   ;;  %3192 = vperm.xlu0 %6142, %v1917_v33  }
  0xe4   : > { %v6779_v44 = vpop.permute.xlu1 %1289  ;;  %v6781_v45 = vpop.permute.xlu0 %1284 }
  0xe5   : > { %3207 = vperm.xlu1 %6143, %v1920_v40   ;;  %3202 = vperm.xlu0 %6142, %v1919_v41  }
  0xe8   : > { %v6789_v52 = vpop.permute.xlu1 %1299  ;;  %v6791_v53 = vpop.permute.xlu0 %1294 }
  0xe9   : > { %3217 = vperm.xlu1 %6143, %v1922_v48   ;;  %3212 = vperm.xlu0 %6142, %v1921_v49  }
  0xec   : > { %v6799_v60 = vpop.permute.xlu1 %1309  ;;  %v6801_v61 = vpop.permute.xlu0 %1304 }
  0xed   : > { %3227 = vperm.xlu1 %6143, %v1924_v56   ;;  %3222 = vperm.xlu0 %6142, %v1923_v57  }
  0xf0   : > { %v6809_v4 = vpop.permute.xlu1 %1319  ;;  %v6811_v5 = vpop.permute.xlu0 %1314 }
  0xf1   : > { %3237 = vperm.xlu1 %6143, %v1926_v0   ;;  %3232 = vperm.xlu0 %6142, %v1925_v1  }
  0xf2   : > { %v5894_v8 = vpop.f32.mrb[0].mxu0 }
  0xf3   : > { %v780_v9 = vmul.f32 %v5894_v8, %v6579_v10  ;;  %v707_v16 = vpop.f32.mrb[1].mxu0 }
  0xf4   : > { %v778_v25 = vmul.f32 %v6581_v11, %v707_v16  ;;  %v5895_v32 = vpop.f32.mrb[2].mxu0  ;;  %v6823_v41 = vpop.permute.xlu1 %1558  ;;  %v1930_v11 = vld [vmem:[%s9388_s14 + $0x118] sm:$0xff] }
  0xf5   : > { %v828_v33 = vadd.f32 %v6631_v31, %v780_v9  ;;  %v781_v40 = vmul.f32 %v5895_v32, %v6589_v14  ;;  %v6825_v48 = vpop.permute.xlu0 %1553  ;;  %v710_v10 = vpop.f32.mrb[3].mxu0  ;;  %3247 = vperm.xlu1 %6143, %v1928_v17   ;;  %3242 = vperm.xlu0 %6142, %v1927_v24   ;;  %v1929_v14 = vld [vmem:[%s9388_s14 + $0x110] sm:$0xff]  ;;  %v1932_v24 = vld [vmem:[%s9388_s14 + $0x128] sm:$0xff] }
  0xf6   : > { %v826_v49 = vadd.f32 %v6621_v27, %v778_v25  ;;  %v779_v57 = vmul.f32 %v6591_v15, %v710_v10 }
  0xf7   : > { %v829_v56 = vadd.f32 %v6629_v30, %v781_v40  ;;  %v836_v31 = vmax.f32 %v828_v33, 0.0 }
  0xf8   : > { %v827_v1 = vadd.f32 %v6619_v26, %v779_v57  ;;  %v6837_v8 = vpop.permute.xlu1 %1568  ;;  %v834_v15 = vmax.f32 %v826_v49, 0.0  ;;  %v1931_v26 = vld [vmem:[%s9388_s14 + $0x120] sm:$0xff] }
  0xf9   : > { %v837_v0 = vmax.f32 %v829_v56, 0.0  ;;  %v6839_v9 = vpop.permute.xlu0 %1563  ;;  %3257 = vperm.xlu1 %6143, %v1930_v11   ;;  %3252 = vperm.xlu0 %6142, %v1929_v14  }
  0xfa   : > { %v5898_v27 = vpop.f32.mrb[4].mxu0  ;;  %v835_v30 = vmax.f32 %v827_v1, 0.0 }
  0xfb   : > { %v784_v16 = vmul.f32 %v5898_v27, %v6611_v23  ;;  %v723_v17 = vpop.f32.mrb[5].mxu0  ;;  %v843_v25 = vpack.c.bf16 %v837_v0, %v836_v31 }
  0xfc   : > { %v782_v32 = vmul.f32 %v6601_v19, %v723_v17  ;;  %v5899_v33 = vpop.f32.mrb[6].mxu0  ;;  %v6851_v49 = vpop.permute.xlu1 %1578  ;;  %v842_v56 = vpack.c.bf16 %v835_v30, %v834_v15  ;;  %v1934_v19 = vld [vmem:[%s9388_s14 + $0x138] sm:$0xff]  ;;  %v1936_v15 = vld [vmem:[%s9388_s14 + $0x148] sm:$0xff]  ;;  %v1935_v30 = vld [vmem:[%s9388_s14 + $0x140] sm:$0xff] }
  0xfd   : > { %v832_v40 = vadd.f32 %v6651_v39, %v784_v16  ;;  %v785_v10 = vmul.f32 %v5899_v33, %v6609_v22  ;;  %v6853_v23 = vpop.permute.xlu0 %1573  ;;  %v726_v57 = vpop.f32.mrb[7].mxu0  ;;  %3267 = vperm.xlu1 %6143, %v1932_v24   ;;  %3262 = vperm.xlu0 %6142, %v1931_v26   ;;  %v1933_v22 = vld [vmem:[%s9388_s14 + $0x130] sm:$0xff]  ;;  %v1938_v26 = vld [vmem:[%s9388_s14 + $0x158] sm:$0xff] }
  0xfe   : > { %v830_v11 = vadd.f32 %v6641_v35, %v782_v32  ;;  %v783_v31 = vmul.f32 %v6599_v18, %v726_v57  ;;  %5900 = vmatprep.subr.bf16.mxu1 %v842_v56  ;;  %v1937_v32 = vld [vmem:[%s9388_s14 + $0x150] sm:$0xff] }
  0xff   : > { %v833_v14 = vadd.f32 %v6649_v38, %v785_v10  ;;  %5901 = vmatpush3.bf16.msra.mxu1 %v842_v56  ;;  %v840_v39 = vmax.f32 %v832_v40, 0.0  ;;  %v1940_v40 = vld [vmem:[%s9388_s14 + $0x168] sm:$0xff]  ;;  %v1939_v10 = vld [vmem:[%s9388_s14 + $0x160] sm:$0xff]  ;;  %v6150_v57 = vld [vmem:[%s9378_s4 + $0x10] sm:$0xff]  }
 0x100   : > { %v831_v1 = vadd.f32 %v6639_v34, %v783_v31  ;;  %5902 = vmatprep.subr.bf16.mxu1 %v843_v25  ;;  %v6865_v35 = vpop.permute.xlu1 %1588  ;;  %v838_v18 = vmax.f32 %v830_v11, 0.0  ;;  %v6149_v56 = vld [vmem:[%s9378_s4 + $0x8] sm:$0xff]   ;;  %v1942_v31 = vld [vmem:[%s9388_s14 + $0x178] sm:$0xff] }
 0x101   : > { %v841_v0 = vmax.f32 %v833_v14, 0.0  ;;  %v6867_v38 = vpop.permute.xlu0 %1583  ;;  %3277 = vperm.xlu1 %6143, %v1934_v19   ;;  %3272 = vperm.xlu0 %6142, %v1933_v22   ;;  %v1941_v19 = vld [vmem:[%s9388_s14 + $0x170] sm:$0xff] }
 0x102   : > { %v839_v27 = vmax.f32 %v831_v1, 0.0  ;;  %v1943_v1 = vld [vmem:[%s9388_s14 + $0x180] sm:$0xff] }
 0x103   : > { %v845_v16 = vpack.c.bf16 %v841_v0, %v840_v39  ;;  %5903 = vmatpush3.bf16.msra.mxu1 %v843_v25  ;;  %v1944_v0 = vld [vmem:[%s9388_s14 + $0x188] sm:$0xff] }
 0x104   : > { %v6875_v34 = vpop.permute.xlu1 %1598  ;;  %v844_v24 = vpack.c.bf16 %v839_v27, %v838_v18  ;;  %v6151_v18 = vld [vmem:[%s9378_s4 + $0x18] sm:$0xff]  }
 0x105   : > { %9404 = vst [vmem:[#allocation5_spill] sm:$0xff] %v6875_v34  ;;  %v6877_v17 = vpop.permute.xlu0 %1593  ;;  %3287 = vperm.xlu1 %6143, %v1936_v15   ;;  %3282 = vperm.xlu0 %6142, %v1935_v30   ;;  %v1946_v30 = vld [vmem:[%s9388_s14 + $0x198] sm:$0xff] }
 0x106   : > { %5904 = vmatprep.subr.bf16.mxu1 %v844_v24 }
 0x107   : > { %5905 = vmatpush3.bf16.msra.mxu1 %v844_v24 }
 0x108   : > { %5906 = vmatprep.subr.bf16.mxu1 %v845_v16  ;;  %v6885_v33 = vpop.permute.xlu1 %1608 }
 0x109   : > { %9405 = vst [vmem:[#allocation6_spill] sm:$0xff] %v6885_v33  ;;  %v6887_v25 = vpop.permute.xlu0 %1603  ;;  %3297 = vperm.xlu1 %6143, %v1938_v26   ;;  %3292 = vperm.xlu0 %6142, %v1937_v32   ;;  %v1948_v32 = vld [vmem:[%s9388_s14 + $0x1a8] sm:$0xff] }
 0x10b   : > { %5907 = vmatpush3.bf16.msra.mxu1 %v845_v16  ;;  %v1945_v16 = vld [vmem:[%s9388_s14 + $0x190] sm:$0xff] }
 0x10c   : > { %v6901_v11 = vpop.permute.xlu1 %1618 }
 0x10d   : > { %9406 = vst [vmem:[#allocation7_spill] sm:$0xff] %v6901_v11  ;;  %v6903_v14 = vpop.permute.xlu0 %1613  ;;  %3307 = vperm.xlu1 %6143, %v1940_v40   ;;  %3302 = vperm.xlu0 %6142, %v1939_v10   ;;  %v1947_v40 = vld [vmem:[%s9388_s14 + $0x1a0] sm:$0xff]  ;;  %v1956_v11 = vld [vmem:[%s9388_s14 + $0x1e8] sm:$0xff] }
 0x10e   : > { %9407 = vst [vmem:[#allocation8_spill] sm:$0xff] %v6903_v14  ;;  %5909 = vmatmul.mubr.msk.bf16.vlgmr.msra.gmra.mrb[0].mxu1 %vm890_vm2, %v6149_v56  ;;  %v1958_v14 = vld [vmem:[%s9388_s14 + $0x1f8] sm:$0xff] }
 0x10f   : > { %5912 = vmatprep.mubr.msk.bf16.mxu1 %vm890_vm2, %v6150_v57  ;;  %v1950_v57 = vld [vmem:[%s9388_s14 + $0x1b8] sm:$0xff] }
 0x110   : > { %v6913_v22 = vpop.permute.xlu1 %1628 }
 0x111   : > { %9408 = vst [vmem:[#allocation9_spill] sm:$0xff] %v6913_v22  ;;  %v6915_v39 = vpop.permute.xlu0 %1623  ;;  %3317 = vperm.xlu1 %6143, %v1942_v31   ;;  %3312 = vperm.xlu0 %6142, %v1941_v19   ;;  %v1949_v31 = vld [vmem:[%s9388_s14 + $0x1b0] sm:$0xff] }
 0x112   : > { %9409 = vst [vmem:[#allocation10_spill] sm:$0xff] %v6915_v39 }
 0x114   : > { %v6926_v27 = vpop.permute.xlu1 %1654 }
 0x115   : > { %v6928_v15 = vpop.permute.xlu0 %1649  ;;  %3327 = vperm.xlu1 %6143, %v1944_v0   ;;  %3322 = vperm.xlu0 %6142, %v1943_v1   ;;  %v1952_v1 = vld [vmem:[%s9388_s14 + $0x1c8] sm:$0xff] }
 0x116   : > { %5913 = vmatmul.mubr.msk.bf16.gmra.mrb[4].mxu1 %vm890_vm2, %v6151_v18  ;;  %v1951_v18 = vld [vmem:[%s9388_s14 + $0x1c0] sm:$0xff] }
 0x118   : > { %v6937_v24 = vpop.permute.xlu1 %1664 }
 0x119   : > { %v6939_v26 = vpop.permute.xlu0 %1659  ;;  %3337 = vperm.xlu1 %6143, %v1946_v30   ;;  %3332 = vperm.xlu0 %6142, %v1945_v16  }
 0x11c   : > { %v6947_v10 = vpop.permute.xlu1 %1674 }
 0x11d   : > { %v6949_v56 = vpop.permute.xlu0 %1669  ;;  %3347 = vperm.xlu1 %6143, %v1948_v32   ;;  %3342 = vperm.xlu0 %6142, %v1947_v40   ;;  %v1954_v32 = vld [vmem:[%s9388_s14 + $0x1d8] sm:$0xff]  ;;  %v1953_v40 = vld [vmem:[%s9388_s14 + $0x1d0] sm:$0xff] }
 0x120   : > { %v6957_v19 = vpop.permute.xlu1 %1684 }
 0x121   : > { %v6959_v0 = vpop.permute.xlu0 %1679  ;;  %3357 = vperm.xlu1 %6143, %v1950_v57   ;;  %3352 = vperm.xlu0 %6142, %v1949_v31  }
 0x124   : > { %v6967_v30 = vpop.permute.xlu1 %1694 }
 0x125   : > { %9410 = vst [vmem:[#allocation11_spill] sm:$0xff] %v6967_v30  ;;  %v6969_v16 = vpop.permute.xlu0 %1689  ;;  %3367 = vperm.xlu1 %6143, %v1952_v1   ;;  %3362 = vperm.xlu0 %6142, %v1951_v18   ;;  %v1955_v1 = vld [vmem:[%s9388_s14 + $0x1e0] sm:$0xff] }
 0x126   : > { %9411 = vst [vmem:[#allocation12_spill] sm:$0xff] %v6969_v16 }
 0x128   : > { %v6977_v57 = vpop.permute.xlu1 %1704 }
 0x129   : > { %9412 = vst [vmem:[#allocation13_spill] sm:$0xff] %v6977_v57  ;;  %v6979_v31 = vpop.permute.xlu0 %1699  ;;  %3377 = vperm.xlu1 %6143, %v1954_v32   ;;  %3372 = vperm.xlu0 %6142, %v1953_v40   ;;  %v1957_v32 = vld [vmem:[%s9388_s14 + $0x1f0] sm:$0xff] }
 0x12a   : > { %9413 = vst [vmem:[#allocation14_spill] sm:$0xff] %v6979_v31 }
 0x12c   : > { %v6987_v18 = vpop.permute.xlu1 %1714 }
 0x12d   : > { %9414 = vst [vmem:[#allocation15_spill] sm:$0xff] %v6987_v18  ;;  %v6989_v22 = vpop.permute.xlu0 %1709  ;;  %3387 = vperm.xlu1 %6143, %v1956_v11   ;;  %3382 = vperm.xlu0 %6142, %v1955_v1   ;;  %v1960_v18 = vld [vmem:[%s9388_s14 + $0x208] sm:$0xff]  ;;  %v1959_v11 = vld [vmem:[%s9388_s14 + $0x200] sm:$0xff] }
 0x12e   : > { %9415 = vst [vmem:[#allocation16_spill] sm:$0xff] %v6989_v22 }
 0x130   : > { %v6997_v40 = vpop.permute.xlu1 %1724 }
 0x131   : > { %9416 = vst [vmem:[#allocation17_spill] sm:$0xff] %v6997_v40  ;;  %v6999_v39 = vpop.permute.xlu0 %1719  ;;  %3397 = vperm.xlu1 %6143, %v1958_v14   ;;  %3392 = vperm.xlu0 %6142, %v1957_v32   ;;  %v1962_v40 = vld [vmem:[%s9388_s14 + $0x218] sm:$0xff]  ;;  %v1961_v14 = vld [vmem:[%s9388_s14 + $0x210] sm:$0xff] }
 0x132   : > { %9417 = vst [vmem:[#allocation18_spill] sm:$0xff] %v6999_v39 }
 0x134   : > { %v7007_v1 = vpop.permute.xlu1 %3087 }
 0x135   : > { %9418 = vst [vmem:[#allocation19_spill] sm:$0xff] %v7007_v1  ;;  %v7009_v22 = vpop.permute.xlu0 %3082  ;;  %3407 = vperm.xlu1 %6143, %v1960_v18   ;;  %3402 = vperm.xlu0 %6142, %v1959_v11   ;;  %v1964_v1 = vld [vmem:[%s9388_s14 + $0x228] sm:$0xff]  ;;  %v1963_v18 = vld [vmem:[%s9388_s14 + $0x220] sm:$0xff] }
 0x136   : > { %9419 = vst [vmem:[#allocation20_spill] sm:$0xff] %v7009_v22 }
 0x138   : > { %v7017_v32 = vpop.permute.xlu1 %3097 }
 0x139   : > { %9420 = vst [vmem:[#allocation21_spill] sm:$0xff] %v7017_v32  ;;  %v7019_v39 = vpop.permute.xlu0 %3092  ;;  %3417 = vperm.xlu1 %6143, %v1962_v40   ;;  %3412 = vperm.xlu0 %6142, %v1961_v14   ;;  %v1966_v32 = vld [vmem:[%s9388_s14 + $0x238] sm:$0xff]  ;;  %v1965_v40 = vld [vmem:[%s9388_s14 + $0x230] sm:$0xff] }
 0x13a   : > { %9421 = vst [vmem:[#allocation22_spill] sm:$0xff] %v7019_v39 }
 0x13c   : > { %v7027_v11 = vpop.permute.xlu1 %3107 }
 0x13d   : > { %9422 = vst [vmem:[#allocation23_spill] sm:$0xff] %v7027_v11  ;;  %v7029_v22 = vpop.permute.xlu0 %3102  ;;  %3427 = vperm.xlu1 %6143, %v1964_v1   ;;  %3422 = vperm.xlu0 %6142, %v1963_v18   ;;  %v1968_v11 = vld [vmem:[%s9388_s14 + $0x248] sm:$0xff]  ;;  %v1967_v1 = vld [vmem:[%s9388_s14 + $0x240] sm:$0xff] }
 0x13e   : > { %9423 = vst [vmem:[#allocation24_spill] sm:$0xff] %v7029_v22 }
 0x140   : > { %v7037_v14 = vpop.permute.xlu1 %3117 }
 0x141   : > { %9424 = vst [vmem:[#allocation25_spill] sm:$0xff] %v7037_v14  ;;  %v7039_v39 = vpop.permute.xlu0 %3112  ;;  %3437 = vperm.xlu1 %6143, %v1966_v32   ;;  %3432 = vperm.xlu0 %6142, %v1965_v40   ;;  %v1970_v14 = vld [vmem:[%s9388_s14 + $0x258] sm:$0xff]  ;;  %v1969_v32 = vld [vmem:[%s9388_s14 + $0x250] sm:$0xff] }
 0x142   : > { %9425 = vst [vmem:[#allocation26_spill] sm:$0xff] %v7039_v39 }
 0x144   : > { %v7047_v18 = vpop.permute.xlu1 %3127 }
 0x145   : > { %9426 = vst [vmem:[#allocation27_spill] sm:$0xff] %v7047_v18  ;;  %v7049_v22 = vpop.permute.xlu0 %3122  ;;  %3447 = vperm.xlu1 %6143, %v1968_v11   ;;  %3442 = vperm.xlu0 %6142, %v1967_v1   ;;  %v1972_v18 = vld [vmem:[%s9388_s14 + $0x268] sm:$0xff]  ;;  %v1971_v11 = vld [vmem:[%s9388_s14 + $0x260] sm:$0xff] }
 0x146   : > { %9427 = vst [vmem:[#allocation28_spill] sm:$0xff] %v7049_v22 }
 0x148   : > { %v7057_v40 = vpop.permute.xlu1 %3137 }
 0x149   : > { %9428 = vst [vmem:[#allocation29_spill] sm:$0xff] %v7057_v40  ;;  %v7059_v39 = vpop.permute.xlu0 %3132  ;;  %3457 = vperm.xlu1 %6143, %v1970_v14   ;;  %3452 = vperm.xlu0 %6142, %v1969_v32   ;;  %v1974_v40 = vld [vmem:[%s9388_s14 + $0x278] sm:$0xff]  ;;  %v1973_v14 = vld [vmem:[%s9388_s14 + $0x270] sm:$0xff] }
 0x14a   : > { %9429 = vst [vmem:[#allocation30_spill] sm:$0xff] %v7059_v39 }
 0x14c   : > { %v7067_v1 = vpop.permute.xlu1 %3147 }
 0x14d   : > { %9430 = vst [vmem:[#allocation31_spill] sm:$0xff] %v7067_v1  ;;  %v7069_v22 = vpop.permute.xlu0 %3142  ;;  %3467 = vperm.xlu1 %6143, %v1972_v18   ;;  %3462 = vperm.xlu0 %6142, %v1971_v11   ;;  %v1976_v1 = vld [vmem:[%s9388_s14 + $0x288] sm:$0xff]  ;;  %v1975_v18 = vld [vmem:[%s9388_s14 + $0x280] sm:$0xff] }
 0x14e   : > { %9431 = vst [vmem:[#allocation32_spill] sm:$0xff] %v7069_v22 }
 0x150   : > { %v7077_v32 = vpop.permute.xlu1 %3157 }
 0x151   : > { %9432 = vst [vmem:[#allocation33_spill] sm:$0xff] %v7077_v32  ;;  %v7079_v39 = vpop.permute.xlu0 %3152  ;;  %3477 = vperm.xlu1 %6143, %v1974_v40   ;;  %3472 = vperm.xlu0 %6142, %v1973_v14   ;;  %v1978_v32 = vld [vmem:[%s9388_s14 + $0x298] sm:$0xff]  ;;  %v1977_v40 = vld [vmem:[%s9388_s14 + $0x290] sm:$0xff] }
 0x152   : > { %9433 = vst [vmem:[#allocation34_spill] sm:$0xff] %v7079_v39 }
 0x154   : > { %v7087_v11 = vpop.permute.xlu1 %3167 }
 0x155   : > { %9434 = vst [vmem:[#allocation35_spill] sm:$0xff] %v7087_v11  ;;  %v7089_v22 = vpop.permute.xlu0 %3162  ;;  %3487 = vperm.xlu1 %6143, %v1976_v1   ;;  %3482 = vperm.xlu0 %6142, %v1975_v18   ;;  %v1980_v11 = vld [vmem:[%s9388_s14 + $0x2a8] sm:$0xff]  ;;  %v1979_v1 = vld [vmem:[%s9388_s14 + $0x2a0] sm:$0xff] }
 0x156   : > { %9435 = vst [vmem:[#allocation36_spill] sm:$0xff] %v7089_v22 }
 0x158   : > { %v7097_v14 = vpop.permute.xlu1 %3177 }
 0x159   : > { %9436 = vst [vmem:[#allocation37_spill] sm:$0xff] %v7097_v14  ;;  %v7099_v39 = vpop.permute.xlu0 %3172  ;;  %3497 = vperm.xlu1 %6143, %v1978_v32   ;;  %3492 = vperm.xlu0 %6142, %v1977_v40   ;;  %v1982_v14 = vld [vmem:[%s9388_s14 + $0x2b8] sm:$0xff]  ;;  %v1981_v32 = vld [vmem:[%s9388_s14 + $0x2b0] sm:$0xff] }
 0x15a   : > { %9437 = vst [vmem:[#allocation38_spill] sm:$0xff] %v7099_v39 }
 0x15c   : > { %v7107_v18 = vpop.permute.xlu1 %3187 }
 0x15d   : > { %9438 = vst [vmem:[#allocation39_spill] sm:$0xff] %v7107_v18  ;;  %v7109_v22 = vpop.permute.xlu0 %3182  ;;  %3507 = vperm.xlu1 %6143, %v1980_v11   ;;  %3502 = vperm.xlu0 %6142, %v1979_v1   ;;  %v1984_v18 = vld [vmem:[%s9388_s14 + $0x2c8] sm:$0xff]  ;;  %v1983_v11 = vld [vmem:[%s9388_s14 + $0x2c0] sm:$0xff] }
 0x15e   : > { %9439 = vst [vmem:[#allocation40_spill] sm:$0xff] %v7109_v22 }
 0x160   : > { %v7117_v40 = vpop.permute.xlu1 %3197 }
 0x161   : > { %9440 = vst [vmem:[#allocation41_spill] sm:$0xff] %v7117_v40  ;;  %v7119_v39 = vpop.permute.xlu0 %3192  ;;  %3517 = vperm.xlu1 %6143, %v1982_v14   ;;  %3512 = vperm.xlu0 %6142, %v1981_v32   ;;  %v1986_v40 = vld [vmem:[%s9388_s14 + $0x2d8] sm:$0xff]  ;;  %v1985_v14 = vld [vmem:[%s9388_s14 + $0x2d0] sm:$0xff] }
 0x162   : > { %9441 = vst [vmem:[#allocation42_spill] sm:$0xff] %v7119_v39 }
 0x164   : > { %v7127_v1 = vpop.permute.xlu1 %3207 }
 0x165   : > { %9442 = vst [vmem:[#allocation43_spill] sm:$0xff] %v7127_v1  ;;  %v7129_v22 = vpop.permute.xlu0 %3202  ;;  %3527 = vperm.xlu1 %6143, %v1984_v18   ;;  %3522 = vperm.xlu0 %6142, %v1983_v11   ;;  %v1988_v1 = vld [vmem:[%s9388_s14 + $0x2e8] sm:$0xff]  ;;  %v1987_v18 = vld [vmem:[%s9388_s14 + $0x2e0] sm:$0xff] }
 0x166   : > { %9443 = vst [vmem:[#allocation44_spill] sm:$0xff] %v7129_v22 }
 0x168   : > { %v7137_v32 = vpop.permute.xlu1 %3217 }
 0x169   : > { %9444 = vst [vmem:[#allocation45_spill] sm:$0xff] %v7137_v32  ;;  %v7139_v39 = vpop.permute.xlu0 %3212  ;;  %3537 = vperm.xlu1 %6143, %v1986_v40   ;;  %3532 = vperm.xlu0 %6142, %v1985_v14   ;;  %v1990_v32 = vld [vmem:[%s9388_s14 + $0x2f8] sm:$0xff]  ;;  %v1989_v40 = vld [vmem:[%s9388_s14 + $0x2f0] sm:$0xff] }
 0x16a   : > { %9445 = vst [vmem:[#allocation46_spill] sm:$0xff] %v7139_v39 }
 0x16c   : > { %v7147_v11 = vpop.permute.xlu1 %3227 }
 0x16d   : > { %9446 = vst [vmem:[#allocation47_spill] sm:$0xff] %v7147_v11  ;;  %v7149_v22 = vpop.permute.xlu0 %3222  ;;  %3547 = vperm.xlu1 %6143, %v1988_v1   ;;  %3542 = vperm.xlu0 %6142, %v1987_v18   ;;  %v1992_v11 = vld [vmem:[%s9388_s14 + $0x308] sm:$0xff]  ;;  %v1991_v1 = vld [vmem:[%s9388_s14 + $0x300] sm:$0xff] }
 0x16e   : > { %9447 = vst [vmem:[#allocation48_spill] sm:$0xff] %v7149_v22 }
 0x170   : > { %v7157_v14 = vpop.permute.xlu1 %3237 }
 0x171   : > { %9448 = vst [vmem:[#allocation49_spill] sm:$0xff] %v7157_v14  ;;  %v7159_v39 = vpop.permute.xlu0 %3232  ;;  %3557 = vperm.xlu1 %6143, %v1990_v32   ;;  %3552 = vperm.xlu0 %6142, %v1989_v40   ;;  %v1994_v14 = vld [vmem:[%s9388_s14 + $0x318] sm:$0xff]  ;;  %v1993_v32 = vld [vmem:[%s9388_s14 + $0x310] sm:$0xff] }
 0x172   : > { %9449 = vst [vmem:[#allocation50_spill] sm:$0xff] %v7159_v39 }
 0x174   : > { %v7167_v18 = vpop.permute.xlu1 %3247 }
 0x175   : > { %9450 = vst [vmem:[#allocation51_spill] sm:$0xff] %v7167_v18  ;;  %v7169_v22 = vpop.permute.xlu0 %3242  ;;  %3567 = vperm.xlu1 %6143, %v1992_v11   ;;  %3562 = vperm.xlu0 %6142, %v1991_v1   ;;  %v1996_v18 = vld [vmem:[%s9388_s14 + $0x328] sm:$0xff]  ;;  %v1995_v11 = vld [vmem:[%s9388_s14 + $0x320] sm:$0xff] }
 0x176   : > { %9451 = vst [vmem:[#allocation52_spill] sm:$0xff] %v7169_v22  ;;  %v6152_v1 = vld [vmem:[%s9381_s7] sm:$0xff]  }
 0x177   : > { %5924 = vmatprep.mubr.msk.bf16.mxu0 %vm890_vm2, %v6152_v1  ;;  %v2000_v1 = vld [vmem:[%s9388_s14 + $0x348] sm:$0xff] }
 0x178   : > { %v7177_v40 = vpop.permute.xlu1 %3257 }
 0x179   : > { %9452 = vst [vmem:[#allocation53_spill] sm:$0xff] %v7177_v40  ;;  %v7179_v39 = vpop.permute.xlu0 %3252  ;;  %3577 = vperm.xlu1 %6143, %v1994_v14   ;;  %3572 = vperm.xlu0 %6142, %v1993_v32   ;;  %v1998_v14 = vld [vmem:[%s9388_s14 + $0x338] sm:$0xff]  ;;  %v1997_v32 = vld [vmem:[%s9388_s14 + $0x330] sm:$0xff] }
 0x17a   : > { %9453 = vst [vmem:[#allocation54_spill] sm:$0xff] %v7179_v39 }
 0x17c   : > { %v7190_v22 = vpop.permute.xlu1 %3267 }
 0x17d   : > { %9454 = vst [vmem:[#allocation55_spill] sm:$0xff] %v7190_v22  ;;  %v7192_v30 = vpop.permute.xlu0 %3262  ;;  %3587 = vperm.xlu1 %6143, %v1996_v18   ;;  %3582 = vperm.xlu0 %6142, %v1995_v11   ;;  %v1999_v18 = vld [vmem:[%s9388_s14 + $0x340] sm:$0xff] }
 0x17e   : > { %9455 = vst [vmem:[#allocation56_spill] sm:$0xff] %v7192_v30 }
 0x180   : > { %v7201_v40 = vpop.permute.xlu1 %3277 }
 0x181   : > { %9456 = vst [vmem:[#allocation57_spill] sm:$0xff] %v7201_v40  ;;  %v7203_v39 = vpop.permute.xlu0 %3272  ;;  %3597 = vperm.xlu1 %6143, %v1998_v14   ;;  %3592 = vperm.xlu0 %6142, %v1997_v32   ;;  %v2002_v40 = vld [vmem:[%s9388_s14 + $0x358] sm:$0xff]  ;;  %v2001_v14 = vld [vmem:[%s9388_s14 + $0x350] sm:$0xff] }
 0x182   : > { %9457 = vst [vmem:[#allocation58_spill] sm:$0xff] %v7203_v39  ;;  %v2032_v39 = vld [vmem:[%s9389_s15 + $0x48] sm:$0xff] }
 0x184   : > { %v7211_v11 = vpop.permute.xlu1 %3287 }
 0x185   : > { %9458 = vst [vmem:[#allocation59_spill] sm:$0xff] %v7211_v11  ;;  %v7213_v22 = vpop.permute.xlu0 %3282  ;;  %3607 = vperm.xlu1 %6143, %v2000_v1   ;;  %3602 = vperm.xlu0 %6142, %v1999_v18   ;;  %v2004_v11 = vld [vmem:[%s9388_s14 + $0x368] sm:$0xff]  ;;  %v2003_v1 = vld [vmem:[%s9388_s14 + $0x360] sm:$0xff] }
 0x186   : > { %9459 = vst [vmem:[#allocation60_spill] sm:$0xff] %v7213_v22 }
 0x188   : > { %v7221_v32 = vpop.permute.xlu1 %3297 }
 0x189   : > { %9460 = vst [vmem:[#allocation61_spill] sm:$0xff] %v7221_v32  ;;  %v7223_v30 = vpop.permute.xlu0 %3292  ;;  %3617 = vperm.xlu1 %6143, %v2002_v40   ;;  %3612 = vperm.xlu0 %6142, %v2001_v14   ;;  %v2006_v32 = vld [vmem:[%s9388_s14 + $0x378] sm:$0xff]  ;;  %v2005_v40 = vld [vmem:[%s9388_s14 + $0x370] sm:$0xff] }
 0x18a   : > { %9461 = vst [vmem:[#allocation62_spill] sm:$0xff] %v7223_v30 }
 0x18c   : > { %v7231_v18 = vpop.permute.xlu1 %3307 }
 0x18d   : > { %9462 = vst [vmem:[#allocation63_spill] sm:$0xff] %v7231_v18  ;;  %v7233_v22 = vpop.permute.xlu0 %3302  ;;  %3627 = vperm.xlu1 %6143, %v2004_v11   ;;  %3622 = vperm.xlu0 %6142, %v2003_v1   ;;  %v2008_v18 = vld [vmem:[%s9388_s14 + $0x388] sm:$0xff]  ;;  %v2007_v11 = vld [vmem:[%s9388_s14 + $0x380] sm:$0xff] }
 0x18e   : > { %9463 = vst [vmem:[#allocation64_spill] sm:$0xff] %v7233_v22 }
 0x190   : > { %v7241_v14 = vpop.permute.xlu1 %3317 }
 0x191   : > { %9464 = vst [vmem:[#allocation65_spill] sm:$0xff] %v7241_v14  ;;  %v7243_v30 = vpop.permute.xlu0 %3312  ;;  %3637 = vperm.xlu1 %6143, %v2006_v32   ;;  %3632 = vperm.xlu0 %6142, %v2005_v40   ;;  %v2010_v14 = vld [vmem:[%s9388_s14 + $0x398] sm:$0xff]  ;;  %v2009_v32 = vld [vmem:[%s9388_s14 + $0x390] sm:$0xff] }
 0x192   : > { %9465 = vst [vmem:[#allocation66_spill] sm:$0xff] %v7243_v30 }
 0x194   : > { %v7251_v1 = vpop.permute.xlu1 %3327 }
 0x195   : > { %9466 = vst [vmem:[#allocation67_spill] sm:$0xff] %v7251_v1  ;;  %v7253_v22 = vpop.permute.xlu0 %3322  ;;  %3647 = vperm.xlu1 %6143, %v2008_v18   ;;  %3642 = vperm.xlu0 %6142, %v2007_v11   ;;  %v2012_v1 = vld [vmem:[%s9388_s14 + $0x3a8] sm:$0xff]  ;;  %v2011_v18 = vld [vmem:[%s9388_s14 + $0x3a0] sm:$0xff] }
 0x196   : > { %9467 = vst [vmem:[#allocation68_spill] sm:$0xff] %v7253_v22 }
 0x198   : > { %v7261_v40 = vpop.permute.xlu1 %3337 }
 0x199   : > { %9468 = vst [vmem:[#allocation69_spill] sm:$0xff] %v7261_v40  ;;  %v7263_v30 = vpop.permute.xlu0 %3332  ;;  %3657 = vperm.xlu1 %6143, %v2010_v14   ;;  %3652 = vperm.xlu0 %6142, %v2009_v32   ;;  %v2014_v40 = vld [vmem:[%s9388_s14 + $0x3b8] sm:$0xff]  ;;  %v2013_v14 = vld [vmem:[%s9388_s14 + $0x3b0] sm:$0xff] }
 0x19a   : > { %9469 = vst [vmem:[#allocation70_spill] sm:$0xff] %v7263_v30 }
 0x19c   : > { %v7271_v11 = vpop.permute.xlu1 %3347 }
 0x19d   : > { %9470 = vst [vmem:[#allocation71_spill] sm:$0xff] %v7271_v11  ;;  %v7273_v22 = vpop.permute.xlu0 %3342  ;;  %3667 = vperm.xlu1 %6143, %v2012_v1   ;;  %3662 = vperm.xlu0 %6142, %v2011_v18   ;;  %v2016_v11 = vld [vmem:[%s9388_s14 + $0x3c8] sm:$0xff]  ;;  %v2015_v1 = vld [vmem:[%s9388_s14 + $0x3c0] sm:$0xff] }
 0x19e   : > { %9471 = vst [vmem:[#allocation72_spill] sm:$0xff] %v7273_v22 }
 0x1a0   : > { %v7281_v32 = vpop.permute.xlu1 %3357 }
 0x1a1   : > { %9472 = vst [vmem:[#allocation73_spill] sm:$0xff] %v7281_v32  ;;  %v7283_v30 = vpop.permute.xlu0 %3352  ;;  %3677 = vperm.xlu1 %6143, %v2014_v40   ;;  %3672 = vperm.xlu0 %6142, %v2013_v14   ;;  %v2018_v32 = vld [vmem:[%s9388_s14 + $0x3d8] sm:$0xff]  ;;  %v2017_v40 = vld [vmem:[%s9388_s14 + $0x3d0] sm:$0xff] }
 0x1a2   : > { %9473 = vst [vmem:[#allocation74_spill] sm:$0xff] %v7283_v30 }
 0x1a4   : > { %v7291_v18 = vpop.permute.xlu1 %3367 }
 0x1a5   : > { %9474 = vst [vmem:[#allocation75_spill] sm:$0xff] %v7291_v18  ;;  %v7293_v22 = vpop.permute.xlu0 %3362  ;;  %3687 = vperm.xlu1 %6143, %v2016_v11   ;;  %3682 = vperm.xlu0 %6142, %v2015_v1   ;;  %v2020_v18 = vld [vmem:[%s9388_s14 + $0x3e8] sm:$0xff]  ;;  %v2019_v11 = vld [vmem:[%s9388_s14 + $0x3e0] sm:$0xff] }
 0x1a6   : > { %9475 = vst [vmem:[#allocation76_spill] sm:$0xff] %v7293_v22 }
 0x1a8   : > { %v7301_v14 = vpop.permute.xlu1 %3377 }
 0x1a9   : > { %9476 = vst [vmem:[#allocation77_spill] sm:$0xff] %v7301_v14  ;;  %v7303_v30 = vpop.permute.xlu0 %3372  ;;  %3697 = vperm.xlu1 %6143, %v2018_v32   ;;  %3692 = vperm.xlu0 %6142, %v2017_v40   ;;  %v2022_v14 = vld [vmem:[%s9388_s14 + $0x3f8] sm:$0xff]  ;;  %v2021_v32 = vld [vmem:[%s9388_s14 + $0x3f0] sm:$0xff] }
 0x1aa   : > { %9477 = vst [vmem:[#allocation78_spill] sm:$0xff] %v7303_v30 }
 0x1ac   : > { %v7311_v1 = vpop.permute.xlu1 %3387 }
 0x1ad   : > { %9478 = vst [vmem:[#allocation79_spill] sm:$0xff] %v7311_v1  ;;  %v7313_v22 = vpop.permute.xlu0 %3382  ;;  %3707 = vperm.xlu1 %6143, %v2020_v18   ;;  %3702 = vperm.xlu0 %6142, %v2019_v11   ;;  %v2024_v1 = vld [vmem:[%s9389_s15 + $0x8] sm:$0xff]  ;;  %v2023_v18 = vld [vmem:[%s9389_s15] sm:$0xff] }
 0x1ae   : > { %9479 = vst [vmem:[#allocation80_spill] sm:$0xff] %v7313_v22 }
 0x1b0   : > { %v7321_v40 = vpop.permute.xlu1 %3397 }
 0x1b1   : > { %9480 = vst [vmem:[#allocation81_spill] sm:$0xff] %v7321_v40  ;;  %v7323_v30 = vpop.permute.xlu0 %3392  ;;  %3717 = vperm.xlu1 %6143, %v2022_v14   ;;  %3712 = vperm.xlu0 %6142, %v2021_v32   ;;  %v2026_v40 = vld [vmem:[%s9389_s15 + $0x18] sm:$0xff]  ;;  %v2025_v14 = vld [vmem:[%s9389_s15 + $0x10] sm:$0xff] }
 0x1b2   : > { %9481 = vst [vmem:[#allocation82_spill] sm:$0xff] %v7323_v30 }
 0x1b4   : > { %v7331_v11 = vpop.permute.xlu1 %3407 }
 0x1b5   : > { %9482 = vst [vmem:[#allocation83_spill] sm:$0xff] %v7331_v11  ;;  %v7333_v22 = vpop.permute.xlu0 %3402  ;;  %3855 = vperm.xlu1 %6143, %v2024_v1   ;;  %3850 = vperm.xlu0 %6142, %v2023_v18   ;;  %v2028_v11 = vld [vmem:[%s9389_s15 + $0x28] sm:$0xff]  ;;  %v2027_v1 = vld [vmem:[%s9389_s15 + $0x20] sm:$0xff] }
 0x1b6   : > { %9483 = vst [vmem:[#allocation84_spill] sm:$0xff] %v7333_v22 }
 0x1b8   : > { %v7341_v32 = vpop.permute.xlu1 %3417 }
 0x1b9   : > { %9484 = vst [vmem:[#allocation85_spill] sm:$0xff] %v7341_v32  ;;  %v7343_v30 = vpop.permute.xlu0 %3412  ;;  %3865 = vperm.xlu1 %6143, %v2026_v40   ;;  %3860 = vperm.xlu0 %6142, %v2025_v14   ;;  %v2030_v32 = vld [vmem:[%s9389_s15 + $0x38] sm:$0xff]  ;;  %v2029_v40 = vld [vmem:[%s9389_s15 + $0x30] sm:$0xff] }
 0x1ba   : > { %9485 = vst [vmem:[#allocation86_spill] sm:$0xff] %v7343_v30 }
 0x1bc   : > { %v7351_v18 = vpop.permute.xlu1 %3427 }
 0x1bd   : > { %9486 = vst [vmem:[#allocation87_spill] sm:$0xff] %v7351_v18  ;;  %v7353_v22 = vpop.permute.xlu0 %3422  ;;  %3875 = vperm.xlu1 %6143, %v2028_v11   ;;  %3870 = vperm.xlu0 %6142, %v2027_v1   ;;  %v2031_v11 = vld [vmem:[%s9389_s15 + $0x40] sm:$0xff] }
 0x1be   : > { %9487 = vst [vmem:[#allocation88_spill] sm:$0xff] %v7353_v22 }
 0x1c0   : > { %v7361_v14 = vpop.permute.xlu1 %3437 }
 0x1c1   : > { %9488 = vst [vmem:[#allocation89_spill] sm:$0xff] %v7361_v14  ;;  %v7363_v30 = vpop.permute.xlu0 %3432  ;;  %3885 = vperm.xlu1 %6143, %v2030_v32   ;;  %3880 = vperm.xlu0 %6142, %v2029_v40   ;;  %v2034_v14 = vld [vmem:[%s9389_s15 + $0x58] sm:$0xff]  ;;  %v2033_v32 = vld [vmem:[%s9389_s15 + $0x50] sm:$0xff] }
 0x1c2   : > { %9489 = vst [vmem:[#allocation90_spill] sm:$0xff] %v7363_v30 }
 0x1c4   : > { %v7371_v1 = vpop.permute.xlu1 %3447 }
 0x1c5   : > { %9490 = vst [vmem:[#allocation91_spill] sm:$0xff] %v7371_v1  ;;  %v7373_v18 = vpop.permute.xlu0 %3442  ;;  %3895 = vperm.xlu1 %6143, %v2032_v39   ;;  %3890 = vperm.xlu0 %6142, %v2031_v11   ;;  %v2036_v1 = vld [vmem:[%s9389_s15 + $0x68] sm:$0xff]  ;;  %v2035_v39 = vld [vmem:[%s9389_s15 + $0x60] sm:$0xff] }
 0x1c6   : > { %9491 = vst [vmem:[#allocation92_spill] sm:$0xff] %v7373_v18 }
 0x1c8   : > { %v7381_v40 = vpop.permute.xlu1 %3457 }
 0x1c9   : > { %9492 = vst [vmem:[#allocation93_spill] sm:$0xff] %v7381_v40  ;;  %v7383_v22 = vpop.permute.xlu0 %3452  ;;  %3905 = vperm.xlu1 %6143, %v2034_v14   ;;  %3900 = vperm.xlu0 %6142, %v2033_v32   ;;  %v2038_v40 = vld [vmem:[%s9389_s15 + $0x78] sm:$0xff]  ;;  %v2037_v14 = vld [vmem:[%s9389_s15 + $0x70] sm:$0xff] }
 0x1ca   : > { %9493 = vst [vmem:[#allocation94_spill] sm:$0xff] %v7383_v22 }
 0x1cc   : > { %v7391_v11 = vpop.permute.xlu1 %3467 }
 0x1cd   : > { %9494 = vst [vmem:[#allocation95_spill] sm:$0xff] %v7391_v11  ;;  %v7393_v18 = vpop.permute.xlu0 %3462  ;;  %3915 = vperm.xlu1 %6143, %v2036_v1   ;;  %3910 = vperm.xlu0 %6142, %v2035_v39   ;;  %v2040_v11 = vld [vmem:[%s9389_s15 + $0x88] sm:$0xff]  ;;  %v2039_v1 = vld [vmem:[%s9389_s15 + $0x80] sm:$0xff] }
 0x1ce   : > { %9495 = vst [vmem:[#allocation96_spill] sm:$0xff] %v7393_v18 }
 0x1d0   : > { %v7401_v32 = vpop.permute.xlu1 %3477 }
 0x1d1   : > { %9496 = vst [vmem:[#allocation97_spill] sm:$0xff] %v7401_v32  ;;  %v7403_v22 = vpop.permute.xlu0 %3472  ;;  %3925 = vperm.xlu1 %6143, %v2038_v40   ;;  %3920 = vperm.xlu0 %6142, %v2037_v14   ;;  %v2042_v32 = vld [vmem:[%s9389_s15 + $0x98] sm:$0xff]  ;;  %v2041_v40 = vld [vmem:[%s9389_s15 + $0x90] sm:$0xff] }
 0x1d2   : > { %9497 = vst [vmem:[#allocation98_spill] sm:$0xff] %v7403_v22 }
 0x1d4   : > { %v7411_v39 = vpop.permute.xlu1 %3487 }
 0x1d5   : > { %9498 = vst [vmem:[#allocation99_spill] sm:$0xff] %v7411_v39  ;;  %v7413_v18 = vpop.permute.xlu0 %3482  ;;  %3935 = vperm.xlu1 %6143, %v2040_v11   ;;  %3930 = vperm.xlu0 %6142, %v2039_v1   ;;  %v2044_v39 = vld [vmem:[%s9389_s15 + $0xa8] sm:$0xff]  ;;  %v2043_v11 = vld [vmem:[%s9389_s15 + $0xa0] sm:$0xff] }
 0x1d6   : > { %9499 = vst [vmem:[#allocation100_spill] sm:$0xff] %v7413_v18 }
 0x1d8   : > { %v7421_v14 = vpop.permute.xlu1 %3497 }
 0x1d9   : > { %9500 = vst [vmem:[#allocation101_spill] sm:$0xff] %v7421_v14  ;;  %v7423_v22 = vpop.permute.xlu0 %3492  ;;  %3945 = vperm.xlu1 %6143, %v2042_v32   ;;  %3940 = vperm.xlu0 %6142, %v2041_v40   ;;  %v2046_v14 = vld [vmem:[%s9389_s15 + $0xb8] sm:$0xff]  ;;  %v2045_v32 = vld [vmem:[%s9389_s15 + $0xb0] sm:$0xff] }
 0x1da   : > { %9501 = vst [vmem:[#allocation102_spill] sm:$0xff] %v7423_v22 }
 0x1dc   : > { %v7431_v1 = vpop.permute.xlu1 %3507 }
 0x1dd   : > { %9502 = vst [vmem:[#allocation103_spill] sm:$0xff] %v7431_v1  ;;  %v7433_v18 = vpop.permute.xlu0 %3502  ;;  %3955 = vperm.xlu1 %6143, %v2044_v39   ;;  %3950 = vperm.xlu0 %6142, %v2043_v11   ;;  %v2048_v39 = vld [vmem:[%s9389_s15 + $0xc8] sm:$0xff]  ;;  %v2047_v11 = vld [vmem:[%s9389_s15 + $0xc0] sm:$0xff] }
 0x1de   : > { %9503 = vst [vmem:[#allocation104_spill] sm:$0xff] %v7433_v18 }
 0x1e0   : > { %v7441_v40 = vpop.permute.xlu1 %3517 }
 0x1e1   : > { %9504 = vst [vmem:[#allocation105_spill] sm:$0xff] %v7441_v40  ;;  %v7443_v22 = vpop.permute.xlu0 %3512  ;;  %v5910_v30 = vpop.f32.mrb[0].mxu1  ;;  %3965 = vperm.xlu1 %6143, %v2046_v14   ;;  %3960 = vperm.xlu0 %6142, %v2045_v32  }
 0x1e2   : > { %9505 = vst [vmem:[#allocation106_spill] sm:$0xff] %v7443_v22  ;;  %v1010_v1 = vmul.f32 %v5910_v30, %v6671_v47  ;;  %v937_v18 = vpop.f32.mrb[1].mxu1 }
 0x1e3   : > { %v1008_v57 = vmul.f32 %v6661_v43, %v937_v18  ;;  %v5911_v40 = vpop.f32.mrb[2].mxu1  ;;  %v2050_v43 = vld [vmem:[%s9389_s15 + $0xd8] sm:$0xff] }
 0x1e4   : > { %v1058_v22 = vadd.f32 %v6711_v63, %v1010_v1  ;;  %v1011_v14 = vmul.f32 %v5911_v40, %v6669_v46  ;;  %v940_v32 = vpop.f32.mrb[3].mxu1  ;;  %v7457_v34 = vpop.permute.xlu1 %3527  ;;  %v2049_v46 = vld [vmem:[%s9389_s15 + $0xd0] sm:$0xff] }
 0x1e5   : > { %v1056_v47 = vadd.f32 %v6701_v59, %v1008_v57  ;;  %v1009_v30 = vmul.f32 %v6659_v42, %v940_v32  ;;  %9506 = vst [vmem:[#allocation107_spill] sm:$0xff] %v7457_v34  ;;  %3975 = vperm.xlu1 %6143, %v2048_v39   ;;  %3970 = vperm.xlu0 %6142, %v2047_v11   ;;  %v7460_v31 = vpop.permute.xlu0 %3522  ;;  %v2052_v11 = vld [vmem:[%s9389_s15 + $0xe8] sm:$0xff] }
 0x1e6   : > { %v1066_v16 = vmax.f32 %v1058_v22, 0.0  ;;  %v1059_v33 = vadd.f32 %v6709_v62, %v1011_v14  ;;  %9507 = vst [vmem:[#allocation108_spill] sm:$0xff] %v7460_v31 }
 0x1e7   : > { %v1064_v42 = vmax.f32 %v1056_v47, 0.0  ;;  %v1057_v59 = vadd.f32 %v6699_v58, %v1009_v30 }
 0x1e8   : > { %v5779_v62 = vpack.c.bf16 %v1066_v16, %v1066_v16  ;;  %v1067_v63 = vmax.f32 %v1059_v33, 0.0  ;;  %v7484_v14 = vpop.permute.xlu1 %3537 }
 0x1e9   : > { %v5777_v22 = vpack.c.bf16 %v1064_v42, %v1064_v42  ;;  %v1065_v57 = vmax.f32 %v1057_v59, 0.0  ;;  %v5914_v18 = vpop.f32.mrb[4].mxu1  ;;  %3985 = vperm.xlu1 %6143, %v2050_v43   ;;  %3980 = vperm.xlu0 %6142, %v2049_v46   ;;  %9508 = vst [vmem:[#allocation109_spill] sm:$0xff] %v7484_v14  ;;  %v7492_v43 = vpop.permute.xlu0 %3532 }
 0x1ea   : > { %1107 = vst.msk [vmem:[%s7473_s21 + $0x8] sm:$0xf] %vm1104_vm3, %v5779_v62  ;;  %v5780_v1 = vpack.c.bf16 %v1067_v63, %v1067_v63  ;;  %v1014_v40 = vmul.f32 %v5914_v18, %v6691_v55  ;;  %v953_v39 = vpop.f32.mrb[5].mxu1  ;;  %v1073_v58 = vpack.c.bf16 %v1067_v63, %v1066_v16  ;;  %v2051_v55 = vld [vmem:[%s9389_s15 + $0xe0] sm:$0xff]  ;;  %9509 = vst [vmem:[#allocation110_spill] sm:$0xff] %v7492_v43 }
 0x1eb   : > { %1105 = vst.msk [vmem:[%s7473_s21] sm:$0xf] %vm1104_vm3, %v5777_v22  ;;  %v5778_v33 = vpack.c.bf16 %v1065_v57, %v1065_v57  ;;  %v1012_v32 = vmul.f32 %v6681_v51, %v953_v39  ;;  %v5915_v47 = vpop.f32.mrb[6].mxu1  ;;  %v1072_v30 = vpack.c.bf16 %v1065_v57, %v1064_v42 }
 0x1ec   : > { %1108 = vst.msk [vmem:[%s7473_s21 + $0xc] sm:$0xf] %vm1104_vm3, %v5780_v1  ;;  %v1062_v46 = vadd.f32 %v6731_v7, %v1014_v40  ;;  %v1015_v16 = vmul.f32 %v5915_v47, %v6689_v54  ;;  %v956_v59 = vpop.f32.mrb[7].mxu1  ;;  %v2054_v7 = vld [vmem:[%s9389_s15 + $0xf8] sm:$0xff]  ;;  %v7508_v1 = vpop.permute.xlu1 %3547  ;;  %v2055_v47 = vld [vmem:[%s9389_s15 + $0x100] sm:$0xff] }
 0x1ed   : > { %1106 = vst.msk [vmem:[%s7473_s21 + $0x4] sm:$0xf] %vm1104_vm3, %v5778_v33  ;;  %v1060_v62 = vadd.f32 %v6721_v3, %v1012_v32  ;;  %v1013_v51 = vmul.f32 %v6679_v50, %v956_v59  ;;  %5916 = vmatprep.subr.bf16.mxu0 %v1072_v30  ;;  %3995 = vperm.xlu1 %6143, %v2052_v11   ;;  %v2053_v50 = vld [vmem:[%s9389_s15 + $0xf0] sm:$0xff]  ;;  %9510 = vst [vmem:[#allocation111_spill] sm:$0xff] %v7508_v1  ;;  %v7512_v39 = vpop.permute.xlu0 %3542  ;;  %v2060_v59 = vld [vmem:[%s9389_s15 + $0x128] sm:$0xff] }
 0x1ee   : > { %v1070_v42 = vmax.f32 %v1062_v46, 0.0  ;;  %v1063_v63 = vadd.f32 %v6729_v6, %v1015_v16  ;;  %3990 = vperm.xlu0 %6142, %v2051_v55   ;;  %5917 = vmatpush3.bf16.msra.mxu0 %v1072_v30  ;;  %9511 = vst [vmem:[#allocation112_spill] sm:$0xff] %v7512_v39  ;;  %v2057_v55 = vld [vmem:[%s9389_s15 + $0x110] sm:$0xff]  ;;  %v6153_v16 = vld [vmem:[%s9381_s7 + $0x8] sm:$0xff]   ;;  %v2134_v39 = vld [vmem:[%s9389_s15 + $0x378] sm:$0xff] }
 0x1ef   : > { %v1068_v54 = vmax.f32 %v1060_v62, 0.0  ;;  %v1061_v22 = vadd.f32 %v6719_v2, %v1013_v51  ;;  %5918 = vmatprep.subr.bf16.mxu0 %v1073_v58  ;;  %v2056_v2 = vld [vmem:[%s9389_s15 + $0x108] sm:$0xff]  ;;  %v6154_v62 = vld [vmem:[%s9381_s7 + $0x10] sm:$0xff]   ;;  %v2059_v51 = vld [vmem:[%s9389_s15 + $0x120] sm:$0xff] }
 0x1f0   : > { %v5783_v3 = vpack.c.bf16 %v1070_v42, %v1070_v42  ;;  %v1071_v57 = vmax.f32 %v1063_v63, 0.0  ;;  %v7529_v30 = vpop.permute.xlu1 %3557  ;;  %v2132_v1 = vld [vmem:[%s9389_s15 + $0x368] sm:$0xff] }
 0x1f1   : > { %v5781_v18 = vpack.c.bf16 %v1068_v54, %v1068_v54  ;;  %v1069_v6 = vmax.f32 %v1061_v22, 0.0  ;;  %4005 = vperm.xlu1 %6143, %v2054_v7   ;;  %9512 = vst [vmem:[#allocation113_spill] sm:$0xff] %v7529_v30  ;;  %v7534_v46 = vpop.permute.xlu0 %3552  ;;  %v2062_v7 = vld [vmem:[%s9389_s15 + $0x138] sm:$0xff] }
 0x1f2   : > { %1111 = vst.msk [vmem:[%s7473_s21 + $0x18] sm:$0xf] %vm1104_vm3, %v5783_v3  ;;  %v5784_v40 = vpack.c.bf16 %v1071_v57, %v1071_v57  ;;  %4000 = vperm.xlu0 %6142, %v2053_v50   ;;  %5919 = vmatpush3.bf16.msra.mxu0 %v1073_v58  ;;  %v1075_v11 = vpack.c.bf16 %v1071_v57, %v1070_v42  ;;  %v2058_v58 = vld [vmem:[%s9389_s15 + $0x118] sm:$0xff]  ;;  %9513 = vst [vmem:[#allocation114_spill] sm:$0xff] %v7534_v46  ;;  %v2064_v50 = vld [vmem:[%s9389_s15 + $0x148] sm:$0xff] }
 0x1f3   : > { %1109 = vst.msk [vmem:[%s7473_s21 + $0x10] sm:$0xf] %vm1104_vm3, %v5781_v18  ;;  %v5782_v33 = vpack.c.bf16 %v1069_v6, %v1069_v6  ;;  %v1074_v32 = vpack.c.bf16 %v1069_v6, %v1068_v54  ;;  %v2061_v54 = vld [vmem:[%s9389_s15 + $0x130] sm:$0xff]  ;;  %v6155_v22 = vld [vmem:[%s9381_s7 + $0x18] sm:$0xff]   ;;  %v2063_v57 = vld [vmem:[%s9389_s15 + $0x140] sm:$0xff] }
 0x1f4   : > { %1112 = vst.msk [vmem:[%s7473_s21 + $0x1c] sm:$0xf] %vm1104_vm3, %v5784_v40  ;;  %v7548_v42 = vpop.permute.xlu1 %3567  ;;  %v2066_v6 = vld [vmem:[%s9389_s15 + $0x158] sm:$0xff]  ;;  %v2065_v40 = vld [vmem:[%s9389_s15 + $0x150] sm:$0xff] }
 0x1f5   : > { %1110 = vst.msk [vmem:[%s7473_s21 + $0x14] sm:$0xf] %vm1104_vm3, %v5782_v33  ;;  %5920 = vmatprep.subr.bf16.mxu0 %v1074_v32  ;;  %4015 = vperm.xlu1 %6143, %v2056_v2   ;;  %9514 = vst [vmem:[#allocation115_spill] sm:$0xff] %v7548_v42  ;;  %v7551_v63 = vpop.permute.xlu0 %3562  ;;  %v2068_v33 = vld [vmem:[%s9389_s15 + $0x168] sm:$0xff]  ;;  %v2126_v42 = vld [vmem:[%s9389_s15 + $0x338] sm:$0xff] }
 0x1f6   : > { %4010 = vperm.xlu0 %6142, %v2055_v47   ;;  %5921 = vmatpush3.bf16.msra.mxu0 %v1074_v32  ;;  %9515 = vst [vmem:[#allocation116_spill] sm:$0xff] %v7551_v63  ;;  %v2067_v32 = vld [vmem:[%s9389_s15 + $0x160] sm:$0xff]  ;;  %v2070_v47 = vld [vmem:[%s9389_s15 + $0x178] sm:$0xff]  ;;  %v2128_v63 = vld [vmem:[%s9389_s15 + $0x348] sm:$0xff] }
 0x1f7   : > { %5922 = vmatprep.subr.bf16.mxu0 %v1075_v11  ;;  %v2138_v46 = vld [vmem:[%s9389_s15 + $0x398] sm:$0xff] }
 0x1f8   : > { %v7566_v3 = vpop.permute.xlu1 %3577 }
 0x1f9   : > { %4025 = vperm.xlu1 %6143, %v2058_v58   ;;  %9516 = vst [vmem:[#allocation117_spill] sm:$0xff] %v7566_v3  ;;  %v7571_v18 = vpop.permute.xlu0 %3572 }
 0x1fa   : > { %4020 = vperm.xlu0 %6142, %v2057_v55   ;;  %5923 = vmatpush3.bf16.msra.mxu0 %v1075_v11  ;;  %9517 = vst [vmem:[#allocation118_spill] sm:$0xff] %v7571_v18  ;;  %v2069_v55 = vld [vmem:[%s9389_s15 + $0x170] sm:$0xff] }
 0x1fc   : > { %v7580_v2 = vpop.permute.xlu1 %3587 }
 0x1fd   : > { %5925 = vmatmul.mubr.msk.bf16.vlgmr.msra.gmra.mrb[8].mxu0 %vm890_vm2, %v6153_v16  ;;  %4035 = vperm.xlu1 %6143, %v2060_v59   ;;  %9518 = vst [vmem:[#allocation119_spill] sm:$0xff] %v7580_v2  ;;  %v7582_v11 = vpop.permute.xlu0 %3582  ;;  %v2072_v59 = vld [vmem:[%s9389_s15 + $0x188] sm:$0xff] }
 0x1fe   : > { %4030 = vperm.xlu0 %6142, %v2059_v51   ;;  %5928 = vmatprep.mubr.msk.bf16.mxu0 %vm890_vm2, %v6154_v62  ;;  %9519 = vst [vmem:[#allocation120_spill] sm:$0xff] %v7582_v11  ;;  %v2071_v62 = vld [vmem:[%s9389_s15 + $0x180] sm:$0xff]  ;;  %v2122_v11 = vld [vmem:[%s9389_s15 + $0x318] sm:$0xff] }
 0x200   : > { %v7593_v58 = vpop.permute.xlu1 %3597 }
 0x201   : > { %4045 = vperm.xlu1 %6143, %v2062_v7   ;;  %9520 = vst [vmem:[#allocation121_spill] sm:$0xff] %v7593_v58  ;;  %v7598_v16 = vpop.permute.xlu0 %3592 }
 0x202   : > { %4040 = vperm.xlu0 %6142, %v2061_v54   ;;  %9521 = vst [vmem:[#allocation122_spill] sm:$0xff] %v7598_v16  ;;  %v2074_v54 = vld [vmem:[%s9389_s15 + $0x198] sm:$0xff] }
 0x204   : > { %v7606_v51 = vpop.permute.xlu1 %3607 }
 0x205   : > { %5929 = vmatmul.mubr.msk.bf16.gmra.mrb[12].mxu0 %vm890_vm2, %v6155_v22  ;;  %4055 = vperm.xlu1 %6143, %v2064_v50   ;;  %9522 = vst [vmem:[#allocation123_spill] sm:$0xff] %v7606_v51  ;;  %v7608_v7 = vpop.permute.xlu0 %3602  ;;  %v2073_v22 = vld [vmem:[%s9389_s15 + $0x190] sm:$0xff]  ;;  %v2076_v50 = vld [vmem:[%s9389_s15 + $0x1a8] sm:$0xff]  ;;  %v2114_v51 = vld [vmem:[%s9389_s15 + $0x2d8] sm:$0xff] }
 0x206   : > { %4050 = vperm.xlu0 %6142, %v2063_v57   ;;  %9523 = vst [vmem:[#allocation124_spill] sm:$0xff] %v7608_v7 }
 0x208   : > { %v7619_v57 = vpop.permute.xlu1 %3617 }
 0x209   : > { %4065 = vperm.xlu1 %6143, %v2066_v6   ;;  %9524 = vst [vmem:[#allocation125_spill] sm:$0xff] %v7619_v57  ;;  %v2075_v6 = vld [vmem:[%s9389_s15 + $0x1a0] sm:$0xff] }
 0x20a   : > { %4060 = vperm.xlu0 %6142, %v2065_v40   ;;  %v7624_v40 = vpop.permute.xlu0 %3612  ;;  %v6156_v57 = vld [vmem:[%s9384_s10] sm:$0xff]  }
 0x20b   : > { %9525 = vst [vmem:[#allocation126_spill] sm:$0xff] %v7624_v40  ;;  %5940 = vmatprep.mubr.msk.bf16.mxu1 %vm890_vm2, %v6156_v57  ;;  %v2120_v57 = vld [vmem:[%s9389_s15 + $0x308] sm:$0xff] }
 0x20d   : > { %4075 = vperm.xlu1 %6143, %v2068_v33   ;;  %v2078_v33 = vld [vmem:[%s9389_s15 + $0x1b8] sm:$0xff] }
 0x20e   : > { %4070 = vperm.xlu0 %6142, %v2067_v32   ;;  %v2077_v32 = vld [vmem:[%s9389_s15 + $0x1b0] sm:$0xff] }
 0x211   : > { %4085 = vperm.xlu1 %6143, %v2070_v47   ;;  %v7632_v47 = vpop.permute.xlu1 %3627 }
 0x212   : > { %4080 = vperm.xlu0 %6142, %v2069_v55   ;;  %9526 = vst [vmem:[#allocation127_spill] sm:$0xff] %v7632_v47  ;;  %v7634_v55 = vpop.permute.xlu0 %3622  ;;  %v2086_v47 = vld [vmem:[%s9389_s15 + $0x1f8] sm:$0xff] }
 0x213   : > { %9527 = vst [vmem:[#allocation128_spill] sm:$0xff] %v7634_v55 }
 0x215   : > { %4095 = vperm.xlu1 %6143, %v2072_v59   ;;  %v2080_v59 = vld [vmem:[%s9389_s15 + $0x1c8] sm:$0xff] }
 0x216   : > { %4090 = vperm.xlu0 %6142, %v2071_v62   ;;  %v2079_v62 = vld [vmem:[%s9389_s15 + $0x1c0] sm:$0xff] }
 0x219   : > { %4105 = vperm.xlu1 %6143, %v2074_v54   ;;  %v2082_v54 = vld [vmem:[%s9389_s15 + $0x1d8] sm:$0xff] }
 0x21a   : > { %4100 = vperm.xlu0 %6142, %v2073_v22   ;;  %v7645_v22 = vpop.permute.xlu1 %3637 }
 0x21b   : > { %9528 = vst [vmem:[#allocation129_spill] sm:$0xff] %v7645_v22 }
 0x21d   : > { %4115 = vperm.xlu1 %6143, %v2076_v50   ;;  %v2081_v50 = vld [vmem:[%s9389_s15 + $0x1d0] sm:$0xff] }
 0x21e   : > { %4110 = vperm.xlu0 %6142, %v2075_v6   ;;  %v7650_v6 = vpop.permute.xlu0 %3632 }
 0x21f   : > { %9529 = vst [vmem:[#allocation130_spill] sm:$0xff] %v7650_v6 }
 0x221   : > { %4125 = vperm.xlu1 %6143, %v2078_v33   ;;  %v2084_v33 = vld [vmem:[%s9389_s15 + $0x1e8] sm:$0xff] }
 0x222   : > { %4120 = vperm.xlu0 %6142, %v2077_v32   ;;  %v2083_v32 = vld [vmem:[%s9389_s15 + $0x1e0] sm:$0xff] }
 0x225   : > { %4135 = vperm.xlu1 %6143, %v2080_v59   ;;  %v7658_v59 = vpop.permute.xlu1 %3647 }
 0x226   : > { %4130 = vperm.xlu0 %6142, %v2079_v62   ;;  %9530 = vst [vmem:[#allocation131_spill] sm:$0xff] %v7658_v59  ;;  %v7660_v62 = vpop.permute.xlu0 %3642  ;;  %v2090_v59 = vld [vmem:[%s9389_s15 + $0x218] sm:$0xff] }
 0x227   : > { %9531 = vst [vmem:[#allocation132_spill] sm:$0xff] %v7660_v62 }
 0x229   : > { %4145 = vperm.xlu1 %6143, %v2082_v54   ;;  %v2085_v54 = vld [vmem:[%s9389_s15 + $0x1f0] sm:$0xff]  ;;  %v7671_v22 = vpop.permute.xlu1 %3657 }
 0x22a   : > { %4140 = vperm.xlu0 %6142, %v2081_v50   ;;  %v2088_v50 = vld [vmem:[%s9389_s15 + $0x208] sm:$0xff]  ;;  %9532 = vst [vmem:[#allocation133_spill] sm:$0xff] %v7671_v22 }
 0x22b   : > { %v2140_v22 = vld [vmem:[%s9389_s15 + $0x3a8] sm:$0xff] }
 0x22d   : > { %4155 = vperm.xlu1 %6143, %v2084_v33   ;;  %v2087_v33 = vld [vmem:[%s9389_s15 + $0x200] sm:$0xff] }
 0x22e   : > { %4150 = vperm.xlu0 %6142, %v2083_v32   ;;  %v7676_v32 = vpop.permute.xlu0 %3652 }
 0x22f   : > { %9533 = vst [vmem:[#allocation134_spill] sm:$0xff] %v7676_v32  ;;  %v2092_v32 = vld [vmem:[%s9389_s15 + $0x228] sm:$0xff] }
 0x231   : > { %4165 = vperm.xlu1 %6143, %v2086_v47   ;;  %v2089_v47 = vld [vmem:[%s9389_s15 + $0x210] sm:$0xff] }
 0x232   : > { %4160 = vperm.xlu0 %6142, %v2085_v54   ;;  %v7684_v54 = vpop.permute.xlu1 %3667  ;;  %v7686_v62 = vpop.permute.xlu0 %3662 }
 0x233   : > { %9534 = vst [vmem:[#allocation135_spill] sm:$0xff] %v7684_v54  ;;  %9535 = vst [vmem:[#allocation136_spill] sm:$0xff] %v7686_v62  ;;  %v2096_v54 = vld [vmem:[%s9389_s15 + $0x248] sm:$0xff]  ;;  %v2098_v62 = vld [vmem:[%s9389_s15 + $0x258] sm:$0xff] }
 0x235   : > { %4175 = vperm.xlu1 %6143, %v2088_v50   ;;  %v2091_v50 = vld [vmem:[%s9389_s15 + $0x220] sm:$0xff] }
 0x236   : > { %4170 = vperm.xlu0 %6142, %v2087_v33   ;;  %v2094_v33 = vld [vmem:[%s9389_s15 + $0x238] sm:$0xff]  ;;  %v7697_v55 = vpop.permute.xlu1 %3677 }
 0x237   : > { %9536 = vst [vmem:[#allocation137_spill] sm:$0xff] %v7697_v55 }
 0x239   : > { %4185 = vperm.xlu1 %6143, %v2090_v59   ;;  %v2093_v59 = vld [vmem:[%s9389_s15 + $0x230] sm:$0xff] }
 0x23a   : > { %4180 = vperm.xlu0 %6142, %v2089_v47   ;;  %v7702_v47 = vpop.permute.xlu0 %3672 }
 0x23b   : > { %9537 = vst [vmem:[#allocation138_spill] sm:$0xff] %v7702_v47 }
 0x23d   : > { %4195 = vperm.xlu1 %6143, %v2092_v32   ;;  %v2095_v32 = vld [vmem:[%s9389_s15 + $0x240] sm:$0xff] }
 0x23e   : > { %4190 = vperm.xlu0 %6142, %v2091_v50   ;;  %v7710_v50 = vpop.permute.xlu1 %3687  ;;  %v7712_v55 = vpop.permute.xlu0 %3682 }
 0x23f   : > { %9538 = vst [vmem:[#allocation139_spill] sm:$0xff] %v7710_v50  ;;  %9539 = vst [vmem:[#allocation140_spill] sm:$0xff] %v7712_v55  ;;  %v2102_v50 = vld [vmem:[%s9389_s15 + $0x278] sm:$0xff]  ;;  %v2104_v55 = vld [vmem:[%s9389_s15 + $0x288] sm:$0xff] }
 0x241   : > { %4205 = vperm.xlu1 %6143, %v2094_v33   ;;  %v2097_v33 = vld [vmem:[%s9389_s15 + $0x250] sm:$0xff] }
 0x242   : > { %4200 = vperm.xlu0 %6142, %v2093_v59   ;;  %v2100_v59 = vld [vmem:[%s9389_s15 + $0x268] sm:$0xff]  ;;  %v7723_v6 = vpop.permute.xlu1 %3697 }
 0x243   : > { %9540 = vst [vmem:[#allocation141_spill] sm:$0xff] %v7723_v6 }
 0x245   : > { %4215 = vperm.xlu1 %6143, %v2096_v54   ;;  %v2099_v54 = vld [vmem:[%s9389_s15 + $0x260] sm:$0xff] }
 0x246   : > { %4210 = vperm.xlu0 %6142, %v2095_v32   ;;  %v7728_v32 = vpop.permute.xlu0 %3692 }
 0x247   : > { %9541 = vst [vmem:[#allocation142_spill] sm:$0xff] %v7728_v32 }
 0x249   : > { %4225 = vperm.xlu1 %6143, %v2098_v62   ;;  %v2101_v62 = vld [vmem:[%s9389_s15 + $0x270] sm:$0xff] }
 0x24a   : > { %4220 = vperm.xlu0 %6142, %v2097_v33   ;;  %v7736_v33 = vpop.permute.xlu1 %3707  ;;  %v7738_v6 = vpop.permute.xlu0 %3702 }
 0x24b   : > { %9542 = vst [vmem:[#allocation143_spill] sm:$0xff] %v7736_v33  ;;  %9543 = vst [vmem:[#allocation144_spill] sm:$0xff] %v7738_v6  ;;  %v2108_v33 = vld [vmem:[%s9389_s15 + $0x2a8] sm:$0xff] }
 0x24d   : > { %4235 = vperm.xlu1 %6143, %v2100_v59   ;;  %v2103_v59 = vld [vmem:[%s9389_s15 + $0x280] sm:$0xff] }
 0x24e   : > { %4230 = vperm.xlu0 %6142, %v2099_v54   ;;  %v2106_v54 = vld [vmem:[%s9389_s15 + $0x298] sm:$0xff]  ;;  %v7749_v32 = vpop.permute.xlu1 %3717 }
 0x24f   : > { %9544 = vst [vmem:[#allocation145_spill] sm:$0xff] %v7749_v32 }
 0x251   : > { %4245 = vperm.xlu1 %6143, %v2102_v50   ;;  %v2105_v50 = vld [vmem:[%s9389_s15 + $0x290] sm:$0xff] }
 0x252   : > { %4240 = vperm.xlu0 %6142, %v2101_v62   ;;  %v7754_v62 = vpop.permute.xlu0 %3712 }
 0x253   : > { %9545 = vst [vmem:[#allocation146_spill] sm:$0xff] %v7754_v62  ;;  %v2110_v62 = vld [vmem:[%s9389_s15 + $0x2b8] sm:$0xff] }
 0x255   : > { %4255 = vperm.xlu1 %6143, %v2104_v55   ;;  %v2107_v55 = vld [vmem:[%s9389_s15 + $0x2a0] sm:$0xff] }
 0x256   : > { %4250 = vperm.xlu0 %6142, %v2103_v59   ;;  %v7762_v59 = vpop.permute.xlu1 %3855  ;;  %v7764_v32 = vpop.permute.xlu0 %3850 }
 0x259   : > { %4265 = vperm.xlu1 %6143, %v2106_v54   ;;  %v2109_v54 = vld [vmem:[%s9389_s15 + $0x2b0] sm:$0xff] }
 0x25a   : > { %4260 = vperm.xlu0 %6142, %v2105_v50   ;;  %v2112_v50 = vld [vmem:[%s9389_s15 + $0x2c8] sm:$0xff]  ;;  %v7775_v6 = vpop.permute.xlu1 %3865 }
 0x25d   : > { %4275 = vperm.xlu1 %6143, %v2108_v33   ;;  %v2111_v33 = vld [vmem:[%s9389_s15 + $0x2c0] sm:$0xff] }
 0x25e   : > { %4270 = vperm.xlu0 %6142, %v2107_v55   ;;  %v7780_v55 = vpop.permute.xlu0 %3860 }
 0x261   : > { %4285 = vperm.xlu1 %6143, %v2110_v62   ;;  %v2113_v62 = vld [vmem:[%s9389_s15 + $0x2d0] sm:$0xff] }
 0x262   : > { %4280 = vperm.xlu0 %6142, %v2109_v54   ;;  %v7788_v54 = vpop.permute.xlu1 %3875  ;;  %v7793_v7 = vpop.permute.xlu0 %3870 }
 0x265   : > { %4295 = vperm.xlu1 %6143, %v2112_v50   ;;  %v2116_v50 = vld [vmem:[%s9389_s15 + $0x2e8] sm:$0xff] }
 0x266   : > { %4290 = vperm.xlu0 %6142, %v2111_v33   ;;  %v2115_v33 = vld [vmem:[%s9389_s15 + $0x2e0] sm:$0xff]  ;;  %v7805_v40 = vpop.permute.xlu1 %3885  ;;  %v7810_v2 = vpop.permute.xlu0 %3880 }
 0x269   : > { %4305 = vperm.xlu1 %6143, %v2114_v51   ;;  %v2118_v51 = vld [vmem:[%s9389_s15 + $0x2f8] sm:$0xff] }
 0x26a   : > { %4300 = vperm.xlu0 %6142, %v2113_v62   ;;  %v2117_v62 = vld [vmem:[%s9389_s15 + $0x2f0] sm:$0xff]  ;;  %v7820_v58 = vpop.permute.xlu0 %3890 }
 0x26d   : > { %4315 = vperm.xlu1 %6143, %v2116_v50   ;;  %v2119_v50 = vld [vmem:[%s9389_s15 + $0x300] sm:$0xff] }
 0x26e   : > { %4310 = vperm.xlu0 %6142, %v2115_v33   ;;  %v7818_v33 = vpop.permute.xlu1 %3895 }
 0x271   : > { %4325 = vperm.xlu1 %6143, %v2118_v51   ;;  %v2121_v51 = vld [vmem:[%s9389_s15 + $0x310] sm:$0xff] }
 0x272   : > { %4320 = vperm.xlu0 %6142, %v2117_v62   ;;  %v2124_v62 = vld [vmem:[%s9389_s15 + $0x328] sm:$0xff]  ;;  %v7831_v16 = vpop.permute.xlu1 %3905 }
 0x275   : > { %4335 = vperm.xlu1 %6143, %v2120_v57   ;;  %v2123_v57 = vld [vmem:[%s9389_s15 + $0x320] sm:$0xff] }
 0x276   : > { %4330 = vperm.xlu0 %6142, %v2119_v50   ;;  %v7836_v50 = vpop.permute.xlu0 %3900 }
 0x279   : > { %4345 = vperm.xlu1 %6143, %v2122_v11   ;;  %v2125_v11 = vld [vmem:[%s9389_s15 + $0x330] sm:$0xff] }
 0x27a   : > { %4340 = vperm.xlu0 %6142, %v2121_v51   ;;  %v7844_v51 = vpop.permute.xlu1 %3915  ;;  %v7846_v3 = vpop.permute.xlu0 %3910 }
 0x27b   : > { %9546 = vst [vmem:[#allocation147_spill] sm:$0xff] %v7844_v51 }
 0x27d   : > { %4355 = vperm.xlu1 %6143, %v2124_v62   ;;  %v2127_v62 = vld [vmem:[%s9389_s15 + $0x340] sm:$0xff] }
 0x27e   : > { %4350 = vperm.xlu0 %6142, %v2123_v57   ;;  %v2130_v57 = vld [vmem:[%s9389_s15 + $0x358] sm:$0xff]  ;;  %v7857_v18 = vpop.permute.xlu1 %3925 }
 0x281   : > { %4365 = vperm.xlu1 %6143, %v2126_v42   ;;  %v2129_v42 = vld [vmem:[%s9389_s15 + $0x350] sm:$0xff] }
 0x282   : > { %4360 = vperm.xlu0 %6142, %v2125_v11   ;;  %v7862_v11 = vpop.permute.xlu0 %3920 }
 0x285   : > { %4375 = vperm.xlu1 %6143, %v2128_v63   ;;  %v2131_v63 = vld [vmem:[%s9389_s15 + $0x360] sm:$0xff] }
 0x286   : > { %4370 = vperm.xlu0 %6142, %v2127_v62   ;;  %v7870_v62 = vpop.permute.xlu1 %3935  ;;  %v7872_v30 = vpop.permute.xlu0 %3930 }
 0x287   : > { %9547 = vst [vmem:[#allocation148_spill] sm:$0xff] %v7870_v62  ;;  %9548 = vst [vmem:[#allocation149_spill] sm:$0xff] %v7872_v30 }
 0x289   : > { %4385 = vperm.xlu1 %6143, %v2130_v57   ;;  %v2133_v57 = vld [vmem:[%s9389_s15 + $0x370] sm:$0xff] }
 0x28a   : > { %4380 = vperm.xlu0 %6142, %v2129_v42   ;;  %v2136_v42 = vld [vmem:[%s9389_s15 + $0x388] sm:$0xff]  ;;  %v7883_v47 = vpop.permute.xlu1 %3945 }
 0x28b   : > { %9549 = vst [vmem:[#allocation150_spill] sm:$0xff] %v7883_v47 }
 0x28d   : > { %4395 = vperm.xlu1 %6143, %v2132_v1   ;;  %v2135_v1 = vld [vmem:[%s9389_s15 + $0x380] sm:$0xff] }
 0x28e   : > { %4390 = vperm.xlu0 %6142, %v2131_v63   ;;  %v7888_v63 = vpop.permute.xlu0 %3940 }
 0x28f   : > { %9550 = vst [vmem:[#allocation151_spill] sm:$0xff] %v7888_v63 }
 0x291   : > { %4405 = vperm.xlu1 %6143, %v2134_v39   ;;  %v2137_v39 = vld [vmem:[%s9389_s15 + $0x390] sm:$0xff] }
 0x292   : > { %4400 = vperm.xlu0 %6142, %v2133_v57   ;;  %v7896_v57 = vpop.permute.xlu1 %3955  ;;  %v7898_v34 = vpop.permute.xlu0 %3950 }
 0x293   : > { %9551 = vst [vmem:[#allocation152_spill] sm:$0xff] %v7896_v57  ;;  %9552 = vst [vmem:[#allocation153_spill] sm:$0xff] %v7898_v34  ;;  %v2144_v57 = vld [vmem:[%s9389_s15 + $0x3c8] sm:$0xff]  ;;  %v2146_v34 = vld [vmem:[%s9389_s15 + $0x3d8] sm:$0xff] }
 0x295   : > { %4415 = vperm.xlu1 %6143, %v2136_v42   ;;  %v2139_v42 = vld [vmem:[%s9389_s15 + $0x3a0] sm:$0xff] }
 0x296   : > { %4410 = vperm.xlu0 %6142, %v2135_v1   ;;  %v2142_v1 = vld [vmem:[%s9389_s15 + $0x3b8] sm:$0xff]  ;;  %v7909_v14 = vpop.permute.xlu1 %3965 }
 0x297   : > { %9553 = vst [vmem:[#allocation154_spill] sm:$0xff] %v7909_v14 }
 0x299   : > { %4425 = vperm.xlu1 %6143, %v2138_v46   ;;  %v2141_v46 = vld [vmem:[%s9389_s15 + $0x3b0] sm:$0xff] }
 0x29a   : > { %4420 = vperm.xlu0 %6142, %v2137_v39   ;;  %v7914_v39 = vpop.permute.xlu0 %3960 }
 0x29b   : > { %9554 = vst [vmem:[#allocation155_spill] sm:$0xff] %v7914_v39 }
 0x29d   : > { %4435 = vperm.xlu1 %6143, %v2140_v22   ;;  %v2143_v22 = vld [vmem:[%s9389_s15 + $0x3c0] sm:$0xff] }
 0x29e   : > { %4430 = vperm.xlu0 %6142, %v2139_v42   ;;  %v7922_v42 = vpop.permute.xlu1 %3975  ;;  %v7924_v14 = vpop.permute.xlu0 %3970 }
 0x29f   : > { %9555 = vst [vmem:[#allocation156_spill] sm:$0xff] %v7922_v42  ;;  %9556 = vst [vmem:[#allocation157_spill] sm:$0xff] %v7924_v14  ;;  %v2150_v42 = vld [vmem:[%s9389_s15 + $0x3f8] sm:$0xff] }
 0x2a1   : > { %4445 = vperm.xlu1 %6143, %v2142_v1   ;;  %v2145_v1 = vld [vmem:[%s9389_s15 + $0x3d0] sm:$0xff] }
 0x2a2   : > { %4440 = vperm.xlu0 %6142, %v2141_v46   ;;  %v2148_v46 = vld [vmem:[%s9389_s15 + $0x3e8] sm:$0xff]  ;;  %v7935_v31 = vpop.permute.xlu1 %3985 }
 0x2a3   : > { %9557 = vst [vmem:[#allocation158_spill] sm:$0xff] %v7935_v31 }
 0x2a5   : > { %4455 = vperm.xlu1 %6143, %v2144_v57   ;;  %v2147_v57 = vld [vmem:[%s9389_s15 + $0x3e0] sm:$0xff] }
 0x2a6   : > { %4450 = vperm.xlu0 %6142, %v2143_v22   ;;  %v7940_v22 = vpop.permute.xlu0 %3980 }
 0x2a7   : > { %9558 = vst [vmem:[#allocation159_spill] sm:$0xff] %v7940_v22 }
 0x2a9   : > { %4465 = vperm.xlu1 %6143, %v2146_v34   ;;  %v2149_v34 = vld [vmem:[%s9389_s15 + $0x3f0] sm:$0xff] }
 0x2aa   : > { %4460 = vperm.xlu0 %6142, %v2145_v1   ;;  %v7948_v1 = vpop.permute.xlu1 %3995  ;;  %v7950_v31 = vpop.permute.xlu0 %3990 }
 0x2ab   : > { %9559 = vst [vmem:[#allocation160_spill] sm:$0xff] %v7948_v1  ;;  %9560 = vst [vmem:[#allocation161_spill] sm:$0xff] %v7950_v31 }
 0x2ad   : > { %4475 = vperm.xlu1 %6143, %v2148_v46  }
 0x2ae   : > { %4470 = vperm.xlu0 %6142, %v2147_v57  }
 0x2b1   : > { %4485 = vperm.xlu1 %6143, %v2150_v42  }
 0x2b2   : > { %4480 = vperm.xlu0 %6142, %v2149_v34  }
 0x2d0   : > { %v5926_v14 = vpop.f32.mrb[8].mxu0 }
 0x2d1   : > { %v1276_v43 = vmul.f32 %v5926_v14, %v6751_v21  ;;  %v1203_v22 = vpop.f32.mrb[9].mxu0 }
 0x2d2   : > { %v1274_v46 = vmul.f32 %v6741_v13, %v1203_v22  ;;  %v5927_v57 = vpop.f32.mrb[10].mxu0 }
 0x2d3   : > { %v1324_v39 = vadd.f32 %v6791_v53, %v1276_v43  ;;  %v1277_v62 = vmul.f32 %v5927_v57, %v6749_v20  ;;  %v1206_v47 = vpop.f32.mrb[11].mxu0 }
 0x2d4   : > { %v1322_v30 = vadd.f32 %v6781_v45, %v1274_v46  ;;  %v1275_v1 = vmul.f32 %v6739_v12, %v1206_v47  ;;  %v6164_v46 = vld [vmem:[%s9561_s23] sm:$0xff]  }
 0x2d5   : > { %v1325_v42 = vadd.f32 %v6789_v52, %v1277_v62  ;;  %v1332_v31 = vmax.f32 %v1324_v39, 0.0  ;;  %v6162_v39 = vld [vmem:[%s9384_s10 + $0x30] sm:$0xff]   ;;  %5972 = vmatprep.mubr.bf16.mxu0 %v6164_v46 }
 0x2d6   : > { %v1323_v34 = vadd.f32 %v6779_v44, %v1275_v1  ;;  %v1330_v21 = vmax.f32 %v1322_v30, 0.0  ;;  %v6163_v1 = vld [vmem:[%s9384_s10 + $0x38] sm:$0xff]  }
 0x2d7   : > { %v1333_v63 = vmax.f32 %v1325_v42, 0.0  ;;  %v6165_v42 = vld [vmem:[%s9561_s23 + $0x110] sm:$0xff]  }
 0x2d8   : > { %v1331_v14 = vmax.f32 %v1323_v34, 0.0  ;;  %v5930_v51 = vpop.f32.mrb[12].mxu0 }
 0x2d9   : > { %v1280_v13 = vmul.f32 %v5930_v51, %v6771_v37  ;;  %v1219_v22 = vpop.f32.mrb[13].mxu0  ;;  %v1339_v53 = vpack.c.bf16 %v1333_v63, %v1332_v31 }
 0x2da   : > { %v1278_v20 = vmul.f32 %v6761_v29, %v1219_v22  ;;  %v5931_v43 = vpop.f32.mrb[14].mxu0  ;;  %v1338_v57 = vpack.c.bf16 %v1331_v14, %v1330_v21 }
 0x2db   : > { %v1328_v45 = vadd.f32 %v6811_v5, %v1280_v13  ;;  %v1281_v12 = vmul.f32 %v5931_v43, %v6769_v36  ;;  %v1222_v52 = vpop.f32.mrb[15].mxu0  ;;  %v6158_v36 = vld [vmem:[%s9384_s10 + $0x10] sm:$0xff]  }
 0x2dc   : > { %v1326_v44 = vadd.f32 %v6801_v61, %v1278_v20  ;;  %v1279_v47 = vmul.f32 %v6759_v28, %v1222_v52  ;;  %5932 = vmatprep.subr.bf16.mxu1 %v1338_v57  ;;  %v6157_v28 = vld [vmem:[%s9384_s10 + $0x8] sm:$0xff]   ;;  %v6160_v61 = vld [vmem:[%s9384_s10 + $0x20] sm:$0xff]  }
 0x2dd   : > { %v1329_v30 = vadd.f32 %v6809_v4, %v1281_v12  ;;  %5933 = vmatpush3.bf16.msra.mxu1 %v1338_v57  ;;  %v1336_v31 = vmax.f32 %v1328_v45, 0.0  ;;  %v6161_v4 = vld [vmem:[%s9384_s10 + $0x28] sm:$0xff]  }
 0x2de   : > { %v1327_v37 = vadd.f32 %v6799_v60, %v1279_v47  ;;  %5934 = vmatprep.subr.bf16.mxu1 %v1339_v53  ;;  %v1334_v51 = vmax.f32 %v1326_v44, 0.0  ;;  %v6159_v60 = vld [vmem:[%s9384_s10 + $0x18] sm:$0xff]  }
 0x2df   : > { %v1337_v29 = vmax.f32 %v1329_v30, 0.0 }
 0x2e0   : > { %v1335_v62 = vmax.f32 %v1327_v37, 0.0 }
 0x2e1   : > { %5935 = vmatpush3.bf16.msra.mxu1 %v1339_v53  ;;  %v1341_v5 = vpack.c.bf16 %v1337_v29, %v1336_v31 }
 0x2e2   : > { %v1340_v63 = vpack.c.bf16 %v1335_v62, %v1334_v51 }
 0x2e4   : > { %5936 = vmatprep.subr.bf16.mxu1 %v1340_v63 }
 0x2e5   : > { %5937 = vmatpush3.bf16.msra.mxu1 %v1340_v63 }
 0x2e6   : > { %5938 = vmatprep.subr.bf16.mxu1 %v1341_v5 }
 0x2e9   : > { %5939 = vmatpush3.bf16.msra.mxu1 %v1341_v5 }
 0x2ec   : > { %5941 = vmatmul.mubr.msk.bf16.vlgmr.msra.gmra.mrb[8].mxu1 %vm890_vm2, %v6157_v28 }
 0x2ed   : > { %5944 = vmatprep.mubr.msk.bf16.mxu1 %vm890_vm2, %v6158_v36 }
 0x2f4   : > { %5945 = vmatmul.mubr.msk.bf16.gmra.mrb[12].mxu1 %vm890_vm2, %v6159_v60 }
 0x2f5   : > { %5948 = vmatprep.mubr.msk.bf16.mxu1 %vm890_vm2, %v6160_v61 }
 0x2fc   : > { %5949 = vmatmul.mubr.msk.bf16.gmra.mrb[16].mxu1 %vm890_vm2, %v6161_v4  ;;  %v9562_v4 = vld [vmem:[#allocation14_spill] sm:$0xff] }
 0x2fd   : > { %5952 = vmatprep.mubr.msk.bf16.mxu1 %vm890_vm2, %v6162_v39 }
 0x304   : > { %5953 = vmatmul.mubr.msk.bf16.gmra.mrb[20].mxu1 %vm890_vm2, %v6163_v1 }
 0x305   : > { %6040 = vmatprep.mubr.bf16.mxu1 %v6165_v42  ;;  %v9564_v42 = vld [vmem:[#allocation12_spill] sm:$0xff] }
 0x3bf   : > { %v5942_v34 = vpop.f32.mrb[8].mxu1 }
 0x3c0   : > { %v1633_v21 = vmul.f32 %v5942_v34, %v6839_v9  ;;  %v1488_v14 = vpop.f32.mrb[9].mxu1 }
 0x3c1   : > { %v1631_v13 = vmul.f32 %v6825_v48, %v1488_v14  ;;  %v5943_v22 = vpop.f32.mrb[10].mxu1 }
 0x3c2   : > { %v1729_v53 = vadd.f32 %v6939_v26, %v1633_v21  ;;  %v1634_v20 = vmul.f32 %v5943_v22, %v6837_v8  ;;  %v1491_v43 = vpop.f32.mrb[11].mxu1  ;;  %v9565_v21 = vld [vmem:[#allocation5_spill] sm:$0xff]  ;;  %v9567_v22 = vld [vmem:[#allocation11_spill] sm:$0xff] }
 0x3c3   : > { %v1727_v57 = vadd.f32 %v6928_v15, %v1631_v13  ;;  %v1632_v45 = vmul.f32 %v6823_v41, %v1491_v43  ;;  %v9566_v13 = vld [vmem:[#allocation13_spill] sm:$0xff] }
 0x3c4   : > { %v1730_v12 = vadd.f32 %v6937_v24, %v1634_v20  ;;  %v1745_v44 = vmax.f32 %v1729_v53, 0.0 }
 0x3c5   : > { %v1728_v52 = vadd.f32 %v6926_v27, %v1632_v45  ;;  %v1743_v9 = vmax.f32 %v1727_v57, 0.0 }
 0x3c6   : > { %v1746_v47 = vmax.f32 %v1730_v12, 0.0 }
 0x3c7   : > { %v1744_v30 = vmax.f32 %v1728_v52, 0.0  ;;  %v5946_v37 = vpop.f32.mrb[12].mxu1  ;;  %v9568_v52 = vld [vmem:[#allocation10_spill] sm:$0xff] }
 0x3c8   : > { %v1760_v48 = vpack.c.bf16 %v1746_v47, %v1745_v44  ;;  %v1637_v31 = vmul.f32 %v5946_v37, %v6867_v38  ;;  %v1504_v26 = vpop.f32.mrb[13].mxu1 }
 0x3c9   : > { %v1759_v29 = vpack.c.bf16 %v1744_v30, %v1743_v9  ;;  %v1635_v8 = vmul.f32 %v6853_v23, %v1504_v26  ;;  %v5947_v51 = vpop.f32.mrb[14].mxu1  ;;  %v9569_v30 = vld [vmem:[#allocation8_spill] sm:$0xff] }
 0x3ca   : > { %v1733_v15 = vadd.f32 %v6959_v0, %v1637_v31  ;;  %v1638_v41 = vmul.f32 %v5947_v51, %v6865_v35  ;;  %v1507_v24 = vpop.f32.mrb[15].mxu1  ;;  %v9570_v31 = vld [vmem:[#allocation18_spill] sm:$0xff] }
 0x3cb   : > { %v1731_v27 = vadd.f32 %v6949_v56, %v1635_v8  ;;  %v1636_v62 = vmul.f32 %v6851_v49, %v1507_v24  ;;  %5956 = vmatprep.subr.bf16.mxu0 %v1759_v29  ;;  %6100 = vmatprep.subr.bf16.mxu1 %v1759_v29  ;;  %v9573_v24 = vld [vmem:[#allocation7_spill] sm:$0xff] }
 0x3cc   : > { %v1734_v5 = vadd.f32 %v6957_v19, %v1638_v41  ;;  %5957 = vmatpush3.bf16.msra.mxu0 %v1759_v29  ;;  %6108 = vmatpush3.bf16.msra.mxu1 %v1759_v29  ;;  %v1749_v23 = vmax.f32 %v1733_v15, 0.0  ;;  %v9571_v29 = vld [vmem:[#allocation9_spill] sm:$0xff]  ;;  %v9572_v15 = vld [vmem:[#allocation16_spill] sm:$0xff] }
 0x3cd   : > { %v1732_v38 = vadd.f32 %v6947_v10, %v1636_v62  ;;  %5958 = vmatprep.subr.bf16.mxu0 %v1760_v48  ;;  %6101 = vmatprep.subr.bf16.mxu1 %v1760_v48  ;;  %v1747_v0 = vmax.f32 %v1731_v27, 0.0  ;;  %v9563_v10 = vld [vmem:[#allocation6_spill] sm:$0xff]  ;;  %v9574_v62 = vld [vmem:[#allocation17_spill] sm:$0xff] }
 0x3ce   : > { %v1750_v63 = vmax.f32 %v1734_v5, 0.0 }
 0x3cf   : > { %v1748_v28 = vmax.f32 %v1732_v38, 0.0  ;;  %v5950_v35 = vpop.f32.mrb[16].mxu1  ;;  %v9575_v38 = vld [vmem:[#allocation15_spill] sm:$0xff] }
 0x3d0   : > { %v1762_v36 = vpack.c.bf16 %v1750_v63, %v1749_v23  ;;  %v1641_v56 = vmul.f32 %v5950_v35, %v6887_v25  ;;  %v1520_v60 = vpop.f32.mrb[17].mxu1  ;;  %5959 = vmatpush3.bf16.msra.mxu0 %v1760_v48  ;;  %6109 = vmatpush3.bf16.msra.mxu1 %v1760_v48 }
 0x3d1   : > { %v1761_v49 = vpack.c.bf16 %v1748_v28, %v1747_v0  ;;  %v1639_v19 = vmul.f32 %v6877_v17, %v1520_v60  ;;  %v5951_v61 = vpop.f32.mrb[18].mxu1  ;;  %v6166_v60 = vld [vmem:[%s9561_s23 + $0x8] sm:$0xff]  }
 0x3d2   : > { %v1737_v39 = vadd.f32 %v9562_v4, %v1641_v56  ;;  %v1642_v1 = vmul.f32 %v5951_v61, %v9563_v10  ;;  %v1523_v46 = vpop.f32.mrb[19].mxu1  ;;  %v6169_v61 = vld [vmem:[%s9561_s23 + $0x120] sm:$0xff]   ;;  %v6170_v4 = vld [vmem:[%s9561_s23 + $0x18] sm:$0xff]  }
 0x3d3   : > { %v1735_v34 = vadd.f32 %v9564_v42, %v1639_v19  ;;  %v1640_v14 = vmul.f32 %v9565_v21, %v1523_v46  ;;  %5960 = vmatprep.subr.bf16.mxu0 %v1761_v49  ;;  %6102 = vmatprep.subr.bf16.mxu1 %v1761_v49  ;;  %v6168_v19 = vld [vmem:[%s9561_s23 + $0x10] sm:$0xff]   ;;  %v6172_v10 = vld [vmem:[%s9561_s23 + $0x20] sm:$0xff]   ;;  %v6174_v46 = vld [vmem:[%s9561_s23 + $0x28] sm:$0xff]  }
 0x3d4   : > { %v1738_v25 = vadd.f32 %v9566_v13, %v1642_v1  ;;  %5961 = vmatpush3.bf16.msra.mxu0 %v1761_v49  ;;  %6110 = vmatpush3.bf16.msra.mxu1 %v1761_v49  ;;  %v1753_v17 = vmax.f32 %v1737_v39, 0.0  ;;  %v6167_v49 = vld [vmem:[%s9561_s23 + $0x118] sm:$0xff]   ;;  %v6171_v39 = vld [vmem:[%s9561_s23 + $0x128] sm:$0xff]   ;;  %v6173_v1 = vld [vmem:[%s9561_s23 + $0x130] sm:$0xff]  }
 0x3d5   : > { %v1736_v53 = vadd.f32 %v9567_v22, %v1640_v14  ;;  %5962 = vmatprep.subr.bf16.mxu0 %v1762_v36  ;;  %6103 = vmatprep.subr.bf16.mxu1 %v1762_v36  ;;  %v1751_v43 = vmax.f32 %v1735_v34, 0.0  ;;  %v6175_v42 = vld [vmem:[%s9561_s23 + $0x138] sm:$0xff]   ;;  %v6176_v34 = vld [vmem:[%s9561_s23 + $0x30] sm:$0xff]   ;;  %v6177_v21 = vld [vmem:[%s9561_s23 + $0x140] sm:$0xff]   ;;  %v8070_v14 = vpop.permute.xlu0 %4000 }
 0x3d6   : > { %v1754_v20 = vmax.f32 %v1738_v25, 0.0  ;;  %v6178_v13 = vld [vmem:[%s9561_s23 + $0x38] sm:$0xff]   ;;  %v6179_v25 = vld [vmem:[%s9561_s23 + $0x148] sm:$0xff]   ;;  %v6180_v22 = vld [vmem:[%s9561_s23 + $0x40] sm:$0xff]  }
 0x3d7   : > { %v1752_v57 = vmax.f32 %v1736_v53, 0.0  ;;  %v5954_v45 = vpop.f32.mrb[20].mxu1  ;;  %v6181_v53 = vld [vmem:[%s9561_s23 + $0x150] sm:$0xff]  }
 0x3d8   : > { %v1764_v12 = vpack.c.bf16 %v1754_v20, %v1753_v17  ;;  %v1645_v44 = vmul.f32 %v5954_v45, %v9568_v52  ;;  %v1536_v47 = vpop.f32.mrb[21].mxu1  ;;  %5963 = vmatpush3.bf16.msra.mxu0 %v1762_v36  ;;  %6111 = vmatpush3.bf16.msra.mxu1 %v1762_v36  ;;  %v6182_v20 = vld [vmem:[%s9561_s23 + $0x48] sm:$0xff]   ;;  %v6185_v45 = vld [vmem:[%s9561_s23 + $0x160] sm:$0xff]  }
 0x3d9   : > { %v1763_v9 = vpack.c.bf16 %v1752_v57, %v1751_v43  ;;  %v1643_v37 = vmul.f32 %v9569_v30, %v1536_v47  ;;  %v5955_v48 = vpop.f32.mrb[22].mxu1  ;;  %v8084_v17 = vpop.permute.xlu0 %4010  ;;  %v6183_v43 = vld [vmem:[%s9561_s23 + $0x158] sm:$0xff]   ;;  %v6184_v57 = vld [vmem:[%s9561_s23 + $0x50] sm:$0xff]   ;;  %v6187_v30 = vld [vmem:[%s9561_s23 + $0x168] sm:$0xff]  }
 0x3da   : > { %v1741_v26 = vadd.f32 %v9570_v31, %v1645_v44  ;;  %v1646_v8 = vmul.f32 %v5955_v48, %v9571_v29  ;;  %v1539_v51 = vpop.f32.mrb[23].mxu1  ;;  %9576 = vst [vmem:[#allocation14_spill] sm:$0xff] %v8084_v17  ;;  %v6189_v48 = vld [vmem:[%s9561_s23 + $0x170] sm:$0xff]   ;;  %v6190_v29 = vld [vmem:[%s9561_s23 + $0x68] sm:$0xff]   ;;  %v9616_v17 = vld [vmem:[#allocation21_spill] sm:$0xff] }
 0x3db   : > { %v1739_v41 = vadd.f32 %v9572_v15, %v1643_v37  ;;  %v1644_v27 = vmul.f32 %v9573_v24, %v1539_v51  ;;  %5964 = vmatprep.subr.bf16.mxu0 %v1763_v9  ;;  %6104 = vmatprep.subr.bf16.mxu1 %v1763_v9  ;;  %v6188_v37 = vld [vmem:[%s9561_s23 + $0x60] sm:$0xff]   ;;  %v6192_v51 = vld [vmem:[%s9561_s23 + $0x70] sm:$0xff]  }
 0x3dc   : > { %v1742_v5 = vadd.f32 %v9574_v62, %v1646_v8  ;;  %5965 = vmatpush3.bf16.msra.mxu0 %v1763_v9  ;;  %6112 = vmatpush3.bf16.msra.mxu1 %v1763_v9  ;;  %v1757_v63 = vmax.f32 %v1741_v26, 0.0  ;;  %v6186_v9 = vld [vmem:[%s9561_s23 + $0x58] sm:$0xff]   ;;  %v6193_v15 = vld [vmem:[%s9561_s23 + $0x180] sm:$0xff]   ;;  %v6195_v62 = vld [vmem:[%s9561_s23 + $0x188] sm:$0xff]  }
 0x3dd   : > { %v1740_v23 = vadd.f32 %v9575_v38, %v1644_v27  ;;  %5966 = vmatprep.subr.bf16.mxu0 %v1764_v12  ;;  %6105 = vmatprep.subr.bf16.mxu1 %v1764_v12  ;;  %v1755_v28 = vmax.f32 %v1739_v41, 0.0  ;;  %v8100_v52 = vpop.permute.xlu0 %4020  ;;  %v6191_v8 = vld [vmem:[%s9561_s23 + $0x178] sm:$0xff]   ;;  %v6197_v38 = vld [vmem:[%s9561_s23 + $0x190] sm:$0xff]  }
 0x3de   : > { %v1758_v0 = vmax.f32 %v1742_v5, 0.0  ;;  %9577 = vst [vmem:[#allocation6_spill] sm:$0xff] %v8100_v52  ;;  %v6194_v27 = vld [vmem:[%s9561_s23 + $0x78] sm:$0xff]   ;;  %v6196_v5 = vld [vmem:[%s9561_s23 + $0x80] sm:$0xff]  }
 0x3df   : > { %v1756_v35 = vmax.f32 %v1740_v23, 0.0 }
 0x3e0   : > { %v1766_v36 = vpack.c.bf16 %v1758_v0, %v1757_v63  ;;  %5967 = vmatpush3.bf16.msra.mxu0 %v1764_v12  ;;  %6113 = vmatpush3.bf16.msra.mxu1 %v1764_v12  ;;  %v8098_v12 = vpop.permute.xlu1 %4005 }
 0x3e1   : > { %v1765_v56 = vpack.c.bf16 %v1756_v35, %v1755_v28  ;;  %v8104_v47 = vpop.permute.xlu0 %4030  ;;  %v6198_v35 = vld [vmem:[%s9561_s23 + $0x88] sm:$0xff]  }
 0x3e2   : > { %9579 = vst [vmem:[#allocation5_spill] sm:$0xff] %v8104_v47 }
 0x3e3   : > { %5968 = vmatprep.subr.bf16.mxu0 %v1765_v56  ;;  %6106 = vmatprep.subr.bf16.mxu1 %v1765_v56 }
 0x3e4   : > { %5969 = vmatpush3.bf16.msra.mxu0 %v1765_v56  ;;  %6114 = vmatpush3.bf16.msra.mxu1 %v1765_v56  ;;  %v8102_v44 = vpop.permute.xlu1 %4015  ;;  %v6200_v56 = vld [vmem:[%s9561_s23 + $0x90] sm:$0xff]  }
 0x3e5   : > { %5970 = vmatprep.subr.bf16.mxu0 %v1766_v36  ;;  %6107 = vmatprep.subr.bf16.mxu1 %v1766_v36  ;;  %9578 = vst [vmem:[#allocation12_spill] sm:$0xff] %v8102_v44  ;;  %v8120_v26 = vpop.permute.xlu0 %4040 }
 0x3e6   : > { %9581 = vst [vmem:[#allocation11_spill] sm:$0xff] %v8120_v26 }
 0x3e8   : > { %5971 = vmatpush3.bf16.msra.mxu0 %v1766_v36  ;;  %6115 = vmatpush3.bf16.msra.mxu1 %v1766_v36  ;;  %v8118_v31 = vpop.permute.xlu1 %4025  ;;  %v6199_v36 = vld [vmem:[%s9561_s23 + $0x198] sm:$0xff]  }
 0x3e9   : > { %9580 = vst [vmem:[#allocation13_spill] sm:$0xff] %v8118_v31  ;;  %v8136_v24 = vpop.permute.xlu0 %4050 }
 0x3ea   : > { %9583 = vst [vmem:[#allocation8_spill] sm:$0xff] %v8136_v24 }
 0x3eb   : > { %5973 = vmatmul.mubr.bf16.vlgmr.msra.gmra.mrb[16].mxu0 %v6166_v60  ;;  %6041 = vmatmul.mubr.bf16.vlgmr.msra.gmra.mrb[24].mxu1 %v6167_v49  ;;  %v6201_v60 = vld [vmem:[%s9561_s23 + $0x1a0] sm:$0xff]  }
 0x3ec   : > { %5976 = vmatprep.mubr.bf16.mxu0 %v6168_v19  ;;  %6044 = vmatprep.mubr.bf16.mxu1 %v6169_v61  ;;  %v8134_v41 = vpop.permute.xlu1 %4035  ;;  %v6202_v61 = vld [vmem:[%s9561_s23 + $0x98] sm:$0xff]  }
 0x3ed   : > { %9582 = vst [vmem:[#allocation10_spill] sm:$0xff] %v8134_v41  ;;  %v8152_v63 = vpop.permute.xlu0 %4060 }
 0x3ee   : > { %9585 = vst [vmem:[#allocation9_spill] sm:$0xff] %v8152_v63 }
 0x3f0   : > { %v8150_v23 = vpop.permute.xlu1 %4045 }
 0x3f1   : > { %9584 = vst [vmem:[#allocation18_spill] sm:$0xff] %v8150_v23  ;;  %v8156_v28 = vpop.permute.xlu0 %4070 }
 0x3f2   : > { %9587 = vst [vmem:[#allocation7_spill] sm:$0xff] %v8156_v28 }
 0x3f3   : > { %5977 = vmatmul.mubr.bf16.gmra.mrb[20].mxu0 %v6170_v4  ;;  %6045 = vmatmul.mubr.bf16.gmra.mrb[28].mxu1 %v6171_v39  ;;  %v6203_v4 = vld [vmem:[%s9561_s23 + $0x1a8] sm:$0xff]   ;;  %v6204_v39 = vld [vmem:[%s9561_s23 + $0xa0] sm:$0xff]  }
 0x3f4   : > { %5980 = vmatprep.mubr.bf16.mxu0 %v6172_v10  ;;  %6048 = vmatprep.mubr.bf16.mxu1 %v6173_v1  ;;  %v8154_v0 = vpop.permute.xlu1 %4055  ;;  %v6205_v10 = vld [vmem:[%s9561_s23 + $0x1b0] sm:$0xff]  }
 0x3f5   : > { %9586 = vst [vmem:[#allocation16_spill] sm:$0xff] %v8154_v0  ;;  %v8172_v19 = vpop.permute.xlu0 %4080 }
 0x3f6   : > { %9589 = vst [vmem:[#allocation15_spill] sm:$0xff] %v8172_v19  ;;  %v9614_v19 = vld [vmem:[#allocation20_spill] sm:$0xff] }
 0x3f8   : > { %v8170_v49 = vpop.permute.xlu1 %4065 }
 0x3f9   : > { %9588 = vst [vmem:[#allocation17_spill] sm:$0xff] %v8170_v49  ;;  %v9615_v49 = vld [vmem:[#allocation88_spill] sm:$0xff] }
 0x3fb   : > { %5981 = vmatmul.mubr.bf16.gmra.mrb[24].mxu0 %v6174_v46  ;;  %6049 = vmatmul.mubr.bf16.gmra.mrb[32].mxu1 %v6175_v42  ;;  %v8188_v46 = vpop.permute.xlu0 %4090  ;;  %v6206_v42 = vld [vmem:[%s9561_s23 + $0xa8] sm:$0xff]  }
 0x3fc   : > { %5984 = vmatprep.mubr.bf16.mxu0 %v6176_v34  ;;  %6052 = vmatprep.mubr.bf16.mxu1 %v6177_v21  ;;  %v8186_v1 = vpop.permute.xlu1 %4075  ;;  %9591 = vst [vmem:[#allocation163_spill] sm:$0xff] %v8188_v46  ;;  %v6207_v34 = vld [vmem:[%s9561_s23 + $0x1b8] sm:$0xff]   ;;  %v6208_v21 = vld [vmem:[%s9561_s23 + $0xb0] sm:$0xff]  }
 0x3fd   : > { %9590 = vst [vmem:[#allocation162_spill] sm:$0xff] %v8186_v1 }
 0x403   : > { %5985 = vmatmul.mubr.bf16.gmra.mrb[28].mxu0 %v6178_v13  ;;  %6053 = vmatmul.mubr.bf16.gmra.mrb[36].mxu1 %v6179_v25  ;;  %v6209_v13 = vld [vmem:[%s9561_s23 + $0x1c0] sm:$0xff]   ;;  %v8202_v25 = vpop.permute.xlu1 %4085 }
 0x404   : > { %5988 = vmatprep.mubr.bf16.mxu0 %v6180_v22  ;;  %6056 = vmatprep.mubr.bf16.mxu1 %v6181_v53  ;;  %9592 = vst [vmem:[#allocation164_spill] sm:$0xff] %v8202_v25  ;;  %v8204_v22 = vpop.permute.xlu0 %4100 }
 0x405   : > { %9593 = vst [vmem:[#allocation165_spill] sm:$0xff] %v8204_v22  ;;  %v9613_v22 = vld [vmem:[#allocation90_spill] sm:$0xff] }
 0x407   : > { %v8206_v53 = vpop.permute.xlu1 %4095 }
 0x408   : > { %9594 = vst [vmem:[#allocation166_spill] sm:$0xff] %v8206_v53 }
 0x40b   : > { %5989 = vmatmul.mubr.bf16.gmra.mrb[32].mxu0 %v6182_v20  ;;  %6057 = vmatmul.mubr.bf16.gmra.mrb[40].mxu1 %v6183_v43  ;;  %v8208_v20 = vpop.permute.xlu0 %4110  ;;  %v6210_v43 = vld [vmem:[%s9561_s23 + $0xb8] sm:$0xff]  }
 0x40c   : > { %5992 = vmatprep.mubr.bf16.mxu0 %v6184_v57  ;;  %6060 = vmatprep.mubr.bf16.mxu1 %v6185_v45  ;;  %9595 = vst [vmem:[#allocation167_spill] sm:$0xff] %v8208_v20  ;;  %v6211_v57 = vld [vmem:[%s9561_s23 + $0x1c8] sm:$0xff]   ;;  %v6212_v45 = vld [vmem:[%s9561_s23 + $0xc0] sm:$0xff]  }
 0x413   : > { %5993 = vmatmul.mubr.bf16.gmra.mrb[36].mxu0 %v6186_v9  ;;  %6061 = vmatmul.mubr.bf16.gmra.mrb[44].mxu1 %v6187_v30  ;;  %v6213_v9 = vld [vmem:[%s9561_s23 + $0x1d0] sm:$0xff]   ;;  %v8222_v30 = vpop.permute.xlu1 %4105 }
 0x414   : > { %5996 = vmatprep.mubr.bf16.mxu0 %v6188_v37  ;;  %6064 = vmatprep.mubr.bf16.mxu1 %v6189_v48  ;;  %9596 = vst [vmem:[#allocation168_spill] sm:$0xff] %v8222_v30  ;;  %v8224_v37 = vpop.permute.xlu0 %4120  ;;  %v6214_v48 = vld [vmem:[%s9561_s23 + $0xc8] sm:$0xff]  }
 0x415   : > { %9597 = vst [vmem:[#allocation169_spill] sm:$0xff] %v8224_v37  ;;  %v9612_v30 = vld [vmem:[#allocation22_spill] sm:$0xff] }
 0x41b   : > { %5997 = vmatmul.mubr.bf16.gmra.mrb[40].mxu0 %v6190_v29  ;;  %6065 = vmatmul.mubr.bf16.gmra.mrb[48].mxu1 %v6191_v8  ;;  %v6215_v29 = vld [vmem:[%s9561_s23 + $0x1d8] sm:$0xff]   ;;  %v6216_v8 = vld [vmem:[%s9561_s23 + $0xd0] sm:$0xff]  }
 0x41c   : > { %6000 = vmatprep.mubr.bf16.mxu0 %v6192_v51  ;;  %6068 = vmatprep.mubr.bf16.mxu1 %v6193_v15  ;;  %v6217_v51 = vld [vmem:[%s9561_s23 + $0x1e0] sm:$0xff]   ;;  %v8238_v15 = vpop.permute.xlu1 %4115 }
 0x41d   : > { %9598 = vst [vmem:[#allocation170_spill] sm:$0xff] %v8238_v15 }
 0x423   : > { %6001 = vmatmul.mubr.bf16.gmra.mrb[44].mxu0 %v6194_v27  ;;  %6069 = vmatmul.mubr.bf16.gmra.mrb[52].mxu1 %v6195_v62  ;;  %v8240_v27 = vpop.permute.xlu0 %4130  ;;  %v6218_v62 = vld [vmem:[%s9561_s23 + $0xd8] sm:$0xff]  }
 0x424   : > { %6004 = vmatprep.mubr.bf16.mxu0 %v6196_v5  ;;  %6072 = vmatprep.mubr.bf16.mxu1 %v6197_v38  ;;  %9599 = vst [vmem:[#allocation171_spill] sm:$0xff] %v8240_v27  ;;  %v6219_v5 = vld [vmem:[%s9561_s23 + $0x1e8] sm:$0xff]   ;;  %v6220_v38 = vld [vmem:[%s9561_s23 + $0xe0] sm:$0xff]  }
 0x42b   : > { %6005 = vmatmul.mubr.bf16.gmra.mrb[48].mxu0 %v6198_v35  ;;  %6073 = vmatmul.mubr.bf16.gmra.mrb[56].mxu1 %v6199_v36  ;;  %v6221_v35 = vld [vmem:[%s9561_s23 + $0x1f0] sm:$0xff]   ;;  %v8254_v36 = vpop.permute.xlu1 %4125 }
 0x42c   : > { %6008 = vmatprep.mubr.bf16.mxu0 %v6200_v56  ;;  %6076 = vmatprep.mubr.bf16.mxu1 %v6201_v60  ;;  %9600 = vst [vmem:[#allocation172_spill] sm:$0xff] %v8254_v36  ;;  %v8256_v56 = vpop.permute.xlu0 %4140 }
 0x42d   : > { %9601 = vst [vmem:[#allocation173_spill] sm:$0xff] %v8256_v56 }
 0x42f   : > { %v8258_v60 = vpop.permute.xlu1 %4135 }
 0x430   : > { %9602 = vst [vmem:[#allocation174_spill] sm:$0xff] %v8258_v60 }
 0x433   : > { %6009 = vmatmul.mubr.bf16.gmra.mrb[52].mxu0 %v6202_v61  ;;  %6077 = vmatmul.mubr.bf16.gmra.mrb[60].mxu1 %v6203_v4  ;;  %v8260_v61 = vpop.permute.xlu0 %4150  ;;  %v6222_v4 = vld [vmem:[%s9561_s23 + $0xe8] sm:$0xff]  }
 0x434   : > { %6012 = vmatprep.mubr.bf16.mxu0 %v6204_v39  ;;  %6080 = vmatprep.mubr.bf16.mxu1 %v6205_v10  ;;  %9603 = vst [vmem:[#allocation175_spill] sm:$0xff] %v8260_v61  ;;  %v6223_v39 = vld [vmem:[%s9561_s23 + $0x1f8] sm:$0xff]   ;;  %v6224_v10 = vld [vmem:[%s9561_s23 + $0xf0] sm:$0xff]  }
 0x43b   : > { %6013 = vmatmul.mubr.bf16.gmra.mrb[56].mxu0 %v6206_v42  ;;  %6081 = vmatmul.mubr.bf16.gmra.mrb[64].mxu1 %v6207_v34  ;;  %v8271_v42 = vpop.permute.xlu1 %4145  ;;  %v8273_v34 = vpop.permute.xlu0 %4160 }
 0x43c   : > { %6016 = vmatprep.mubr.bf16.mxu0 %v6208_v21  ;;  %6084 = vmatprep.mubr.bf16.mxu1 %v6209_v13  ;;  %9604 = vst [vmem:[#allocation176_spill] sm:$0xff] %v8271_v42  ;;  %9605 = vst [vmem:[#allocation177_spill] sm:$0xff] %v8273_v34  ;;  %v6225_v21 = vld [vmem:[%s9561_s23 + $0xf8] sm:$0xff]   ;;  %v6226_v13 = vld [vmem:[%s9561_s23 + $0x100] sm:$0xff]  }
 0x443   : > { %6017 = vmatmul.mubr.bf16.gmra.mrb[60].mxu0 %v6210_v43  ;;  %6085 = vmatmul.mubr.bf16.gmra.mrb[68].mxu1 %v6211_v57  ;;  %v8281_v43 = vpop.permute.xlu1 %4155  ;;  %v8283_v57 = vpop.permute.xlu0 %4170 }
 0x444   : > { %6020 = vmatprep.mubr.bf16.mxu0 %v6212_v45  ;;  %6088 = vmatprep.mubr.bf16.mxu1 %v6213_v9  ;;  %9606 = vst [vmem:[#allocation178_spill] sm:$0xff] %v8281_v43  ;;  %9607 = vst [vmem:[#allocation179_spill] sm:$0xff] %v8283_v57  ;;  %v6227_v45 = vld [vmem:[%s9561_s23 + $0x108] sm:$0xff]  }
 0x447   : > { %v8288_v9 = vpop.permute.xlu1 %4165 }
 0x448   : > { %9608 = vst [vmem:[#allocation180_spill] sm:$0xff] %v8288_v9 }
 0x44b   : > { %6021 = vmatmul.mubr.bf16.gmra.mrb[64].mxu0 %v6214_v48  ;;  %6089 = vmatmul.mubr.bf16.gmra.mrb[72].mxu1 %v6215_v29  ;;  %v8290_v48 = vpop.permute.xlu0 %4180  ;;  %v8292_v29 = vpop.permute.xlu1 %4175 }
 0x44c   : > { %6024 = vmatprep.mubr.bf16.mxu0 %v6216_v8  ;;  %6092 = vmatprep.mubr.bf16.mxu1 %v6217_v51  ;;  %9609 = vst [vmem:[#allocation181_spill] sm:$0xff] %v8290_v48  ;;  %9610 = vst [vmem:[#allocation182_spill] sm:$0xff] %v8292_v29 }
 0x44f   : > { %v4191_v8 = vpop.permute.xlu0 %4190  ;;  %v8294_v51 = vpop.permute.xlu1 %4185 }
 0x450   : > { %9611 = vst [vmem:[#allocation183_spill] sm:$0xff] %v8294_v51 }
 0x453   : > { %6025 = vmatmul.mubr.bf16.gmra.mrb[68].mxu0 %v6218_v62  ;;  %6093 = vmatmul.mubr.bf16.gmra.mrb[76].mxu1 %v6219_v5  ;;  %v4201_v62 = vpop.permute.xlu0 %4200  ;;  %v8296_v5 = vpop.permute.xlu1 %4195 }
 0x454   : > { %6028 = vmatprep.mubr.bf16.mxu0 %v6220_v38  ;;  %6096 = vmatprep.mubr.bf16.mxu1 %v6221_v35 }
 0x457   : > { %v8298_v38 = vpop.permute.xlu0 %4210  ;;  %v8300_v35 = vpop.permute.xlu1 %4205 }
 0x45b   : > { %6029 = vmatmul.mubr.bf16.gmra.mrb[72].mxu0 %v6222_v4  ;;  %6097 = vmatmul.mubr.bf16.gmra.mrb[80].mxu1 %v6223_v39  ;;  %v8302_v4 = vpop.permute.xlu0 %4220  ;;  %v8304_v39 = vpop.permute.xlu1 %4215 }
 0x45c   : > { %6032 = vmatprep.mubr.bf16.mxu0 %v6224_v10 }
 0x45f   : > { %v8306_v10 = vpop.permute.xlu0 %4230 }
 0x463   : > { %6033 = vmatmul.mubr.bf16.gmra.mrb[76].mxu0 %v6225_v21  ;;  %v8308_v21 = vpop.permute.xlu1 %4225 }
 0x464   : > { %6036 = vmatprep.mubr.bf16.mxu0 %v6226_v13  ;;  %v8310_v13 = vpop.permute.xlu0 %4240 }
 0x468   : > { %v8314_v29 = vpop.permute.xlu0 %4250 }
 0x46b   : > { %6037 = vmatmul.mubr.bf16.gmra.mrb[80].mxu0 %v6227_v45  ;;  %v8312_v45 = vpop.permute.xlu1 %4235 }
 0x46c   : > { %v8318_v57 = vpop.permute.xlu0 %4260 }
 0x46f   : > { %v8316_v51 = vpop.permute.xlu1 %4245 }
 0x470   : > { %v8322_v48 = vpop.permute.xlu0 %4270 }
 0x473   : > { %v8320_v43 = vpop.permute.xlu1 %4255 }
 0x474   : > { %v8326_v61 = vpop.permute.xlu0 %4280 }
 0x477   : > { %v8324_v9 = vpop.permute.xlu1 %4265 }
 0x478   : > { %v8330_v60 = vpop.permute.xlu0 %4290 }
 0x47b   : > { %v8328_v34 = vpop.permute.xlu1 %4275 }
 0x47c   : > { %v8334_v27 = vpop.permute.xlu0 %4300 }
 0x47f   : > { %v8332_v42 = vpop.permute.xlu1 %4285 }
 0x480   : > { %v8338_v15 = vpop.permute.xlu0 %4310 }
 0x483   : > { %v8336_v56 = vpop.permute.xlu1 %4295 }
 0x484   : > { %v8342_v20 = vpop.permute.xlu0 %4320 }
 0x487   : > { %v8340_v36 = vpop.permute.xlu1 %4305 }
 0x4be   : > { %v5974_v37 = vpop.f32.mrb[16].mxu0  ;;  %v6042_v53 = vpop.f32.mrb[24].mxu1 }
 0x4bf   : > { %v3722_v46 = vmul.f32 %v5974_v37, %v9612_v30  ;;  %v3790_v1 = vmul.f32 %v6042_v53, %v9613_v22  ;;  %v2569_v25 = vpop.f32.mrb[17].mxu0  ;;  %v2841_v28 = vpop.f32.mrb[25].mxu1  ;;  %v9617_v22 = vld [vmem:[#allocation19_spill] sm:$0xff] }
 0x4c0   : > { %v3720_v0 = vmul.f32 %v9614_v19, %v2569_v25  ;;  %v3788_v24 = vmul.f32 %v9615_v49, %v2841_v28  ;;  %v5975_v63 = vpop.f32.mrb[18].mxu0  ;;  %v6043_v41 = vpop.f32.mrb[26].mxu1 }
 0x4c1   : > { %v4490_v23 = vadd.f32 %v7780_v55, %v3722_v46  ;;  %v4558_v47 = vadd.f32 %v4201_v62, %v3790_v1  ;;  %v2572_v26 = vpop.f32.mrb[19].mxu0  ;;  %v2844_v44 = vpop.f32.mrb[27].mxu1  ;;  %v3723_v30 = vmul.f32 %v5975_v63, %v9616_v17  ;;  %v9619_v1 = vld [vmem:[#allocation89_spill] sm:$0xff] }
 0x4c2   : > { %v4488_v31 = vadd.f32 %v7764_v32, %v3720_v0  ;;  %v4556_v37 = vadd.f32 %v4191_v8, %v3788_v24  ;;  %v3721_v53 = vmul.f32 %v9617_v22, %v2572_v26  ;;  %v8354_v28 = vpop.permute.xlu1 %4315  ;;  %v8356_v49 = vpop.permute.xlu0 %4330  ;;  %v3791_v46 = vmul.f32 %v6043_v41, %v9619_v1  ;;  %v9620_v24 = vld [vmem:[#allocation26_spill] sm:$0xff] }
 0x4c3   : > { %v4827_v52 = vsel %vm4616_vm4, %v4558_v47, -inf  ;;  %v4623_v19 = vsel %vm4616_vm4, %v4490_v23, -inf  ;;  %9618 = vst [vmem:[#allocation22_spill] sm:$0xff] %v8356_v49  ;;  %v4491_v55 = vadd.f32 %v7775_v6, %v3723_v30  ;;  %v9621_v30 = vld [vmem:[#allocation87_spill] sm:$0xff] }
 0x4c4   : > { %4828 = vmax.xlane.f32.xlu1 %v4827_v52  ;;  %4624 = vmax.xlane.f32.xlu0 %v4623_v19  ;;  %v4489_v17 = vadd.f32 %v7762_v59, %v3721_v53  ;;  %v4821_v23 = vsel %vm4616_vm4, %v4556_v37, -inf  ;;  %v4617_v52 = vsel %vm4616_vm4, %v4488_v31, -inf  ;;  %v4559_v41 = vadd.f32 %v8300_v35, %v3791_v46  ;;  %v9622_v53 = vld [vmem:[#allocation94_spill] sm:$0xff]  ;;  %v9623_v46 = vld [vmem:[#allocation24_spill] sm:$0xff]  ;;  %v9629_v49 = vld [vmem:[#allocation23_spill] sm:$0xff] }
 0x4c5   : > { %v3789_v22 = vmul.f32 %v9621_v30, %v2844_v44  ;;  %v4626_v1 = vsel %vm4616_vm4, %v4491_v55, -inf }
 0x4c6   : > { %v5978_v32 = vpop.f32.mrb[20].mxu0  ;;  %v6046_v0 = vpop.f32.mrb[28].mxu1  ;;  %v4620_v37 = vsel %vm4616_vm4, %v4489_v17, -inf  ;;  %v4830_v44 = vsel %vm4616_vm4, %v4559_v41, -inf }
 0x4c7   : > { %v3726_v26 = vmul.f32 %v5978_v32, %v9620_v24  ;;  %v2585_v63 = vpop.f32.mrb[21].mxu0  ;;  %v2857_v47 = vpop.f32.mrb[29].mxu1  ;;  %v3794_v19 = vmul.f32 %v6046_v0, %v9622_v53  ;;  %v4557_v24 = vadd.f32 %v8296_v5, %v3789_v22  ;;  %v9625_v22 = vld [vmem:[#allocation92_spill] sm:$0xff] }
 0x4c8   : > { %4822 = vmax.xlane.f32.xlu1 %v4821_v23  ;;  %v6047_v25 = vpop.f32.mrb[30].mxu1  ;;  %4618 = vmax.xlane.f32.xlu0 %v4617_v52  ;;  %v5979_v8 = vpop.f32.mrb[22].mxu0  ;;  %v3724_v0 = vmul.f32 %v9623_v46, %v2585_v63  ;;  %v3792_v41 = vmul.f32 %v9625_v22, %v2857_v47 }
 0x4c9   : > { %v2588_v62 = vpop.f32.mrb[23].mxu0  ;;  %v2860_v6 = vpop.f32.mrb[31].mxu1  ;;  %v4494_v59 = vadd.f32 %v7810_v2, %v3726_v26  ;;  %v4562_v2 = vadd.f32 %v8302_v4, %v3794_v19  ;;  %v9624_v26 = vld [vmem:[#allocation25_spill] sm:$0xff]  ;;  %v4824_v4 = vsel %vm4616_vm4, %v4557_v24, -inf }
 0x4ca   : > { %v8370_v31 = vpop.permute.xlu1 %4325  ;;  %v8372_v32 = vpop.permute.xlu0 %4340  ;;  %v3727_v55 = vmul.f32 %v5979_v8, %v9624_v26  ;;  %v4492_v63 = vadd.f32 %v7793_v7, %v3724_v0  ;;  %v9626_v19 = vld [vmem:[#allocation93_spill] sm:$0xff]  ;;  %v3725_v47 = vmul.f32 %v9629_v49, %v2588_v62 }
 0x4cb   : > { %v4635_v30 = vsel %vm4616_vm4, %v4494_v59, -inf  ;;  %v3795_v8 = vmul.f32 %v6047_v25, %v9626_v19  ;;  %v4839_v59 = vsel %vm4616_vm4, %v4562_v2, -inf  ;;  %v9630_v25 = vld [vmem:[#allocation30_spill] sm:$0xff] }
 0x4cc   : > { %4627 = vmax.xlane.f32.xlu0 %v4626_v1  ;;  %4621 = vmax.xlane.f32.xlu1 %v4620_v37  ;;  %v4495_v46 = vadd.f32 %v7805_v40, %v3727_v55  ;;  %v4629_v55 = vsel %vm4616_vm4, %v4492_v63, -inf }
 0x4cd   : > { %v4563_v7 = vadd.f32 %v8308_v21, %v3795_v8  ;;  %v4493_v21 = vadd.f32 %v7788_v54, %v3725_v47  ;;  %v9636_v47 = vld [vmem:[#allocation29_spill] sm:$0xff] }
 0x4ce   : > { %v5982_v23 = vpop.f32.mrb[24].mxu0  ;;  %v6050_v35 = vpop.f32.mrb[32].mxu1 }
 0x4cf   : > { %v2601_v52 = vpop.f32.mrb[25].mxu0  ;;  %v2873_v17 = vpop.f32.mrb[33].mxu1  ;;  %v3730_v0 = vmul.f32 %v5982_v23, %v9630_v25  ;;  %v9631_v23 = vld [vmem:[#allocation91_spill] sm:$0xff]  ;;  %v4842_v25 = vsel %vm4616_vm4, %v4563_v7, -inf }
 0x4d0   : > { %v6051_v53 = vpop.f32.mrb[34].mxu1  ;;  %4831 = vmax.xlane.f32.xlu0 %v4830_v44  ;;  %4636 = vmax.xlane.f32.xlu1 %v4635_v30  ;;  %v5983_v1 = vpop.f32.mrb[26].mxu0  ;;  %v4560_v30 = vadd.f32 %v8298_v38, %v3792_v41  ;;  %v3793_v41 = vmul.f32 %v9631_v23, %v2860_v6 }
 0x4d1   : > { %v8380_v37 = vpop.f32.mrb[27].mxu0  ;;  %v8382_v5 = vpop.f32.mrb[35].mxu1  ;;  %v4498_v8 = vadd.f32 %v7836_v50, %v3730_v0  ;;  %v4632_v50 = vsel %vm4616_vm4, %v4493_v21, -inf  ;;  %v3731_v7 = vmul.f32 %v5983_v1, %v9636_v47 }
 0x4d2   : > { %v8390_v44 = vpop.permute.xlu1 %4335  ;;  %v8392_v26 = vpop.permute.xlu0 %4350 }
 0x4d3   : > { %9627 = vst [vmem:[#allocation90_spill] sm:$0xff] %v8390_v44  ;;  %9628 = vst [vmem:[#allocation20_spill] sm:$0xff] %v8392_v26  ;;  %v4561_v26 = vadd.f32 %v8304_v39, %v3793_v41 }
 0x4d4   : > { %4825 = vmax.xlane.f32.xlu0 %v4824_v4  ;;  %4840 = vmax.xlane.f32.xlu1 %v4839_v59  ;;  %v4638_v4 = vsel %vm4616_vm4, %v4495_v46, -inf  ;;  %v9632_v59 = vld [vmem:[#allocation98_spill] sm:$0xff]  ;;  %v4833_v46 = vsel %vm4616_vm4, %v4560_v30, -inf }
 0x4d5   : > { %v3798_v63 = vmul.f32 %v6050_v35, %v9632_v59  ;;  %v9635_v35 = vld [vmem:[#allocation28_spill] sm:$0xff]  ;;  %v4647_v59 = vsel %vm4616_vm4, %v4498_v8, -inf  ;;  %v4836_v1 = vsel %vm4616_vm4, %v4561_v26, -inf  ;;  %v4499_v8 = vadd.f32 %v7831_v16, %v3731_v7  ;;  %v9642_v16 = vld [vmem:[#allocation34_spill] sm:$0xff] }
 0x4d6   : > { %v5986_v22 = vpop.f32.mrb[28].mxu0  ;;  %v8396_v24 = vpop.f32.mrb[36].mxu1  ;;  %v3728_v30 = vmul.f32 %v9635_v35, %v2601_v52 }
 0x4d7   : > { %v8400_v40 = vpop.f32.mrb[29].mxu0  ;;  %v8402_v2 = vpop.f32.mrb[37].mxu1  ;;  %v4566_v6 = vadd.f32 %v8310_v13, %v3798_v63  ;;  %v9637_v13 = vld [vmem:[#allocation96_spill] sm:$0xff] }
 0x4d8   : > { %v8406_v19 = vpop.f32.mrb[38].mxu1  ;;  %4630 = vmax.xlane.f32.xlu1 %v4629_v55  ;;  %4639 = vmax.xlane.f32.xlu0 %v4638_v4  ;;  %v8408_v38 = vpop.f32.mrb[30].mxu0  ;;  %v3796_v52 = vmul.f32 %v9637_v13, %v2873_v17  ;;  %v4496_v63 = vadd.f32 %v7820_v58, %v3728_v30  ;;  %v9641_v17 = vld [vmem:[#allocation27_spill] sm:$0xff]  ;;  %v3734_v30 = vmul.f32 %v5986_v22, %v9642_v16 }
 0x4d9   : > { %v8410_v49 = vpop.f32.mrb[31].mxu0  ;;  %v8412_v62 = vpop.f32.mrb[39].mxu1  ;;  %v4851_v47 = vsel %vm4616_vm4, %v4566_v6, -inf  ;;  %v3729_v13 = vmul.f32 %v9641_v17, %v8380_v37  ;;  %v9643_v22 = vld [vmem:[#allocation95_spill] sm:$0xff] }
 0x4da   : > { %v8420_v55 = vpop.permute.xlu1 %4345  ;;  %v8422_v4 = vpop.permute.xlu0 %4360  ;;  %v4502_v17 = vadd.f32 %v7862_v11, %v3734_v30 }
 0x4db   : > { %9633 = vst [vmem:[#allocation88_spill] sm:$0xff] %v8420_v55  ;;  %9634 = vst [vmem:[#allocation21_spill] sm:$0xff] %v8422_v4  ;;  %v4564_v4 = vadd.f32 %v8306_v10, %v3796_v52 }
 0x4dc   : > { %4834 = vmax.xlane.f32.xlu1 %v4833_v46  ;;  %4843 = vmax.xlane.f32.xlu0 %v4842_v25  ;;  %v9638_v25 = vld [vmem:[#allocation97_spill] sm:$0xff] }
 0x4dd   : > { %v3799_v35 = vmul.f32 %v6051_v53, %v9638_v25  ;;  %v4650_v25 = vsel %vm4616_vm4, %v4499_v8, -inf  ;;  %v4845_v16 = vsel %vm4616_vm4, %v4564_v4, -inf  ;;  %v9647_v4 = vld [vmem:[#allocation32_spill] sm:$0xff] }
 0x4de   : > { %v8425_v44 = vpop.f32.mrb[32].mxu0  ;;  %v8427_v54 = vpop.f32.mrb[40].mxu1  ;;  %v3732_v30 = vmul.f32 %v9647_v4, %v8400_v40  ;;  %v9649_v40 = vld [vmem:[#allocation100_spill] sm:$0xff] }
 0x4df   : > { %v8433_v0 = vpop.f32.mrb[33].mxu0  ;;  %v8435_v23 = vpop.f32.mrb[41].mxu1  ;;  %v4567_v53 = vadd.f32 %v8316_v51, %v3799_v35  ;;  %v4497_v51 = vadd.f32 %v7818_v33, %v3729_v13  ;;  %v3797_v35 = vmul.f32 %v9643_v22, %v8382_v5 }
 0x4e0   : > { %v8438_v46 = vpop.f32.mrb[42].mxu1  ;;  %4633 = vmax.xlane.f32.xlu0 %v4632_v50  ;;  %4648 = vmax.xlane.f32.xlu1 %v4647_v59  ;;  %v8440_v39 = vpop.f32.mrb[34].mxu0  ;;  %v4500_v4 = vadd.f32 %v7846_v3, %v3732_v30 }
 0x4e1   : > { %v8442_v41 = vpop.f32.mrb[35].mxu0  ;;  %v8444_v21 = vpop.f32.mrb[43].mxu1  ;;  %v4565_v33 = vadd.f32 %v8312_v45, %v3797_v35  ;;  %v4644_v11 = vsel %vm4616_vm4, %v4497_v51, -inf  ;;  %v4659_v45 = vsel %vm4616_vm4, %v4502_v17, -inf }
 0x4e2   : > { %v8452_v50 = vpop.permute.xlu1 %4355  ;;  %v8454_v59 = vpop.permute.xlu0 %4370 }
 0x4e3   : > { %9639 = vst [vmem:[#allocation19_spill] sm:$0xff] %v8452_v50  ;;  %9640 = vst [vmem:[#allocation89_spill] sm:$0xff] %v8454_v59 }
 0x4e4   : > { %4837 = vmax.xlane.f32.xlu0 %v4836_v1  ;;  %4852 = vmax.xlane.f32.xlu1 %v4851_v47  ;;  %v4641_v1 = vsel %vm4616_vm4, %v4496_v63, -inf  ;;  %v9644_v63 = vld [vmem:[#allocation102_spill] sm:$0xff] }
 0x4e5   : > { %v3802_v8 = vmul.f32 %v8396_v24, %v9644_v63 }
 0x4e6   : > { %v8459_v26 = vpop.f32.mrb[36].mxu0  ;;  %v8461_v58 = vpop.f32.mrb[44].mxu1 }
 0x4e7   : > { %v8465_v6 = vpop.f32.mrb[37].mxu0  ;;  %v8467_v7 = vpop.f32.mrb[45].mxu1  ;;  %v4570_v24 = vadd.f32 %v8318_v57, %v3802_v8  ;;  %v3800_v8 = vmul.f32 %v9649_v40, %v8402_v2  ;;  %v9653_v2 = vld [vmem:[#allocation31_spill] sm:$0xff] }
 0x4e8   : > { %v8471_v10 = vpop.f32.mrb[46].mxu1  ;;  %4642 = vmax.xlane.f32.xlu1 %v4641_v1  ;;  %4651 = vmax.xlane.f32.xlu0 %v4650_v25  ;;  %v8473_v37 = vpop.f32.mrb[38].mxu0  ;;  %v4854_v1 = vsel %vm4616_vm4, %v4567_v53, -inf  ;;  %v9648_v53 = vld [vmem:[#allocation33_spill] sm:$0xff] }
 0x4e9   : > { %v8475_v52 = vpop.f32.mrb[39].mxu0  ;;  %v8477_v47 = vpop.f32.mrb[47].mxu1  ;;  %v3735_v22 = vmul.f32 %v8408_v38, %v9648_v53  ;;  %v4848_v38 = vsel %vm4616_vm4, %v4565_v33, -inf  ;;  %v9650_v53 = vld [vmem:[#allocation101_spill] sm:$0xff]  ;;  %v3733_v33 = vmul.f32 %v9653_v2, %v8410_v49 }
 0x4ea   : > { %v8487_v25 = vpop.permute.xlu1 %4365  ;;  %v8489_v59 = vpop.permute.xlu0 %4380  ;;  %v3803_v17 = vmul.f32 %v8406_v19, %v9650_v53 }
 0x4eb   : > { %9645 = vst [vmem:[#allocation26_spill] sm:$0xff] %v8487_v25  ;;  %9646 = vst [vmem:[#allocation87_spill] sm:$0xff] %v8489_v59  ;;  %v4503_v59 = vadd.f32 %v7857_v18, %v3735_v22  ;;  %v4568_v25 = vadd.f32 %v8314_v29, %v3800_v8  ;;  %v9654_v18 = vld [vmem:[#allocation38_spill] sm:$0xff] }
 0x4ec   : > { %4846 = vmax.xlane.f32.xlu1 %v4845_v16  ;;  %4855 = vmax.xlane.f32.xlu0 %v4854_v1  ;;  %v4571_v19 = vadd.f32 %v8324_v9, %v3803_v17  ;;  %v9655_v17 = vld [vmem:[#allocation147_spill] sm:$0xff] }
 0x4ed   : > { %v4662_v29 = vsel %vm4616_vm4, %v4503_v59, -inf }
 0x4ee   : > { %v8492_v13 = vpop.f32.mrb[40].mxu0  ;;  %v8494_v5 = vpop.f32.mrb[48].mxu1 }
 0x4ef   : > { %v8502_v63 = vpop.f32.mrb[41].mxu0  ;;  %v8504_v16 = vpop.f32.mrb[49].mxu1 }
 0x4f0   : > { %v8507_v35 = vpop.f32.mrb[50].mxu1  ;;  %4645 = vmax.xlane.f32.xlu0 %v4644_v11  ;;  %4660 = vmax.xlane.f32.xlu1 %v4659_v45  ;;  %v8509_v1 = vpop.f32.mrb[42].mxu0  ;;  %v4863_v11 = vsel %vm4616_vm4, %v4570_v24, -inf  ;;  %v3738_v24 = vmul.f32 %v8425_v44, %v9654_v18  ;;  %v4501_v44 = vadd.f32 %v9655_v17, %v3733_v33  ;;  %v9657_v18 = vld [vmem:[#allocation151_spill] sm:$0xff] }
 0x4f1   : > { %v8511_v51 = vpop.f32.mrb[43].mxu0  ;;  %v8513_v57 = vpop.f32.mrb[51].mxu1 }
 0x4f2   : > { %v8523_v45 = vpop.permute.xlu1 %4375  ;;  %v8525_v50 = vpop.permute.xlu0 %4390 }
 0x4f3   : > { %9651 = vst [vmem:[#allocation94_spill] sm:$0xff] %v8523_v45  ;;  %9652 = vst [vmem:[#allocation24_spill] sm:$0xff] %v8525_v50  ;;  %v4506_v50 = vadd.f32 %v9657_v18, %v3738_v24  ;;  %v4857_v45 = vsel %vm4616_vm4, %v4568_v25, -inf  ;;  %v4656_v24 = vsel %vm4616_vm4, %v4501_v44, -inf  ;;  %v9661_v25 = vld [vmem:[#allocation36_spill] sm:$0xff] }
 0x4f4   : > { %4849 = vmax.xlane.f32.xlu0 %v4848_v38  ;;  %4864 = vmax.xlane.f32.xlu1 %v4863_v11  ;;  %v4653_v38 = vsel %vm4616_vm4, %v4500_v4, -inf  ;;  %v9656_v11 = vld [vmem:[#allocation99_spill] sm:$0xff]  ;;  %v9658_v4 = vld [vmem:[#allocation106_spill] sm:$0xff] }
 0x4f5   : > { %v3801_v2 = vmul.f32 %v9656_v11, %v8412_v62  ;;  %v3806_v59 = vmul.f32 %v8427_v54, %v9658_v4  ;;  %v3736_v11 = vmul.f32 %v9661_v25, %v8433_v0  ;;  %v9666_v0 = vld [vmem:[#allocation104_spill] sm:$0xff]  ;;  %v9667_v25 = vld [vmem:[#allocation149_spill] sm:$0xff] }
 0x4f6   : > { %v8530_v40 = vpop.f32.mrb[44].mxu0  ;;  %v8532_v3 = vpop.f32.mrb[52].mxu1 }
 0x4f7   : > { %v8537_v30 = vpop.f32.mrb[45].mxu0  ;;  %v8539_v22 = vpop.f32.mrb[53].mxu1  ;;  %v4569_v33 = vadd.f32 %v8320_v43, %v3801_v2  ;;  %v4574_v54 = vadd.f32 %v8326_v61, %v3806_v59  ;;  %v4671_v43 = vsel %vm4616_vm4, %v4506_v50, -inf  ;;  %v3804_v59 = vmul.f32 %v9666_v0, %v8435_v23  ;;  %v9672_v23 = vld [vmem:[#allocation35_spill] sm:$0xff] }
 0x4f8   : > { %v8543_v8 = vpop.f32.mrb[54].mxu1  ;;  %4654 = vmax.xlane.f32.xlu1 %v4653_v38  ;;  %4663 = vmax.xlane.f32.xlu0 %v4662_v29  ;;  %v8545_v49 = vpop.f32.mrb[46].mxu0  ;;  %v4866_v38 = vsel %vm4616_vm4, %v4571_v19, -inf  ;;  %v9662_v19 = vld [vmem:[#allocation37_spill] sm:$0xff] }
 0x4f9   : > { %v8547_v53 = vpop.f32.mrb[47].mxu0  ;;  %v8549_v9 = vpop.f32.mrb[55].mxu1 }
 0x4fa   : > { %v8559_v29 = vpop.permute.xlu1 %4385  ;;  %v8561_v55 = vpop.permute.xlu0 %4400 }
 0x4fb   : > { %9659 = vst [vmem:[#allocation25_spill] sm:$0xff] %v8559_v29  ;;  %9660 = vst [vmem:[#allocation92_spill] sm:$0xff] %v8561_v55  ;;  %v9668_v55 = vld [vmem:[#allocation105_spill] sm:$0xff]  ;;  %v9669_v29 = vld [vmem:[#allocation150_spill] sm:$0xff] }
 0x4fc   : > { %4858 = vmax.xlane.f32.xlu1 %v4857_v45  ;;  %4867 = vmax.xlane.f32.xlu0 %v4866_v38  ;;  %v3739_v45 = vmul.f32 %v8440_v39, %v9662_v19  ;;  %v4860_v39 = vsel %vm4616_vm4, %v4569_v33, -inf  ;;  %v4504_v19 = vadd.f32 %v9667_v25, %v3736_v11  ;;  %v3807_v50 = vmul.f32 %v8438_v46, %v9668_v55  ;;  %v9673_v46 = vld [vmem:[#allocation42_spill] sm:$0xff] }
 0x4fd   : > { %v3737_v33 = vmul.f32 %v9672_v23, %v8442_v41 }
 0x4fe   : > { %v8564_v17 = vpop.f32.mrb[48].mxu0  ;;  %v8566_v62 = vpop.f32.mrb[56].mxu1  ;;  %v4575_v55 = vadd.f32 %v8332_v42, %v3807_v50  ;;  %v9675_v50 = vld [vmem:[#allocation148_spill] sm:$0xff] }
 0x4ff   : > { %v8574_v18 = vpop.f32.mrb[49].mxu0  ;;  %v8576_v4 = vpop.f32.mrb[57].mxu1 }
 0x500   : > { %v8579_v2 = vpop.f32.mrb[58].mxu1  ;;  %4657 = vmax.xlane.f32.xlu0 %v4656_v24  ;;  %4672 = vmax.xlane.f32.xlu1 %v4671_v43  ;;  %v8581_v38 = vpop.f32.mrb[50].mxu0  ;;  %v4875_v24 = vsel %vm4616_vm4, %v4574_v54, -inf }
 0x501   : > { %9663 = vst [vmem:[#allocation93_spill] sm:$0xff] %v8579_v2  ;;  %v8583_v44 = vpop.f32.mrb[51].mxu0  ;;  %v8585_v61 = vpop.f32.mrb[59].mxu1  ;;  %v4507_v2 = vadd.f32 %v9669_v29, %v3739_v45  ;;  %v3742_v29 = vmul.f32 %v8459_v26, %v9673_v46  ;;  %v4505_v26 = vadd.f32 %v9675_v50, %v3737_v33  ;;  %v9677_v46 = vld [vmem:[#allocation155_spill] sm:$0xff] }
 0x502   : > { %9664 = vst [vmem:[#allocation23_spill] sm:$0xff] %v8583_v44  ;;  %9665 = vst [vmem:[#allocation30_spill] sm:$0xff] %v8585_v61  ;;  %v8595_v43 = vpop.permute.xlu1 %4395  ;;  %v8597_v44 = vpop.permute.xlu0 %4410  ;;  %v4572_v61 = vadd.f32 %v8322_v48, %v3804_v59 }
 0x503   : > { %9670 = vst [vmem:[#allocation91_spill] sm:$0xff] %v8595_v43  ;;  %9671 = vst [vmem:[#allocation98_spill] sm:$0xff] %v8597_v44  ;;  %v4674_v48 = vsel %vm4616_vm4, %v4507_v2, -inf  ;;  %v4510_v44 = vadd.f32 %v9677_v46, %v3742_v29  ;;  %v4668_v29 = vsel %vm4616_vm4, %v4505_v26, -inf }
 0x504   : > { %4861 = vmax.xlane.f32.xlu0 %v4860_v39  ;;  %4876 = vmax.xlane.f32.xlu1 %v4875_v24  ;;  %v4665_v39 = vsel %vm4616_vm4, %v4504_v19, -inf  ;;  %v9676_v24 = vld [vmem:[#allocation103_spill] sm:$0xff]  ;;  %v9678_v19 = vld [vmem:[#allocation110_spill] sm:$0xff]  ;;  %v4869_v43 = vsel %vm4616_vm4, %v4572_v61, -inf  ;;  %v9681_v61 = vld [vmem:[#allocation40_spill] sm:$0xff] }
 0x505   : > { %v3805_v23 = vmul.f32 %v9676_v24, %v8444_v21  ;;  %v3810_v2 = vmul.f32 %v8461_v58, %v9678_v19  ;;  %v3740_v24 = vmul.f32 %v9681_v61, %v8465_v6  ;;  %v9686_v6 = vld [vmem:[#allocation108_spill] sm:$0xff]  ;;  %v9687_v61 = vld [vmem:[#allocation153_spill] sm:$0xff] }
 0x506   : > { %v8602_v0 = vpop.f32.mrb[52].mxu0  ;;  %v8604_v11 = vpop.f32.mrb[60].mxu1 }
 0x507   : > { %v8609_v54 = vpop.f32.mrb[53].mxu0  ;;  %v8611_v45 = vpop.f32.mrb[61].mxu1  ;;  %v4573_v33 = vadd.f32 %v8328_v34, %v3805_v23  ;;  %v4578_v58 = vadd.f32 %v8334_v27, %v3810_v2  ;;  %v4683_v34 = vsel %vm4616_vm4, %v4510_v44, -inf  ;;  %v3808_v2 = vmul.f32 %v9686_v6, %v8467_v7  ;;  %v9692_v7 = vld [vmem:[#allocation39_spill] sm:$0xff] }
 0x508   : > { %v8615_v59 = vpop.f32.mrb[62].mxu1  ;;  %4666 = vmax.xlane.f32.xlu1 %v4665_v39  ;;  %4675 = vmax.xlane.f32.xlu0 %v4674_v48  ;;  %v8617_v41 = vpop.f32.mrb[54].mxu0  ;;  %v4878_v39 = vsel %vm4616_vm4, %v4575_v55, -inf  ;;  %v9682_v55 = vld [vmem:[#allocation41_spill] sm:$0xff] }
 0x509   : > { %v8619_v25 = vpop.f32.mrb[55].mxu0  ;;  %v8621_v42 = vpop.f32.mrb[63].mxu1 }
 0x50a   : > { %9674 = vst [vmem:[#allocation28_spill] sm:$0xff] %v8619_v25  ;;  %v8631_v48 = vpop.permute.xlu1 %4405  ;;  %v8633_v25 = vpop.permute.xlu0 %4420 }
 0x50b   : > { %9679 = vst [vmem:[#allocation29_spill] sm:$0xff] %v8631_v48  ;;  %9680 = vst [vmem:[#allocation96_spill] sm:$0xff] %v8633_v25  ;;  %v9688_v25 = vld [vmem:[#allocation109_spill] sm:$0xff]  ;;  %v9689_v48 = vld [vmem:[#allocation154_spill] sm:$0xff] }
 0x50c   : > { %4870 = vmax.xlane.f32.xlu1 %v4869_v43  ;;  %4879 = vmax.xlane.f32.xlu0 %v4878_v39  ;;  %v3743_v43 = vmul.f32 %v8473_v37, %v9682_v55  ;;  %v4872_v37 = vsel %vm4616_vm4, %v4573_v33, -inf  ;;  %v4508_v55 = vadd.f32 %v9687_v61, %v3740_v24  ;;  %v3811_v44 = vmul.f32 %v8471_v10, %v9688_v25  ;;  %v9693_v25 = vld [vmem:[#allocation46_spill] sm:$0xff]  ;;  %v9696_v61 = vld [vmem:[#allocation133_spill] sm:$0xff] }
 0x50d   : > { %v3741_v33 = vmul.f32 %v9692_v7, %v8475_v52 }
 0x50e   : > { %v8636_v50 = vpop.f32.mrb[56].mxu0  ;;  %v8638_v21 = vpop.f32.mrb[64].mxu1  ;;  %v4579_v10 = vadd.f32 %v8340_v36, %v3811_v44  ;;  %v9698_v44 = vld [vmem:[#allocation152_spill] sm:$0xff] }
 0x50f   : > { %v8646_v46 = vpop.f32.mrb[57].mxu0  ;;  %v8648_v19 = vpop.f32.mrb[65].mxu1 }
 0x510   : > { %v8651_v23 = vpop.f32.mrb[66].mxu1  ;;  %4669 = vmax.xlane.f32.xlu0 %v4668_v29  ;;  %4684 = vmax.xlane.f32.xlu1 %v4683_v34  ;;  %v8653_v39 = vpop.f32.mrb[58].mxu0  ;;  %v4887_v29 = vsel %vm4616_vm4, %v4578_v58, -inf }
 0x511   : > { %9683 = vst [vmem:[#allocation97_spill] sm:$0xff] %v8651_v23  ;;  %v8655_v26 = vpop.f32.mrb[59].mxu0  ;;  %v8657_v27 = vpop.f32.mrb[67].mxu1  ;;  %v4511_v23 = vadd.f32 %v9689_v48, %v3743_v43  ;;  %v3746_v48 = vmul.f32 %v8492_v13, %v9693_v25  ;;  %v4509_v25 = vadd.f32 %v9698_v44, %v3741_v33  ;;  %v9702_v33 = vld [vmem:[#allocation44_spill] sm:$0xff] }
 0x512   : > { %9684 = vst [vmem:[#allocation27_spill] sm:$0xff] %v8655_v26  ;;  %9685 = vst [vmem:[#allocation34_spill] sm:$0xff] %v8657_v27  ;;  %v8667_v34 = vpop.permute.xlu1 %4415  ;;  %v8669_v26 = vpop.permute.xlu0 %4430  ;;  %v4576_v27 = vadd.f32 %v8330_v60, %v3808_v2  ;;  %v3744_v44 = vmul.f32 %v9702_v33, %v8502_v63  ;;  %v9708_v33 = vld [vmem:[#allocation157_spill] sm:$0xff] }
 0x513   : > { %9690 = vst [vmem:[#allocation95_spill] sm:$0xff] %v8667_v34  ;;  %9691 = vst [vmem:[#allocation102_spill] sm:$0xff] %v8669_v26  ;;  %v4686_v60 = vsel %vm4616_vm4, %v4511_v23, -inf  ;;  %v9699_v26 = vld [vmem:[#allocation107_spill] sm:$0xff] }
 0x514   : > { %4873 = vmax.xlane.f32.xlu0 %v4872_v37  ;;  %4888 = vmax.xlane.f32.xlu1 %v4887_v29  ;;  %v4677_v37 = vsel %vm4616_vm4, %v4508_v55, -inf  ;;  %v3809_v34 = vmul.f32 %v9699_v26, %v8477_v47  ;;  %v4881_v55 = vsel %vm4616_vm4, %v4576_v27, -inf  ;;  %v9700_v23 = vld [vmem:[#allocation159_spill] sm:$0xff]  ;;  %v4680_v27 = vsel %vm4616_vm4, %v4509_v25, -inf }
 0x516   : > { %v8674_v6 = vpop.f32.mrb[60].mxu0  ;;  %v8676_v24 = vpop.f32.mrb[68].mxu1 }
 0x517   : > { %v8681_v58 = vpop.f32.mrb[61].mxu0  ;;  %v8683_v43 = vpop.f32.mrb[69].mxu1 }
 0x518   : > { %9694 = vst [vmem:[#allocation32_spill] sm:$0xff] %v8683_v43  ;;  %v6087_v2 = vpop.f32.mrb[70].mxu1  ;;  %4678 = vmax.xlane.f32.xlu1 %v4677_v37  ;;  %4687 = vmax.xlane.f32.xlu0 %v4686_v60  ;;  %v8687_v52 = vpop.f32.mrb[62].mxu0  ;;  %v4514_v43 = vadd.f32 %v9700_v23, %v3746_v48  ;;  %v9701_v37 = vld [vmem:[#allocation114_spill] sm:$0xff] }
 0x519   : > { %9695 = vst [vmem:[#allocation33_spill] sm:$0xff] %v8687_v52  ;;  %v3835_v29 = vmul.f32 %v6087_v2, %v9696_v61  ;;  %v8690_v7 = vpop.f32.mrb[63].mxu0  ;;  %v8692_v36 = vpop.f32.mrb[71].mxu1  ;;  %v3814_v60 = vmul.f32 %v8494_v5, %v9701_v37  ;;  %v4890_v2 = vsel %vm4616_vm4, %v4579_v10, -inf  ;;  %v9703_v5 = vld [vmem:[#allocation45_spill] sm:$0xff] }
 0x51a   : > { %9697 = vst [vmem:[#allocation100_spill] sm:$0xff] %v8692_v36  ;;  %v4426_v13 = vpop.permute.xlu1 %4425  ;;  %v4441_v61 = vpop.permute.xlu0 %4440  ;;  %v4577_v36 = vadd.f32 %v8336_v56, %v3809_v34  ;;  %v4695_v56 = vsel %vm4616_vm4, %v4514_v43, -inf  ;;  %v9709_v43 = vld [vmem:[#allocation113_spill] sm:$0xff] }
 0x51b   : > { %v8701_v52 = vadd.f32 %v4426_v13, %v3835_v29  ;;  %v4582_v48 = vadd.f32 %v8342_v20, %v3814_v60  ;;  %v3747_v29 = vmul.f32 %v8509_v1, %v9703_v5  ;;  %v9704_v13 = vld [vmem:[#allocation138_spill] sm:$0xff]  ;;  %v9707_v1 = vld [vmem:[#allocation112_spill] sm:$0xff]  ;;  %v3815_v5 = vmul.f32 %v8507_v35, %v9709_v43  ;;  %v9714_v43 = vld [vmem:[#allocation111_spill] sm:$0xff] }
 0x51c   : > { %4882 = vmax.xlane.f32.xlu1 %v4881_v55  ;;  %4891 = vmax.xlane.f32.xlu0 %v4890_v2  ;;  %v3812_v60 = vmul.f32 %v9707_v1, %v8504_v16  ;;  %v4884_v2 = vsel %vm4616_vm4, %v4577_v36, -inf }
 0x51d   : > { %v4583_v36 = vadd.f32 %v8370_v31, %v3815_v5  ;;  %v3813_v5 = vmul.f32 %v9714_v43, %v8513_v57 }
 0x51e   : > { %v8707_v47 = vpop.f32.mrb[64].mxu0  ;;  %v6090_v26 = vpop.f32.mrb[72].mxu1 }
 0x51f   : > { %v3838_v10 = vmul.f32 %v6090_v26, %v9704_v13  ;;  %v8714_v55 = vpop.f32.mrb[65].mxu0  ;;  %v8716_v23 = vpop.f32.mrb[73].mxu1  ;;  %v4512_v26 = vadd.f32 %v9708_v33, %v3744_v44  ;;  %v9712_v44 = vld [vmem:[#allocation50_spill] sm:$0xff]  ;;  %v9713_v33 = vld [vmem:[#allocation156_spill] sm:$0xff] }
 0x520   : > { %v8719_v34 = vpop.f32.mrb[74].mxu1  ;;  %4681 = vmax.xlane.f32.xlu0 %v4680_v27  ;;  %4696 = vmax.xlane.f32.xlu1 %v4695_v56  ;;  %v8721_v63 = vpop.f32.mrb[66].mxu0  ;;  %v9710_v27 = vld [vmem:[#allocation158_spill] sm:$0xff]  ;;  %v4899_v56 = vsel %vm4616_vm4, %v4582_v48, -inf  ;;  %v3750_v35 = vmul.f32 %v8530_v40, %v9712_v44 }
 0x521   : > { %v8723_v25 = vadd.f32 %v4441_v61, %v3838_v10  ;;  %v8725_v20 = vpop.f32.mrb[67].mxu0  ;;  %v8727_v37 = vpop.f32.mrb[75].mxu1  ;;  %v4515_v13 = vadd.f32 %v9710_v27, %v3747_v29  ;;  %v4580_v61 = vadd.f32 %v8338_v15, %v3812_v60  ;;  %v9711_v10 = vld [vmem:[#allocation43_spill] sm:$0xff]  ;;  %v4689_v48 = vsel %vm4616_vm4, %v4512_v26, -inf  ;;  %v9715_v26 = vld [vmem:[#allocation118_spill] sm:$0xff] }
 0x522   : > { %9705 = vst [vmem:[#allocation101_spill] sm:$0xff] %v8725_v20  ;;  %9706 = vst [vmem:[#allocation31_spill] sm:$0xff] %v8727_v37  ;;  %v3745_v37 = vmul.f32 %v9711_v10, %v8511_v51  ;;  %v4518_v27 = vadd.f32 %v8070_v14, %v3750_v35  ;;  %v4902_v10 = vsel %vm4616_vm4, %v4583_v36, -inf  ;;  %v8769_v44 = vpop.permute.xlu1 %4435 }
 0x523   : > { %v4698_v15 = vsel %vm4616_vm4, %v4515_v13, -inf  ;;  %v3818_v13 = vmul.f32 %v8532_v3, %v9715_v26  ;;  %v9717_v3 = vld [vmem:[#allocation48_spill] sm:$0xff] }
 0x524   : > { %4885 = vmax.xlane.f32.xlu0 %v4884_v2  ;;  %4900 = vmax.xlane.f32.xlu1 %v4899_v56  ;;  %v4513_v40 = vadd.f32 %v9713_v33, %v3745_v37  ;;  %v4893_v56 = vsel %vm4616_vm4, %v4580_v61, -inf  ;;  %v3748_v35 = vmul.f32 %v9717_v3, %v8537_v30  ;;  %v9718_v61 = vld [vmem:[#allocation49_spill] sm:$0xff]  ;;  %v9721_v30 = vld [vmem:[#allocation116_spill] sm:$0xff] }
 0x525   : > { %v4586_v14 = vadd.f32 %v8372_v32, %v3818_v13  ;;  %v3751_v36 = vmul.f32 %v8545_v49, %v9718_v61  ;;  %v3816_v13 = vmul.f32 %v9721_v30, %v8539_v22  ;;  %v9723_v3 = vld [vmem:[#allocation117_spill] sm:$0xff] }
 0x526   : > { %v8740_v20 = vpop.f32.mrb[68].mxu0  ;;  %v8742_v16 = vpop.f32.mrb[76].mxu1  ;;  %v4692_v57 = vsel %vm4616_vm4, %v4513_v40, -inf }
 0x527   : > { %v8747_v1 = vpop.f32.mrb[69].mxu0  ;;  %v8749_v29 = vpop.f32.mrb[77].mxu1  ;;  %v4519_v61 = vadd.f32 %v8098_v12, %v3751_v36 }
 0x528   : > { %v8753_v60 = vpop.f32.mrb[78].mxu1  ;;  %4690 = vmax.xlane.f32.xlu1 %v4689_v48  ;;  %4699 = vmax.xlane.f32.xlu0 %v4698_v15  ;;  %v8755_v51 = vpop.f32.mrb[70].mxu0  ;;  %v4581_v48 = vadd.f32 %v8354_v28, %v3813_v5  ;;  %v4707_v28 = vsel %vm4616_vm4, %v4518_v27, -inf  ;;  %v3819_v27 = vmul.f32 %v8543_v8, %v9723_v3 }
 0x529   : > { %v8757_v2 = vpop.f32.mrb[71].mxu0  ;;  %v8759_v31 = vpop.f32.mrb[79].mxu1 }
 0x52a   : > { %v4896_v49 = vsel %vm4616_vm4, %v4581_v48, -inf  ;;  %v9726_v48 = vld [vmem:[#allocation88_spill] sm:$0xff] }
 0x52c   : > { %4894 = vmax.xlane.f32.xlu1 %v4893_v56  ;;  %4903 = vmax.xlane.f32.xlu0 %v4902_v10  ;;  %v9722_v56 = vld [vmem:[#allocation161_spill] sm:$0xff] }
 0x52d   : > { %v4516_v10 = vadd.f32 %v9722_v56, %v3748_v35  ;;  %v4587_v35 = vadd.f32 %v9726_v48, %v3819_v27  ;;  %v9727_v56 = vld [vmem:[#allocation54_spill] sm:$0xff] }
 0x52e   : > { %v8772_v15 = vpop.f32.mrb[72].mxu0  ;;  %v8774_v37 = vpop.f32.mrb[80].mxu1  ;;  %v3754_v8 = vmul.f32 %v8564_v17, %v9727_v56 }
 0x52f   : > { %9716 = vst [vmem:[#allocation38_spill] sm:$0xff] %v8774_v37  ;;  %v8782_v33 = vpop.f32.mrb[73].mxu0  ;;  %v8784_v43 = vpop.f32.mrb[81].mxu1  ;;  %v4701_v12 = vsel %vm4616_vm4, %v4516_v10, -inf  ;;  %v9734_v10 = vld [vmem:[#allocation122_spill] sm:$0xff] }
 0x530   : > { %v8787_v5 = vpop.f32.mrb[82].mxu1  ;;  %4693 = vmax.xlane.f32.xlu0 %v4692_v57  ;;  %4708 = vmax.xlane.f32.xlu1 %v4707_v28  ;;  %v8789_v26 = vpop.f32.mrb[74].mxu0  ;;  %v4911_v57 = vsel %vm4616_vm4, %v4586_v14, -inf  ;;  %v4710_v14 = vsel %vm4616_vm4, %v4519_v61, -inf  ;;  %v3822_v61 = vmul.f32 %v8566_v62, %v9734_v10 }
 0x531   : > { %9719 = vst [vmem:[#allocation147_spill] sm:$0xff] %v8787_v5  ;;  %v8791_v40 = vpop.f32.mrb[75].mxu0  ;;  %v8793_v32 = vpop.f32.mrb[83].mxu1  ;;  %v9724_v5 = vld [vmem:[#allocation22_spill] sm:$0xff] }
 0x532   : > { %9720 = vst [vmem:[#allocation99_spill] sm:$0xff] %v8793_v32  ;;  %v8803_v28 = vpop.permute.xlu1 %4445  ;;  %v4584_v37 = vadd.f32 %v9724_v5, %v3816_v13  ;;  %v9725_v32 = vld [vmem:[#allocation47_spill] sm:$0xff]  ;;  %v8826_v17 = vpop.permute.xlu0 %4450 }
 0x533   : > { %v3749_v22 = vmul.f32 %v9725_v32, %v8547_v53  ;;  %v9731_v32 = vld [vmem:[#allocation160_spill] sm:$0xff] }
 0x534   : > { %4897 = vmax.xlane.f32.xlu0 %v4896_v49  ;;  %4912 = vmax.xlane.f32.xlu1 %v4911_v57  ;;  %v9732_v49 = vld [vmem:[#allocation115_spill] sm:$0xff]  ;;  %v9733_v57 = vld [vmem:[#allocation6_spill] sm:$0xff]  ;;  %v4905_v56 = vsel %vm4616_vm4, %v4584_v37, -inf }
 0x535   : > { %v4517_v13 = vadd.f32 %v9731_v32, %v3749_v22  ;;  %v3817_v27 = vmul.f32 %v9732_v49, %v8549_v9  ;;  %v4522_v48 = vadd.f32 %v9733_v57, %v3754_v8  ;;  %v9737_v9 = vld [vmem:[#allocation21_spill] sm:$0xff]  ;;  %v9738_v49 = vld [vmem:[#allocation52_spill] sm:$0xff] }
 0x536   : > { %v8808_v30 = vpop.f32.mrb[76].mxu0  ;;  %v8821_v53 = vpop.permute.xlu1 %4455  ;;  %v4590_v32 = vadd.f32 %v9737_v9, %v3822_v61  ;;  %v3752_v8 = vmul.f32 %v9738_v49, %v8574_v18  ;;  %v9739_v57 = vld [vmem:[#allocation53_spill] sm:$0xff]  ;;  %v9743_v61 = vld [vmem:[#allocation120_spill] sm:$0xff] }
 0x537   : > { %v8813_v3 = vpop.f32.mrb[77].mxu0  ;;  %v4704_v22 = vsel %vm4616_vm4, %v4517_v13, -inf  ;;  %v3755_v62 = vmul.f32 %v8581_v38, %v9739_v57  ;;  %v4719_v37 = vsel %vm4616_vm4, %v4522_v48, -inf  ;;  %v3820_v18 = vmul.f32 %v9743_v61, %v8576_v4  ;;  %v9744_v38 = vld [vmem:[#allocation14_spill] sm:$0xff]  ;;  %v9745_v9 = vld [vmem:[#allocation121_spill] sm:$0xff] }
 0x538   : > { %9728 = vst [vmem:[#allocation151_spill] sm:$0xff] %v8813_v3  ;;  %4702 = vmax.xlane.f32.xlu1 %v4701_v12  ;;  %4711 = vmax.xlane.f32.xlu0 %v4710_v14  ;;  %v8817_v36 = vpop.f32.mrb[78].mxu0  ;;  %v4914_v12 = vsel %vm4616_vm4, %v4587_v35, -inf  ;;  %v9735_v14 = vld [vmem:[#allocation90_spill] sm:$0xff]  ;;  %v9746_v49 = vld [vmem:[#allocation93_spill] sm:$0xff] }
 0x539   : > { %9729 = vst [vmem:[#allocation106_spill] sm:$0xff] %v8817_v36  ;;  %v8819_v5 = vpop.f32.mrb[79].mxu0  ;;  %v3823_v48 = vmul.f32 %v9746_v49, %v9745_v9  ;;  %v9747_v57 = vld [vmem:[#allocation13_spill] sm:$0xff]  ;;  %v9755_v49 = vld [vmem:[#allocation30_spill] sm:$0xff] }
 0x53a   : > { %9730 = vst [vmem:[#allocation36_spill] sm:$0xff] %v8819_v5  ;;  %v4585_v5 = vadd.f32 %v9735_v14, %v3817_v27  ;;  %v8845_v35 = vpop.permute.xlu1 %4465  ;;  %v4520_v14 = vadd.f32 %v9744_v38, %v3752_v8  ;;  %v9752_v8 = vld [vmem:[#allocation26_spill] sm:$0xff] }
 0x53b   : > { %v4591_v61 = vadd.f32 %v9752_v8, %v3823_v48  ;;  %v9753_v38 = vld [vmem:[#allocation58_spill] sm:$0xff] }
 0x53c   : > { %4906 = vmax.xlane.f32.xlu1 %v4905_v56  ;;  %4915 = vmax.xlane.f32.xlu0 %v4914_v12  ;;  %v8849_v56 = vpop.permute.xlu0 %4460  ;;  %v4908_v12 = vsel %vm4616_vm4, %v4585_v5, -inf  ;;  %v3758_v9 = vmul.f32 %v8602_v0, %v9753_v38 }
 0x53d   : > { %v4926_v0 = vsel %vm4616_vm4, %v4591_v61, -inf  ;;  %v9762_v61 = vld [vmem:[#allocation56_spill] sm:$0xff] }
 0x53e   : > { %v8834_v36 = vpop.f32.mrb[80].mxu0  ;;  %v8864_v4 = vpop.permute.xlu1 %4475 }
 0x53f   : > { %9736 = vst [vmem:[#allocation37_spill] sm:$0xff] %v8834_v36  ;;  %v8842_v10 = vpop.f32.mrb[81].mxu0  ;;  %v9749_v36 = vld [vmem:[#allocation23_spill] sm:$0xff]  ;;  %9751 = vst [vmem:[#allocation150_spill] sm:$0xff] %v8864_v4 }
 0x540   : > { %9740 = vst [vmem:[#allocation104_spill] sm:$0xff] %v8842_v10  ;;  %4705 = vmax.xlane.f32.xlu0 %v4704_v22  ;;  %4720 = vmax.xlane.f32.xlu1 %v4719_v37  ;;  %v8847_v27 = vpop.f32.mrb[82].mxu0  ;;  %v4523_v10 = vadd.f32 %v9747_v57, %v3755_v62  ;;  %v4923_v22 = vsel %vm4616_vm4, %v4590_v32, -inf  ;;  %v9748_v37 = vld [vmem:[#allocation20_spill] sm:$0xff]  ;;  %v8866_v5 = vpop.permute.xlu0 %4470  ;;  %v4713_v62 = vsel %vm4616_vm4, %v4520_v14, -inf  ;;  %v9756_v57 = vld [vmem:[#allocation119_spill] sm:$0xff] }
 0x541   : > { %9741 = vst [vmem:[#allocation149_spill] sm:$0xff] %v8847_v27  ;;  %v8851_v13 = vpop.f32.mrb[83].mxu0  ;;  %v4588_v27 = vadd.f32 %v9748_v37, %v3820_v18  ;;  %v9754_v18 = vld [vmem:[#allocation12_spill] sm:$0xff]  ;;  %v9758_v37 = vld [vmem:[#allocation126_spill] sm:$0xff] }
 0x542   : > { %9742 = vst [vmem:[#allocation105_spill] sm:$0xff] %v8851_v13  ;;  %v9750_v13 = vld [vmem:[#allocation51_spill] sm:$0xff]  ;;  %v4722_v32 = vsel %vm4616_vm4, %v4523_v10, -inf  ;;  %v3826_v4 = vmul.f32 %v8604_v11, %v9758_v37  ;;  %v8882_v10 = vpop.permute.xlu1 %4485  ;;  %v9767_v37 = vld [vmem:[#allocation18_spill] sm:$0xff] }
 0x543   : > { %v3753_v3 = vmul.f32 %v9750_v13, %v9749_v36  ;;  %v3821_v36 = vmul.f32 %v9756_v57, %v9755_v49  ;;  %v9757_v13 = vld [vmem:[#allocation11_spill] sm:$0xff]  ;;  %v4917_v48 = vsel %vm4616_vm4, %v4588_v27, -inf  ;;  %v9764_v57 = vld [vmem:[#allocation124_spill] sm:$0xff] }
 0x544   : > { %4909 = vmax.xlane.f32.xlu0 %v4908_v12  ;;  %4924 = vmax.xlane.f32.xlu1 %v4923_v22  ;;  %v4526_v22 = vadd.f32 %v9757_v13, %v3758_v9  ;;  %v8884_v14 = vpop.permute.xlu0 %4480  ;;  %v9761_v11 = vld [vmem:[#allocation87_spill] sm:$0xff]  ;;  %v3756_v9 = vmul.f32 %v9762_v61, %v8609_v54  ;;  %v9769_v61 = vld [vmem:[#allocation28_spill] sm:$0xff] }
 0x545   : > { %v4521_v12 = vadd.f32 %v9754_v18, %v3753_v3  ;;  %v9759_v3 = vld [vmem:[#allocation19_spill] sm:$0xff]  ;;  %v4594_v27 = vadd.f32 %v9761_v11, %v3826_v4  ;;  %v9765_v4 = vld [vmem:[#allocation5_spill] sm:$0xff] }
 0x546   : > { %v4589_v8 = vadd.f32 %v9759_v3, %v3821_v36  ;;  %v4731_v18 = vsel %vm4616_vm4, %v4526_v22, -inf  ;;  %v3824_v36 = vmul.f32 %v9764_v57, %v8611_v45  ;;  %v4524_v13 = vadd.f32 %v9765_v4, %v3756_v9  ;;  %v9774_v4 = vld [vmem:[#allocation123_spill] sm:$0xff] }
 0x547   : > { %v4716_v38 = vsel %vm4616_vm4, %v4521_v12, -inf }
 0x548   : > { %4714 = vmax.xlane.f32.xlu1 %v4713_v62  ;;  %4723 = vmax.xlane.f32.xlu0 %v4722_v32  ;;  %v9763_v62 = vld [vmem:[#allocation57_spill] sm:$0xff]  ;;  %v4920_v54 = vsel %vm4616_vm4, %v4589_v8, -inf }
 0x549   : > { %v3759_v32 = vmul.f32 %v8617_v41, %v9763_v62  ;;  %v9766_v41 = vld [vmem:[#allocation125_spill] sm:$0xff]  ;;  %v9770_v62 = vld [vmem:[#allocation55_spill] sm:$0xff] }
 0x54a   : > { %v3827_v22 = vmul.f32 %v8615_v59, %v9766_v41  ;;  %v3757_v8 = vmul.f32 %v9770_v62, %v9769_v61  ;;  %v9771_v59 = vld [vmem:[#allocation25_spill] sm:$0xff]  ;;  %v3825_v41 = vmul.f32 %v9774_v4, %v8621_v42  ;;  %v9777_v42 = vld [vmem:[#allocation94_spill] sm:$0xff]  ;;  %v9778_v62 = vld [vmem:[#allocation92_spill] sm:$0xff] }
 0x54c   : > { %4918 = vmax.xlane.f32.xlu1 %v4917_v48  ;;  %4927 = vmax.xlane.f32.xlu0 %v4926_v0  ;;  %v4527_v48 = vadd.f32 %v9767_v37, %v3759_v32  ;;  %v4935_v0 = vsel %vm4616_vm4, %v4594_v27, -inf  ;;  %v4595_v9 = vadd.f32 %v9771_v59, %v3827_v22  ;;  %v9772_v32 = vld [vmem:[#allocation62_spill] sm:$0xff]  ;;  %v9780_v59 = vld [vmem:[#allocation61_spill] sm:$0xff] }
 0x54d   : > { %v3762_v27 = vmul.f32 %v8636_v50, %v9772_v32  ;;  %v9775_v50 = vld [vmem:[#allocation9_spill] sm:$0xff] }
 0x54f   : > { %v4530_v22 = vadd.f32 %v9775_v50, %v3762_v27 }
 0x550   : > { %4717 = vmax.xlane.f32.xlu0 %v4716_v38  ;;  %4732 = vmax.xlane.f32.xlu1 %v4731_v18  ;;  %v9768_v38 = vld [vmem:[#allocation89_spill] sm:$0xff]  ;;  %v4725_v18 = vsel %vm4616_vm4, %v4524_v13, -inf  ;;  %v9776_v13 = vld [vmem:[#allocation130_spill] sm:$0xff] }
 0x551   : > { %v4829_v12 = vpop.xlane.xlu1 %4828  ;;  %v4625_v49 = vpop.xlane.xlu0 %4624  ;;  %v4592_v11 = vadd.f32 %v9768_v38, %v3824_v36  ;;  %v9773_v36 = vld [vmem:[#allocation10_spill] sm:$0xff]  ;;  %v3830_v37 = vmul.f32 %v8638_v21, %v9776_v13  ;;  %v4593_v38 = vadd.f32 %v9777_v42, %v3825_v41  ;;  %v4743_v32 = vsel %vm4616_vm4, %v4530_v22, -inf  ;;  %v9785_v41 = vld [vmem:[#allocation17_spill] sm:$0xff] }
 0x552   : > { %5076 = vst.msk [vmem:[%s8891_s17 + $0x230] sm:$0xff] %vm5005_vm5, %v4829_v12  ;;  %5008 = vst.msk [vmem:[%s8891_s17 + $0x10] sm:$0xff] %vm5005_vm5, %v4625_v49  ;;  %v4734_v12 = vsel %vm4616_vm4, %v4527_v48, -inf  ;;  %v9789_v42 = vld [vmem:[#allocation29_spill] sm:$0xff] }
 0x553   : > { %v4929_v48 = vsel %vm4616_vm4, %v4592_v11, -inf  ;;  %v4598_v21 = vadd.f32 %v9778_v62, %v3830_v37  ;;  %v9779_v11 = vld [vmem:[#allocation60_spill] sm:$0xff] }
 0x554   : > { %4921 = vmax.xlane.f32.xlu0 %v4920_v54  ;;  %4936 = vmax.xlane.f32.xlu1 %v4935_v0  ;;  %v4525_v54 = vadd.f32 %v9773_v36, %v3757_v8  ;;  %v4938_v0 = vsel %vm4616_vm4, %v4595_v9, -inf  ;;  %v3760_v8 = vmul.f32 %v9779_v11, %v8646_v46  ;;  %v3763_v9 = vmul.f32 %v8653_v39, %v9780_v59  ;;  %v9783_v39 = vld [vmem:[#allocation129_spill] sm:$0xff]  ;;  %v9786_v37 = vld [vmem:[#allocation24_spill] sm:$0xff] }
 0x555   : > { %v4823_v3 = vpop.xlane.xlu1 %4822  ;;  %v4619_v45 = vpop.xlane.xlu0 %4618  ;;  %v4932_v46 = vsel %vm4616_vm4, %v4593_v38, -inf  ;;  %v4947_v22 = vsel %vm4616_vm4, %v4598_v21, -inf }
 0x556   : > { %5074 = vst.msk [vmem:[%s8891_s17 + $0x220] sm:$0xff] %vm5005_vm5, %v4823_v3  ;;  %5006 = vst.msk [vmem:[%s8891_s17] sm:$0xff] %vm5005_vm5, %v4619_v45  ;;  %v4728_v61 = vsel %vm4616_vm4, %v4525_v54, -inf  ;;  %v9784_v54 = vld [vmem:[#allocation97_spill] sm:$0xff]  ;;  %v4531_v50 = vadd.f32 %v9785_v41, %v3763_v9  ;;  %v9791_v9 = vld [vmem:[#allocation16_spill] sm:$0xff] }
 0x557   : > { %v3831_v4 = vmul.f32 %v9784_v54, %v9783_v39  ;;  %v9796_v41 = vld [vmem:[#allocation91_spill] sm:$0xff] }
 0x558   : > { %4726 = vmax.xlane.f32.xlu1 %v4725_v18  ;;  %4735 = vmax.xlane.f32.xlu0 %v4734_v12  ;;  %v9781_v12 = vld [vmem:[#allocation128_spill] sm:$0xff]  ;;  %v4746_v11 = vsel %vm4616_vm4, %v4531_v50, -inf }
 0x559   : > { %v4628_v49 = vpop.xlane.xlu0 %4627  ;;  %v4622_v57 = vpop.xlane.xlu1 %4621  ;;  %v4599_v38 = vadd.f32 %v9789_v42, %v3831_v4 }
 0x55a   : > { %5009 = vst.msk [vmem:[%s8891_s17 + $0x18] sm:$0xff] %vm5005_vm5, %v4628_v49  ;;  %5007 = vst.msk [vmem:[%s8891_s17 + $0x8] sm:$0xff] %vm5005_vm5, %v4622_v57  ;;  %v3828_v49 = vmul.f32 %v9781_v12, %v8648_v19  ;;  %v9782_v57 = vld [vmem:[#allocation8_spill] sm:$0xff] }
 0x55b   : > { %v4528_v36 = vadd.f32 %v9782_v57, %v3760_v8  ;;  %v4950_v39 = vsel %vm4616_vm4, %v4599_v38, -inf }
 0x55c   : > { %4930 = vmax.xlane.f32.xlu1 %v4929_v48  ;;  %4939 = vmax.xlane.f32.xlu0 %v4938_v0  ;;  %v4596_v48 = vadd.f32 %v9786_v37, %v3828_v49  ;;  %v9787_v0 = vld [vmem:[#allocation27_spill] sm:$0xff] }
 0x55d   : > { %v4832_v3 = vpop.xlane.xlu0 %4831  ;;  %v4637_v45 = vpop.xlane.xlu1 %4636  ;;  %v4737_v21 = vsel %vm4616_vm4, %v4528_v36, -inf }
 0x55e   : > { %5077 = vst.msk [vmem:[%s8891_s17 + $0x238] sm:$0xff] %vm5005_vm5, %v4832_v3  ;;  %5012 = vst.msk [vmem:[%s8891_s17 + $0x30] sm:$0xff] %vm5005_vm5, %v4637_v45  ;;  %v9788_v3 = vld [vmem:[#allocation59_spill] sm:$0xff]  ;;  %v4941_v36 = vsel %vm4616_vm4, %v4596_v48, -inf  ;;  %v9799_v48 = vld [vmem:[#allocation65_spill] sm:$0xff] }
 0x55f   : > { %v3761_v45 = vmul.f32 %v9788_v3, %v9787_v0  ;;  %v9800_v0 = vld [vmem:[#allocation33_spill] sm:$0xff] }
 0x560   : > { %4729 = vmax.xlane.f32.xlu0 %v4728_v61  ;;  %4744 = vmax.xlane.f32.xlu1 %v4743_v32  ;;  %v9790_v61 = vld [vmem:[#allocation66_spill] sm:$0xff]  ;;  %v3767_v3 = vmul.f32 %v9800_v0, %v9799_v48  ;;  %v4962_v48 = vsel %vm4616_vm4, %v8701_v52, -inf }
 0x561   : > { %v4826_v27 = vpop.xlane.xlu0 %4825  ;;  %v4841_v18 = vpop.xlane.xlu1 %4840  ;;  %v3766_v62 = vmul.f32 %v8674_v6, %v9790_v61  ;;  %v4529_v32 = vadd.f32 %v9791_v9, %v3761_v45  ;;  %v9794_v6 = vld [vmem:[#allocation15_spill] sm:$0xff]  ;;  %v9801_v61 = vld [vmem:[#allocation32_spill] sm:$0xff] }
 0x562   : > { %5075 = vst.msk [vmem:[%s8891_s17 + $0x228] sm:$0xff] %vm5005_vm5, %v4826_v27  ;;  %5080 = vst.msk [vmem:[%s8891_s17 + $0x250] sm:$0xff] %vm5005_vm5, %v4841_v18  ;;  %v9792_v27 = vld [vmem:[#allocation34_spill] sm:$0xff]  ;;  %v9793_v18 = vld [vmem:[#allocation127_spill] sm:$0xff] }
 0x563   : > { %v3829_v12 = vmul.f32 %v9793_v18, %v9792_v27  ;;  %v4534_v49 = vadd.f32 %v9794_v6, %v3766_v62  ;;  %v9802_v62 = vld [vmem:[#allocation132_spill] sm:$0xff] }
 0x564   : > { %4933 = vmax.xlane.f32.xlu0 %v4932_v46  ;;  %4948 = vmax.xlane.f32.xlu1 %v4947_v22  ;;  %v9795_v46 = vld [vmem:[#allocation134_spill] sm:$0xff]  ;;  %v4740_v22 = vsel %vm4616_vm4, %v4529_v32, -inf }
 0x565   : > { %v4631_v13 = vpop.xlane.xlu1 %4630  ;;  %v4640_v19 = vpop.xlane.xlu0 %4639  ;;  %v3834_v57 = vmul.f32 %v8676_v24, %v9795_v46  ;;  %v4597_v50 = vadd.f32 %v9796_v41, %v3829_v12  ;;  %v4755_v45 = vsel %vm4616_vm4, %v4534_v49, -inf  ;;  %v9805_v12 = vld [vmem:[#allocation98_spill] sm:$0xff]  ;;  %v9806_v49 = vld [vmem:[#allocation63_spill] sm:$0xff] }
 0x566   : > { %5010 = vst.msk [vmem:[%s8891_s17 + $0x20] sm:$0xff] %vm5005_vm5, %v4631_v13  ;;  %5013 = vst.msk [vmem:[%s8891_s17 + $0x38] sm:$0xff] %vm5005_vm5, %v4640_v19  ;;  %v9797_v13 = vld [vmem:[#allocation96_spill] sm:$0xff]  ;;  %v3765_v46 = vmul.f32 %v9806_v49, %v8690_v7  ;;  %v9810_v7 = vld [vmem:[#allocation162_spill] sm:$0xff]  ;;  %v4971_v49 = vsel %vm4616_vm4, %v8723_v25, -inf }
 0x567   : > { %v4602_v24 = vadd.f32 %v9797_v13, %v3834_v57  ;;  %v9798_v19 = vld [vmem:[#allocation64_spill] sm:$0xff]  ;;  %v4944_v9 = vsel %vm4616_vm4, %v4597_v50, -inf  ;;  %v9807_v57 = vld [vmem:[#allocation70_spill] sm:$0xff] }
 0x568   : > { %4738 = vmax.xlane.f32.xlu1 %v4737_v21  ;;  %4747 = vmax.xlane.f32.xlu0 %v4746_v11  ;;  %v3764_v37 = vmul.f32 %v9798_v19, %v8681_v58  ;;  %v3832_v21 = vmul.f32 %v9802_v62, %v9801_v61  ;;  %v9803_v11 = vld [vmem:[#allocation7_spill] sm:$0xff]  ;;  %v9808_v50 = vld [vmem:[#allocation100_spill] sm:$0xff]  ;;  %v9814_v62 = vld [vmem:[#allocation69_spill] sm:$0xff] }
 0x569   : > { %v4835_v8 = vpop.xlane.xlu1 %4834  ;;  %v4844_v59 = vpop.xlane.xlu0 %4843  ;;  %v4959_v32 = vsel %vm4616_vm4, %v4602_v24, -inf  ;;  %v4533_v24 = vadd.f32 %v9810_v7, %v3765_v46 }
 0x56a   : > { %5078 = vst.msk [vmem:[%s8891_s17 + $0x240] sm:$0xff] %vm5005_vm5, %v4835_v8  ;;  %5081 = vst.msk [vmem:[%s8891_s17 + $0x258] sm:$0xff] %vm5005_vm5, %v4844_v59  ;;  %v4532_v58 = vadd.f32 %v9803_v11, %v3764_v37  ;;  %v9804_v8 = vld [vmem:[#allocation164_spill] sm:$0xff]  ;;  %v4600_v6 = vadd.f32 %v9805_v12, %v3832_v21  ;;  %v3771_v21 = vmul.f32 %v8721_v63, %v9814_v62  ;;  %v9816_v63 = vld [vmem:[#allocation163_spill] sm:$0xff] }
 0x56b   : > { %v4535_v59 = vadd.f32 %v9804_v8, %v3767_v3  ;;  %v4752_v52 = vsel %vm4616_vm4, %v4533_v24, -inf  ;;  %v9818_v12 = vld [vmem:[#allocation168_spill] sm:$0xff]  ;;  %v9823_v24 = vld [vmem:[#allocation166_spill] sm:$0xff] }
 0x56c   : > { %4942 = vmax.xlane.f32.xlu1 %v4941_v36  ;;  %4951 = vmax.xlane.f32.xlu0 %v4950_v39  ;;  %v3770_v36 = vmul.f32 %v8707_v47, %v9807_v57  ;;  %v4749_v39 = vsel %vm4616_vm4, %v4532_v58, -inf  ;;  %v9811_v47 = vld [vmem:[#allocation165_spill] sm:$0xff]  ;;  %v4953_v37 = vsel %vm4616_vm4, %v4600_v6, -inf  ;;  %v4539_v6 = vadd.f32 %v9818_v12, %v3771_v21  ;;  %v9819_v57 = vld [vmem:[#allocation102_spill] sm:$0xff] }
 0x56d   : > { %v4634_v54 = vpop.xlane.xlu0 %4633  ;;  %v4649_v4 = vpop.xlane.xlu1 %4648 }
 0x56e   : > { %5011 = vst.msk [vmem:[%s8891_s17 + $0x28] sm:$0xff] %vm5005_vm5, %v4634_v54  ;;  %5016 = vst.msk [vmem:[%s8891_s17 + $0x50] sm:$0xff] %vm5005_vm5, %v4649_v4  ;;  %v4758_v54 = vsel %vm4616_vm4, %v4535_v59, -inf  ;;  %v4538_v19 = vadd.f32 %v9811_v47, %v3770_v36  ;;  %v9815_v59 = vld [vmem:[#allocation136_spill] sm:$0xff] }
 0x570   : > { %4741 = vmax.xlane.f32.xlu0 %v4740_v22  ;;  %4756 = vmax.xlane.f32.xlu1 %v4755_v45  ;;  %v9809_v22 = vld [vmem:[#allocation131_spill] sm:$0xff]  ;;  %v4767_v11 = vsel %vm4616_vm4, %v4538_v19, -inf }
 0x571   : > { %v4838_v42 = vpop.xlane.xlu0 %4837  ;;  %v4853_v38 = vpop.xlane.xlu1 %4852  ;;  %v3833_v13 = vmul.f32 %v9809_v22, %v9808_v50  ;;  %v9812_v45 = vld [vmem:[#allocation95_spill] sm:$0xff]  ;;  %v4770_v22 = vsel %vm4616_vm4, %v4539_v6, -inf }
 0x572   : > { %5079 = vst.msk [vmem:[%s8891_s17 + $0x248] sm:$0xff] %vm5005_vm5, %v4838_v42  ;;  %5084 = vst.msk [vmem:[%s8891_s17 + $0x270] sm:$0xff] %vm5005_vm5, %v4853_v38  ;;  %v9813_v38 = vld [vmem:[#allocation68_spill] sm:$0xff]  ;;  %v9824_v19 = vld [vmem:[#allocation31_spill] sm:$0xff] }
 0x573   : > { %v4601_v42 = vadd.f32 %v9812_v45, %v3833_v13  ;;  %v3768_v61 = vmul.f32 %v9813_v38, %v8714_v55 }
 0x574   : > { %4945 = vmax.xlane.f32.xlu0 %v4944_v9  ;;  %4960 = vmax.xlane.f32.xlu1 %v4959_v32  ;;  %v3836_v9 = vmul.f32 %v9815_v59, %v8716_v23 }
 0x575   : > { %v4643_v27 = vpop.xlane.xlu1 %4642  ;;  %v4652_v18 = vpop.xlane.xlu0 %4651  ;;  %v4956_v55 = vsel %vm4616_vm4, %v4601_v42, -inf  ;;  %v4536_v32 = vadd.f32 %v9816_v63, %v3768_v61 }
 0x576   : > { %5014 = vst.msk [vmem:[%s8891_s17 + $0x40] sm:$0xff] %vm5005_vm5, %v4643_v27  ;;  %5017 = vst.msk [vmem:[%s8891_s17 + $0x58] sm:$0xff] %vm5005_vm5, %v4652_v18  ;;  %v9817_v27 = vld [vmem:[#allocation137_spill] sm:$0xff]  ;;  %v4604_v36 = vadd.f32 %v9819_v57, %v3836_v9 }
 0x577   : > { %v3839_v18 = vmul.f32 %v8719_v34, %v9817_v27  ;;  %v4761_v50 = vsel %vm4616_vm4, %v4536_v32, -inf }
 0x578   : > { %4750 = vmax.xlane.f32.xlu1 %v4749_v39  ;;  %4759 = vmax.xlane.f32.xlu0 %v4758_v54  ;;  %v9820_v39 = vld [vmem:[#allocation101_spill] sm:$0xff]  ;;  %v9821_v54 = vld [vmem:[#allocation67_spill] sm:$0xff]  ;;  %v4965_v45 = vsel %vm4616_vm4, %v4604_v36, -inf  ;;  %v9835_v36 = vld [vmem:[#allocation78_spill] sm:$0xff] }
 0x579   : > { %v4847_v4 = vpop.xlane.xlu1 %4846  ;;  %v4856_v41 = vpop.xlane.xlu0 %4855  ;;  %v4607_v34 = vadd.f32 %v8803_v28, %v3839_v18  ;;  %v9833_v18 = vld [vmem:[#allocation172_spill] sm:$0xff] }
 0x57a   : > { %5082 = vst.msk [vmem:[%s8891_s17 + $0x260] sm:$0xff] %vm5005_vm5, %v4847_v4  ;;  %5085 = vst.msk [vmem:[%s8891_s17 + $0x278] sm:$0xff] %vm5005_vm5, %v4856_v41  ;;  %v3769_v4 = vmul.f32 %v9821_v54, %v9820_v39  ;;  %v9822_v41 = vld [vmem:[#allocation74_spill] sm:$0xff]  ;;  %v3778_v39 = vmul.f32 %v8772_v15, %v9835_v36  ;;  %v9838_v15 = vld [vmem:[#allocation173_spill] sm:$0xff] }
 0x57b   : > { %v3774_v25 = vmul.f32 %v8740_v20, %v9822_v41  ;;  %v9826_v20 = vld [vmem:[#allocation169_spill] sm:$0xff]  ;;  %v4974_v42 = vsel %vm4616_vm4, %v4607_v34, -inf  ;;  %v9856_v36 = vld [vmem:[#allocation86_spill] sm:$0xff] }
 0x57c   : > { %4954 = vmax.xlane.f32.xlu1 %v4953_v37  ;;  %4963 = vmax.xlane.f32.xlu0 %v4962_v48  ;;  %v4537_v47 = vadd.f32 %v9823_v24, %v3769_v4  ;;  %v9825_v37 = vld [vmem:[#allocation135_spill] sm:$0xff] }
 0x57d   : > { %v4646_v0 = vpop.xlane.xlu0 %4645  ;;  %v4661_v3 = vpop.xlane.xlu1 %4660  ;;  %v3837_v48 = vmul.f32 %v9825_v37, %v9824_v19  ;;  %v4542_v28 = vadd.f32 %v9826_v20, %v3774_v25  ;;  %v9837_v25 = vld [vmem:[#allocation139_spill] sm:$0xff]  ;;  %v9841_v20 = vld [vmem:[#allocation144_spill] sm:$0xff] }
 0x57e   : > { %5015 = vst.msk [vmem:[%s8891_s17 + $0x48] sm:$0xff] %vm5005_vm5, %v4646_v0  ;;  %5020 = vst.msk [vmem:[%s8891_s17 + $0x70] sm:$0xff] %vm5005_vm5, %v4661_v3  ;;  %v9827_v0 = vld [vmem:[#allocation142_spill] sm:$0xff]  ;;  %v4764_v21 = vsel %vm4616_vm4, %v4537_v47, -inf }
 0x57f   : > { %v3842_v3 = vmul.f32 %v8742_v16, %v9827_v0  ;;  %v4605_v62 = vadd.f32 %v8769_v44, %v3837_v48  ;;  %v4779_v59 = vsel %vm4616_vm4, %v4542_v28, -inf  ;;  %v9840_v48 = vld [vmem:[#allocation171_spill] sm:$0xff]  ;;  %v3844_v28 = vmul.f32 %v9841_v20, %v8784_v43  ;;  %v9842_v0 = vld [vmem:[#allocation77_spill] sm:$0xff] }
 0x580   : > { %4753 = vmax.xlane.f32.xlu0 %v4752_v52  ;;  %4768 = vmax.xlane.f32.xlu1 %v4767_v11  ;;  %v9828_v52 = vld [vmem:[#allocation72_spill] sm:$0xff] }
 0x581   : > { %v4850_v58 = vpop.xlane.xlu0 %4849  ;;  %v4865_v8 = vpop.xlane.xlu1 %4864  ;;  %v4610_v16 = vadd.f32 %v8849_v56, %v3842_v3  ;;  %v3772_v11 = vmul.f32 %v9828_v52, %v8747_v1  ;;  %v4968_v1 = vsel %vm4616_vm4, %v4605_v62, -inf  ;;  %v9831_v56 = vld [vmem:[#allocation167_spill] sm:$0xff]  ;;  %v3779_v3 = vmul.f32 %v8789_v26, %v9842_v0  ;;  %v9844_v26 = vld [vmem:[#allocation176_spill] sm:$0xff] }
 0x582   : > { %5083 = vst.msk [vmem:[%s8891_s17 + $0x268] sm:$0xff] %vm5005_vm5, %v4850_v58  ;;  %5088 = vst.msk [vmem:[%s8891_s17 + $0x290] sm:$0xff] %vm5005_vm5, %v4865_v8  ;;  %v9829_v58 = vld [vmem:[#allocation73_spill] sm:$0xff]  ;;  %v4612_v62 = vadd.f32 %v8866_v5, %v3844_v28  ;;  %v9866_v28 = vld [vmem:[#allocation178_spill] sm:$0xff] }
 0x583   : > { %v3775_v8 = vmul.f32 %v8755_v51, %v9829_v58  ;;  %v4540_v32 = vadd.f32 %v9831_v56, %v3772_v11  ;;  %v9832_v51 = vld [vmem:[#allocation141_spill] sm:$0xff]  ;;  %v4983_v6 = vsel %vm4616_vm4, %v4610_v16, -inf  ;;  %v9845_v16 = vld [vmem:[#allocation82_spill] sm:$0xff] }
 0x584   : > { %4957 = vmax.xlane.f32.xlu0 %v4956_v55  ;;  %4972 = vmax.xlane.f32.xlu1 %v4971_v49  ;;  %v9830_v55 = vld [vmem:[#allocation140_spill] sm:$0xff]  ;;  %v3843_v27 = vmul.f32 %v8753_v60, %v9832_v51  ;;  %v3782_v52 = vmul.f32 %v8808_v30, %v9845_v16  ;;  %v9849_v5 = vld [vmem:[#allocation177_spill] sm:$0xff]  ;;  %v9850_v30 = vld [vmem:[#allocation151_spill] sm:$0xff] }
 0x585   : > { %v4655_v46 = vpop.xlane.xlu1 %4654  ;;  %v4664_v23 = vpop.xlane.xlu0 %4663  ;;  %v3840_v63 = vmul.f32 %v9830_v55, %v8749_v29  ;;  %v4543_v12 = vadd.f32 %v9833_v18, %v3775_v8  ;;  %v4773_v54 = vsel %vm4616_vm4, %v4540_v32, -inf  ;;  %v9846_v8 = vld [vmem:[#allocation174_spill] sm:$0xff]  ;;  %v4989_v32 = vsel %vm4616_vm4, %v4612_v62, -inf  ;;  %v9870_v16 = vld [vmem:[#allocation183_spill] sm:$0xff] }
 0x586   : > { %5018 = vst.msk [vmem:[%s8891_s17 + $0x60] sm:$0xff] %vm5005_vm5, %v4655_v46  ;;  %5021 = vst.msk [vmem:[%s8891_s17 + $0x78] sm:$0xff] %vm5005_vm5, %v4664_v23  ;;  %v9834_v23 = vld [vmem:[#allocation71_spill] sm:$0xff]  ;;  %v4611_v60 = vadd.f32 %v8845_v35, %v3843_v27  ;;  %v4546_v35 = vadd.f32 %v9838_v15, %v3778_v39  ;;  %v9857_v39 = vld [vmem:[#allocation37_spill] sm:$0xff] }
 0x587   : > { %v4608_v46 = vadd.f32 %v8826_v17, %v3840_v63  ;;  %v3773_v57 = vmul.f32 %v9834_v23, %v8757_v2  ;;  %v4782_v4 = vsel %vm4616_vm4, %v4543_v12, -inf  ;;  %v9836_v2 = vld [vmem:[#allocation170_spill] sm:$0xff]  ;;  %v4550_v63 = vadd.f32 %v9849_v5, %v3782_v52  ;;  %v9854_v23 = vld [vmem:[#allocation81_spill] sm:$0xff]  ;;  %v9860_v15 = vld [vmem:[#allocation180_spill] sm:$0xff] }
 0x588   : > { %4762 = vmax.xlane.f32.xlu1 %v4761_v50  ;;  %4771 = vmax.xlane.f32.xlu0 %v4770_v22  ;;  %v3841_v50 = vmul.f32 %v9837_v25, %v8759_v31  ;;  %v9839_v22 = vld [vmem:[#allocation76_spill] sm:$0xff]  ;;  %v4986_v24 = vsel %vm4616_vm4, %v4611_v60, -inf  ;;  %v9852_v12 = vld [vmem:[#allocation150_spill] sm:$0xff] }
 0x589   : > { %v4859_v13 = vpop.xlane.xlu1 %4858  ;;  %v4868_v7 = vpop.xlane.xlu0 %4867  ;;  %v4541_v41 = vadd.f32 %v9836_v2, %v3773_v57  ;;  %v9855_v57 = vld [vmem:[#allocation106_spill] sm:$0xff]  ;;  %v9858_v2 = vld [vmem:[#allocation36_spill] sm:$0xff] }
 0x58a   : > { %5086 = vst.msk [vmem:[%s8891_s17 + $0x280] sm:$0xff] %vm5005_vm5, %v4859_v13  ;;  %5089 = vst.msk [vmem:[%s8891_s17 + $0x298] sm:$0xff] %vm5005_vm5, %v4868_v7  ;;  %v3776_v13 = vmul.f32 %v9839_v22, %v8782_v33  ;;  %v4977_v7 = vsel %vm4616_vm4, %v4608_v46, -inf  ;;  %v4609_v31 = vadd.f32 %v8821_v53, %v3841_v50  ;;  %v3783_v60 = vmul.f32 %v9855_v57, %v9854_v23  ;;  %v9861_v22 = vld [vmem:[#allocation181_spill] sm:$0xff] }
 0x58b   : > { %v4776_v37 = vsel %vm4616_vm4, %v4541_v41, -inf  ;;  %v9859_v41 = vld [vmem:[#allocation79_spill] sm:$0xff] }
 0x58c   : > { %4966 = vmax.xlane.f32.xlu1 %v4965_v45  ;;  %4975 = vmax.xlane.f32.xlu0 %v4974_v42  ;;  %v4544_v33 = vadd.f32 %v9840_v48, %v3776_v13  ;;  %v4791_v45 = vsel %vm4616_vm4, %v4546_v35, -inf  ;;  %v4980_v43 = vsel %vm4616_vm4, %v4609_v31, -inf  ;;  %v3781_v25 = vmul.f32 %v9859_v41, %v9858_v2  ;;  %v9864_v48 = vld [vmem:[#allocation146_spill] sm:$0xff] }
 0x58d   : > { %v4658_v38 = vpop.xlane.xlu0 %4657  ;;  %v4673_v61 = vpop.xlane.xlu1 %4672  ;;  %v4551_v35 = vadd.f32 %v9860_v15, %v3783_v60 }
 0x58e   : > { %5019 = vst.msk [vmem:[%s8891_s17 + $0x68] sm:$0xff] %vm5005_vm5, %v4658_v38  ;;  %5024 = vst.msk [vmem:[%s8891_s17 + $0x90] sm:$0xff] %vm5005_vm5, %v4673_v61  ;;  %v9843_v38 = vld [vmem:[#allocation75_spill] sm:$0xff]  ;;  %v4785_v11 = vsel %vm4616_vm4, %v4544_v33, -inf  ;;  %v9865_v33 = vld [vmem:[#allocation38_spill] sm:$0xff]  ;;  %v4549_v0 = vadd.f32 %v9866_v28, %v3781_v25 }
 0x58f   : > { %v3777_v61 = vmul.f32 %v9843_v38, %v8791_v40  ;;  %v3846_v20 = vmul.f32 %v9865_v33, %v9864_v48 }
 0x590   : > { %4765 = vmax.xlane.f32.xlu0 %v4764_v21  ;;  %4780 = vmax.xlane.f32.xlu1 %v4779_v59  ;;  %v4547_v21 = vadd.f32 %v9844_v26, %v3779_v3  ;;  %v9867_v3 = vld [vmem:[#allocation179_spill] sm:$0xff] }
 0x591   : > { %v4862_v9 = vpop.xlane.xlu0 %4861  ;;  %v4877_v44 = vpop.xlane.xlu1 %4876  ;;  %v4545_v59 = vadd.f32 %v9846_v8, %v3777_v61  ;;  %v4806_v61 = vsel %vm4616_vm4, %v4551_v35, -inf  ;;  %v4800_v8 = vsel %vm4616_vm4, %v4549_v0, -inf }
 0x592   : > { %5087 = vst.msk [vmem:[%s8891_s17 + $0x288] sm:$0xff] %vm5005_vm5, %v4862_v9  ;;  %5092 = vst.msk [vmem:[%s8891_s17 + $0x2b0] sm:$0xff] %vm5005_vm5, %v4877_v44  ;;  %v9847_v9 = vld [vmem:[#allocation99_spill] sm:$0xff]  ;;  %v4794_v51 = vsel %vm4616_vm4, %v4547_v21, -inf  ;;  %v4614_v21 = vadd.f32 %v8884_v14, %v3846_v20  ;;  %v9873_v14 = vld [vmem:[#allocation145_spill] sm:$0xff] }
 0x593   : > { %v9848_v44 = vld [vmem:[#allocation143_spill] sm:$0xff] }
 0x594   : > { %4969 = vmax.xlane.f32.xlu0 %v4968_v1  ;;  %4984 = vmax.xlane.f32.xlu1 %v4983_v6  ;;  %v3845_v55 = vmul.f32 %v9848_v44, %v9847_v9  ;;  %v9851_v1 = vld [vmem:[#allocation80_spill] sm:$0xff] }
 0x595   : > { %v4667_v49 = vpop.xlane.xlu1 %4666  ;;  %v4676_v29 = vpop.xlane.xlu0 %4675  ;;  %v3780_v56 = vmul.f32 %v9851_v1, %v9850_v30  ;;  %v4995_v1 = vsel %vm4616_vm4, %v4614_v21, -inf }
 0x596   : > { %5022 = vst.msk [vmem:[%s8891_s17 + $0x80] sm:$0xff] %vm5005_vm5, %v4667_v49  ;;  %5025 = vst.msk [vmem:[%s8891_s17 + $0x98] sm:$0xff] %vm5005_vm5, %v4676_v29  ;;  %v4613_v6 = vadd.f32 %v9852_v12, %v3845_v55  ;;  %v4788_v49 = vsel %vm4616_vm4, %v4545_v59, -inf  ;;  %v9853_v29 = vld [vmem:[#allocation175_spill] sm:$0xff] }
 0x597   : > { %v4548_v46 = vadd.f32 %v9853_v29, %v3780_v56  ;;  %v9874_v55 = vld [vmem:[#allocation147_spill] sm:$0xff] }
 0x598   : > { %4774 = vmax.xlane.f32.xlu1 %v4773_v54  ;;  %4783 = vmax.xlane.f32.xlu0 %v4782_v4  ;;  %v3786_v54 = vmul.f32 %v9857_v39, %v9856_v36  ;;  %v4803_v4 = vsel %vm4616_vm4, %v4550_v63, -inf  ;;  %v4992_v50 = vsel %vm4616_vm4, %v4613_v6, -inf  ;;  %v3847_v5 = vmul.f32 %v9874_v55, %v9873_v14  ;;  %v9875_v63 = vld [vmem:[#allocation182_spill] sm:$0xff] }
 0x599   : > { %v4871_v17 = vpop.xlane.xlu1 %4870  ;;  %v4880_v34 = vpop.xlane.xlu0 %4879 }
 0x59a   : > { %5090 = vst.msk [vmem:[%s8891_s17 + $0x2a0] sm:$0xff] %vm5005_vm5, %v4871_v17  ;;  %5093 = vst.msk [vmem:[%s8891_s17 + $0x2b8] sm:$0xff] %vm5005_vm5, %v4880_v34  ;;  %v4554_v13 = vadd.f32 %v9861_v22, %v3786_v54 }
 0x59c   : > { %4978 = vmax.xlane.f32.xlu1 %v4977_v7  ;;  %4987 = vmax.xlane.f32.xlu0 %v4986_v24  ;;  %v9862_v7 = vld [vmem:[#allocation104_spill] sm:$0xff] }
 0x59d   : > { %v4670_v47 = vpop.xlane.xlu0 %4669  ;;  %v4685_v19 = vpop.xlane.xlu1 %4684  ;;  %v9863_v24 = vld [vmem:[#allocation84_spill] sm:$0xff] }
 0x59e   : > { %5023 = vst.msk [vmem:[%s8891_s17 + $0x88] sm:$0xff] %vm5005_vm5, %v4670_v47  ;;  %5028 = vst.msk [vmem:[%s8891_s17 + $0xb0] sm:$0xff] %vm5005_vm5, %v4685_v19  ;;  %v3784_v47 = vmul.f32 %v9863_v24, %v9862_v7  ;;  %v4797_v19 = vsel %vm4616_vm4, %v4548_v46, -inf }
 0x5a0   : > { %4777 = vmax.xlane.f32.xlu0 %v4776_v37  ;;  %4792 = vmax.xlane.f32.xlu1 %v4791_v45  ;;  %v4552_v45 = vadd.f32 %v9867_v3, %v3784_v47 }
 0x5a1   : > { %v4874_v42 = vpop.xlane.xlu0 %4873  ;;  %v4889_v53 = vpop.xlane.xlu1 %4888 }
 0x5a2   : > { %5091 = vst.msk [vmem:[%s8891_s17 + $0x2a8] sm:$0xff] %vm5005_vm5, %v4874_v42  ;;  %5096 = vst.msk [vmem:[%s8891_s17 + $0x2d0] sm:$0xff] %vm5005_vm5, %v4889_v53  ;;  %v9868_v42 = vld [vmem:[#allocation85_spill] sm:$0xff]  ;;  %v4809_v59 = vsel %vm4616_vm4, %v4552_v45, -inf }
 0x5a3   : > { %v9869_v53 = vld [vmem:[#allocation149_spill] sm:$0xff] }
 0x5a4   : > { %4981 = vmax.xlane.f32.xlu0 %v4980_v43  ;;  %4786 = vmax.xlane.f32.xlu1 %v4785_v11  ;;  %v3787_v38 = vmul.f32 %v9869_v53, %v9868_v42  ;;  %v4815_v43 = vsel %vm4616_vm4, %v4554_v13, -inf  ;;  %v9871_v11 = vld [vmem:[#allocation105_spill] sm:$0xff] }
 0x5a5   : > { %v4679_v58 = vpop.xlane.xlu1 %4678  ;;  %v4688_v40 = vpop.xlane.xlu0 %4687 }
 0x5a6   : > { %5026 = vst.msk [vmem:[%s8891_s17 + $0xa0] sm:$0xff] %vm5005_vm5, %v4679_v58  ;;  %5029 = vst.msk [vmem:[%s8891_s17 + $0xb8] sm:$0xff] %vm5005_vm5, %v4688_v40  ;;  %v4555_v52 = vadd.f32 %v9870_v16, %v3787_v38  ;;  %v9872_v58 = vld [vmem:[#allocation83_spill] sm:$0xff] }
 0x5a7   : > { %v3785_v40 = vmul.f32 %v9872_v58, %v9871_v11 }
 0x5a8   : > { %4990 = vmax.xlane.f32.xlu1 %v4989_v32  ;;  %4795 = vmax.xlane.f32.xlu0 %v4794_v51  ;;  %v4818_v56 = vsel %vm4616_vm4, %v4555_v52, -inf }
 0x5a9   : > { %v4883_v27 = vpop.xlane.xlu1 %4882  ;;  %v4892_v18 = vpop.xlane.xlu0 %4891  ;;  %v4553_v30 = vadd.f32 %v9875_v63, %v3785_v40 }
 0x5aa   : > { %5094 = vst.msk [vmem:[%s8891_s17 + $0x2c0] sm:$0xff] %vm5005_vm5, %v4883_v27  ;;  %5097 = vst.msk [vmem:[%s8891_s17 + $0x2d8] sm:$0xff] %vm5005_vm5, %v4892_v18  ;;  %v4615_v27 = vadd.f32 %v8882_v10, %v3847_v5 }
 0x5ab   : > { %v4812_v18 = vsel %vm4616_vm4, %v4553_v30, -inf }
 0x5ac   : > { %4789 = vmax.xlane.f32.xlu0 %v4788_v49  ;;  %4804 = vmax.xlane.f32.xlu1 %v4803_v4  ;;  %v4998_v49 = vsel %vm4616_vm4, %v4615_v27, -inf }
 0x5ad   : > { %v4682_v17 = vpop.xlane.xlu0 %4681  ;;  %v4697_v34 = vpop.xlane.xlu1 %4696 }
 0x5ae   : > { %5027 = vst.msk [vmem:[%s8891_s17 + $0xa8] sm:$0xff] %vm5005_vm5, %v4682_v17  ;;  %5032 = vst.msk [vmem:[%s8891_s17 + $0xd0] sm:$0xff] %vm5005_vm5, %v4697_v34 }
 0x5b0   : > { %4993 = vmax.xlane.f32.xlu0 %v4992_v50  ;;  %4798 = vmax.xlane.f32.xlu1 %v4797_v19 }
 0x5b1   : > { %v4886_v31 = vpop.xlane.xlu0 %4885  ;;  %v4901_v37 = vpop.xlane.xlu1 %4900 }
 0x5b2   : > { %5095 = vst.msk [vmem:[%s8891_s17 + $0x2c8] sm:$0xff] %vm5005_vm5, %v4886_v31  ;;  %5100 = vst.msk [vmem:[%s8891_s17 + $0x2f0] sm:$0xff] %vm5005_vm5, %v4901_v37 }
 0x5b4   : > { %4807 = vmax.xlane.f32.xlu0 %v4806_v61  ;;  %4816 = vmax.xlane.f32.xlu1 %v4815_v43 }
 0x5b5   : > { %v4691_v62 = vpop.xlane.xlu1 %4690  ;;  %v4700_v26 = vpop.xlane.xlu0 %4699 }
 0x5b6   : > { %5030 = vst.msk [vmem:[%s8891_s17 + $0xc0] sm:$0xff] %vm5005_vm5, %v4691_v62  ;;  %5033 = vst.msk [vmem:[%s8891_s17 + $0xd8] sm:$0xff] %vm5005_vm5, %v4700_v26 }
 0x5b8   : > { %4801 = vmax.xlane.f32.xlu0 %v4800_v8  ;;  %4810 = vmax.xlane.f32.xlu1 %v4809_v59 }
 0x5b9   : > { %v4895_v9 = vpop.xlane.xlu1 %4894  ;;  %v4904_v44 = vpop.xlane.xlu0 %4903 }
 0x5ba   : > { %5098 = vst.msk [vmem:[%s8891_s17 + $0x2e0] sm:$0xff] %vm5005_vm5, %v4895_v9  ;;  %5101 = vst.msk [vmem:[%s8891_s17 + $0x2f8] sm:$0xff] %vm5005_vm5, %v4904_v44 }
 0x5bc   : > { %4996 = vmax.xlane.f32.xlu1 %v4995_v1  ;;  %4819 = vmax.xlane.f32.xlu0 %v4818_v56 }
 0x5bd   : > { %v4694_v32 = vpop.xlane.xlu0 %4693  ;;  %v4709_v51 = vpop.xlane.xlu1 %4708 }
 0x5be   : > { %5031 = vst.msk [vmem:[%s8891_s17 + $0xc8] sm:$0xff] %vm5005_vm5, %v4694_v32  ;;  %5036 = vst.msk [vmem:[%s8891_s17 + $0xf0] sm:$0xff] %vm5005_vm5, %v4709_v51 }
 0x5c0   : > { %4813 = vmax.xlane.f32.xlu0 %v4812_v18 }
 0x5c1   : > { %v4898_v12 = vpop.xlane.xlu0 %4897  ;;  %v4913_v6 = vpop.xlane.xlu1 %4912 }
 0x5c2   : > { %5099 = vst.msk [vmem:[%s8891_s17 + $0x2e8] sm:$0xff] %vm5005_vm5, %v4898_v12  ;;  %5104 = vst.msk [vmem:[%s8891_s17 + $0x310] sm:$0xff] %vm5005_vm5, %v4913_v6 }
 0x5c4   : > { %4999 = vmax.xlane.f32.xlu0 %v4998_v49 }
 0x5c5   : > { %v4703_v29 = vpop.xlane.xlu1 %4702  ;;  %v4712_v46 = vpop.xlane.xlu0 %4711 }
 0x5c6   : > { %5034 = vst.msk [vmem:[%s8891_s17 + $0xe0] sm:$0xff] %vm5005_vm5, %v4703_v29  ;;  %5037 = vst.msk [vmem:[%s8891_s17 + $0xf8] sm:$0xff] %vm5005_vm5, %v4712_v46 }
 0x5c9   : > { %v4907_v10 = vpop.xlane.xlu1 %4906  ;;  %v4916_v23 = vpop.xlane.xlu0 %4915 }
 0x5ca   : > { %5102 = vst.msk [vmem:[%s8891_s17 + $0x300] sm:$0xff] %vm5005_vm5, %v4907_v10  ;;  %5105 = vst.msk [vmem:[%s8891_s17 + $0x318] sm:$0xff] %vm5005_vm5, %v4916_v23 }
 0x5cd   : > { %v4706_v57 = vpop.xlane.xlu0 %4705  ;;  %v4721_v60 = vpop.xlane.xlu1 %4720 }
 0x5ce   : > { %5035 = vst.msk [vmem:[%s8891_s17 + $0xe8] sm:$0xff] %vm5005_vm5, %v4706_v57  ;;  %5040 = vst.msk [vmem:[%s8891_s17 + $0x110] sm:$0xff] %vm5005_vm5, %v4721_v60 }
 0x5d1   : > { %v4910_v36 = vpop.xlane.xlu0 %4909  ;;  %v4925_v39 = vpop.xlane.xlu1 %4924 }
 0x5d2   : > { %5103 = vst.msk [vmem:[%s8891_s17 + $0x308] sm:$0xff] %vm5005_vm5, %v4910_v36  ;;  %5108 = vst.msk [vmem:[%s8891_s17 + $0x330] sm:$0xff] %vm5005_vm5, %v4925_v39 }
 0x5d5   : > { %v4715_v54 = vpop.xlane.xlu1 %4714  ;;  %v4724_v4 = vpop.xlane.xlu0 %4723 }
 0x5d6   : > { %5038 = vst.msk [vmem:[%s8891_s17 + $0x100] sm:$0xff] %vm5005_vm5, %v4715_v54  ;;  %5041 = vst.msk [vmem:[%s8891_s17 + $0x118] sm:$0xff] %vm5005_vm5, %v4724_v4 }
 0x5d9   : > { %v4919_v17 = vpop.xlane.xlu1 %4918  ;;  %v4928_v34 = vpop.xlane.xlu0 %4927 }
 0x5da   : > { %5106 = vst.msk [vmem:[%s8891_s17 + $0x320] sm:$0xff] %vm5005_vm5, %v4919_v17  ;;  %5109 = vst.msk [vmem:[%s8891_s17 + $0x338] sm:$0xff] %vm5005_vm5, %v4928_v34 }
 0x5dd   : > { %v4718_v2 = vpop.xlane.xlu0 %4717  ;;  %v4733_v41 = vpop.xlane.xlu1 %4732 }
 0x5de   : > { %5039 = vst.msk [vmem:[%s8891_s17 + $0x108] sm:$0xff] %vm5005_vm5, %v4718_v2  ;;  %5044 = vst.msk [vmem:[%s8891_s17 + $0x130] sm:$0xff] %vm5005_vm5, %v4733_v41 }
 0x5e1   : > { %v4922_v25 = vpop.xlane.xlu0 %4921  ;;  %v4937_v50 = vpop.xlane.xlu1 %4936 }
 0x5e2   : > { %5107 = vst.msk [vmem:[%s8891_s17 + $0x328] sm:$0xff] %vm5005_vm5, %v4922_v25  ;;  %5112 = vst.msk [vmem:[%s8891_s17 + $0x350] sm:$0xff] %vm5005_vm5, %v4937_v50 }
 0x5e5   : > { %v4727_v15 = vpop.xlane.xlu1 %4726  ;;  %v4736_v35 = vpop.xlane.xlu0 %4735 }
 0x5e6   : > { %5042 = vst.msk [vmem:[%s8891_s17 + $0x120] sm:$0xff] %vm5005_vm5, %v4727_v15  ;;  %5045 = vst.msk [vmem:[%s8891_s17 + $0x138] sm:$0xff] %vm5005_vm5, %v4736_v35 }
 0x5e9   : > { %v4931_v22 = vpop.xlane.xlu1 %4930  ;;  %v4940_v13 = vpop.xlane.xlu0 %4939 }
 0x5ea   : > { %5110 = vst.msk [vmem:[%s8891_s17 + $0x340] sm:$0xff] %vm5005_vm5, %v4931_v22  ;;  %5113 = vst.msk [vmem:[%s8891_s17 + $0x358] sm:$0xff] %vm5005_vm5, %v4940_v13 }
 0x5ed   : > { %v4730_v7 = vpop.xlane.xlu0 %4729  ;;  %v4745_v24 = vpop.xlane.xlu1 %4744 }
 0x5ee   : > { %5043 = vst.msk [vmem:[%s8891_s17 + $0x128] sm:$0xff] %vm5005_vm5, %v4730_v7  ;;  %5048 = vst.msk [vmem:[%s8891_s17 + $0x150] sm:$0xff] %vm5005_vm5, %v4745_v24 }
 0x5f1   : > { %v4934_v47 = vpop.xlane.xlu0 %4933  ;;  %v4949_v19 = vpop.xlane.xlu1 %4948 }
 0x5f2   : > { %5111 = vst.msk [vmem:[%s8891_s17 + $0x348] sm:$0xff] %vm5005_vm5, %v4934_v47  ;;  %5116 = vst.msk [vmem:[%s8891_s17 + $0x370] sm:$0xff] %vm5005_vm5, %v4949_v19 }
 0x5f5   : > { %v4739_v31 = vpop.xlane.xlu1 %4738  ;;  %v4748_v37 = vpop.xlane.xlu0 %4747 }
 0x5f6   : > { %5046 = vst.msk [vmem:[%s8891_s17 + $0x140] sm:$0xff] %vm5005_vm5, %v4739_v31  ;;  %5049 = vst.msk [vmem:[%s8891_s17 + $0x158] sm:$0xff] %vm5005_vm5, %v4748_v37 }
 0x5f9   : > { %v4943_v48 = vpop.xlane.xlu1 %4942  ;;  %v4952_v33 = vpop.xlane.xlu0 %4951 }
 0x5fa   : > { %5114 = vst.msk [vmem:[%s8891_s17 + $0x360] sm:$0xff] %vm5005_vm5, %v4943_v48  ;;  %5117 = vst.msk [vmem:[%s8891_s17 + $0x378] sm:$0xff] %vm5005_vm5, %v4952_v33 }
 0x5fd   : > { %v4742_v20 = vpop.xlane.xlu0 %4741  ;;  %v4757_v28 = vpop.xlane.xlu1 %4756 }
 0x5fe   : > { %5047 = vst.msk [vmem:[%s8891_s17 + $0x148] sm:$0xff] %vm5005_vm5, %v4742_v20  ;;  %5052 = vst.msk [vmem:[%s8891_s17 + $0x170] sm:$0xff] %vm5005_vm5, %v4757_v28 }
 0x601   : > { %v4946_v0 = vpop.xlane.xlu0 %4945  ;;  %v4961_v3 = vpop.xlane.xlu1 %4960 }
 0x602   : > { %5115 = vst.msk [vmem:[%s8891_s17 + $0x368] sm:$0xff] %vm5005_vm5, %v4946_v0  ;;  %5120 = vst.msk [vmem:[%s8891_s17 + $0x390] sm:$0xff] %vm5005_vm5, %v4961_v3 }
 0x605   : > { %v4751_v45 = vpop.xlane.xlu1 %4750  ;;  %v4760_v42 = vpop.xlane.xlu0 %4759 }
 0x606   : > { %5050 = vst.msk [vmem:[%s8891_s17 + $0x160] sm:$0xff] %vm5005_vm5, %v4751_v45  ;;  %5053 = vst.msk [vmem:[%s8891_s17 + $0x178] sm:$0xff] %vm5005_vm5, %v4760_v42 }
 0x609   : > { %v4955_v53 = vpop.xlane.xlu1 %4954  ;;  %v4964_v38 = vpop.xlane.xlu0 %4963 }
 0x60a   : > { %5118 = vst.msk [vmem:[%s8891_s17 + $0x380] sm:$0xff] %vm5005_vm5, %v4955_v53  ;;  %5121 = vst.msk [vmem:[%s8891_s17 + $0x398] sm:$0xff] %vm5005_vm5, %v4964_v38 }
 0x60d   : > { %v4754_v61 = vpop.xlane.xlu0 %4753  ;;  %v4769_v43 = vpop.xlane.xlu1 %4768 }
 0x60e   : > { %5051 = vst.msk [vmem:[%s8891_s17 + $0x168] sm:$0xff] %vm5005_vm5, %v4754_v61  ;;  %5056 = vst.msk [vmem:[%s8891_s17 + $0x190] sm:$0xff] %vm5005_vm5, %v4769_v43 }
 0x611   : > { %v4958_v62 = vpop.xlane.xlu0 %4957  ;;  %v4973_v26 = vpop.xlane.xlu1 %4972 }
 0x612   : > { %5119 = vst.msk [vmem:[%s8891_s17 + $0x388] sm:$0xff] %vm5005_vm5, %v4958_v62  ;;  %5124 = vst.msk [vmem:[%s8891_s17 + $0x3b0] sm:$0xff] %vm5005_vm5, %v4973_v26 }
 0x615   : > { %v4763_v21 = vpop.xlane.xlu1 %4762  ;;  %v4772_v16 = vpop.xlane.xlu0 %4771 }
 0x616   : > { %5054 = vst.msk [vmem:[%s8891_s17 + $0x180] sm:$0xff] %vm5005_vm5, %v4763_v21  ;;  %5057 = vst.msk [vmem:[%s8891_s17 + $0x198] sm:$0xff] %vm5005_vm5, %v4772_v16 }
 0x619   : > { %v4967_v52 = vpop.xlane.xlu1 %4966  ;;  %v4976_v11 = vpop.xlane.xlu0 %4975 }
 0x61a   : > { %5122 = vst.msk [vmem:[%s8891_s17 + $0x3a0] sm:$0xff] %vm5005_vm5, %v4967_v52  ;;  %5125 = vst.msk [vmem:[%s8891_s17 + $0x3b8] sm:$0xff] %vm5005_vm5, %v4976_v11 }
 0x61d   : > { %v4766_v58 = vpop.xlane.xlu0 %4765  ;;  %v4781_v40 = vpop.xlane.xlu1 %4780 }
 0x61e   : > { %5055 = vst.msk [vmem:[%s8891_s17 + $0x188] sm:$0xff] %vm5005_vm5, %v4766_v58  ;;  %5060 = vst.msk [vmem:[%s8891_s17 + $0x1b0] sm:$0xff] %vm5005_vm5, %v4781_v40 }
 0x621   : > { %v4970_v8 = vpop.xlane.xlu0 %4969  ;;  %v4985_v59 = vpop.xlane.xlu1 %4984 }
 0x622   : > { %5123 = vst.msk [vmem:[%s8891_s17 + $0x3a8] sm:$0xff] %vm5005_vm5, %v4970_v8  ;;  %5128 = vst.msk [vmem:[%s8891_s17 + $0x3d0] sm:$0xff] %vm5005_vm5, %v4985_v59 }
 0x625   : > { %v4775_v9 = vpop.xlane.xlu1 %4774  ;;  %v4784_v44 = vpop.xlane.xlu0 %4783 }
 0x626   : > { %5058 = vst.msk [vmem:[%s8891_s17 + $0x1a0] sm:$0xff] %vm5005_vm5, %v4775_v9  ;;  %5061 = vst.msk [vmem:[%s8891_s17 + $0x1b8] sm:$0xff] %vm5005_vm5, %v4784_v44 }
 0x629   : > { %v4979_v14 = vpop.xlane.xlu1 %4978  ;;  %v4988_v55 = vpop.xlane.xlu0 %4987 }
 0x62a   : > { %5126 = vst.msk [vmem:[%s8891_s17 + $0x3c0] sm:$0xff] %vm5005_vm5, %v4979_v14  ;;  %5129 = vst.msk [vmem:[%s8891_s17 + $0x3d8] sm:$0xff] %vm5005_vm5, %v4988_v55 }
 0x62d   : > { %v4778_v5 = vpop.xlane.xlu0 %4777  ;;  %v4793_v63 = vpop.xlane.xlu1 %4792 }
 0x62e   : > { %5059 = vst.msk [vmem:[%s8891_s17 + $0x1a8] sm:$0xff] %vm5005_vm5, %v4778_v5  ;;  %5064 = vst.msk [vmem:[%s8891_s17 + $0x1d0] sm:$0xff] %vm5005_vm5, %v4793_v63 }
 0x631   : > { %v4982_v30 = vpop.xlane.xlu0 %4981  ;;  %v4787_v1 = vpop.xlane.xlu1 %4786 }
 0x632   : > { %5127 = vst.msk [vmem:[%s8891_s17 + $0x3c8] sm:$0xff] %vm5005_vm5, %v4982_v30  ;;  %5062 = vst.msk [vmem:[%s8891_s17 + $0x1c0] sm:$0xff] %vm5005_vm5, %v4787_v1 }
 0x635   : > { %v4991_v56 = vpop.xlane.xlu1 %4990  ;;  %v4796_v32 = vpop.xlane.xlu0 %4795 }
 0x636   : > { %5130 = vst.msk [vmem:[%s8891_s17 + $0x3e0] sm:$0xff] %vm5005_vm5, %v4991_v56  ;;  %5065 = vst.msk [vmem:[%s8891_s17 + $0x1d8] sm:$0xff] %vm5005_vm5, %v4796_v32 }
 0x639   : > { %v4790_v51 = vpop.xlane.xlu0 %4789  ;;  %v4805_v27 = vpop.xlane.xlu1 %4804 }
 0x63a   : > { %5063 = vst.msk [vmem:[%s8891_s17 + $0x1c8] sm:$0xff] %vm5005_vm5, %v4790_v51  ;;  %5068 = vst.msk [vmem:[%s8891_s17 + $0x1f0] sm:$0xff] %vm5005_vm5, %v4805_v27 }
 0x63d   : > { %v4994_v18 = vpop.xlane.xlu0 %4993  ;;  %v4799_v12 = vpop.xlane.xlu1 %4798 }
 0x63e   : > { %5131 = vst.msk [vmem:[%s8891_s17 + $0x3e8] sm:$0xff] %vm5005_vm5, %v4994_v18  ;;  %5066 = vst.msk [vmem:[%s8891_s17 + $0x1e0] sm:$0xff] %vm5005_vm5, %v4799_v12 }
 0x641   : > { %v4808_v6 = vpop.xlane.xlu0 %4807  ;;  %v4817_v49 = vpop.xlane.xlu1 %4816 }
 0x642   : > { %5069 = vst.msk [vmem:[%s8891_s17 + $0x1f8] sm:$0xff] %vm5005_vm5, %v4808_v6  ;;  %5072 = vst.msk [vmem:[%s8891_s17 + $0x210] sm:$0xff] %vm5005_vm5, %v4817_v49 }
 0x645   : > { %v4802_v29 = vpop.xlane.xlu0 %4801  ;;  %v4811_v46 = vpop.xlane.xlu1 %4810 }
 0x646   : > { %5067 = vst.msk [vmem:[%s8891_s17 + $0x1e8] sm:$0xff] %vm5005_vm5, %v4802_v29  ;;  %5070 = vst.msk [vmem:[%s8891_s17 + $0x200] sm:$0xff] %vm5005_vm5, %v4811_v46 }
 0x649   : > { %v4997_v10 = vpop.xlane.xlu1 %4996  ;;  %v4820_v23 = vpop.xlane.xlu0 %4819 }
 0x64a   : > { %5132 = vst.msk [vmem:[%s8891_s17 + $0x3f0] sm:$0xff] %vm5005_vm5, %v4997_v10  ;;  %5073 = vst.msk [vmem:[%s8891_s17 + $0x218] sm:$0xff] %vm5005_vm5, %v4820_v23 }
 0x64d   : > { %v4814_v57 = vpop.xlane.xlu0 %4813 }
 0x64e   : > { %5071 = vst.msk [vmem:[%s8891_s17 + $0x208] sm:$0xff] %vm5005_vm5, %v4814_v57 }
 0x651   : > { %v5000_v60 = vpop.xlane.xlu0 %4999 }
 0x652   : > { %5133 = vst.msk [vmem:[%s8891_s17 + $0x3f8] sm:$0xff] %vm5005_vm5, %v5000_v60 }
 0x653 PF: > { %s9876_s24 = sld [smem:[#allocation3_spill]]  ;;  %s9878_s25 = sld [smem:[#allocation4_spill]] }
 0x659   : > { %s28_s26 = sadd.s32 1, %s9876_s24   ;;  %s9877_s24 = sld [smem:[#allocation2_spill]] }
 0x65a   : > { %p25_p5 = scmp.ge.s32.totalorder %s28_s26, 4  }
 0x65c   :  { %27 = sbr.rel (!%p25_p5) target bundleno = 5 (0x5), region = 137 }

</bundles_post_ra>
